<compile_context>
chip_gen: v6e
topology: v6e:2x2x1
jax: 0.10.0
libtpu: 0.0.40
codegen_flags: <defaults>
</compile_context>

<pallas_src>
import jax
import jax.numpy as jnp
from jax import lax
from jax.experimental import pallas as pl
from jax.experimental.pallas import tpu as pltpu

SELU_ALPHA = 1.6732632423543772
SELU_SCALE = 1.0507009873554805


def _selu(x):
    return SELU_SCALE * jnp.where(x > 0, x, SELU_ALPHA * (jnp.exp(x) - 1.0))


def cleave_head_kernel(xpad_ref, wflat_ref, bconv_ref, w1_ref, b1_ref,
                       w2_ref, b2_ref, out_ref, z_ref):
    """One batch element per grid step.

    xpad_ref : (1, Lp, Cin)  bf16  zero-padded encoder features (Lp >= L+K-1)
    wflat_ref: (Cin, K*Cout) bf16  conv weight, flattened tap-major on lanes
    bconv_ref: (1, Cout)     f32
    w1_ref   : (Cout, Cout)  bf16  MLP linear 1
    b1_ref   : (1, Cout)     f32
    w2_ref   : (1, Cout)     f32   MLP linear 2 (row vector)
    b2_ref   : (1, 1)        f32
    out_ref  : (1, 1, L)     f32   sigmoid predictions (lane-dense row)
    z_ref    : (Lp, K*Cout)  f32   VMEM scratch for the wide conv matmul
    """
    L = out_ref.shape[2]
    cout = w1_ref.shape[0]
    K = wflat_ref.shape[1] // cout

    # ---- Conv1d as ONE wide MXU matmul (bf16 in, f32 accumulate) ---------
    z_ref[...] = jnp.dot(xpad_ref[0], wflat_ref[...],
                         preferred_element_type=jnp.float32)

    # ---- shift-add over the K taps (static unroll; VPU adds only) --------
    acc = jnp.broadcast_to(bconv_ref[...], (L, cout)).astype(jnp.float32)
    for k in range(K):                                   # K is compile-time
        acc = acc + z_ref[pl.ds(k, L), pl.ds(k * cout, cout)]

    # ---- SELU (Dropout is identity at inference), f32 elementwise --------
    x = _selu(acc)                                        # (L, Cout)

    # ---- MLP: Linear -> SELU -> Linear -> Sigmoid -------------------------
    h1 = _selu(jnp.dot(x.astype(jnp.bfloat16), w1_ref[...],
                       preferred_element_type=jnp.float32)
               + b1_ref[...])                             # (L, Cout) f32

    # Lane-dense logit row: (1, Cout) @ (Cout, L) -> (1, L); the transpose is
    # fused into the matmul (standard q @ k.T pattern).
    logit = (jnp.dot(w2_ref[...], h1.T, preferred_element_type=jnp.float32)
             + b2_ref[...])                               # (1, L)
    out_ref[0] = jax.nn.sigmoid(logit)                    # single wide store


def cleave_egnn_forward(h, params):
    """h: [B, L, 512] encoder output.  Returns preds [B, L]."""
    B, L, Cin = h.shape
    wconv = params["wconv"]        # (K, Cin, Cout)  (tap-major; note: PyTorch
    K, _, Cout = wconv.shape       #  Conv1d stores (Cout, Cin, K) -> transpose
    pad = K // 2                   #  when importing real weights)
    Lp = L + K - 1
    Lp_pad = ((Lp + 7) // 8) * 8   # round the padded length up to 8 sublanes

    # Zero-pad the sequence axis and cast to bf16 in one XLA glue pass.
    h_pad = jnp.pad(
        h, ((0, 0), (pad, pad + (Lp_pad - Lp)), (0, 0))).astype(jnp.bfloat16)

    # Flatten conv weights tap-major along lanes: (Cin, K*Cout), bf16.
    wflat = jnp.transpose(wconv, (1, 0, 2)).reshape(Cin, K * Cout)
    wflat = wflat.astype(jnp.bfloat16)
    bconv = params["bconv"].reshape(1, Cout).astype(jnp.float32)
    w1 = params["w1"].astype(jnp.bfloat16)                       # (Cout, Cout)
    b1 = params["b1"].reshape(1, Cout).astype(jnp.float32)
    w2 = params["w2"].reshape(1, Cout).astype(jnp.float32)       # row vector
    b2 = params["b2"].reshape(1, 1).astype(jnp.float32)

    out = pl.pallas_call(
        cleave_head_kernel,
        out_shape=jax.ShapeDtypeStruct((B, 1, L), jnp.float32),
        grid_spec=pltpu.PrefetchScalarGridSpec(
            num_scalar_prefetch=0,
            grid=(B,),                     # >=2 parallel steps -> both v7x TCs
            in_specs=[
                pl.BlockSpec((1, Lp_pad, Cin), lambda b: (b, 0, 0)),  # h_pad
                pl.BlockSpec((Cin, K * Cout), lambda b: (0, 0)),      # Wflat
                pl.BlockSpec((1, Cout), lambda b: (0, 0)),            # conv b
                pl.BlockSpec((Cout, Cout), lambda b: (0, 0)),         # W1
                pl.BlockSpec((1, Cout), lambda b: (0, 0)),            # b1
                pl.BlockSpec((1, Cout), lambda b: (0, 0)),            # W2 row
                pl.BlockSpec((1, 1), lambda b: (0, 0)),               # b2
            ],
            out_specs=pl.BlockSpec((1, 1, L), lambda b: (b, 0, 0)),
            scratch_shapes=[pltpu.VMEM((Lp_pad, K * Cout), jnp.float32)],
        ),
        compiler_params=pltpu.CompilerParams(
            dimension_semantics=("parallel",),
            vmem_limit_bytes=32 * 1024 * 1024,   # valid on v7x (64 MiB VMEM)
        ),
    )(h_pad, wflat, bconv, w1, b1, w2, b2)

    return out[:, 0, :]   # -> [B, L]


def reference_forward(h, params):
    """Pure-JAX f32 reference of the same math (sanity check)."""
    B, L, Cin = h.shape
    wconv = params["wconv"]
    K, _, Cout = wconv.shape
    pad = K // 2
    h_pad = jnp.pad(h, ((0, 0), (pad, pad), (0, 0)))
    conv = jnp.broadcast_to(params["bconv"], (B, L, Cout)).astype(jnp.float32)
    for k in range(K):
        conv = conv + jnp.einsum("blc,co->blo", h_pad[:, k:k + L, :], wconv[k])
    x = _selu(conv)
    h1 = _selu(jnp.einsum("blc,co->blo", x, params["w1"]) + params["b1"])
    logit = jnp.einsum("blc,co->blo", h1, params["w2"]) + params["b2"]
    return jax.nn.sigmoid(logit)[..., 0]


def init_params(key, cin=512, conv_channels=128, kernel_size=31):
    ks = jax.random.split(key, 6)
    wconv = 0.02 * jax.random.normal(ks[0], (kernel_size, cin, conv_channels),
                                     jnp.float32)
    bconv = 0.01 * jax.random.normal(ks[1], (conv_channels,), jnp.float32)
    w1 = 0.05 * jax.random.normal(ks[2], (conv_channels, conv_channels),
                                  jnp.float32)
    b1 = 0.01 * jax.random.normal(ks[3], (conv_channels,), jnp.float32)
    w2 = 0.05 * jax.random.normal(ks[4], (conv_channels, 1), jnp.float32)
    b2 = 0.01 * jax.random.normal(ks[5], (1,), jnp.float32)
    return dict(wconv=wconv, bconv=bconv, w1=w1, b1=b1, w2=w2, b2=b2)


if __name__ == "__main__":
    key = jax.random.PRNGKey(0)
    k_h, k_p = jax.random.split(key)

    B, L, C = 2, 64, 512          # batch, sequence length, EGNN feature dim
    # Stand-in for the EGNN encoder output h = egnn(seqs, coords): [B, L, 512]
    h = jax.random.normal(k_h, (B, L, C), jnp.float32)

    params = init_params(k_p, cin=C, conv_channels=128, kernel_size=31)

    preds = jax.block_until_ready(cleave_egnn_forward(h, params))
    ref = jax.block_until_ready(reference_forward(h, params))

    assert preds.shape == (B, L)
    err = float(jnp.max(jnp.abs(preds - ref)))
    # bf16 matmul operands (f32 accumulation) vs f32 reference -> loose tol.
    assert err < 2e-2, f"mismatch vs JAX reference: {err}"

    print("KERNEL_OK")
</pallas_src>

<mosaic_0001>
module attributes {stable_mosaic.version = 11 : i64} {
  func.func @cleave_head_kernel(%arg0: i32, %arg1: memref<1x96x512xbf16, #tpu.memory_space<vmem>>, %arg2: memref<512x3968xbf16, #tpu.memory_space<vmem>>, %arg3: memref<1x128xf32, #tpu.memory_space<vmem>>, %arg4: memref<128x128xbf16, #tpu.memory_space<vmem>>, %arg5: memref<1x128xf32, #tpu.memory_space<vmem>>, %arg6: memref<1x128xf32, #tpu.memory_space<vmem>>, %arg7: memref<1x1xf32, #tpu.memory_space<vmem>>, %arg8: memref<1x1x64xf32, #tpu.memory_space<vmem>>, %arg9: memref<96x3968xf32, #tpu.memory_space<vmem>>) attributes {dimension_semantics = [#tpu.dimension_semantics<parallel>], iteration_bounds = array<i64: 2>, scalar_prefetch = 0 : i64, scratch_operands = 1 : i64, tpu.core_type = #tpu.core_type<tc>, window_params = [{transform_indices = @transform_0, window_bounds = array<i64: 1, 96, 512>}, {pipeline_mode = #tpu.pipeline_mode<synchronous>, transform_indices = @transform_1, window_bounds = array<i64: 512, 3968>}, {pipeline_mode = #tpu.pipeline_mode<synchronous>, transform_indices = @transform_2, window_bounds = array<i64: 1, 128>}, {pipeline_mode = #tpu.pipeline_mode<synchronous>, transform_indices = @transform_3, window_bounds = array<i64: 128, 128>}, {pipeline_mode = #tpu.pipeline_mode<synchronous>, transform_indices = @transform_4, window_bounds = array<i64: 1, 128>}, {pipeline_mode = #tpu.pipeline_mode<synchronous>, transform_indices = @transform_5, window_bounds = array<i64: 1, 128>}, {pipeline_mode = #tpu.pipeline_mode<synchronous>, transform_indices = @transform_6, window_bounds = array<i64: 1, 1>}, {transform_indices = @transform_7, window_bounds = array<i64: 1, 1, 64>}]} {
    %c0 = arith.constant 0 : index
    %c0_0 = arith.constant 0 : index
    %c0_1 = arith.constant 0 : index
    %0 = vector.load %arg1[%c0, %c0_0, %c0_1] : memref<1x96x512xbf16, #tpu.memory_space<vmem>>, vector<1x96x512xbf16>
    %1 = vector.shape_cast %0 : vector<1x96x512xbf16> to vector<96x512xbf16>
    %c0_2 = arith.constant 0 : index
    %c0_3 = arith.constant 0 : index
    %2 = vector.load %arg2[%c0_2, %c0_3] : memref<512x3968xbf16, #tpu.memory_space<vmem>>, vector<512x3968xbf16>
    %cst = arith.constant dense<0.000000e+00> : vector<96x3968xf32>
    %3 = tpu.matmul %1, %2, %cst {dimension_numbers = #tpu.dot_dimension_numbers<[1], [0], [0], [1], [0, 0, 1, 1], [], []>} : vector<96x512xbf16>, vector<512x3968xbf16>, vector<96x3968xf32> -> vector<96x3968xf32>
    %c0_4 = arith.constant 0 : index
    %c0_5 = arith.constant 0 : index
    %4 = vector.load %arg9[%c0_4, %c0_5] : memref<96x3968xf32, #tpu.memory_space<vmem>>, vector<96x3968xf32>
    tpu.vector_store %arg9[%c0_4, %c0_5], %3 {strides = array<i32>} : memref<96x3968xf32, #tpu.memory_space<vmem>>, vector<96x3968xf32>,
    %c0_6 = arith.constant 0 : index
    %c0_7 = arith.constant 0 : index
    %5 = vector.load %arg3[%c0_6, %c0_7] : memref<1x128xf32, #tpu.memory_space<vmem>>, vector<1x128xf32>
    %6 = vector.shape_cast %5 : vector<1x128xf32> to vector<1x128xf32>
    %7 = vector.broadcast %6 : vector<1x128xf32> to vector<64x128xf32>
    %c0_8 = arith.constant 0 : index
    %c0_9 = arith.constant 0 : index
    %8 = vector.load %arg9[%c0_8, %c0_9] : memref<96x3968xf32, #tpu.memory_space<vmem>>, vector<64x128xf32>
    %9 = arith.addf %7, %8 : vector<64x128xf32>
    %c1 = arith.constant 1 : index
    %c128 = arith.constant 128 : index
    %10 = vector.load %arg9[%c1, %c128] : memref<96x3968xf32, #tpu.memory_space<vmem>>, vector<64x128xf32>
    %11 = arith.addf %9, %10 : vector<64x128xf32>
    %c2 = arith.constant 2 : index
    %c256 = arith.constant 256 : index
    %12 = vector.load %arg9[%c2, %c256] : memref<96x3968xf32, #tpu.memory_space<vmem>>, vector<64x128xf32>
    %13 = arith.addf %11, %12 : vector<64x128xf32>
    %c3 = arith.constant 3 : index
    %c384 = arith.constant 384 : index
    %14 = vector.load %arg9[%c3, %c384] : memref<96x3968xf32, #tpu.memory_space<vmem>>, vector<64x128xf32>
    %15 = arith.addf %13, %14 : vector<64x128xf32>
    %c4 = arith.constant 4 : index
    %c512 = arith.constant 512 : index
    %16 = vector.load %arg9[%c4, %c512] : memref<96x3968xf32, #tpu.memory_space<vmem>>, vector<64x128xf32>
    %17 = arith.addf %15, %16 : vector<64x128xf32>
    %c5 = arith.constant 5 : index
    %c640 = arith.constant 640 : index
    %18 = vector.load %arg9[%c5, %c640] : memref<96x3968xf32, #tpu.memory_space<vmem>>, vector<64x128xf32>
    %19 = arith.addf %17, %18 : vector<64x128xf32>
    %c6 = arith.constant 6 : index
    %c768 = arith.constant 768 : index
    %20 = vector.load %arg9[%c6, %c768] : memref<96x3968xf32, #tpu.memory_space<vmem>>, vector<64x128xf32>
    %21 = arith.addf %19, %20 : vector<64x128xf32>
    %c7 = arith.constant 7 : index
    %c896 = arith.constant 896 : index
    %22 = vector.load %arg9[%c7, %c896] : memref<96x3968xf32, #tpu.memory_space<vmem>>, vector<64x128xf32>
    %23 = arith.addf %21, %22 : vector<64x128xf32>
    %c8 = arith.constant 8 : index
    %c1024 = arith.constant 1024 : index
    %24 = vector.load %arg9[%c8, %c1024] : memref<96x3968xf32, #tpu.memory_space<vmem>>, vector<64x128xf32>
    %25 = arith.addf %23, %24 : vector<64x128xf32>
    %c9 = arith.constant 9 : index
    %c1152 = arith.constant 1152 : index
    %26 = vector.load %arg9[%c9, %c1152] : memref<96x3968xf32, #tpu.memory_space<vmem>>, vector<64x128xf32>
    %27 = arith.addf %25, %26 : vector<64x128xf32>
    %c10 = arith.constant 10 : index
    %c1280 = arith.constant 1280 : index
    %28 = vector.load %arg9[%c10, %c1280] : memref<96x3968xf32, #tpu.memory_space<vmem>>, vector<64x128xf32>
    %29 = arith.addf %27, %28 : vector<64x128xf32>
    %c11 = arith.constant 11 : index
    %c1408 = arith.constant 1408 : index
    %30 = vector.load %arg9[%c11, %c1408] : memref<96x3968xf32, #tpu.memory_space<vmem>>, vector<64x128xf32>
    %31 = arith.addf %29, %30 : vector<64x128xf32>
    %c12 = arith.constant 12 : index
    %c1536 = arith.constant 1536 : index
    %32 = vector.load %arg9[%c12, %c1536] : memref<96x3968xf32, #tpu.memory_space<vmem>>, vector<64x128xf32>
    %33 = arith.addf %31, %32 : vector<64x128xf32>
    %c13 = arith.constant 13 : index
    %c1664 = arith.constant 1664 : index
    %34 = vector.load %arg9[%c13, %c1664] : memref<96x3968xf32, #tpu.memory_space<vmem>>, vector<64x128xf32>
    %35 = arith.addf %33, %34 : vector<64x128xf32>
    %c14 = arith.constant 14 : index
    %c1792 = arith.constant 1792 : index
    %36 = vector.load %arg9[%c14, %c1792] : memref<96x3968xf32, #tpu.memory_space<vmem>>, vector<64x128xf32>
    %37 = arith.addf %35, %36 : vector<64x128xf32>
    %c15 = arith.constant 15 : index
    %c1920 = arith.constant 1920 : index
    %38 = vector.load %arg9[%c15, %c1920] : memref<96x3968xf32, #tpu.memory_space<vmem>>, vector<64x128xf32>
    %39 = arith.addf %37, %38 : vector<64x128xf32>
    %c16 = arith.constant 16 : index
    %c2048 = arith.constant 2048 : index
    %40 = vector.load %arg9[%c16, %c2048] : memref<96x3968xf32, #tpu.memory_space<vmem>>, vector<64x128xf32>
    %41 = arith.addf %39, %40 : vector<64x128xf32>
    %c17 = arith.constant 17 : index
    %c2176 = arith.constant 2176 : index
    %42 = vector.load %arg9[%c17, %c2176] : memref<96x3968xf32, #tpu.memory_space<vmem>>, vector<64x128xf32>
    %43 = arith.addf %41, %42 : vector<64x128xf32>
    %c18 = arith.constant 18 : index
    %c2304 = arith.constant 2304 : index
    %44 = vector.load %arg9[%c18, %c2304] : memref<96x3968xf32, #tpu.memory_space<vmem>>, vector<64x128xf32>
    %45 = arith.addf %43, %44 : vector<64x128xf32>
    %c19 = arith.constant 19 : index
    %c2432 = arith.constant 2432 : index
    %46 = vector.load %arg9[%c19, %c2432] : memref<96x3968xf32, #tpu.memory_space<vmem>>, vector<64x128xf32>
    %47 = arith.addf %45, %46 : vector<64x128xf32>
    %c20 = arith.constant 20 : index
    %c2560 = arith.constant 2560 : index
    %48 = vector.load %arg9[%c20, %c2560] : memref<96x3968xf32, #tpu.memory_space<vmem>>, vector<64x128xf32>
    %49 = arith.addf %47, %48 : vector<64x128xf32>
    %c21 = arith.constant 21 : index
    %c2688 = arith.constant 2688 : index
    %50 = vector.load %arg9[%c21, %c2688] : memref<96x3968xf32, #tpu.memory_space<vmem>>, vector<64x128xf32>
    %51 = arith.addf %49, %50 : vector<64x128xf32>
    %c22 = arith.constant 22 : index
    %c2816 = arith.constant 2816 : index
    %52 = vector.load %arg9[%c22, %c2816] : memref<96x3968xf32, #tpu.memory_space<vmem>>, vector<64x128xf32>
    %53 = arith.addf %51, %52 : vector<64x128xf32>
    %c23 = arith.constant 23 : index
    %c2944 = arith.constant 2944 : index
    %54 = vector.load %arg9[%c23, %c2944] : memref<96x3968xf32, #tpu.memory_space<vmem>>, vector<64x128xf32>
    %55 = arith.addf %53, %54 : vector<64x128xf32>
    %c24 = arith.constant 24 : index
    %c3072 = arith.constant 3072 : index
    %56 = vector.load %arg9[%c24, %c3072] : memref<96x3968xf32, #tpu.memory_space<vmem>>, vector<64x128xf32>
    %57 = arith.addf %55, %56 : vector<64x128xf32>
    %c25 = arith.constant 25 : index
    %c3200 = arith.constant 3200 : index
    %58 = vector.load %arg9[%c25, %c3200] : memref<96x3968xf32, #tpu.memory_space<vmem>>, vector<64x128xf32>
    %59 = arith.addf %57, %58 : vector<64x128xf32>
    %c26 = arith.constant 26 : index
    %c3328 = arith.constant 3328 : index
    %60 = vector.load %arg9[%c26, %c3328] : memref<96x3968xf32, #tpu.memory_space<vmem>>, vector<64x128xf32>
    %61 = arith.addf %59, %60 : vector<64x128xf32>
    %c27 = arith.constant 27 : index
    %c3456 = arith.constant 3456 : index
    %62 = vector.load %arg9[%c27, %c3456] : memref<96x3968xf32, #tpu.memory_space<vmem>>, vector<64x128xf32>
    %63 = arith.addf %61, %62 : vector<64x128xf32>
    %c28 = arith.constant 28 : index
    %c3584 = arith.constant 3584 : index
    %64 = vector.load %arg9[%c28, %c3584] : memref<96x3968xf32, #tpu.memory_space<vmem>>, vector<64x128xf32>
    %65 = arith.addf %63, %64 : vector<64x128xf32>
    %c29 = arith.constant 29 : index
    %c3712 = arith.constant 3712 : index
    %66 = vector.load %arg9[%c29, %c3712] : memref<96x3968xf32, #tpu.memory_space<vmem>>, vector<64x128xf32>
    %67 = arith.addf %65, %66 : vector<64x128xf32>
    %c30 = arith.constant 30 : index
    %c3840 = arith.constant 3840 : index
    %68 = vector.load %arg9[%c30, %c3840] : memref<96x3968xf32, #tpu.memory_space<vmem>>, vector<64x128xf32>
    %69 = arith.addf %67, %68 : vector<64x128xf32>
    %cst_10 = arith.constant 0.000000e+00 : f32
    %70 = vector.broadcast %cst_10 : f32 to vector<64x128xf32>
    %71 = arith.cmpf ogt, %69, %70 : vector<64x128xf32>
    %72 = math.exp %69 : vector<64x128xf32>
    %cst_11 = arith.constant 1.000000e+00 : f32
    %73 = vector.broadcast %cst_11 : f32 to vector<64x128xf32>
    %74 = arith.subf %72, %73 : vector<64x128xf32>
    %cst_12 = arith.constant 1.67326319 : f32
    %75 = vector.broadcast %cst_12 : f32 to vector<64x128xf32>
    %76 = arith.mulf %75, %74 : vector<64x128xf32>
    %77 = arith.select %71, %69, %76 : vector<64x128xi1>, vector<64x128xf32>
    %cst_13 = arith.constant 1.05070102 : f32
    %78 = vector.broadcast %cst_13 : f32 to vector<64x128xf32>
    %79 = arith.mulf %78, %77 : vector<64x128xf32>
    %80 = arith.truncf %79 : vector<64x128xf32> to vector<64x128xbf16>
    %c0_14 = arith.constant 0 : index
    %c0_15 = arith.constant 0 : index
    %81 = vector.load %arg4[%c0_14, %c0_15] : memref<128x128xbf16, #tpu.memory_space<vmem>>, vector<128x128xbf16>
    %cst_16 = arith.constant dense<0.000000e+00> : vector<64x128xf32>
    %82 = tpu.matmul %80, %81, %cst_16 {dimension_numbers = #tpu.dot_dimension_numbers<[1], [0], [0], [1], [0, 0, 1, 1], [], []>} : vector<64x128xbf16>, vector<128x128xbf16>, vector<64x128xf32> -> vector<64x128xf32>
    %c0_17 = arith.constant 0 : index
    %c0_18 = arith.constant 0 : index
    %83 = vector.load %arg5[%c0_17, %c0_18] : memref<1x128xf32, #tpu.memory_space<vmem>>, vector<1x128xf32>
    %84 = vector.broadcast %83 : vector<1x128xf32> to vector<64x128xf32>
    %85 = arith.addf %82, %84 : vector<64x128xf32>
    %cst_19 = arith.constant 0.000000e+00 : f32
    %86 = vector.broadcast %cst_19 : f32 to vector<64x128xf32>
    %87 = arith.cmpf ogt, %85, %86 : vector<64x128xf32>
    %88 = math.exp %85 : vector<64x128xf32>
    %cst_20 = arith.constant 1.000000e+00 : f32
    %89 = vector.broadcast %cst_20 : f32 to vector<64x128xf32>
    %90 = arith.subf %88, %89 : vector<64x128xf32>
    %cst_21 = arith.constant 1.67326319 : f32
    %91 = vector.broadcast %cst_21 : f32 to vector<64x128xf32>
    %92 = arith.mulf %91, %90 : vector<64x128xf32>
    %93 = arith.select %87, %85, %92 : vector<64x128xi1>, vector<64x128xf32>
    %cst_22 = arith.constant 1.05070102 : f32
    %94 = vector.broadcast %cst_22 : f32 to vector<64x128xf32>
    %95 = arith.mulf %94, %93 : vector<64x128xf32>
    %c0_23 = arith.constant 0 : index
    %c0_24 = arith.constant 0 : index
    %96 = vector.load %arg6[%c0_23, %c0_24] : memref<1x128xf32, #tpu.memory_space<vmem>>, vector<1x128xf32>
    %97 = tpu.transpose %95, [1, 0] : vector<64x128xf32> -> vector<128x64xf32>
    %cst_25 = arith.constant dense<0.000000e+00> : vector<1x64xf32>
    %98 = tpu.matmul %96, %97, %cst_25 {dimension_numbers = #tpu.dot_dimension_numbers<[1], [0], [0], [1], [0, 0, 1, 1], [], []>} : vector<1x128xf32>, vector<128x64xf32>, vector<1x64xf32> -> vector<1x64xf32>
    %c0_26 = arith.constant 0 : index
    %c0_27 = arith.constant 0 : index
    %99 = vector.load %arg7[%c0_26, %c0_27] : memref<1x1xf32, #tpu.memory_space<vmem>>, vector<1x1xf32>
    %100 = vector.broadcast %99 : vector<1x1xf32> to vector<1x64xf32>
    %101 = arith.addf %98, %100 : vector<1x64xf32>
    %102 = arith.negf %101 : vector<1x64xf32>
    %103 = math.exp %102 : vector<1x64xf32>
    %cst_28 = arith.constant 1.000000e+00 : f32
    %104 = vector.broadcast %cst_28 : f32 to vector<1x64xf32>
    %105 = arith.addf %104, %103 : vector<1x64xf32>
    %106 = arith.divf %104, %105 : vector<1x64xf32>
    %c0_29 = arith.constant 0 : index
    %c0_30 = arith.constant 0 : index
    %c0_31 = arith.constant 0 : index
    %107 = vector.load %arg8[%c0_29, %c0_30, %c0_31] : memref<1x1x64xf32, #tpu.memory_space<vmem>>, vector<1x1x64xf32>
    %108 = vector.shape_cast %107 : vector<1x1x64xf32> to vector<1x64xf32>
    %109 = vector.shape_cast %106 : vector<1x64xf32> to vector<1x1x64xf32>
    tpu.vector_store %arg8[%c0_29, %c0_30, %c0_31], %109 {strides = array<i32>} : memref<1x1x64xf32, #tpu.memory_space<vmem>>, vector<1x1x64xf32>,
    return
  }
  func.func @transform_0(%arg0: i32) -> (i32, i32, i32) {
    %c0_i32 = arith.constant 0 : i32
    %c0_i32_0 = arith.constant 0 : i32
    %c0_i32_1 = arith.constant 0 : i32
    return %arg0, %c0_i32, %c0_i32_0 : i32, i32, i32
  }
  func.func @transform_1(%arg0: i32) -> (i32, i32) {
    %c0_i32 = arith.constant 0 : i32
    %c0_i32_0 = arith.constant 0 : i32
    %c0_i32_1 = arith.constant 0 : i32
    return %c0_i32, %c0_i32_0 : i32, i32
  }
  func.func @transform_2(%arg0: i32) -> (i32, i32) {
    %c0_i32 = arith.constant 0 : i32
    %c0_i32_0 = arith.constant 0 : i32
    %c0_i32_1 = arith.constant 0 : i32
    return %c0_i32, %c0_i32_0 : i32, i32
  }
  func.func @transform_3(%arg0: i32) -> (i32, i32) {
    %c0_i32 = arith.constant 0 : i32
    %c0_i32_0 = arith.constant 0 : i32
    %c0_i32_1 = arith.constant 0 : i32
    return %c0_i32, %c0_i32_0 : i32, i32
  }
  func.func @transform_4(%arg0: i32) -> (i32, i32) {
    %c0_i32 = arith.constant 0 : i32
    %c0_i32_0 = arith.constant 0 : i32
    %c0_i32_1 = arith.constant 0 : i32
    return %c0_i32, %c0_i32_0 : i32, i32
  }
  func.func @transform_5(%arg0: i32) -> (i32, i32) {
    %c0_i32 = arith.constant 0 : i32
    %c0_i32_0 = arith.constant 0 : i32
    %c0_i32_1 = arith.constant 0 : i32
    return %c0_i32, %c0_i32_0 : i32, i32
  }
  func.func @transform_6(%arg0: i32) -> (i32, i32) {
    %c0_i32 = arith.constant 0 : i32
    %c0_i32_0 = arith.constant 0 : i32
    %c0_i32_1 = arith.constant 0 : i32
    return %c0_i32, %c0_i32_0 : i32, i32
  }
  func.func @transform_7(%arg0: i32) -> (i32, i32, i32) {
    %c0_i32 = arith.constant 0 : i32
    %c0_i32_0 = arith.constant 0 : i32
    %c0_i32_1 = arith.constant 0 : i32
    return %arg0, %c0_i32, %c0_i32_0 : i32, i32, i32
  }
}

</mosaic_0001>

<bundles_post_ra>
// kernel: tpu_custom_call.1
= control target key start
LH: loop header
LB: loop body
LE: loop exit
PB: predicated region body
PF: predicated region fallthrough
CT: control target
= control target key end

     0   :  { %s17158_s0 = inlined_call_operand.hbm [shape: bf16[2,96,512], index: 0, kind: input, shape index: {}]   ;;  %s17159_s1 = inlined_call_operand.hbm [shape: bf16[512,3968], index: 1, kind: input, shape index: {}]   ;;  %s17160_s2 = inlined_call_operand.hbm [shape: f32[1,128], index: 2, kind: input, shape index: {}]   ;;  %s17161_s3 = inlined_call_operand.hbm [shape: bf16[128,128], index: 3, kind: input, shape index: {}]   ;;  %s17162_s4 = inlined_call_operand.hbm [shape: f32[1,128], index: 4, kind: input, shape index: {}]   ;;  %s17163_s5 = inlined_call_operand.hbm [shape: f32[1,128], index: 5, kind: input, shape index: {}]   ;;  %s17164_s6 = inlined_call_operand.<no memory space> [shape: f32[1,1], index: 6, kind: input, shape index: {}]   ;;  %s17165_s7 = inlined_call_operand.hbm [shape: f32[2,1,64], index: 7, kind: output, shape index: {}]  }
   0x1   :  { %v12_v0 = vstv %s17164_s6 }
   0x2   :  { %13 = vst [vmem:[#allocation3] sm:$0x1] %v12_v0 }
   0x3   :  { %14 = vsyncpa [#allocation5], 0 }
   0x4   :  { %16 = vsyncpa [#allocation5 + $0x1], 0 }
   0x5   :  { %17 = vsyncpa [#allocation8], 0 }
   0x6   :  { %18 = vsyncpa [#allocation11], 0 }
   0x7   :  { %19 = vsyncpa [#allocation14], 0 }
   0x8   :  { %20 = vsyncpa [#allocation6], 0 }
   0x9   :  { %22 = vsyncpa [#allocation6 + $0x1], 0  ;;  %s15125_s26 = smov 0   ;;  %s15127_s27 = smov 0  }
   0xa   :  { %s15129_s28 = smov 0   ;;  %s15131_s29 = smov 0  }
   0xb LB: > { %s15066_s6 = smov [#allocation7]   ;;  %s15146_s8 = sadd.s32 4294967295, %s15064_s29   ;;  %s15064_s29 = sphi %s15131_s29, %s17192_s29   ;;  %s15060_s28 = sphi %s15129_s28, %s17191_s28   ;;  %s15056_s27 = sphi %s15127_s27, %s17190_s27   ;;  %s15052_s26 = sphi %s15125_s26, %s17189_s26  }
   0xc   : > { %s223_s30 = sshll.u32 %s15066_s6, 4  ;;  %p11774_p0 = scmp.ge.s32.totalorder %s15064_s29, 1  ;;  %s224_s30 = int_to_ptr.vmem [resolvable:$true] %s223_s30 }
   0xd   : > { %p17166_p1 = scmp.eq.s32.totalorder %s15146_s8, 0  ;;  %p211_p2 = scmp.lt.s32.totalorder %s15064_s29, 3 }
   0xe   : > { %s15067_s10 = smov [#allocation10]   ;;  %s15068_s13 = smov [#allocation9]  }
   0xf   : > { %p15151_p3 = pnand %p11774_p0, %p211_p2  ;;  %s247_s11 = sshll.u32 %s15067_s10, 4  ;;  %s15164_s11 = int_to_ptr.vmem [resolvable:$true] %s247_s11 }
  0x10   : > { %s15166_s14 = sshll.u32 %s15068_s13, 4  ;;  %s14841_s16 = scalar_lea.vmem %s224_s30, 126976  ;;  %s238_s14 = int_to_ptr.vmem [resolvable:$true] %s15166_s14 }
  0x11   : > { %s17170_s9 = scalar_select %p15151_p3, 1, 0 }
  0x12   : > { %p13029_p5 = pneg %p15151_p3  ;;  %p14842_p8 = scmp.ne.s32.totalorder %s224_s30, %s14841_s16 }
  0x13   : > { %p14849_p11 = scmp.lt.s32.totalorder %s224_s30, %s224_s30  ;;  %p14850_p12 = scmp.lt.s32.totalorder %s14841_s16, %s14841_s16 }
  0x14   : > { %p15160_p6 = pnand %p13029_p5, %p17166_p1 }
  0x15   : > { %p14851_p13 = por %p14850_p12, %p14849_p11 }
  0x16   : > { %p15170_p7 = pneg %p15160_p6 }
  0x18   : > { %p14844_p9 = pnand %p14842_p8, %p15170_p7 }
  0x1a   : > { %p14845_p10 = pneg %p14844_p9 }
  0x1c   : > { %p14852_p0 = pnand %p14851_p13, %p14845_p10 }
  0x1e   : > { %14855 = shalt.err (!%p14852_p0)
}
  0x1f   : > { %s15069_s17 = smov 1984   ;;  %s15070_s18 = smov 124  }
  0x20   : > { %13032 = dma.hbm_to_vmem [thread:$0]  (!%p15160_p6), %s17159_s1, 126976, %s224_s30, [#allocation8], %s15069_s17, %s15069_s17, %s15070_s18  }
  0x21   : > { %s14867_s21 = scalar_lea.vmem %s15164_s11, 1024  ;;  %p14875_p9 = scmp.lt.s32.totalorder %s15164_s11, %s15164_s11 }
  0x22   : > { %p14868_p2 = scmp.ne.s32.totalorder %s15164_s11, %s14867_s21  ;;  %p14876_p10 = scmp.lt.s32.totalorder %s14867_s21, %s14867_s21 }
  0x24   : > { %p14870_p5 = pnand %p14868_p2, %p15170_p7  ;;  %p14877_p11 = por %p14876_p10, %p14875_p9 }
  0x26   : > { %p14871_p8 = pneg %p14870_p5 }
  0x28   : > { %p14878_p12 = pnand %p14877_p11, %p14871_p8 }
  0x2a   : > { %14881 = shalt.err (!%p14878_p12)
}
  0x2b   : > { %s15071_s22 = smov 64   ;;  %s15072_s23 = smov 4  }
  0x2c   : > { %13038 = dma.hbm_to_vmem [thread:$0]  (!%p15160_p6), %s17161_s3, 1024, %s15164_s11, [#allocation11], %s15071_s22, %s15071_s22, %s15072_s23  }
  0x2d   : > { %s14893_s6 = scalar_lea.vmem %s238_s14, 16  ;;  %s14900_s30 = scalar_lea.vmem %s238_s14, 32 }
  0x2e   : > { %p14894_p13 = scmp.ne.s32.totalorder %s238_s14, %s14893_s6  ;;  %p14901_p5 = scmp.lt.s32.totalorder %s238_s14, %s238_s14 }
  0x2f   : > { %p14902_p8 = scmp.lt.s32.totalorder %s14900_s30, %s14893_s6 }
  0x30   : > { %p14896_p0 = pnand %p14894_p13, %p15170_p7 }
  0x31   : > { %p14903_p9 = por %p14902_p8, %p14901_p5 }
  0x32   : > { %p14897_p2 = pneg %p14896_p0 }
  0x34   : > { %p14904_p10 = pnand %p14903_p9, %p14897_p2 }
  0x36   : > { %14907 = shalt.err (!%p14904_p10)
}
  0x37   : > { %13035 = dma.hbm_to_vmem [thread:$0]  (!%p15160_p6), %s17160_s2, 16, %s238_s14, [#allocation8]  }
  0x38   : > { %s15073_s11 = smov [#allocation12]   ;;  %s15074_s17 = smov [#allocation13]  }
  0x39   : > { %s261_s16 = sshll.u32 %s15073_s11, 4  ;;  %s272_s18 = sshll.u32 %s15074_s17, 4  ;;  %s262_s16 = int_to_ptr.vmem [resolvable:$true] %s261_s16  ;;  %s273_s18 = int_to_ptr.vmem [resolvable:$true] %s272_s18 }
  0x3a   : > { %s14919_s19 = scalar_lea.vmem %s262_s16, 16  ;;  %s14926_s20 = scalar_lea.vmem %s262_s16, 32 }
  0x3b   : > { %p14920_p11 = scmp.ne.s32.totalorder %s262_s16, %s14919_s19  ;;  %p14927_p0 = scmp.lt.s32.totalorder %s262_s16, %s262_s16 }
  0x3c   : > { %p14928_p2 = scmp.lt.s32.totalorder %s14926_s20, %s14919_s19 }
  0x3d   : > { %p14922_p12 = pnand %p14920_p11, %p15170_p7 }
  0x3e   : > { %p14929_p5 = por %p14928_p2, %p14927_p0 }
  0x3f   : > { %p14923_p13 = pneg %p14922_p12 }
  0x41   : > { %p14930_p8 = pnand %p14929_p5, %p14923_p13 }
  0x43   : > { %14933 = shalt.err (!%p14930_p8)
}
  0x44   : > { %13041 = dma.hbm_to_vmem [thread:$0]  (!%p15160_p6), %s17162_s4, 16, %s262_s16, [#allocation11]  }
  0x45   : > { %s14945_s22 = scalar_lea.vmem %s273_s18, 16  ;;  %s14952_s23 = scalar_lea.vmem %s273_s18, 32 }
  0x46   : > { %p14946_p9 = scmp.ne.s32.totalorder %s273_s18, %s14945_s22  ;;  %p14953_p12 = scmp.lt.s32.totalorder %s273_s18, %s273_s18 }
  0x47   : > { %p14954_p4 = scmp.lt.s32.totalorder %s14952_s23, %s14945_s22 }
  0x48   : > { %p14948_p10 = pnand %p14946_p9, %p15170_p7 }
  0x49   : > { %p14955_p1 = por %p14954_p4, %p14953_p12 }
  0x4a   : > { %p14949_p11 = pneg %p14948_p10 }
  0x4c   : > { %p14956_p0 = pnand %p14955_p1, %p14949_p11 }
  0x4e   : > { %14959 = shalt.err (!%p14956_p0)
}
  0x4f   : > { %13044 = dma.hbm_to_vmem [thread:$0]  (!%p15160_p6), %s17163_s5, 16, %s273_s18, [#allocation14]  }
  0x50   : > { %s11773_s15 = sadd.s32 4294967294, %s15064_s29   ;;  %s15217_s12 = sadd.s32 1, %s15064_s29  }
  0x51   : > { %s35_s6 = sadd.s32 1, %s15060_s28  ;;  %s32_s30 = ssub.s32 %s15064_s29, %s15217_s12 }
  0x52   : > { %p42_p1 = scmp.ne.s32.totalorder %s15060_s28, %s15056_s27  ;;  %p33_p4 = scmp.eq.s32.totalorder %s32_s30, 0 }
  0x53   : > { %p43_p7 = scmp.eq.s32.totalorder %s15064_s29, 0  ;;  %p48_p13 = scmp.ne.s32.totalorder %s15056_s27, %s15052_s26 }
  0x54   : > { %p198_p2 = scmp.eq.s32.totalorder %s15146_s8, 1  ;;  %p17173_p8 = scmp.eq.s32.totalorder %s15146_s8, 0 }
  0x55   : > { %s15229_s10 = scalar_select %p33_p4, %s15060_s28, %s35_s6  }
  0x56   : > { %p44_p5 = por %p43_p7, %p42_p1  ;;  %p15233_p9 = por %p17173_p8, %p48_p13 }
  0x57   : > { %p15237_p6 = por %p198_p2, %p42_p1  ;;  %p204_p10 = scmp.eq.s32.totalorder %s11773_s15, 1 }
  0x58   : > { %s17174_s13 = scalar_select %p15233_p9, 1, 0 }
  0x59   : > { %s17175_s11 = scalar_select %p15237_p6, 1, 0 }
  0x5a   : > { %p13058_p11 = scmp.lt.s32.totalorder %s15064_s29, 2  ;;  %s286_s16 = sand.u32 1, %s15060_s28  }
  0x5b   : > { %p15243_p12 = por %p204_p10, %p48_p13  ;;  %s13002_s18 = smul.u32 192, %s286_s16 }
  0x5c   : > { %p15247_p0 = pnand %p13058_p11, %p44_p5  ;;  %s13003_s20 = smul.u32 3072, %s15064_s29 }
  0x5d   : > { %s17176_s17 = scalar_select %p15243_p12, 1, 0 }
  0x5e   : > { %s15255_s22 = scalar_lea.hbm %s17158_s0, %s13003_s20  ;;  %s290_s23 = scalar_lea.vmem [#allocation4], %s13002_s18 }
  0x5f   : > { %s297_s24 = sshll.u32 %s290_s23, 4  ;;  %s15259_s25 = scalar_lea.sflag [#allocation5], %s286_s16  ;;  %s15257_s24 = int_to_ptr.vmem [resolvable:$true] %s297_s24 }
  0x60   : > { %s14960_s15 = scalar_lea.hbm %s15255_s22, 3072  ;;  %p14962_p4 = pneg %p15247_p0 }
  0x61   : > { %p14961_p1 = scmp.ne.s32.totalorder %s15255_s22, %s14960_s15  ;;  %s14965_s20 = scalar_lea.hbm %s17158_s0, 6144 }
  0x62   : > { %p14966_p2 = scmp.lt.s32.totalorder %s15255_s22, %s17158_s0  ;;  %p14967_p5 = scmp.lt.s32.totalorder %s14965_s20, %s14960_s15 }
  0x63   : > { %p14963_p7 = pnand %p14962_p4, %p14961_p1 }
  0x64   : > { %p14968_p8 = por %p14967_p5, %p14966_p2 }
  0x65   : > { %p14964_p13 = pneg %p14963_p7 }
  0x67   : > { %p14969_p10 = pnand %p14968_p8, %p14964_p13 }
  0x69   : > { %14972 = shalt.err (!%p14969_p10)
}
  0x6a   : > { %s14973_s16 = scalar_lea.vmem %s15257_s24, 3072  ;;  %s15075_s18 = smov [#allocation4]  }
  0x6b   : > { %p14974_p11 = scmp.ne.s32.totalorder %s15257_s24, %s14973_s16  ;;  %s14978_s23 = sshll.u32 %s15075_s18, 4  ;;  %s14979_s23 = int_to_ptr.vmem [resolvable:$false] %s14978_s23 }
  0x6c   : > { %s14980_s6 = scalar_lea.vmem %s14979_s23, 6144  ;;  %p14981_p7 = scmp.lt.s32.totalorder %s15257_s24, %s14979_s23 }
  0x6d   : > { %p14976_p12 = pnand %p14974_p11, %p14962_p4  ;;  %p14982_p6 = scmp.lt.s32.totalorder %s14980_s6, %s14973_s16 }
  0x6f   : > { %p14977_p1 = pneg %p14976_p12  ;;  %p14983_p9 = por %p14982_p6, %p14981_p7 }
  0x71   : > { %p14984_p3 = pnand %p14983_p9, %p14977_p1 }
  0x73   : > { %14987 = shalt.err (!%p14984_p3)
}
  0x74   : > { %s15076_s15 = smov 256   ;;  %s15077_s30 = smov 16  }
  0x75   : > { %13048 = dma.hbm_to_vmem [thread:$0]  (!%p15247_p0), %s15255_s22, 3072, %s15257_s24, %s15259_s25, %s15076_s15, %s15076_s15, %s15077_s30  }
  0x76   : > { %p17178_p4 = scmp.ne.s32.totalorder %s17170_s9, 0 }
  0x77   : > { %s15283_s20 = sand.u32 (!%p17178_p4), 1, %s15056_s27   ;;  %p17179_p3 = scmp.ne.s32.totalorder (!%p17178_p4), %s17174_s13, 0 }
  0x78   : > { %309 = sbr.rel (%p17178_p4) target bundleno = 1921 (0x781), region = 48  ;;  %s312_s14 = scalar_lea.sflag (!%p17178_p4), [#allocation5], %s15283_s20 }
  0x79   : > { %s13004_s21 = smul.u32 (!%p17178_p4), 192, %s15283_s20 }
  0x7b   : > { %s15287_s16 = scalar_lea.vmem (!%p17178_p4), [#allocation4], %s13004_s21 }
  0x7d   : > { %15031 = dma.done.wait (%p17179_p3), %s312_s14, 3072  }
  0x7e   : > { %15033 = vsyncadd (%p17179_p3), %s312_s14, 4294964224  ;;  %p17180_p9 = scmp.eq.s32.totalorder %s15146_s8, 0 }
  0x80   : > { %15035 = dma.done.wait (%p17180_p9), [#allocation8], 126992   ;;  %p17181_p6 = pmov %p17180_p9 }
  0x82   : > { %15037 = vsyncadd (%p17181_p6), [#allocation8], 4294840304  ;;  %p17182_p12 = pmov %p17181_p6 }
  0x83   : > { %p17183_p0 = pmov %p17181_p6 }
  0x84   : > { %15039 = dma.done.wait (%p17182_p12), [#allocation11], 1040  }
  0x85   : > { %15041 = vsyncadd (%p17183_p0), [#allocation11], 4294966256  ;;  %p17184_p13 = pmov %p17183_p0 }
  0x86   : > { %p17185_p2 = pmov %p17183_p0 }
  0x87   : > { %15043 = dma.done.wait (%p17184_p13), [#allocation14], 16  }
  0x88   : > { %15045 = vsyncadd (%p17185_p2), [#allocation14], 4294967280  ;;  %v13112_v1 = vld [vmem:[#allocation7 + $0x6cc] ss:$124 sps:$4 sm:$0xff]   ;;  %v13118_v5 = vld [vmem:[#allocation7 + $0x5d4] ss:$124 sps:$4 sm:$0xff]  }
  0x89   : > { %v13114_v2 = vld [vmem:[#allocation7 + $0x164c] ss:$124 sps:$4 sm:$0xff]   ;;  %6526 = vmatprep.subr.bf16.mxu0 %v13112_v1  ;;  %v13120_v6 = vld [vmem:[#allocation7 + $0x1554] ss:$124 sps:$4 sm:$0xff]   ;;  %v13124_v9 = vld [vmem:[#allocation7 + $0x4dc] ss:$124 sps:$4 sm:$0xff]  }
  0x8a   : > { %v13116_v3 = vld [vmem:[#allocation7 + $0x6c8] ss:$124 sps:$4 sm:$0xff]   ;;  %6619 = vmatprep.subr.bf16.mxu1 %v13114_v2  ;;  %v13122_v7 = vld [vmem:[#allocation7 + $0x5d0] ss:$124 sps:$4 sm:$0xff]   ;;  %v13126_v10 = vld [vmem:[#allocation7 + $0x145c] ss:$124 sps:$4 sm:$0xff]  }
  0x8b   : > { %v13117_v4 = vld [vmem:[#allocation7 + $0x1648] ss:$124 sps:$4 sm:$0xff]   ;;  %6527 = vmatpush1.bf16.msra.mxu0 %v13116_v3  ;;  %v13123_v8 = vld [vmem:[#allocation7 + $0x1550] ss:$124 sps:$4 sm:$0xff]   ;;  %v13128_v11 = vld [vmem:[#allocation7 + $0x4d8] ss:$124 sps:$4 sm:$0xff]  }
  0x8c   : > { %6620 = vmatpush1.bf16.msra.mxu1 %v13117_v4  ;;  %6528 = vmatprep.subr.bf16.mxu0 %v13118_v5  ;;  %v13129_v12 = vld [vmem:[#allocation7 + $0x1458] ss:$124 sps:$4 sm:$0xff]   ;;  %v13130_v13 = vld [vmem:[#allocation7 + $0x3e4] ss:$124 sps:$4 sm:$0xff]   ;;  %v13136_v17 = vld [vmem:[#allocation7 + $0x2ec] ss:$124 sps:$4 sm:$0xff]  }
  0x8d   : > { %6621 = vmatprep.subr.bf16.mxu1 %v13120_v6  ;;  %v13132_v14 = vld [vmem:[#allocation7 + $0x1364] ss:$124 sps:$4 sm:$0xff]   ;;  %v13138_v18 = vld [vmem:[#allocation7 + $0x126c] ss:$124 sps:$4 sm:$0xff]   ;;  %v13142_v21 = vld [vmem:[#allocation7 + $0x1f4] ss:$124 sps:$4 sm:$0xff]  }
  0x8e   : > { %v13134_v15 = vld [vmem:[#allocation7 + $0x3e0] ss:$124 sps:$4 sm:$0xff]   ;;  %v13140_v19 = vld [vmem:[#allocation7 + $0x2e8] ss:$124 sps:$4 sm:$0xff]   ;;  %v13144_v22 = vld [vmem:[#allocation7 + $0x1174] ss:$124 sps:$4 sm:$0xff]  }
  0x8f   : > { %6529 = vmatpush1.bf16.msra.mxu0 %v13122_v7  ;;  %v13135_v16 = vld [vmem:[#allocation7 + $0x1360] ss:$124 sps:$4 sm:$0xff]   ;;  %v13141_v20 = vld [vmem:[#allocation7 + $0x1268] ss:$124 sps:$4 sm:$0xff]   ;;  %v13146_v23 = vld [vmem:[#allocation7 + $0x1f0] ss:$124 sps:$4 sm:$0xff]  }
  0x90   : > { %6622 = vmatpush1.bf16.msra.mxu1 %v13123_v8  ;;  %6530 = vmatprep.subr.bf16.mxu0 %v13124_v9  ;;  %v13147_v24 = vld [vmem:[#allocation7 + $0x1170] ss:$124 sps:$4 sm:$0xff]   ;;  %v13148_v25 = vld [vmem:[#allocation7 + $0xfc] ss:$124 sps:$4 sm:$0xff]   ;;  %v13154_v29 = vld [vmem:[#allocation7 + $0x4] ss:$124 sps:$4 sm:$0xff]  }
  0x91   : > { %6623 = vmatprep.subr.bf16.mxu1 %v13126_v10  ;;  %v13150_v26 = vld [vmem:[#allocation7 + $0x107c] ss:$124 sps:$4 sm:$0xff]   ;;  %v13156_v30 = vld [vmem:[#allocation7 + $0xf84] ss:$124 sps:$4 sm:$0xff]   ;;  %v13160_v33 = vld [vmem:[#allocation7 + $0xe8c] ss:$124 sps:$4 sm:$0xff]  }
  0x92   : > { %v13152_v27 = vld [vmem:[#allocation7 + $0xf8] ss:$124 sps:$4 sm:$0xff]   ;;  %v13158_v31 = vld [vmem:[#allocation7] ss:$124 sps:$4 sm:$0xff]   ;;  %v13162_v34 = vld [vmem:[#allocation7 + $0x1e0c] ss:$124 sps:$4 sm:$0xff]  }
  0x93   : > { %6531 = vmatpush1.bf16.msra.mxu0 %v13128_v11  ;;  %v13153_v28 = vld [vmem:[#allocation7 + $0x1078] ss:$124 sps:$4 sm:$0xff]   ;;  %v13159_v32 = vld [vmem:[#allocation7 + $0xf80] ss:$124 sps:$4 sm:$0xff]   ;;  %v13164_v35 = vld [vmem:[#allocation7 + $0xe88] ss:$124 sps:$4 sm:$0xff]  }
  0x94   : > { %6624 = vmatpush1.bf16.msra.mxu1 %v13129_v12  ;;  %6532 = vmatprep.subr.bf16.mxu0 %v13130_v13  ;;  %v13165_v36 = vld [vmem:[#allocation7 + $0x1e08] ss:$124 sps:$4 sm:$0xff]   ;;  %v13166_v37 = vld [vmem:[#allocation7 + $0xd94] ss:$124 sps:$4 sm:$0xff]   ;;  %v13172_v41 = vld [vmem:[#allocation7 + $0xc9c] ss:$124 sps:$4 sm:$0xff]  }
  0x95   : > { %6625 = vmatprep.subr.bf16.mxu1 %v13132_v14  ;;  %v13168_v38 = vld [vmem:[#allocation7 + $0x1d14] ss:$124 sps:$4 sm:$0xff]   ;;  %v13174_v42 = vld [vmem:[#allocation7 + $0x1c1c] ss:$124 sps:$4 sm:$0xff]   ;;  %v13178_v45 = vld [vmem:[#allocation7 + $0xba4] ss:$124 sps:$4 sm:$0xff]  }
  0x96   : > { %v13170_v39 = vld [vmem:[#allocation7 + $0xd90] ss:$124 sps:$4 sm:$0xff]   ;;  %v13176_v43 = vld [vmem:[#allocation7 + $0xc98] ss:$124 sps:$4 sm:$0xff]   ;;  %v13180_v46 = vld [vmem:[#allocation7 + $0x1b24] ss:$124 sps:$4 sm:$0xff]  }
  0x97   : > { %6533 = vmatpush1.bf16.msra.mxu0 %v13134_v15  ;;  %v13171_v40 = vld [vmem:[#allocation7 + $0x1d10] ss:$124 sps:$4 sm:$0xff]   ;;  %v13177_v44 = vld [vmem:[#allocation7 + $0x1c18] ss:$124 sps:$4 sm:$0xff]   ;;  %v13182_v47 = vld [vmem:[#allocation7 + $0xba0] ss:$124 sps:$4 sm:$0xff]  }
  0x98   : > { %6626 = vmatpush1.bf16.msra.mxu1 %v13135_v16  ;;  %6534 = vmatprep.subr.bf16.mxu0 %v13136_v17  ;;  %v13183_v48 = vld [vmem:[#allocation7 + $0x1b20] ss:$124 sps:$4 sm:$0xff]   ;;  %v15306_v49 = vld [vmem:[%s15287_s16 + $0x4] ss:$16 sps:$4 sm:$0xff]   ;;  %v13184_v50 = vld [vmem:[#allocation7 + $0xaac] ss:$124 sps:$4 sm:$0xff]  }
  0x99   : > { %6627 = vmatprep.subr.bf16.mxu1 %v13138_v18  ;;  %v15309_v51 = vld [vmem:[%s15287_s16 + $0xc] ss:$16 sps:$4 sm:$0xff]   ;;  %6558 = vmatprep.mubr.bf16.mxu0 %v15306_v49  ;;  %v13188_v53 = vld [vmem:[#allocation7 + $0xaa8] ss:$124 sps:$4 sm:$0xff]   ;;  %v13190_v55 = vld [vmem:[#allocation7 + $0x9b4] ss:$124 sps:$4 sm:$0xff]  }
  0x9a   : > { %v13186_v52 = vld [vmem:[#allocation7 + $0x1a2c] ss:$124 sps:$4 sm:$0xff]   ;;  %6651 = vmatprep.mubr.bf16.mxu1 %v15309_v51  ;;  %v13192_v56 = vld [vmem:[#allocation7 + $0x1934] ss:$124 sps:$4 sm:$0xff]   ;;  %v13196_v59 = vld [vmem:[#allocation7 + $0x8bc] ss:$124 sps:$4 sm:$0xff]  }
  0x9b   : > { %6535 = vmatpush1.bf16.msra.mxu0 %v13140_v19  ;;  %v13189_v54 = vld [vmem:[#allocation7 + $0x1a28] ss:$124 sps:$4 sm:$0xff]   ;;  %v13194_v57 = vld [vmem:[#allocation7 + $0x9b0] ss:$124 sps:$4 sm:$0xff]   ;;  %v13198_v60 = vld [vmem:[#allocation7 + $0x183c] ss:$124 sps:$4 sm:$0xff]  }
  0x9c   : > { %6628 = vmatpush1.bf16.msra.mxu1 %v13141_v20  ;;  %6536 = vmatprep.subr.bf16.mxu0 %v13142_v21  ;;  %v13195_v58 = vld [vmem:[#allocation7 + $0x1930] ss:$124 sps:$4 sm:$0xff]   ;;  %v13200_v61 = vld [vmem:[#allocation7 + $0x8b8] ss:$124 sps:$4 sm:$0xff]   ;;  %v13202_v63 = vld [vmem:[#allocation7 + $0x7c4] ss:$124 sps:$4 sm:$0xff]  }
  0x9d   : > { %6629 = vmatprep.subr.bf16.mxu1 %v13144_v22  ;;  %v13201_v62 = vld [vmem:[#allocation7 + $0x1838] ss:$124 sps:$4 sm:$0xff]   ;;  %v13204_v0 = vld [vmem:[#allocation7 + $0x1744] ss:$124 sps:$4 sm:$0xff]   ;;  %v13214_v7 = vld [vmem:[#allocation7 + $0x6d0] ss:$124 sps:$4 sm:$0xff]  }
  0x9e   : > { %v13206_v1 = vld [vmem:[#allocation7 + $0x7c0] ss:$124 sps:$4 sm:$0xff]   ;;  %v13216_v3 = vld [vmem:[#allocation7 + $0x6d4] ss:$124 sps:$4 sm:$0xff]   ;;  %v15317_v6 = vld [vmem:[%s15287_s16 + $0x8] ss:$16 sps:$4 sm:$0xff]  }
  0x9f   : > { %6537 = vmatpush1.bf16.msra.mxu0 %v13146_v23  ;;  %v13207_v2 = vld [vmem:[#allocation7 + $0x1740] ss:$124 sps:$4 sm:$0xff]   ;;  %v13219_v4 = vld [vmem:[#allocation7 + $0x1654] ss:$124 sps:$4 sm:$0xff]   ;;  %v15333_v18 = vld [vmem:[%s15287_s16 + $0x28] ss:$16 sps:$4 sm:$0xff]  }
  0xa0   : > { %6630 = vmatpush1.bf16.msra.mxu1 %v13147_v24  ;;  %6538 = vmatprep.subr.bf16.mxu0 %v13148_v25  ;;  %v15314_v5 = vld [vmem:[%s15287_s16] ss:$16 sps:$4 sm:$0xff]   ;;  %v13222_v9 = vld [vmem:[#allocation7 + $0x5dc] ss:$124 sps:$4 sm:$0xff]   ;;  %v15320_v11 = vld [vmem:[%s15287_s16 + $0x24] ss:$16 sps:$4 sm:$0xff]  }
  0xa1   : > { %6631 = vmatprep.subr.bf16.mxu1 %v13150_v26  ;;  %v13217_v8 = vld [vmem:[#allocation7 + $0x1650] ss:$124 sps:$4 sm:$0xff]   ;;  %v13225_v10 = vld [vmem:[#allocation7 + $0x155c] ss:$124 sps:$4 sm:$0xff]   ;;  %v13234_v15 = vld [vmem:[#allocation7 + $0x4e4] ss:$124 sps:$4 sm:$0xff]  }
  0xa2   : > { %v15323_v12 = vld [vmem:[%s15287_s16 + $0x2c] ss:$16 sps:$4 sm:$0xff]   ;;  %v13220_v13 = vld [vmem:[#allocation7 + $0x5d8] ss:$124 sps:$4 sm:$0xff]   ;;  %v13237_v16 = vld [vmem:[#allocation7 + $0x1464] ss:$124 sps:$4 sm:$0xff]  }
  0xa3   : > { %6539 = vmatpush1.bf16.msra.mxu0 %v13152_v27  ;;  %v13223_v14 = vld [vmem:[#allocation7 + $0x1558] ss:$124 sps:$4 sm:$0xff]   ;;  %v15330_v17 = vld [vmem:[%s15287_s16 + $0x20] ss:$16 sps:$4 sm:$0xff]   ;;  %v13240_v21 = vld [vmem:[#allocation7 + $0x3ec] ss:$124 sps:$4 sm:$0xff]  }
  0xa4   : > { %6632 = vmatpush1.bf16.msra.mxu1 %v13153_v28  ;;  %6540 = vmatprep.subr.bf16.mxu0 %v13154_v29  ;;  %v13232_v19 = vld [vmem:[#allocation7 + $0x4e0] ss:$124 sps:$4 sm:$0xff]   ;;  %v13243_v22 = vld [vmem:[#allocation7 + $0x136c] ss:$124 sps:$4 sm:$0xff]   ;;  %v15336_v23 = vld [vmem:[%s15287_s16 + $0x44] ss:$16 sps:$4 sm:$0xff]  }
  0xa5   : > { %6633 = vmatprep.subr.bf16.mxu1 %v13156_v30  ;;  %v13235_v20 = vld [vmem:[#allocation7 + $0x1460] ss:$124 sps:$4 sm:$0xff]   ;;  %v13238_v25 = vld [vmem:[#allocation7 + $0x3e8] ss:$124 sps:$4 sm:$0xff]   ;;  %v13246_v27 = vld [vmem:[#allocation7 + $0x2f4] ss:$124 sps:$4 sm:$0xff]  }
  0xa6   : > { %v15339_v24 = vld [vmem:[%s15287_s16 + $0x4c] ss:$16 sps:$4 sm:$0xff]   ;;  %v13241_v26 = vld [vmem:[#allocation7 + $0x1368] ss:$124 sps:$4 sm:$0xff]   ;;  %v13249_v28 = vld [vmem:[#allocation7 + $0x1274] ss:$124 sps:$4 sm:$0xff]  }
  0xa7   : > { %6541 = vmatpush1.bf16.msra.mxu0 %v13158_v31  ;;  %v13244_v29 = vld [vmem:[#allocation7 + $0x2f0] ss:$124 sps:$4 sm:$0xff]   ;;  %vm9891_vm0 = vcmask 1046528   ;;  %vm9943_vm1 = vcmask 1045504   ;;  %vm9995_vm2 = vcmask 1044480   ;;  %vm10047_vm3 = vcmask 1043456  }
  0xa8   : > { %6634 = vmatpush1.bf16.msra.mxu1 %v13159_v32  ;;  %6542 = vmatprep.subr.bf16.mxu0 %v13160_v33  ;;  %v13247_v30 = vld [vmem:[#allocation7 + $0x1270] ss:$124 sps:$4 sm:$0xff]   ;;  %v15349_v32 = vld [vmem:[%s15287_s16 + $0x48] ss:$16 sps:$4 sm:$0xff]   ;;  %vm10099_vm4 = vcmask 1042432   ;;  %vm10151_vm5 = vcmask 1041408  }
  0xa9   : > { %6635 = vmatprep.subr.bf16.mxu1 %v13162_v34  ;;  %v15346_v31 = vld [vmem:[%s15287_s16 + $0x40] ss:$16 sps:$4 sm:$0xff]   ;;  %v13252_v33 = vld [vmem:[#allocation7 + $0x1fc] ss:$124 sps:$4 sm:$0xff]   ;;  %vm10203_vm6 = vcmask 1040384   ;;  %vm15079_vm15 = vmmov 0  }
  0xaa   : > { %v13255_v34 = vld [vmem:[#allocation7 + $0x117c] ss:$124 sps:$4 sm:$0xff]   ;;  %s12831_s9 = sshll.u32 %s15146_s8, 4  ;;  %s364_s13 = scalar_lea.vmem [#allocation15], %s15283_s20 }
  0xab   : > { %6543 = vmatpush2.bf16.msra.mxu0 %v13164_v35  ;;  %v15352_v35 = vld [vmem:[%s15287_s16 + $0x64] ss:$16 sps:$4 sm:$0xff]   ;;  %s11659_s19 = sshll.u32 %s364_s13, 4  ;;  %s17121_s25 = scalar_lea.hbm %s17165_s7, %s12831_s9  ;;  %s11660_s19 = int_to_ptr.vmem [resolvable:$true] %s11659_s19 }
  0xac   : > { %6636 = vmatpush2.bf16.msra.mxu1 %v13165_v36  ;;  %6544 = vmatprep.subr.bf16.mxu0 %v13166_v37  ;;  %v15355_v36 = vld [vmem:[%s15287_s16 + $0x6c] ss:$16 sps:$4 sm:$0xff]   ;;  %v13250_v37 = vld [vmem:[#allocation7 + $0x1f8] ss:$124 sps:$4 sm:$0xff]   ;;  %s11647_s18 = scalar_lea.sflag [#allocation6], %s15283_s20  ;;  %s14988_s23 = scalar_lea.vmem %s11660_s19, 16 }
  0xad   : > { %6637 = vmatprep.subr.bf16.mxu1 %v13168_v38  ;;  %v13253_v38 = vld [vmem:[#allocation7 + $0x1178] ss:$124 sps:$4 sm:$0xff]   ;;  %p14989_p5 = scmp.ne.s32.totalorder %s11660_s19, %s14988_s23  ;;  %p17186_p8 = scmp.ne.s32.totalorder %s17175_s11, 0 }
  0xae   : > { %s15081_s6 = smov [#allocation15]  }
  0xaf   : > { %6545 = vmatpush2.bf16.msra.mxu0 %v13170_v39  ;;  %v13264_v39 = vld [vmem:[#allocation7 + $0x104] ss:$124 sps:$4 sm:$0xff]   ;;  %p14990_p10 = pnand %p14989_p5, %p17186_p8  ;;  %s14992_s15 = sshll.u32 %s15081_s6, 4  ;;  %s14993_s15 = int_to_ptr.vmem [resolvable:$false] %s14992_s15 }
  0xb0   : > { %6638 = vmatpush2.bf16.msra.mxu1 %v13171_v40  ;;  %6546 = vmatprep.subr.bf16.mxu0 %v13172_v41  ;;  %v13267_v40 = vld [vmem:[#allocation7 + $0x1084] ss:$124 sps:$4 sm:$0xff]   ;;  %s14994_s8 = scalar_lea.vmem %s14993_s15, 32  ;;  %p14995_p1 = scmp.lt.s32.totalorder %s11660_s19, %s14993_s15 }
  0xb1   : > { %6639 = vmatprep.subr.bf16.mxu1 %v13174_v42  ;;  %v13262_v41 = vld [vmem:[#allocation7 + $0x100] ss:$124 sps:$4 sm:$0xff]   ;;  %p14991_p11 = pneg %p14990_p10  ;;  %p14996_p7 = scmp.lt.s32.totalorder %s14994_s8, %s14988_s23 }
  0xb2   : > { %v13265_v42 = vld [vmem:[#allocation7 + $0x1080] ss:$124 sps:$4 sm:$0xff]  }
  0xb3   : > { %6547 = vmatpush2.bf16.msra.mxu0 %v13176_v43  ;;  %v15362_v43 = vld [vmem:[%s15287_s16 + $0x60] ss:$16 sps:$4 sm:$0xff]   ;;  %p14997_p4 = por %p14996_p7, %p14995_p1 }
  0xb4   : > { %6640 = vmatpush2.bf16.msra.mxu1 %v13177_v44  ;;  %6548 = vmatprep.subr.bf16.mxu0 %v13178_v45  ;;  %v15365_v44 = vld [vmem:[%s15287_s16 + $0x68] ss:$16 sps:$4 sm:$0xff]  }
  0xb5   : > { %6641 = vmatprep.subr.bf16.mxu1 %v13180_v46  ;;  %v13270_v45 = vld [vmem:[#allocation7 + $0xc] ss:$124 sps:$4 sm:$0xff]   ;;  %p14998_p3 = pnand %p14997_p4, %p14991_p11 }
  0xb6   : > { %v13273_v46 = vld [vmem:[#allocation7 + $0xf8c] ss:$124 sps:$4 sm:$0xff]  }
  0xb7   : > { %6549 = vmatpush2.bf16.msra.mxu0 %v13182_v47  ;;  %v15368_v47 = vld [vmem:[%s15287_s16 + $0x84] ss:$16 sps:$4 sm:$0xff]  }
  0xb8   : > { %6642 = vmatpush2.bf16.msra.mxu1 %v13183_v48  ;;  %6550 = vmatprep.subr.bf16.mxu0 %v13184_v50  ;;  %v15371_v48 = vld [vmem:[%s15287_s16 + $0x8c] ss:$16 sps:$4 sm:$0xff]   ;;  %v13268_v50 = vld [vmem:[#allocation7 + $0x8] ss:$124 sps:$4 sm:$0xff]  }
  0xb9   : > { %6643 = vmatprep.subr.bf16.mxu1 %v13186_v52  ;;  %v13271_v52 = vld [vmem:[#allocation7 + $0xf88] ss:$124 sps:$4 sm:$0xff]  }
  0xbb   : > { %6551 = vmatpush2.bf16.msra.mxu0 %v13188_v53  ;;  %v13282_v53 = vld [vmem:[#allocation7 + $0xe94] ss:$124 sps:$4 sm:$0xff]  }
  0xbc   : > { %6644 = vmatpush2.bf16.msra.mxu1 %v13189_v54  ;;  %6552 = vmatprep.subr.bf16.mxu0 %v13190_v55  ;;  %v13285_v54 = vld [vmem:[#allocation7 + $0x1e14] ss:$124 sps:$4 sm:$0xff]  }
  0xbd   : > { %6645 = vmatprep.subr.bf16.mxu1 %v13192_v56  ;;  %v13280_v55 = vld [vmem:[#allocation7 + $0xe90] ss:$124 sps:$4 sm:$0xff]  }
  0xbe   : > { %v13283_v56 = vld [vmem:[#allocation7 + $0x1e10] ss:$124 sps:$4 sm:$0xff]  }
  0xbf   : > { %6553 = vmatpush2.bf16.msra.mxu0 %v13194_v57  ;;  %v15378_v57 = vld [vmem:[%s15287_s16 + $0x80] ss:$16 sps:$4 sm:$0xff]  }
  0xc0   : > { %6646 = vmatpush2.bf16.msra.mxu1 %v13195_v58  ;;  %6554 = vmatprep.subr.bf16.mxu0 %v13196_v59  ;;  %v15381_v58 = vld [vmem:[%s15287_s16 + $0x88] ss:$16 sps:$4 sm:$0xff]  }
  0xc1   : > { %6647 = vmatprep.subr.bf16.mxu1 %v13198_v60  ;;  %v13288_v59 = vld [vmem:[#allocation7 + $0xd9c] ss:$124 sps:$4 sm:$0xff]  }
  0xc2   : > { %v13291_v60 = vld [vmem:[#allocation7 + $0x1d1c] ss:$124 sps:$4 sm:$0xff]  }
  0xc3   : > { %6555 = vmatpush2.bf16.msra.mxu0 %v13200_v61  ;;  %v15384_v61 = vld [vmem:[%s15287_s16 + $0xa4] ss:$16 sps:$4 sm:$0xff]  }
  0xc4   : > { %6648 = vmatpush2.bf16.msra.mxu1 %v13201_v62  ;;  %6556 = vmatprep.subr.bf16.mxu0 %v13202_v63  ;;  %v15387_v62 = vld [vmem:[%s15287_s16 + $0xac] ss:$16 sps:$4 sm:$0xff]   ;;  %v13286_v63 = vld [vmem:[#allocation7 + $0xd98] ss:$124 sps:$4 sm:$0xff]  }
  0xc5   : > { %6649 = vmatprep.subr.bf16.mxu1 %v13204_v0  ;;  %v13289_v0 = vld [vmem:[#allocation7 + $0x1d18] ss:$124 sps:$4 sm:$0xff]  }
  0xc7   : > { %6557 = vmatpush2.bf16.msra.mxu0 %v13206_v1  ;;  %v13300_v1 = vld [vmem:[#allocation7 + $0xca4] ss:$124 sps:$4 sm:$0xff]  }
  0xc8   : > { %6650 = vmatpush2.bf16.msra.mxu1 %v13207_v2  ;;  %6712 = vmatprep.subr.bf16.mxu0 %v13216_v3  ;;  %v13303_v2 = vld [vmem:[#allocation7 + $0x1c24] ss:$124 sps:$4 sm:$0xff]  }
  0xc9   : > { %6805 = vmatprep.subr.bf16.mxu1 %v13219_v4  ;;  %v13298_v3 = vld [vmem:[#allocation7 + $0xca0] ss:$124 sps:$4 sm:$0xff]  }
  0xca   : > { %6559 = vmatmul.mubr.bf16.vlgmr.msra.gmra.mxu0 %v15314_v5  ;;  %v13301_v4 = vld [vmem:[#allocation7 + $0x1c20] ss:$124 sps:$4 sm:$0xff]  }
  0xcb   : > { %6652 = vmatmul.mubr.bf16.vlgmr.msra.gmra.mxu1 %v15317_v6  ;;  %6713 = vmatpush1.bf16.msra.mxu0 %v13214_v7  ;;  %v15394_v7 = vld [vmem:[%s15287_s16 + $0xa0] ss:$16 sps:$4 sm:$0xff]  }
  0xcc   : > { %6806 = vmatpush1.bf16.msra.mxu1 %v13217_v8  ;;  %6714 = vmatprep.subr.bf16.mxu0 %v13222_v9  ;;  %v15397_v8 = vld [vmem:[%s15287_s16 + $0xa8] ss:$16 sps:$4 sm:$0xff]  }
  0xcd   : > { %6807 = vmatprep.subr.bf16.mxu1 %v13225_v10  ;;  %6568 = vmatprep.mubr.bf16.mxu0 %v15320_v11  ;;  %v13306_v9 = vld [vmem:[#allocation7 + $0xbac] ss:$124 sps:$4 sm:$0xff]  }
  0xce   : > { %6661 = vmatprep.mubr.bf16.mxu1 %v15323_v12  ;;  %v13309_v10 = vld [vmem:[#allocation7 + $0x1b2c] ss:$124 sps:$4 sm:$0xff]  }
  0xcf   : > { %6715 = vmatpush1.bf16.msra.mxu0 %v13220_v13  ;;  %v13304_v13 = vld [vmem:[#allocation7 + $0xba8] ss:$124 sps:$4 sm:$0xff]  }
  0xd0   : > { %6808 = vmatpush1.bf16.msra.mxu1 %v13223_v14  ;;  %6716 = vmatprep.subr.bf16.mxu0 %v13234_v15  ;;  %v13307_v14 = vld [vmem:[#allocation7 + $0x1b28] ss:$124 sps:$4 sm:$0xff]   ;;  %v13312_v15 = vld [vmem:[#allocation7 + $0xab4] ss:$124 sps:$4 sm:$0xff]  }
  0xd1   : > { %6809 = vmatprep.subr.bf16.mxu1 %v13237_v16  ;;  %v13315_v16 = vld [vmem:[#allocation7 + $0x1a34] ss:$124 sps:$4 sm:$0xff]  }
  0xd2   : > { %6569 = vmatmul.mubr.bf16.gmra.mxu0 %v15330_v17 }
  0xd3   : > { %6662 = vmatmul.mubr.bf16.gmra.mxu1 %v15333_v18  ;;  %6717 = vmatpush1.bf16.msra.mxu0 %v13232_v19  ;;  %v13310_v19 = vld [vmem:[#allocation7 + $0xab0] ss:$124 sps:$4 sm:$0xff]  }
  0xd4   : > { %6810 = vmatpush1.bf16.msra.mxu1 %v13235_v20  ;;  %6718 = vmatprep.subr.bf16.mxu0 %v13240_v21  ;;  %v13313_v20 = vld [vmem:[#allocation7 + $0x1a30] ss:$124 sps:$4 sm:$0xff]   ;;  %v13324_v21 = vld [vmem:[#allocation7 + $0x9bc] ss:$124 sps:$4 sm:$0xff]  }
  0xd5   : > { %6811 = vmatprep.subr.bf16.mxu1 %v13243_v22  ;;  %6578 = vmatprep.mubr.bf16.mxu0 %v15336_v23  ;;  %v13327_v22 = vld [vmem:[#allocation7 + $0x193c] ss:$124 sps:$4 sm:$0xff]  }
  0xd6   : > { %6671 = vmatprep.mubr.bf16.mxu1 %v15339_v24 }
  0xd7   : > { %6719 = vmatpush1.bf16.msra.mxu0 %v13238_v25  ;;  %v13322_v25 = vld [vmem:[#allocation7 + $0x9b8] ss:$124 sps:$4 sm:$0xff]  }
  0xd8   : > { %6812 = vmatpush1.bf16.msra.mxu1 %v13241_v26  ;;  %6720 = vmatprep.subr.bf16.mxu0 %v13246_v27  ;;  %v13325_v26 = vld [vmem:[#allocation7 + $0x1938] ss:$124 sps:$4 sm:$0xff]   ;;  %v13330_v27 = vld [vmem:[#allocation7 + $0x8c4] ss:$124 sps:$4 sm:$0xff]  }
  0xd9   : > { %6813 = vmatprep.subr.bf16.mxu1 %v13249_v28  ;;  %v13333_v28 = vld [vmem:[#allocation7 + $0x1844] ss:$124 sps:$4 sm:$0xff]  }
  0xda   : > { %6579 = vmatmul.mubr.bf16.gmra.mxu0 %v15346_v31 }
  0xdb   : > { %6672 = vmatmul.mubr.bf16.gmra.mxu1 %v15349_v32  ;;  %6721 = vmatpush1.bf16.msra.mxu0 %v13244_v29  ;;  %v13328_v29 = vld [vmem:[#allocation7 + $0x8c0] ss:$124 sps:$4 sm:$0xff]  }
  0xdc   : > { %6814 = vmatpush1.bf16.msra.mxu1 %v13247_v30  ;;  %6722 = vmatprep.subr.bf16.mxu0 %v13252_v33  ;;  %v13339_v30 = vld [vmem:[#allocation7 + $0x174c] ss:$124 sps:$4 sm:$0xff]  }
  0xdd   : > { %6815 = vmatprep.subr.bf16.mxu1 %v13255_v34  ;;  %6588 = vmatprep.mubr.bf16.mxu0 %v15352_v35  ;;  %v13334_v33 = vld [vmem:[#allocation7 + $0x7c8] ss:$124 sps:$4 sm:$0xff]  }
  0xde   : > { %6681 = vmatprep.mubr.bf16.mxu1 %v15355_v36  ;;  %v13337_v34 = vld [vmem:[#allocation7 + $0x1748] ss:$124 sps:$4 sm:$0xff]  }
  0xdf   : > { %6723 = vmatpush1.bf16.msra.mxu0 %v13250_v37  ;;  %v13342_v37 = vld [vmem:[#allocation7 + $0x6dc] ss:$124 sps:$4 sm:$0xff]  }
  0xe0   : > { %6816 = vmatpush1.bf16.msra.mxu1 %v13253_v38  ;;  %6724 = vmatprep.subr.bf16.mxu0 %v13264_v39  ;;  %v13345_v38 = vld [vmem:[#allocation7 + $0x165c] ss:$124 sps:$4 sm:$0xff]  }
  0xe1   : > { %6817 = vmatprep.subr.bf16.mxu1 %v13267_v40  ;;  %v13340_v39 = vld [vmem:[#allocation7 + $0x6d8] ss:$124 sps:$4 sm:$0xff]  }
  0xe2   : > { %6589 = vmatmul.mubr.bf16.gmra.mxu0 %v15362_v43  ;;  %v13343_v40 = vld [vmem:[#allocation7 + $0x1658] ss:$124 sps:$4 sm:$0xff]  }
  0xe3   : > { %6682 = vmatmul.mubr.bf16.gmra.mxu1 %v15365_v44  ;;  %6725 = vmatpush1.bf16.msra.mxu0 %v13262_v41  ;;  %v13348_v41 = vld [vmem:[#allocation7 + $0x5e4] ss:$124 sps:$4 sm:$0xff]  }
  0xe4   : > { %6818 = vmatpush1.bf16.msra.mxu1 %v13265_v42  ;;  %6726 = vmatprep.subr.bf16.mxu0 %v13270_v45  ;;  %v13351_v42 = vld [vmem:[#allocation7 + $0x1564] ss:$124 sps:$4 sm:$0xff]  }
  0xe5   : > { %6819 = vmatprep.subr.bf16.mxu1 %v13273_v46  ;;  %6598 = vmatprep.mubr.bf16.mxu0 %v15368_v47  ;;  %v13346_v45 = vld [vmem:[#allocation7 + $0x5e0] ss:$124 sps:$4 sm:$0xff]  }
  0xe6   : > { %6691 = vmatprep.mubr.bf16.mxu1 %v15371_v48  ;;  %v13349_v46 = vld [vmem:[#allocation7 + $0x1560] ss:$124 sps:$4 sm:$0xff]  }
  0xe7   : > { %6727 = vmatpush1.bf16.msra.mxu0 %v13268_v50  ;;  %v13354_v50 = vld [vmem:[#allocation7 + $0x4ec] ss:$124 sps:$4 sm:$0xff]  }
  0xe8   : > { %6820 = vmatpush1.bf16.msra.mxu1 %v13271_v52  ;;  %6728 = vmatprep.subr.bf16.mxu0 %v13282_v53  ;;  %v13357_v52 = vld [vmem:[#allocation7 + $0x146c] ss:$124 sps:$4 sm:$0xff]  }
  0xe9   : > { %6821 = vmatprep.subr.bf16.mxu1 %v13285_v54  ;;  %v13352_v53 = vld [vmem:[#allocation7 + $0x4e8] ss:$124 sps:$4 sm:$0xff]  }
  0xea   : > { %6599 = vmatmul.mubr.bf16.gmra.mxu0 %v15378_v57  ;;  %v13355_v54 = vld [vmem:[#allocation7 + $0x1468] ss:$124 sps:$4 sm:$0xff]  }
  0xeb   : > { %6692 = vmatmul.mubr.bf16.gmra.mxu1 %v15381_v58  ;;  %6729 = vmatpush2.bf16.msra.mxu0 %v13280_v55  ;;  %v13360_v55 = vld [vmem:[#allocation7 + $0x3f4] ss:$124 sps:$4 sm:$0xff]  }
  0xec   : > { %6822 = vmatpush2.bf16.msra.mxu1 %v13283_v56  ;;  %6730 = vmatprep.subr.bf16.mxu0 %v13288_v59  ;;  %v13361_v56 = vld [vmem:[#allocation7 + $0x1370] ss:$124 sps:$4 sm:$0xff]   ;;  %v13366_v59 = vld [vmem:[#allocation7 + $0x2fc] ss:$124 sps:$4 sm:$0xff]  }
  0xed   : > { %6823 = vmatprep.subr.bf16.mxu1 %v13291_v60  ;;  %6608 = vmatprep.mubr.bf16.mxu0 %v15384_v61  ;;  %v13367_v60 = vld [vmem:[#allocation7 + $0x1278] ss:$124 sps:$4 sm:$0xff]  }
  0xee   : > { %6701 = vmatprep.mubr.bf16.mxu1 %v15387_v62 }
  0xef   : > { %6731 = vmatpush2.bf16.msra.mxu0 %v13286_v63  ;;  %v13372_v63 = vld [vmem:[#allocation7 + $0x204] ss:$124 sps:$4 sm:$0xff]  }
  0xf0   : > { %6824 = vmatpush2.bf16.msra.mxu1 %v13289_v0  ;;  %6732 = vmatprep.subr.bf16.mxu0 %v13300_v1  ;;  %v13373_v0 = vld [vmem:[#allocation7 + $0x1180] ss:$124 sps:$4 sm:$0xff]   ;;  %v13378_v1 = vld [vmem:[#allocation7 + $0x10c] ss:$124 sps:$4 sm:$0xff]  }
  0xf1   : > { %6825 = vmatprep.subr.bf16.mxu1 %v13303_v2  ;;  %v13379_v2 = vld [vmem:[#allocation7 + $0x1088] ss:$124 sps:$4 sm:$0xff]  }
  0xf2   : > { %6609 = vmatmul.mubr.bf16.gmra.mxu0 %v15394_v7 }
  0xf3   : > { %6702 = vmatmul.mubr.bf16.gmra.mxu1 %v15397_v8  ;;  %6733 = vmatpush2.bf16.msra.mxu0 %v13298_v3  ;;  %v13384_v3 = vld [vmem:[#allocation7 + $0x14] ss:$124 sps:$4 sm:$0xff]  }
  0xf4   : > { %6826 = vmatpush2.bf16.msra.mxu1 %v13301_v4  ;;  %6734 = vmatprep.subr.bf16.mxu0 %v13306_v9  ;;  %v13385_v4 = vld [vmem:[#allocation7 + $0xf90] ss:$124 sps:$4 sm:$0xff]   ;;  %v13390_v9 = vld [vmem:[#allocation7 + $0xe9c] ss:$124 sps:$4 sm:$0xff]  }
  0xf5   : > { %6827 = vmatprep.subr.bf16.mxu1 %v13309_v10  ;;  %6744 = vmatprep.mubr.bf16.mxu0 %v15306_v49  ;;  %v13331_v49 = vld [vmem:[#allocation7 + $0x1840] ss:$124 sps:$4 sm:$0xff]   ;;  %v13391_v10 = vld [vmem:[#allocation7 + $0x1e18] ss:$124 sps:$4 sm:$0xff]  }
  0xf6   : > { %6837 = vmatprep.mubr.bf16.mxu1 %v15309_v51  ;;  %v13336_v51 = vld [vmem:[#allocation7 + $0x7cc] ss:$124 sps:$4 sm:$0xff]  }
  0xf7   : > { %6735 = vmatpush2.bf16.msra.mxu0 %v13304_v13  ;;  %v13396_v13 = vld [vmem:[#allocation7 + $0xda4] ss:$124 sps:$4 sm:$0xff]  }
  0xf8   : > { %6828 = vmatpush2.bf16.msra.mxu1 %v13307_v14  ;;  %6736 = vmatprep.subr.bf16.mxu0 %v13312_v15  ;;  %v13397_v14 = vld [vmem:[#allocation7 + $0x1d20] ss:$124 sps:$4 sm:$0xff]   ;;  %v13402_v15 = vld [vmem:[#allocation7 + $0xcac] ss:$124 sps:$4 sm:$0xff]  }
  0xf9   : > { %6829 = vmatprep.subr.bf16.mxu1 %v13315_v16  ;;  %v13403_v16 = vld [vmem:[#allocation7 + $0x1c28] ss:$124 sps:$4 sm:$0xff]  }
  0xfb   : > { %6737 = vmatpush2.bf16.msra.mxu0 %v13310_v19  ;;  %v13406_v19 = vld [vmem:[#allocation7 + $0xbb0] ss:$124 sps:$4 sm:$0xff]  }
  0xfc   : > { %6830 = vmatpush2.bf16.msra.mxu1 %v13313_v20  ;;  %6738 = vmatprep.subr.bf16.mxu0 %v13324_v21  ;;  %v13409_v20 = vld [vmem:[#allocation7 + $0x1b30] ss:$124 sps:$4 sm:$0xff]   ;;  %v15426_v21 = vld [vmem:[%s15287_s16 + $0x4] ss:$16 sps:$4 sm:$0xff]  }
  0xfd   : > { %6831 = vmatprep.subr.bf16.mxu1 %v13327_v22  ;;  %v15430_v22 = vld [vmem:[%s15287_s16 + $0xc] ss:$16 sps:$4 sm:$0xff]  }
  0xff   : > { %6739 = vmatpush2.bf16.msra.mxu0 %v13322_v25  ;;  %v13412_v25 = vld [vmem:[#allocation7 + $0xab8] ss:$124 sps:$4 sm:$0xff]  }
 0x100   : > { %6832 = vmatpush2.bf16.msra.mxu1 %v13325_v26  ;;  %6740 = vmatprep.subr.bf16.mxu0 %v13330_v27  ;;  %v13415_v26 = vld [vmem:[#allocation7 + $0x1a38] ss:$124 sps:$4 sm:$0xff]   ;;  %v13420_v27 = vld [vmem:[#allocation7 + $0x9c4] ss:$124 sps:$4 sm:$0xff]  }
 0x101   : > { %6833 = vmatprep.subr.bf16.mxu1 %v13333_v28  ;;  %v13423_v28 = vld [vmem:[#allocation7 + $0x1944] ss:$124 sps:$4 sm:$0xff]  }
 0x103   : > { %6741 = vmatpush2.bf16.msra.mxu0 %v13328_v29  ;;  %v13418_v29 = vld [vmem:[#allocation7 + $0x9c0] ss:$124 sps:$4 sm:$0xff]  }
 0x104   : > { %6834 = vmatpush2.bf16.msra.mxu1 %v13331_v49  ;;  %6742 = vmatprep.subr.bf16.mxu0 %v13336_v51  ;;  %v13421_v49 = vld [vmem:[#allocation7 + $0x1940] ss:$124 sps:$4 sm:$0xff]   ;;  %v13426_v51 = vld [vmem:[#allocation7 + $0x8cc] ss:$124 sps:$4 sm:$0xff]  }
 0x105   : > { %6835 = vmatprep.subr.bf16.mxu1 %v13339_v30  ;;  %v13429_v30 = vld [vmem:[#allocation7 + $0x184c] ss:$124 sps:$4 sm:$0xff]  }
 0x107   : > { %6743 = vmatpush2.bf16.msra.mxu0 %v13334_v33  ;;  %v13424_v33 = vld [vmem:[#allocation7 + $0x8c8] ss:$124 sps:$4 sm:$0xff]  }
 0x108   : > { %6836 = vmatpush2.bf16.msra.mxu1 %v13337_v34  ;;  %6898 = vmatprep.subr.bf16.mxu0 %v13342_v37  ;;  %v13427_v34 = vld [vmem:[#allocation7 + $0x1848] ss:$124 sps:$4 sm:$0xff]   ;;  %v13432_v37 = vld [vmem:[#allocation7 + $0x7d4] ss:$124 sps:$4 sm:$0xff]  }
 0x109   : > { %6991 = vmatprep.subr.bf16.mxu1 %v13345_v38  ;;  %v13435_v38 = vld [vmem:[#allocation7 + $0x1754] ss:$124 sps:$4 sm:$0xff]  }
 0x10a   : > { %6745 = vmatmul.mubr.bf16.vlgmr.msra.gmra.mxu0 %v15314_v5  ;;  %v13363_v5 = vld [vmem:[#allocation7 + $0x1374] ss:$124 sps:$4 sm:$0xff]  }
 0x10b   : > { %6838 = vmatmul.mubr.bf16.vlgmr.msra.gmra.mxu1 %v15317_v6  ;;  %6899 = vmatpush1.bf16.msra.mxu0 %v13340_v39  ;;  %v13358_v6 = vld [vmem:[#allocation7 + $0x3f0] ss:$124 sps:$4 sm:$0xff]  }
 0x10c   : > { %6992 = vmatpush1.bf16.msra.mxu1 %v13343_v40  ;;  %6900 = vmatprep.subr.bf16.mxu0 %v13348_v41  ;;  %v13430_v39 = vld [vmem:[#allocation7 + $0x7d0] ss:$124 sps:$4 sm:$0xff]   ;;  %v13438_v41 = vld [vmem:[#allocation7 + $0x6e4] ss:$124 sps:$4 sm:$0xff]  }
 0x10d   : > { %6993 = vmatprep.subr.bf16.mxu1 %v13351_v42  ;;  %6754 = vmatprep.mubr.bf16.mxu0 %v15320_v11  ;;  %v13369_v11 = vld [vmem:[#allocation7 + $0x127c] ss:$124 sps:$4 sm:$0xff]   ;;  %v13433_v40 = vld [vmem:[#allocation7 + $0x1750] ss:$124 sps:$4 sm:$0xff]   ;;  %v13441_v42 = vld [vmem:[#allocation7 + $0x1664] ss:$124 sps:$4 sm:$0xff]  }
 0x10e   : > { %6847 = vmatprep.mubr.bf16.mxu1 %v15323_v12  ;;  %v13364_v12 = vld [vmem:[#allocation7 + $0x2f8] ss:$124 sps:$4 sm:$0xff]  }
 0x10f   : > { %6901 = vmatpush1.bf16.msra.mxu0 %v13346_v45  ;;  %v13436_v45 = vld [vmem:[#allocation7 + $0x6e0] ss:$124 sps:$4 sm:$0xff]  }
 0x110   : > { %6994 = vmatpush1.bf16.msra.mxu1 %v13349_v46  ;;  %6902 = vmatprep.subr.bf16.mxu0 %v13354_v50  ;;  %v13439_v46 = vld [vmem:[#allocation7 + $0x1660] ss:$124 sps:$4 sm:$0xff]   ;;  %v13444_v50 = vld [vmem:[#allocation7 + $0x5ec] ss:$124 sps:$4 sm:$0xff]  }
 0x111   : > { %6995 = vmatprep.subr.bf16.mxu1 %v13357_v52  ;;  %v13447_v52 = vld [vmem:[#allocation7 + $0x156c] ss:$124 sps:$4 sm:$0xff]  }
 0x112   : > { %6755 = vmatmul.mubr.bf16.gmra.mxu0 %v15330_v17  ;;  %v13375_v17 = vld [vmem:[#allocation7 + $0x1184] ss:$124 sps:$4 sm:$0xff]  }
 0x113   : > { %6848 = vmatmul.mubr.bf16.gmra.mxu1 %v15333_v18  ;;  %6903 = vmatpush1.bf16.msra.mxu0 %v13352_v53  ;;  %v13370_v18 = vld [vmem:[#allocation7 + $0x200] ss:$124 sps:$4 sm:$0xff]  }
 0x114   : > { %6996 = vmatpush1.bf16.msra.mxu1 %v13355_v54  ;;  %6904 = vmatprep.subr.bf16.mxu0 %v13360_v55  ;;  %v15434_v53 = vld [vmem:[%s15287_s16] ss:$16 sps:$4 sm:$0xff]   ;;  %v15438_v54 = vld [vmem:[%s15287_s16 + $0x8] ss:$16 sps:$4 sm:$0xff]  }
 0x115   : > { %6997 = vmatprep.subr.bf16.mxu1 %v13363_v5  ;;  %6764 = vmatprep.mubr.bf16.mxu0 %v15336_v23  ;;  %v13381_v23 = vld [vmem:[#allocation7 + $0x108c] ss:$124 sps:$4 sm:$0xff]  }
 0x116   : > { %6857 = vmatprep.mubr.bf16.mxu1 %v15339_v24  ;;  %v13376_v24 = vld [vmem:[#allocation7 + $0x108] ss:$124 sps:$4 sm:$0xff]  }
 0x117   : > { %6905 = vmatpush1.bf16.msra.mxu0 %v13358_v6  ;;  %v13442_v55 = vld [vmem:[#allocation7 + $0x5e8] ss:$124 sps:$4 sm:$0xff]   ;;  %v13450_v6 = vld [vmem:[#allocation7 + $0x4f4] ss:$124 sps:$4 sm:$0xff]  }
 0x118   : > { %6998 = vmatpush1.bf16.msra.mxu1 %v13361_v56  ;;  %6906 = vmatprep.subr.bf16.mxu0 %v13366_v59  ;;  %v13445_v5 = vld [vmem:[#allocation7 + $0x1568] ss:$124 sps:$4 sm:$0xff]   ;;  %v13453_v56 = vld [vmem:[#allocation7 + $0x1474] ss:$124 sps:$4 sm:$0xff]  }
 0x119   : > { %6999 = vmatprep.subr.bf16.mxu1 %v13369_v11  ;;  %v15442_v59 = vld [vmem:[%s15287_s16 + $0x24] ss:$16 sps:$4 sm:$0xff]   ;;  %v15446_v11 = vld [vmem:[%s15287_s16 + $0x2c] ss:$16 sps:$4 sm:$0xff]  }
 0x11a   : > { %6765 = vmatmul.mubr.bf16.gmra.mxu0 %v15346_v31  ;;  %v13387_v31 = vld [vmem:[#allocation7 + $0xf94] ss:$124 sps:$4 sm:$0xff]  }
 0x11b   : > { %6858 = vmatmul.mubr.bf16.gmra.mxu1 %v15349_v32  ;;  %6907 = vmatpush1.bf16.msra.mxu0 %v13364_v12  ;;  %v13382_v32 = vld [vmem:[#allocation7 + $0x10] ss:$124 sps:$4 sm:$0xff]  }
 0x11c   : > { %7000 = vmatpush1.bf16.msra.mxu1 %v13367_v60  ;;  %6908 = vmatprep.subr.bf16.mxu0 %v13372_v63  ;;  %v13448_v12 = vld [vmem:[#allocation7 + $0x4f0] ss:$124 sps:$4 sm:$0xff]   ;;  %v13456_v63 = vld [vmem:[#allocation7 + $0x3fc] ss:$124 sps:$4 sm:$0xff]  }
 0x11d   : > { %7001 = vmatprep.subr.bf16.mxu1 %v13375_v17  ;;  %6774 = vmatprep.mubr.bf16.mxu0 %v15352_v35  ;;  %v13393_v35 = vld [vmem:[#allocation7 + $0x1e1c] ss:$124 sps:$4 sm:$0xff]   ;;  %v13451_v60 = vld [vmem:[#allocation7 + $0x1470] ss:$124 sps:$4 sm:$0xff]  }
 0x11e   : > { %6867 = vmatprep.mubr.bf16.mxu1 %v15355_v36  ;;  %v13388_v36 = vld [vmem:[#allocation7 + $0xe98] ss:$124 sps:$4 sm:$0xff]  }
 0x11f   : > { %6909 = vmatpush1.bf16.msra.mxu0 %v13370_v18  ;;  %v13459_v17 = vld [vmem:[#allocation7 + $0x137c] ss:$124 sps:$4 sm:$0xff]   ;;  %v15450_v18 = vld [vmem:[%s15287_s16 + $0x20] ss:$16 sps:$4 sm:$0xff]  }
 0x120   : > { %7002 = vmatpush1.bf16.msra.mxu1 %v13373_v0  ;;  %6910 = vmatprep.subr.bf16.mxu0 %v13378_v1  ;;  %v15454_v0 = vld [vmem:[%s15287_s16 + $0x28] ss:$16 sps:$4 sm:$0xff]  }
 0x121   : > { %7003 = vmatprep.subr.bf16.mxu1 %v13381_v23  ;;  %v13454_v1 = vld [vmem:[#allocation7 + $0x3f8] ss:$124 sps:$4 sm:$0xff]  }
 0x122   : > { %6775 = vmatmul.mubr.bf16.gmra.mxu0 %v15362_v43  ;;  %v13399_v43 = vld [vmem:[#allocation7 + $0x1d24] ss:$124 sps:$4 sm:$0xff]   ;;  %v13457_v23 = vld [vmem:[#allocation7 + $0x1378] ss:$124 sps:$4 sm:$0xff]  }
 0x123   : > { %6868 = vmatmul.mubr.bf16.gmra.mxu1 %v15365_v44  ;;  %6911 = vmatpush1.bf16.msra.mxu0 %v13376_v24  ;;  %v13394_v44 = vld [vmem:[#allocation7 + $0xda0] ss:$124 sps:$4 sm:$0xff]  }
 0x124   : > { %7004 = vmatpush1.bf16.msra.mxu1 %v13379_v2  ;;  %6912 = vmatprep.subr.bf16.mxu0 %v13384_v3  ;;  %v13462_v24 = vld [vmem:[#allocation7 + $0x304] ss:$124 sps:$4 sm:$0xff]  }
 0x125   : > { %7005 = vmatprep.subr.bf16.mxu1 %v13387_v31  ;;  %6784 = vmatprep.mubr.bf16.mxu0 %v15368_v47  ;;  %v13405_v47 = vld [vmem:[#allocation7 + $0x1c2c] ss:$124 sps:$4 sm:$0xff]   ;;  %v13465_v2 = vld [vmem:[#allocation7 + $0x1284] ss:$124 sps:$4 sm:$0xff]  }
 0x126   : > { %6877 = vmatprep.mubr.bf16.mxu1 %v15371_v48  ;;  %v13400_v48 = vld [vmem:[#allocation7 + $0xca8] ss:$124 sps:$4 sm:$0xff]   ;;  %v15462_v31 = vld [vmem:[%s15287_s16 + $0x4c] ss:$16 sps:$4 sm:$0xff]  }
 0x127   : > { %6913 = vmatpush1.bf16.msra.mxu0 %v13382_v32  ;;  %v15458_v3 = vld [vmem:[%s15287_s16 + $0x44] ss:$16 sps:$4 sm:$0xff]   ;;  %v13460_v32 = vld [vmem:[#allocation7 + $0x300] ss:$124 sps:$4 sm:$0xff]  }
 0x128   : > { %7006 = vmatpush1.bf16.msra.mxu1 %v13385_v4  ;;  %6914 = vmatprep.subr.bf16.mxu0 %v13390_v9  ;;  %v13463_v4 = vld [vmem:[#allocation7 + $0x1280] ss:$124 sps:$4 sm:$0xff]   ;;  %v13468_v9 = vld [vmem:[#allocation7 + $0x20c] ss:$124 sps:$4 sm:$0xff]  }
 0x129   : > { %7007 = vmatprep.subr.bf16.mxu1 %v13393_v35  ;;  %v13471_v35 = vld [vmem:[#allocation7 + $0x118c] ss:$124 sps:$4 sm:$0xff]  }
 0x12a   : > { %6785 = vmatmul.mubr.bf16.gmra.mxu0 %v15378_v57  ;;  %v13408_v57 = vld [vmem:[#allocation7 + $0xbb4] ss:$124 sps:$4 sm:$0xff]  }
 0x12b   : > { %6878 = vmatmul.mubr.bf16.gmra.mxu1 %v15381_v58  ;;  %6915 = vmatpush2.bf16.msra.mxu0 %v13388_v36  ;;  %v13411_v58 = vld [vmem:[#allocation7 + $0x1b34] ss:$124 sps:$4 sm:$0xff]  }
 0x12c   : > { %7008 = vmatpush2.bf16.msra.mxu1 %v13391_v10  ;;  %6916 = vmatprep.subr.bf16.mxu0 %v13396_v13  ;;  %v15466_v36 = vld [vmem:[%s15287_s16 + $0x40] ss:$16 sps:$4 sm:$0xff]   ;;  %v15470_v10 = vld [vmem:[%s15287_s16 + $0x48] ss:$16 sps:$4 sm:$0xff]  }
 0x12d   : > { %7009 = vmatprep.subr.bf16.mxu1 %v13399_v43  ;;  %6794 = vmatprep.mubr.bf16.mxu0 %v15384_v61  ;;  %v13414_v61 = vld [vmem:[#allocation7 + $0xabc] ss:$124 sps:$4 sm:$0xff]   ;;  %v13466_v13 = vld [vmem:[#allocation7 + $0x208] ss:$124 sps:$4 sm:$0xff]  }
 0x12e   : > { %6887 = vmatprep.mubr.bf16.mxu1 %v15387_v62  ;;  %v13417_v62 = vld [vmem:[#allocation7 + $0x1a3c] ss:$124 sps:$4 sm:$0xff]   ;;  %v13469_v43 = vld [vmem:[#allocation7 + $0x1188] ss:$124 sps:$4 sm:$0xff]  }
 0x12f   : > { %6917 = vmatpush2.bf16.msra.mxu0 %v13394_v44  ;;  %v13474_v44 = vld [vmem:[#allocation7 + $0x114] ss:$124 sps:$4 sm:$0xff]  }
 0x130   : > { %7010 = vmatpush2.bf16.msra.mxu1 %v13397_v14  ;;  %6918 = vmatprep.subr.bf16.mxu0 %v13402_v15  ;;  %v13477_v14 = vld [vmem:[#allocation7 + $0x1094] ss:$124 sps:$4 sm:$0xff]  }
 0x131   : > { %7011 = vmatprep.subr.bf16.mxu1 %v13405_v47  ;;  %v15474_v15 = vld [vmem:[%s15287_s16 + $0x64] ss:$16 sps:$4 sm:$0xff]   ;;  %v15478_v47 = vld [vmem:[%s15287_s16 + $0x6c] ss:$16 sps:$4 sm:$0xff]  }
 0x132   : > { %6795 = vmatmul.mubr.bf16.gmra.mxu0 %v15394_v7 }
 0x133   : > { %6888 = vmatmul.mubr.bf16.gmra.mxu1 %v15397_v8  ;;  %6919 = vmatpush2.bf16.msra.mxu0 %v13400_v48  ;;  %v13472_v48 = vld [vmem:[#allocation7 + $0x110] ss:$124 sps:$4 sm:$0xff]  }
 0x134   : > { %7012 = vmatpush2.bf16.msra.mxu1 %v13403_v16  ;;  %6920 = vmatprep.subr.bf16.mxu0 %v13408_v57  ;;  %v13475_v16 = vld [vmem:[#allocation7 + $0x1090] ss:$124 sps:$4 sm:$0xff]   ;;  %v13480_v57 = vld [vmem:[#allocation7 + $0x1c] ss:$124 sps:$4 sm:$0xff]  }
 0x135   : > { %7013 = vmatprep.subr.bf16.mxu1 %v13411_v58  ;;  %6930 = vmatprep.mubr.bf16.mxu0 %v15426_v21  ;;  %v13483_v58 = vld [vmem:[#allocation7 + $0xf9c] ss:$124 sps:$4 sm:$0xff]  }
 0x136   : > { %7023 = vmatprep.mubr.bf16.mxu1 %v15430_v22 }
 0x137   : > { %6921 = vmatpush2.bf16.msra.mxu0 %v13406_v19  ;;  %v15482_v19 = vld [vmem:[%s15287_s16 + $0x60] ss:$16 sps:$4 sm:$0xff]  }
 0x138   : > { %7014 = vmatpush2.bf16.msra.mxu1 %v13409_v20  ;;  %6922 = vmatprep.subr.bf16.mxu0 %v13414_v61  ;;  %v15486_v20 = vld [vmem:[%s15287_s16 + $0x68] ss:$16 sps:$4 sm:$0xff]  }
 0x139   : > { %7015 = vmatprep.subr.bf16.mxu1 %v13417_v62  ;;  %v13478_v61 = vld [vmem:[#allocation7 + $0x18] ss:$124 sps:$4 sm:$0xff]  }
 0x13a   : > { %v13481_v62 = vld [vmem:[#allocation7 + $0xf98] ss:$124 sps:$4 sm:$0xff]  }
 0x13b   : > { %6923 = vmatpush2.bf16.msra.mxu0 %v13412_v25  ;;  %v13486_v25 = vld [vmem:[#allocation7 + $0xea4] ss:$124 sps:$4 sm:$0xff]  }
 0x13c   : > { %7016 = vmatpush2.bf16.msra.mxu1 %v13415_v26  ;;  %6924 = vmatprep.subr.bf16.mxu0 %v13420_v27  ;;  %v13489_v26 = vld [vmem:[#allocation7 + $0x1e24] ss:$124 sps:$4 sm:$0xff]  }
 0x13d   : > { %7017 = vmatprep.subr.bf16.mxu1 %v13423_v28  ;;  %v15490_v27 = vld [vmem:[%s15287_s16 + $0x84] ss:$16 sps:$4 sm:$0xff]   ;;  %v15494_v28 = vld [vmem:[%s15287_s16 + $0x8c] ss:$16 sps:$4 sm:$0xff]  }
 0x13f   : > { %6925 = vmatpush2.bf16.msra.mxu0 %v13418_v29  ;;  %v13484_v29 = vld [vmem:[#allocation7 + $0xea0] ss:$124 sps:$4 sm:$0xff]  }
 0x140   : > { %7018 = vmatpush2.bf16.msra.mxu1 %v13421_v49  ;;  %6926 = vmatprep.subr.bf16.mxu0 %v13426_v51  ;;  %v13487_v49 = vld [vmem:[#allocation7 + $0x1e20] ss:$124 sps:$4 sm:$0xff]   ;;  %v13492_v51 = vld [vmem:[#allocation7 + $0xdac] ss:$124 sps:$4 sm:$0xff]  }
 0x141   : > { %7019 = vmatprep.subr.bf16.mxu1 %v13429_v30  ;;  %v13495_v30 = vld [vmem:[#allocation7 + $0x1d2c] ss:$124 sps:$4 sm:$0xff]  }
 0x143   : > { %6927 = vmatpush2.bf16.msra.mxu0 %v13424_v33  ;;  %v15498_v33 = vld [vmem:[%s15287_s16 + $0x80] ss:$16 sps:$4 sm:$0xff]  }
 0x144   : > { %7020 = vmatpush2.bf16.msra.mxu1 %v13427_v34  ;;  %6928 = vmatprep.subr.bf16.mxu0 %v13432_v37  ;;  %v15502_v34 = vld [vmem:[%s15287_s16 + $0x88] ss:$16 sps:$4 sm:$0xff]  }
 0x145   : > { %7021 = vmatprep.subr.bf16.mxu1 %v13435_v38  ;;  %v13490_v37 = vld [vmem:[#allocation7 + $0xda8] ss:$124 sps:$4 sm:$0xff]  }
 0x146   : > { %v13493_v38 = vld [vmem:[#allocation7 + $0x1d28] ss:$124 sps:$4 sm:$0xff]  }
 0x147   : > { %6929 = vmatpush2.bf16.msra.mxu0 %v13430_v39  ;;  %v13498_v39 = vld [vmem:[#allocation7 + $0xcb4] ss:$124 sps:$4 sm:$0xff]  }
 0x148   : > { %7022 = vmatpush2.bf16.msra.mxu1 %v13433_v40  ;;  %7084 = vmatprep.subr.bf16.mxu0 %v13438_v41  ;;  %v13501_v40 = vld [vmem:[#allocation7 + $0x1c34] ss:$124 sps:$4 sm:$0xff]  }
 0x149   : > { %7177 = vmatprep.subr.bf16.mxu1 %v13441_v42  ;;  %v15506_v41 = vld [vmem:[%s15287_s16 + $0xa4] ss:$16 sps:$4 sm:$0xff]   ;;  %v15510_v42 = vld [vmem:[%s15287_s16 + $0xac] ss:$16 sps:$4 sm:$0xff]  }
 0x14a   : > { %6931 = vmatmul.mubr.bf16.vlgmr.msra.gmra.mxu0 %v15434_v53 }
 0x14b   : > { %7024 = vmatmul.mubr.bf16.vlgmr.msra.gmra.mxu1 %v15438_v54  ;;  %7085 = vmatpush1.bf16.msra.mxu0 %v13436_v45  ;;  %v13496_v45 = vld [vmem:[#allocation7 + $0xcb0] ss:$124 sps:$4 sm:$0xff]  }
 0x14c   : > { %7178 = vmatpush1.bf16.msra.mxu1 %v13439_v46  ;;  %7086 = vmatprep.subr.bf16.mxu0 %v13444_v50  ;;  %v13499_v46 = vld [vmem:[#allocation7 + $0x1c30] ss:$124 sps:$4 sm:$0xff]   ;;  %v13504_v50 = vld [vmem:[#allocation7 + $0xbbc] ss:$124 sps:$4 sm:$0xff]  }
 0x14d   : > { %7179 = vmatprep.subr.bf16.mxu1 %v13447_v52  ;;  %6940 = vmatprep.mubr.bf16.mxu0 %v15442_v59  ;;  %v13507_v52 = vld [vmem:[#allocation7 + $0x1b3c] ss:$124 sps:$4 sm:$0xff]  }
 0x14e   : > { %7033 = vmatprep.mubr.bf16.mxu1 %v15446_v11 }
 0x14f   : > { %7087 = vmatpush1.bf16.msra.mxu0 %v13442_v55  ;;  %v13502_v55 = vld [vmem:[#allocation7 + $0xbb8] ss:$124 sps:$4 sm:$0xff]  }
 0x150   : > { %7180 = vmatpush1.bf16.msra.mxu1 %v13445_v5  ;;  %7088 = vmatprep.subr.bf16.mxu0 %v13450_v6  ;;  %v13505_v5 = vld [vmem:[#allocation7 + $0x1b38] ss:$124 sps:$4 sm:$0xff]   ;;  %v13510_v6 = vld [vmem:[#allocation7 + $0xac4] ss:$124 sps:$4 sm:$0xff]  }
 0x151   : > { %7181 = vmatprep.subr.bf16.mxu1 %v13453_v56  ;;  %v13513_v56 = vld [vmem:[#allocation7 + $0x1a44] ss:$124 sps:$4 sm:$0xff]  }
 0x152   : > { %6941 = vmatmul.mubr.bf16.gmra.mxu0 %v15450_v18 }
 0x153   : > { %7034 = vmatmul.mubr.bf16.gmra.mxu1 %v15454_v0  ;;  %7089 = vmatpush1.bf16.msra.mxu0 %v13448_v12  ;;  %v13508_v12 = vld [vmem:[#allocation7 + $0xac0] ss:$124 sps:$4 sm:$0xff]  }
 0x154   : > { %7182 = vmatpush1.bf16.msra.mxu1 %v13451_v60  ;;  %7090 = vmatprep.subr.bf16.mxu0 %v13456_v63  ;;  %v13511_v60 = vld [vmem:[#allocation7 + $0x1a40] ss:$124 sps:$4 sm:$0xff]   ;;  %v13519_v63 = vld [vmem:[#allocation7 + $0x194c] ss:$124 sps:$4 sm:$0xff]  }
 0x155   : > { %7183 = vmatprep.subr.bf16.mxu1 %v13459_v17  ;;  %6950 = vmatprep.mubr.bf16.mxu0 %v15458_v3  ;;  %v13517_v17 = vld [vmem:[#allocation7 + $0x1948] ss:$124 sps:$4 sm:$0xff]  }
 0x156   : > { %7043 = vmatprep.mubr.bf16.mxu1 %v15462_v31 }
 0x157   : > { %7091 = vmatpush1.bf16.msra.mxu0 %v13454_v1  ;;  %v13522_v1 = vld [vmem:[#allocation7 + $0x8d4] ss:$124 sps:$4 sm:$0xff]  }
 0x158   : > { %7184 = vmatpush1.bf16.msra.mxu1 %v13457_v23  ;;  %7092 = vmatprep.subr.bf16.mxu0 %v13462_v24  ;;  %v13525_v23 = vld [vmem:[#allocation7 + $0x1854] ss:$124 sps:$4 sm:$0xff]  }
 0x159   : > { %7185 = vmatprep.subr.bf16.mxu1 %v13465_v2  ;;  %v13520_v24 = vld [vmem:[#allocation7 + $0x8d0] ss:$124 sps:$4 sm:$0xff]   ;;  %v13531_v2 = vld [vmem:[#allocation7 + $0x175c] ss:$124 sps:$4 sm:$0xff]  }
 0x15a   : > { %6951 = vmatmul.mubr.bf16.gmra.mxu0 %v15466_v36 }
 0x15b   : > { %7044 = vmatmul.mubr.bf16.gmra.mxu1 %v15470_v10  ;;  %7093 = vmatpush1.bf16.msra.mxu0 %v13460_v32  ;;  %v13526_v32 = vld [vmem:[#allocation7 + $0x7d8] ss:$124 sps:$4 sm:$0xff]  }
 0x15c   : > { %7186 = vmatpush1.bf16.msra.mxu1 %v13463_v4  ;;  %7094 = vmatprep.subr.bf16.mxu0 %v13468_v9  ;;  %v13529_v4 = vld [vmem:[#allocation7 + $0x1758] ss:$124 sps:$4 sm:$0xff]   ;;  %v13534_v9 = vld [vmem:[#allocation7 + $0x6ec] ss:$124 sps:$4 sm:$0xff]  }
 0x15d   : > { %7187 = vmatprep.subr.bf16.mxu1 %v13471_v35  ;;  %6960 = vmatprep.mubr.bf16.mxu0 %v15474_v15  ;;  %v13537_v35 = vld [vmem:[#allocation7 + $0x166c] ss:$124 sps:$4 sm:$0xff]  }
 0x15e   : > { %7053 = vmatprep.mubr.bf16.mxu1 %v15478_v47 }
 0x15f   : > { %7095 = vmatpush1.bf16.msra.mxu0 %v13466_v13  ;;  %v13532_v13 = vld [vmem:[#allocation7 + $0x6e8] ss:$124 sps:$4 sm:$0xff]  }
 0x160   : > { %7188 = vmatpush1.bf16.msra.mxu1 %v13469_v43  ;;  %7096 = vmatprep.subr.bf16.mxu0 %v13474_v44  ;;  %v13535_v43 = vld [vmem:[#allocation7 + $0x1668] ss:$124 sps:$4 sm:$0xff]   ;;  %v13540_v44 = vld [vmem:[#allocation7 + $0x5f4] ss:$124 sps:$4 sm:$0xff]  }
 0x161   : > { %7189 = vmatprep.subr.bf16.mxu1 %v13477_v14  ;;  %v13543_v14 = vld [vmem:[#allocation7 + $0x1574] ss:$124 sps:$4 sm:$0xff]  }
 0x162   : > { %6961 = vmatmul.mubr.bf16.gmra.mxu0 %v15482_v19 }
 0x163   : > { %7054 = vmatmul.mubr.bf16.gmra.mxu1 %v15486_v20  ;;  %7097 = vmatpush1.bf16.msra.mxu0 %v13472_v48 }
 0x164   : > { %7190 = vmatpush1.bf16.msra.mxu1 %v13475_v16  ;;  %7098 = vmatprep.subr.bf16.mxu0 %v13480_v57  ;;  %v13538_v57 = vld [vmem:[#allocation7 + $0x5f0] ss:$124 sps:$4 sm:$0xff]  }
 0x165   : > { %7191 = vmatprep.subr.bf16.mxu1 %v13483_v58  ;;  %6970 = vmatprep.mubr.bf16.mxu0 %v15490_v27 }
 0x166   : > { %7063 = vmatprep.mubr.bf16.mxu1 %v15494_v28 }
 0x167   : > { %7099 = vmatpush1.bf16.msra.mxu0 %v13478_v61  ;;  %v13541_v61 = vld [vmem:[#allocation7 + $0x1570] ss:$124 sps:$4 sm:$0xff]  }
 0x168   : > { %7192 = vmatpush1.bf16.msra.mxu1 %v13481_v62  ;;  %7100 = vmatprep.subr.bf16.mxu0 %v13486_v25 }
 0x169   : > { %7193 = vmatprep.subr.bf16.mxu1 %v13489_v26  ;;  %v13546_v26 = vld [vmem:[#allocation7 + $0x4fc] ss:$124 sps:$4 sm:$0xff]  }
 0x16a   : > { %6971 = vmatmul.mubr.bf16.gmra.mxu0 %v15498_v33 }
 0x16b   : > { %7064 = vmatmul.mubr.bf16.gmra.mxu1 %v15502_v34  ;;  %7101 = vmatpush2.bf16.msra.mxu0 %v13484_v29  ;;  %v13549_v29 = vld [vmem:[#allocation7 + $0x147c] ss:$124 sps:$4 sm:$0xff]  }
 0x16c   : > { %7194 = vmatpush2.bf16.msra.mxu1 %v13487_v49  ;;  %7102 = vmatprep.subr.bf16.mxu0 %v13492_v51 }
 0x16d   : > { %7195 = vmatprep.subr.bf16.mxu1 %v13495_v30  ;;  %6980 = vmatprep.mubr.bf16.mxu0 %v15506_v41  ;;  %v13544_v30 = vld [vmem:[#allocation7 + $0x4f8] ss:$124 sps:$4 sm:$0xff]  }
 0x16e   : > { %7073 = vmatprep.mubr.bf16.mxu1 %v15510_v42 }
 0x16f   : > { %7103 = vmatpush2.bf16.msra.mxu0 %v13490_v37  ;;  %v13547_v37 = vld [vmem:[#allocation7 + $0x1478] ss:$124 sps:$4 sm:$0xff]  }
 0x170   : > { %7196 = vmatpush2.bf16.msra.mxu1 %v13493_v38  ;;  %7104 = vmatprep.subr.bf16.mxu0 %v13498_v39 }
 0x171   : > { %7197 = vmatprep.subr.bf16.mxu1 %v13501_v40  ;;  %v13552_v40 = vld [vmem:[#allocation7 + $0x404] ss:$124 sps:$4 sm:$0xff]  }
 0x172   : > { %6981 = vmatmul.mubr.bf16.gmra.mxu0 %v15394_v7  ;;  %v13516_v7 = vld [vmem:[#allocation7 + $0x9cc] ss:$124 sps:$4 sm:$0xff]  }
 0x173   : > { %7074 = vmatmul.mubr.bf16.gmra.mxu1 %v15397_v8  ;;  %7105 = vmatpush2.bf16.msra.mxu0 %v13496_v45  ;;  %v13514_v8 = vld [vmem:[#allocation7 + $0x9c8] ss:$124 sps:$4 sm:$0xff]  }
 0x174   : > { %7198 = vmatpush2.bf16.msra.mxu1 %v13499_v46  ;;  %7106 = vmatprep.subr.bf16.mxu0 %v13504_v50  ;;  %v13555_v45 = vld [vmem:[#allocation7 + $0x1384] ss:$124 sps:$4 sm:$0xff]  }
 0x175   : > { %7199 = vmatprep.subr.bf16.mxu1 %v13507_v52  ;;  %7116 = vmatprep.mubr.bf16.mxu0 %v15426_v21  ;;  %v13523_v21 = vld [vmem:[#allocation7 + $0x1850] ss:$124 sps:$4 sm:$0xff]  }
 0x176   : > { %7209 = vmatprep.mubr.bf16.mxu1 %v15430_v22  ;;  %v13528_v22 = vld [vmem:[#allocation7 + $0x7dc] ss:$124 sps:$4 sm:$0xff]  }
 0x177   : > { %7107 = vmatpush2.bf16.msra.mxu0 %v13502_v55 }
 0x178   : > { %7200 = vmatpush2.bf16.msra.mxu1 %v13505_v5  ;;  %7108 = vmatprep.subr.bf16.mxu0 %v13510_v6  ;;  %v13553_v5 = vld [vmem:[#allocation7 + $0x1380] ss:$124 sps:$4 sm:$0xff]  }
 0x179   : > { %7201 = vmatprep.subr.bf16.mxu1 %v13513_v56 }
 0x17b   : > { %7109 = vmatpush2.bf16.msra.mxu0 %v13508_v12  ;;  %v13558_v12 = vld [vmem:[#allocation7 + $0x30c] ss:$124 sps:$4 sm:$0xff]  }
 0x17c   : > { %7202 = vmatpush2.bf16.msra.mxu1 %v13511_v60  ;;  %7110 = vmatprep.subr.bf16.mxu0 %v13516_v7  ;;  %v13561_v60 = vld [vmem:[#allocation7 + $0x128c] ss:$124 sps:$4 sm:$0xff]  }
 0x17d   : > { %7203 = vmatprep.subr.bf16.mxu1 %v13519_v63 }
 0x17f   : > { %7111 = vmatpush2.bf16.msra.mxu0 %v13514_v8 }
 0x180   : > { %7204 = vmatpush2.bf16.msra.mxu1 %v13517_v17  ;;  %7112 = vmatprep.subr.bf16.mxu0 %v13522_v1 }
 0x181   : > { %7205 = vmatprep.subr.bf16.mxu1 %v13525_v23 }
 0x183   : > { %7113 = vmatpush2.bf16.msra.mxu0 %v13520_v24 }
 0x184   : > { %7206 = vmatpush2.bf16.msra.mxu1 %v13523_v21  ;;  %7114 = vmatprep.subr.bf16.mxu0 %v13528_v22  ;;  %v13564_v22 = vld [vmem:[#allocation7 + $0x214] ss:$124 sps:$4 sm:$0xff]  }
 0x185   : > { %7207 = vmatprep.subr.bf16.mxu1 %v13531_v2 }
 0x187   : > { %7115 = vmatpush2.bf16.msra.mxu0 %v13526_v32 }
 0x188   : > { %7208 = vmatpush2.bf16.msra.mxu1 %v13529_v4  ;;  %7270 = vmatprep.subr.bf16.mxu0 %v13534_v9  ;;  %v13567_v4 = vld [vmem:[#allocation7 + $0x1194] ss:$124 sps:$4 sm:$0xff]  }
 0x189   : > { %7363 = vmatprep.subr.bf16.mxu1 %v13537_v35 }
 0x18a   : > { %v6560_v48 = vpop.f32.mrf.mxu0  ;;  %7117 = vmatmul.mubr.bf16.vlgmr.msra.gmra.mxu0 %v15434_v53 }
 0x18b   : > { %v6653_v16 = vpop.f32.mrf.mxu1  ;;  %7210 = vmatmul.mubr.bf16.vlgmr.msra.gmra.mxu1 %v15438_v54  ;;  %7271 = vmatpush1.bf16.msra.mxu0 %v13532_v13 }
 0x18c   : > { %v6654_v58 = vadd.f32 %v6653_v16, %v6560_v48  ;;  %7364 = vmatpush1.bf16.msra.mxu1 %v13535_v43  ;;  %v6562_v62 = vpop.f32.mrf.mxu0  ;;  %7272 = vmatprep.subr.bf16.mxu0 %v13540_v44  ;;  %v13562_v48 = vld [vmem:[#allocation7 + $0x210] ss:$124 sps:$4 sm:$0xff]  }
 0x18d   : > { %v6655_v25 = vpop.f32.mrf.mxu1  ;;  %7365 = vmatprep.subr.bf16.mxu1 %v13543_v14  ;;  %7126 = vmatprep.mubr.bf16.mxu0 %v15442_v59  ;;  %v13550_v59 = vld [vmem:[#allocation7 + $0x400] ss:$124 sps:$4 sm:$0xff]  }
 0x18e   : > { %v6656_v49 = vadd.f32 %v6655_v25, %v6562_v62  ;;  %7219 = vmatprep.mubr.bf16.mxu1 %v15446_v11  ;;  %v6564_v51 = vpop.f32.mrf.mxu0  ;;  %v15523_v11 = vld [vmem:[#allocation9] ss:$0 sm:$0xff]  ;;  %v13570_v25 = vld [vmem:[#allocation7 + $0x11c] ss:$124 sps:$4 sm:$0xff]  }
 0x18f   : > { %v6657_v53 = vpop.f32.mrf.mxu1  ;;  %7273 = vmatpush1.bf16.msra.mxu0 %v13538_v57  ;;  %v9865_v2 = vadd.f32 %v15523_v11, %v6654_v58 }
 0x190   : > { %9479 = vst [vmem:[#allocation2 + $0x4d0] sm:$0xff] %v6656_v49  ;;  %v6658_v54 = vadd.f32 %v6657_v53, %v6564_v51  ;;  %7366 = vmatpush1.bf16.msra.mxu1 %v13541_v61  ;;  %v6566_v38 = vpop.f32.mrf.mxu0  ;;  %7274 = vmatprep.subr.bf16.mxu0 %v13546_v26  ;;  %v13565_v61 = vld [vmem:[#allocation7 + $0x1190] ss:$124 sps:$4 sm:$0xff]   ;;  %v13573_v49 = vld [vmem:[#allocation7 + $0x109c] ss:$124 sps:$4 sm:$0xff]  }
 0x191   : > { %v6659_v39 = vpop.f32.mrf.mxu1  ;;  %7367 = vmatprep.subr.bf16.mxu1 %v13549_v29 }
 0x192   : > { %v6660_v46 = vadd.f32 %v6659_v39, %v6566_v38  ;;  %v6570_v50 = vpop.f32.mrf.mxu0  ;;  %7127 = vmatmul.mubr.bf16.gmra.mxu0 %v15450_v18  ;;  %v13556_v18 = vld [vmem:[#allocation7 + $0x308] ss:$124 sps:$4 sm:$0xff]   ;;  %v9866_v32 = vadd.f32 %v15523_v11, %v6658_v54  ;;  %v13571_v39 = vld [vmem:[#allocation7 + $0x1098] ss:$124 sps:$4 sm:$0xff]  }
 0x193   : > { %v6663_v52 = vpop.f32.mrf.mxu1  ;;  %7220 = vmatmul.mubr.bf16.gmra.mxu1 %v15454_v0  ;;  %7275 = vmatpush1.bf16.msra.mxu0 %v13544_v30  ;;  %v13559_v0 = vld [vmem:[#allocation7 + $0x1288] ss:$124 sps:$4 sm:$0xff]   ;;  %v13568_v30 = vld [vmem:[#allocation7 + $0x118] ss:$124 sps:$4 sm:$0xff]  }
 0x194   : > { %v6664_v55 = vadd.f32 %v6663_v52, %v6570_v50  ;;  %7368 = vmatpush1.bf16.msra.mxu1 %v13547_v37  ;;  %v6572_v6 = vpop.f32.mrf.mxu0  ;;  %7276 = vmatprep.subr.bf16.mxu0 %v13552_v40  ;;  %v9893_v23 = vrot.slane %v6660_v46, 1  ;;  %v13579_v50 = vld [vmem:[#allocation7 + $0xfa4] ss:$124 sps:$4 sm:$0xff]  }
 0x195   : > { %v6665_v56 = vpop.f32.mrf.mxu1  ;;  %7369 = vmatprep.subr.bf16.mxu1 %v13555_v45  ;;  %7136 = vmatprep.mubr.bf16.mxu0 %v15458_v3  ;;  %v13576_v45 = vld [vmem:[#allocation7 + $0x24] ss:$124 sps:$4 sm:$0xff]  }
 0x196   : > { %v6666_v7 = vadd.f32 %v6665_v56, %v6572_v6  ;;  %7229 = vmatprep.mubr.bf16.mxu1 %v15462_v31  ;;  %v6574_v8 = vpop.f32.mrf.mxu0  ;;  %v9867_v44 = vadd.f32 %v15523_v11, %v6664_v55 }
 0x197   : > { %v9873_v63 = vld [vmem:[#allocation2 + $0x4d0] sm:$0xfe]  ;;  %v6667_v17 = vpop.f32.mrf.mxu1  ;;  %7277 = vmatpush1.bf16.msra.mxu0 %v13550_v59 }
 0x198   : > { %v9892_v1 = vrot.slane %v9873_v63, 1  ;;  %v9895_v24 = vrot.slane %v6666_v7, 1  ;;  %7370 = vmatpush1.bf16.msra.mxu1 %v13553_v5  ;;  %v6668_v21 = vadd.f32 %v6667_v17, %v6574_v8  ;;  %7278 = vmatprep.subr.bf16.mxu0 %v13558_v12  ;;  %v6576_v3 = vpop.f32.mrf.mxu0  ;;  %v13574_v5 = vld [vmem:[#allocation7 + $0x20] ss:$124 sps:$4 sm:$0xff]   ;;  %v13585_v8 = vld [vmem:[#allocation7 + $0x1e2c] ss:$124 sps:$4 sm:$0xff]  }
 0x199   : > { %7371 = vmatprep.subr.bf16.mxu1 %v13561_v60  ;;  %v6669_v31 = vpop.f32.mrf.mxu1  ;;  %v13577_v60 = vld [vmem:[#allocation7 + $0xfa0] ss:$124 sps:$4 sm:$0xff]  }
 0x19a   : > { %v9894_v9 = vsel %vm9891_vm0, %v9892_v1, %v9893_v23  ;;  %v9896_v35 = vsel %vm9891_vm0, %v9893_v23, %v9895_v24  ;;  %v6670_v13 = vadd.f32 %v6669_v31, %v6576_v3  ;;  %7137 = vmatmul.mubr.bf16.gmra.mxu0 %v15466_v36  ;;  %v6580_v16 = vpop.f32.mrf.mxu0  ;;  %v13580_v23 = vld [vmem:[#allocation7 + $0xea8] ss:$124 sps:$4 sm:$0xff]   ;;  %v13588_v3 = vld [vmem:[#allocation7 + $0xdb4] ss:$124 sps:$4 sm:$0xff]  }
 0x19b   : > { %v15531_v43 = vadd.f32 %v9894_v9, %v9865_v2  ;;  %v15534_v14 = vadd.f32 %v9896_v35, %v9866_v32  ;;  %7230 = vmatmul.mubr.bf16.gmra.mxu1 %v15470_v10  ;;  %v6673_v57 = vpop.f32.mrf.mxu1  ;;  %7279 = vmatpush1.bf16.msra.mxu0 %v13556_v18  ;;  %v9868_v10 = vadd.f32 %v15523_v11, %v6668_v21  ;;  %v13582_v18 = vld [vmem:[#allocation7 + $0xeac] ss:$124 sps:$4 sm:$0xff]  }
 0x19c   : > { %7372 = vmatpush1.bf16.msra.mxu1 %v13559_v0  ;;  %v9897_v58 = vrot.slane %v6670_v13, 1  ;;  %v6674_v62 = vadd.f32 %v6673_v57, %v6580_v16  ;;  %7280 = vmatprep.subr.bf16.mxu0 %v13564_v22  ;;  %v6582_v26 = vpop.f32.mrf.mxu0  ;;  %v13583_v2 = vld [vmem:[#allocation7 + $0x1e28] ss:$124 sps:$4 sm:$0xff]  }
 0x19d   : > { %7373 = vmatprep.subr.bf16.mxu1 %v13567_v4  ;;  %v6675_v29 = vpop.f32.mrf.mxu1  ;;  %7146 = vmatprep.mubr.bf16.mxu0 %v15474_v15 }
 0x19e   : > { %v9898_v51 = vsel %vm9891_vm0, %v9895_v24, %v9897_v58  ;;  %7239 = vmatprep.mubr.bf16.mxu1 %v15478_v47  ;;  %v6676_v36 = vadd.f32 %v6675_v29, %v6582_v26  ;;  %v6584_v54 = vpop.f32.mrf.mxu0  ;;  %v9869_v59 = vadd.f32 %v15523_v11, %v6674_v62  ;;  %v13597_v26 = vld [vmem:[#allocation7 + $0x1c3c] ss:$124 sps:$4 sm:$0xff]  }
 0x19f   : > { %v15542_v53 = vadd.f32 %v9898_v51, %v9867_v44  ;;  %v6677_v37 = vpop.f32.mrf.mxu1  ;;  %7281 = vmatpush1.bf16.msra.mxu0 %v13562_v48  ;;  %v13586_v44 = vld [vmem:[#allocation7 + $0xdb0] ss:$124 sps:$4 sm:$0xff]  }
 0x1a0   : > { %7374 = vmatpush1.bf16.msra.mxu1 %v13565_v61  ;;  %v9899_v38 = vrot.slane %v6676_v36, 1  ;;  %v6678_v40 = vadd.f32 %v6677_v37, %v6584_v54  ;;  %7282 = vmatprep.subr.bf16.mxu0 %v13570_v25  ;;  %v6586_v46 = vpop.f32.mrf.mxu0  ;;  %v13594_v61 = vld [vmem:[#allocation7 + $0xcbc] ss:$124 sps:$4 sm:$0xff]   ;;  %v13603_v54 = vld [vmem:[#allocation7 + $0x1b44] ss:$124 sps:$4 sm:$0xff]  }
 0x1a1   : > { %7375 = vmatprep.subr.bf16.mxu1 %v13573_v49  ;;  %v6679_v15 = vpop.f32.mrf.mxu1 }
 0x1a2   : > { %v9900_v47 = vsel %vm9891_vm0, %v9897_v58, %v9899_v38  ;;  %v6680_v52 = vadd.f32 %v6679_v15, %v6586_v46  ;;  %7147 = vmatmul.mubr.bf16.gmra.mxu0 %v15482_v19  ;;  %v6590_v6 = vpop.f32.mrf.mxu0  ;;  %v13589_v58 = vld [vmem:[#allocation7 + $0x1d30] ss:$124 sps:$4 sm:$0xff]   ;;  %v13601_v46 = vld [vmem:[#allocation7 + $0x1b40] ss:$124 sps:$4 sm:$0xff]  }
 0x1a3   : > { %v15546_v55 = vadd.f32 %v9900_v47, %v9868_v10  ;;  %7240 = vmatmul.mubr.bf16.gmra.mxu1 %v15486_v20  ;;  %v6683_v56 = vpop.f32.mrf.mxu1  ;;  %7283 = vmatpush1.bf16.msra.mxu0 %v13568_v30  ;;  %v9870_v20 = vadd.f32 %v15523_v11, %v6678_v40  ;;  %v13595_v10 = vld [vmem:[#allocation7 + $0x1c38] ss:$124 sps:$4 sm:$0xff]   ;;  %v13600_v30 = vld [vmem:[#allocation7 + $0xbc4] ss:$124 sps:$4 sm:$0xff]   ;;  %v13606_v15 = vld [vmem:[#allocation7 + $0xacc] ss:$124 sps:$4 sm:$0xff]  }
 0x1a4   : > { %7376 = vmatpush1.bf16.msra.mxu1 %v13571_v39  ;;  %v9901_v12 = vrot.slane %v6680_v52, 1  ;;  %v6684_v7 = vadd.f32 %v6683_v56, %v6590_v6  ;;  %7284 = vmatprep.subr.bf16.mxu0 %v13576_v45  ;;  %v6592_v0 = vpop.f32.mrf.mxu0  ;;  %v15573_v40 = vld [vmem:[%s15287_s16 + $0xa0] ss:$16 sps:$4 sm:$0xff]   ;;  %v15577_v45 = vld [vmem:[%s15287_s16 + $0xa8] ss:$16 sps:$4 sm:$0xff]  }
 0x1a5   : > { %7377 = vmatprep.subr.bf16.mxu1 %v13579_v50  ;;  %v6685_v63 = vpop.f32.mrf.mxu1  ;;  %7156 = vmatprep.mubr.bf16.mxu0 %v15490_v27  ;;  %v13609_v50 = vld [vmem:[#allocation7 + $0x1a4c] ss:$124 sps:$4 sm:$0xff]  }
 0x1a6   : > { %v9902_v17 = vsel %vm9891_vm0, %v9899_v38, %v9901_v12  ;;  %7249 = vmatprep.mubr.bf16.mxu1 %v15494_v28  ;;  %v6686_v19 = vadd.f32 %v6685_v63, %v6592_v0  ;;  %v6594_v24 = vpop.f32.mrf.mxu0  ;;  %v13591_v28 = vld [vmem:[#allocation7 + $0x1d34] ss:$124 sps:$4 sm:$0xff]   ;;  %v9871_v35 = vadd.f32 %v15523_v11, %v6684_v7  ;;  %v13604_v56 = vld [vmem:[#allocation7 + $0xac8] ss:$124 sps:$4 sm:$0xff]  }
 0x1a7   : > { %v15554_v1 = vadd.f32 %v9902_v17, %v9869_v59  ;;  %v6687_v21 = vpop.f32.mrf.mxu1  ;;  %7285 = vmatpush1.bf16.msra.mxu0 %v13574_v5  ;;  %v15581_v59 = vld [vmem:[%s15287_s16 + $0x4] ss:$16 sps:$4 sm:$0xff]   ;;  %v15585_v5 = vld [vmem:[%s15287_s16 + $0xc] ss:$16 sps:$4 sm:$0xff]  }
 0x1a8   : > { %7378 = vmatpush1.bf16.msra.mxu1 %v13577_v60  ;;  %v9903_v22 = vrot.slane %v6686_v19, 1  ;;  %v15556_v32 = vadd.f32 %v6687_v21, %v6594_v24  ;;  %7286 = vmatprep.subr.bf16.mxu0 %v13582_v18  ;;  %v6596_v27 = vpop.f32.mrf.mxu0  ;;  %v13612_v0 = vld [vmem:[#allocation7 + $0x9d4] ss:$124 sps:$4 sm:$0xff]  }
 0x1a9   : > { %7379 = vmatprep.subr.bf16.mxu1 %v13585_v8  ;;  %v6689_v31 = vpop.f32.mrf.mxu1  ;;  %v13615_v8 = vld [vmem:[#allocation7 + $0x1954] ss:$124 sps:$4 sm:$0xff]  }
 0x1aa   : > { %v9904_v4 = vsel %vm9891_vm0, %v9901_v12, %v9903_v22  ;;  %v15559_v9 = vadd.f32 %v6689_v31, %v6596_v27  ;;  %7157 = vmatmul.mubr.bf16.gmra.mxu0 %v15498_v33  ;;  %v6600_v48 = vpop.f32.mrf.mxu0  ;;  %v13607_v12 = vld [vmem:[#allocation7 + $0x1a48] ss:$124 sps:$4 sm:$0xff]   ;;  %v9872_v63 = vadd.f32 %v15523_v11, %v15556_v32  ;;  %v13610_v24 = vld [vmem:[#allocation7 + $0x9d0] ss:$124 sps:$4 sm:$0xff]   ;;  %v13616_v11 = vld [vmem:[#allocation7 + $0x8d8] ss:$124 sps:$4 sm:$0xff]  }
 0x1ab   : > { %v15562_v13 = vadd.f32 %v9904_v4, %v9870_v20  ;;  %7250 = vmatmul.mubr.bf16.gmra.mxu1 %v15502_v34  ;;  %v6693_v16 = vpop.f32.mrf.mxu1  ;;  %7287 = vmatpush2.bf16.msra.mxu0 %v13580_v23  ;;  %v13592_v34 = vld [vmem:[#allocation7 + $0xcb8] ss:$124 sps:$4 sm:$0xff]   ;;  %v13613_v21 = vld [vmem:[#allocation7 + $0x1950] ss:$124 sps:$4 sm:$0xff]   ;;  %v13627_v27 = vld [vmem:[#allocation7 + $0x1764] ss:$124 sps:$4 sm:$0xff]  }
 0x1ac   : > { %7380 = vmatpush2.bf16.msra.mxu1 %v13583_v2  ;;  %v9905_v57 = vrot.slane %v15559_v9, 1  ;;  %7288 = vmatprep.subr.bf16.mxu0 %v13588_v3  ;;  %v6602_v62 = vpop.f32.mrf.mxu0  ;;  %v13621_v2 = vld [vmem:[#allocation7 + $0x185c] ss:$124 sps:$4 sm:$0xff]   ;;  %v13624_v3 = vld [vmem:[#allocation7 + $0x7e4] ss:$124 sps:$4 sm:$0xff]  }
 0x1ad   : > { %7381 = vmatprep.subr.bf16.mxu1 %v13591_v28  ;;  %v6695_v25 = vpop.f32.mrf.mxu1  ;;  %7166 = vmatprep.mubr.bf16.mxu0 %v15506_v41  ;;  %v13598_v41 = vld [vmem:[#allocation7 + $0xbc0] ss:$124 sps:$4 sm:$0xff]   ;;  %v13619_v32 = vld [vmem:[#allocation7 + $0x1858] ss:$124 sps:$4 sm:$0xff]  }
 0x1ae   : > { %v9906_v29 = vsel %vm9891_vm0, %v9903_v22, %v9905_v57  ;;  %v6696_v49 = vadd.f32 %v6695_v25, %v6602_v62  ;;  %7259 = vmatprep.mubr.bf16.mxu1 %v15510_v42  ;;  %v6604_v51 = vpop.f32.mrf.mxu0  ;;  %v13618_v22 = vld [vmem:[#allocation7 + $0x8dc] ss:$124 sps:$4 sm:$0xff]   ;;  %v13630_v4 = vld [vmem:[#allocation7 + $0x6f4] ss:$124 sps:$4 sm:$0xff]  }
 0x1af   : > { %v15570_v33 = vadd.f32 %v9906_v29, %v9871_v35  ;;  %v6697_v36 = vpop.f32.mrf.mxu1  ;;  %7289 = vmatpush2.bf16.msra.mxu0 %v13586_v44  ;;  %v13622_v31 = vld [vmem:[#allocation7 + $0x7e0] ss:$124 sps:$4 sm:$0xff]   ;;  %v13633_v9 = vld [vmem:[#allocation7 + $0x1674] ss:$124 sps:$4 sm:$0xff]  }
 0x1b0   : > { %7382 = vmatpush2.bf16.msra.mxu1 %v13589_v58  ;;  %9727 = vst [vmem:[#allocation2 + $0x160] sm:$0xff] %v6696_v49  ;;  %7290 = vmatprep.subr.bf16.mxu0 %v13594_v61  ;;  %v6606_v37 = vpop.f32.mrf.mxu0  ;;  %v13625_v28 = vld [vmem:[#allocation7 + $0x1760] ss:$124 sps:$4 sm:$0xff]   ;;  %v13628_v35 = vld [vmem:[#allocation7 + $0x6f0] ss:$124 sps:$4 sm:$0xff]  }
 0x1b1   : > { %7383 = vmatprep.subr.bf16.mxu1 %v13597_v26  ;;  %v6699_v38 = vpop.f32.mrf.mxu1  ;;  %v13631_v44 = vld [vmem:[#allocation7 + $0x1670] ss:$124 sps:$4 sm:$0xff]   ;;  %v13636_v48 = vld [vmem:[#allocation7 + $0x5fc] ss:$124 sps:$4 sm:$0xff]   ;;  %v13642_v29 = vld [vmem:[#allocation7 + $0x504] ss:$124 sps:$4 sm:$0xff]  }
 0x1b2   : > { %v6610_v42 = vpop.f32.mrf.mxu0  ;;  %7167 = vmatmul.mubr.bf16.gmra.mxu0 %v15573_v40  ;;  %v13639_v16 = vld [vmem:[#allocation7 + $0x157c] ss:$124 sps:$4 sm:$0xff]   ;;  %v15594_v25 = vld [vmem:[%s15287_s16] ss:$16 sps:$4 sm:$0xff]  }
 0x1b3   : > { %v6703_v39 = vpop.f32.mrf.mxu1  ;;  %7260 = vmatmul.mubr.bf16.gmra.mxu1 %v15577_v45  ;;  %7291 = vmatpush2.bf16.msra.mxu0 %v13592_v34  ;;  %v13637_v58 = vld [vmem:[#allocation7 + $0x1578] ss:$124 sps:$4 sm:$0xff]   ;;  %v13645_v49 = vld [vmem:[#allocation7 + $0x1484] ss:$124 sps:$4 sm:$0xff]  }
 0x1b4   : > { %7384 = vmatpush2.bf16.msra.mxu1 %v13595_v10  ;;  %7292 = vmatprep.subr.bf16.mxu0 %v13600_v30  ;;  %v6612_v47 = vpop.f32.mrf.mxu0  ;;  %v15598_v26 = vld [vmem:[%s15287_s16 + $0x8] ss:$16 sps:$4 sm:$0xff]   ;;  %v15602_v30 = vld [vmem:[%s15287_s16 + $0x24] ss:$16 sps:$4 sm:$0xff]   ;;  %v13640_v37 = vld [vmem:[#allocation7 + $0x500] ss:$124 sps:$4 sm:$0xff]  }
 0x1b5   : > { %7385 = vmatprep.subr.bf16.mxu1 %v13603_v54  ;;  %v6705_v52 = vpop.f32.mrf.mxu1  ;;  %7302 = vmatprep.mubr.bf16.mxu0 %v15581_v59  ;;  %v15606_v54 = vld [vmem:[%s15287_s16 + $0x2c] ss:$16 sps:$4 sm:$0xff]  }
 0x1b6   : > { %7395 = vmatprep.mubr.bf16.mxu1 %v15585_v5  ;;  %v6614_v60 = vpop.f32.mrf.mxu0  ;;  %v13643_v38 = vld [vmem:[#allocation7 + $0x1480] ss:$124 sps:$4 sm:$0xff]   ;;  %v13648_v39 = vld [vmem:[#allocation7 + $0x40c] ss:$124 sps:$4 sm:$0xff]  }
 0x1b7   : > { %v9881_v6 = vld [vmem:[#allocation2 + $0x160] sm:$0x1]  ;;  %v6707_v7 = vpop.f32.mrf.mxu1  ;;  %7293 = vmatpush2.bf16.msra.mxu0 %v13598_v41 }
 0x1b8   : > { %v9907_v18 = vrot.slane %v9881_v6, 1  ;;  %7386 = vmatpush2.bf16.msra.mxu1 %v13601_v46  ;;  %7294 = vmatprep.subr.bf16.mxu0 %v13606_v15  ;;  %v6616_v17 = vpop.f32.mrf.mxu0  ;;  %v13651_v46 = vld [vmem:[#allocation7 + $0x138c] ss:$124 sps:$4 sm:$0xff]   ;;  %v15610_v7 = vld [vmem:[%s15287_s16 + $0x20] ss:$16 sps:$4 sm:$0xff]  }
 0x1b9   : > { %7387 = vmatprep.subr.bf16.mxu1 %v13609_v50  ;;  %v6709_v19 = vpop.f32.mrf.mxu1  ;;  %v13646_v6 = vld [vmem:[#allocation7 + $0x408] ss:$124 sps:$4 sm:$0xff]  }
 0x1ba   : > { %v9908_v20 = vsel %vm9891_vm0, %v9905_v57, %v9907_v18  ;;  %v13634_v57 = vld [vmem:[#allocation7 + $0x5f8] ss:$124 sps:$4 sm:$0xff]  }
 0x1bb   : > { %v15591_v23 = vadd.f32 %v9908_v20, %v9872_v63  ;;  %7295 = vmatpush2.bf16.msra.mxu0 %v13604_v56  ;;  %v13649_v56 = vld [vmem:[#allocation7 + $0x1388] ss:$124 sps:$4 sm:$0xff]   ;;  %v13657_v63 = vld [vmem:[#allocation7 + $0x1294] ss:$124 sps:$4 sm:$0xff]  }
 0x1bc   : > { %7388 = vmatpush2.bf16.msra.mxu1 %v13607_v12  ;;  %7296 = vmatprep.subr.bf16.mxu0 %v13612_v0  ;;  %v15614_v18 = vld [vmem:[%s15287_s16 + $0x28] ss:$16 sps:$4 sm:$0xff]   ;;  %v13654_v0 = vld [vmem:[#allocation7 + $0x314] ss:$124 sps:$4 sm:$0xff]  }
 0x1bd   : > { %7389 = vmatprep.subr.bf16.mxu1 %v13615_v8 }
 0x1bf   : > { %7297 = vmatpush2.bf16.msra.mxu0 %v13610_v24 }
 0x1c0   : > { %7390 = vmatpush2.bf16.msra.mxu1 %v13613_v21  ;;  %7298 = vmatprep.subr.bf16.mxu0 %v13618_v22 }
 0x1c1   : > { %7391 = vmatprep.subr.bf16.mxu1 %v13621_v2 }
 0x1c3   : > { %7299 = vmatpush2.bf16.msra.mxu0 %v13616_v11  ;;  %v15618_v11 = vld [vmem:[%s15287_s16 + $0x44] ss:$16 sps:$4 sm:$0xff]  }
 0x1c4   : > { %7392 = vmatpush2.bf16.msra.mxu1 %v13619_v32  ;;  %7300 = vmatprep.subr.bf16.mxu0 %v13624_v3  ;;  %v15622_v32 = vld [vmem:[%s15287_s16 + $0x4c] ss:$16 sps:$4 sm:$0xff]  }
 0x1c5   : > { %7393 = vmatprep.subr.bf16.mxu1 %v13627_v27  ;;  %v13652_v3 = vld [vmem:[#allocation7 + $0x310] ss:$124 sps:$4 sm:$0xff]  }
 0x1c6   : > { %v13655_v27 = vld [vmem:[#allocation7 + $0x1290] ss:$124 sps:$4 sm:$0xff]  }
 0x1c7   : > { %7301 = vmatpush2.bf16.msra.mxu0 %v13622_v31 }
 0x1c8   : > { %7394 = vmatpush2.bf16.msra.mxu1 %v13625_v28  ;;  %7456 = vmatprep.subr.bf16.mxu0 %v13630_v4 }
 0x1c9   : > { %7549 = vmatprep.subr.bf16.mxu1 %v13633_v9 }
 0x1ca   : > { %v6746_v61 = vpop.f32.mrf.mxu0  ;;  %7303 = vmatmul.mubr.bf16.vlgmr.msra.gmra.mxu0 %v15594_v25 }
 0x1cb   : > { %v6839_v62 = vpop.f32.mrf.mxu1  ;;  %7396 = vmatmul.mubr.bf16.vlgmr.msra.gmra.mxu1 %v15598_v26  ;;  %7457 = vmatpush1.bf16.msra.mxu0 %v13628_v35  ;;  %v13660_v35 = vld [vmem:[#allocation7 + $0x21c] ss:$124 sps:$4 sm:$0xff]  }
 0x1cc   : > { %v6840_v34 = vadd.f32 %v6839_v62, %v6746_v61  ;;  %7550 = vmatpush1.bf16.msra.mxu1 %v13631_v44  ;;  %v6748_v51 = vpop.f32.mrf.mxu0  ;;  %7458 = vmatprep.subr.bf16.mxu0 %v13636_v48  ;;  %v13663_v44 = vld [vmem:[#allocation7 + $0x119c] ss:$124 sps:$4 sm:$0xff]  }
 0x1cd   : > { %v6841_v36 = vpop.f32.mrf.mxu1  ;;  %7551 = vmatprep.subr.bf16.mxu1 %v13639_v16  ;;  %7312 = vmatprep.mubr.bf16.mxu0 %v15602_v30 }
 0x1ce   : > { %9480 = vst [vmem:[#allocation2 + $0x810] sm:$0xff] %v6840_v34  ;;  %v6842_v10 = vadd.f32 %v6841_v36, %v6748_v51  ;;  %7405 = vmatprep.mubr.bf16.mxu1 %v15606_v54  ;;  %v6750_v41 = vpop.f32.mrf.mxu0 }
 0x1cf   : > { %v6843_v42 = vpop.f32.mrf.mxu1  ;;  %7459 = vmatpush1.bf16.msra.mxu0 %v13634_v57 }
 0x1d0   : > { %9481 = vst [vmem:[#allocation2 + $0x800] sm:$0xff] %v6842_v10  ;;  %v6844_v15 = vadd.f32 %v6843_v42, %v6750_v41  ;;  %7552 = vmatpush1.bf16.msra.mxu1 %v13637_v58  ;;  %v6752_v50 = vpop.f32.mrf.mxu0  ;;  %7460 = vmatprep.subr.bf16.mxu0 %v13642_v29 }
 0x1d1   : > { %v6845_v47 = vpop.f32.mrf.mxu1  ;;  %7553 = vmatprep.subr.bf16.mxu1 %v13645_v49 }
 0x1d2   : > { %v6846_v52 = vadd.f32 %v6845_v47, %v6752_v50  ;;  %v6756_v12 = vpop.f32.mrf.mxu0  ;;  %7313 = vmatmul.mubr.bf16.gmra.mxu0 %v15610_v7  ;;  %v9945_v21 = vrot.slane %v6844_v15, 2  ;;  %v15640_v15 = vld [vmem:[%s15287_s16 + $0x48] ss:$16 sps:$4 sm:$0xff]   ;;  %v13666_v50 = vld [vmem:[#allocation7 + $0x124] ss:$124 sps:$4 sm:$0xff]  }
 0x1d3   : > { %v6849_v60 = vpop.f32.mrf.mxu1  ;;  %7406 = vmatmul.mubr.bf16.gmra.mxu1 %v15614_v18  ;;  %7461 = vmatpush1.bf16.msra.mxu0 %v13640_v37  ;;  %v13658_v37 = vld [vmem:[#allocation7 + $0x218] ss:$124 sps:$4 sm:$0xff]   ;;  %v13669_v47 = vld [vmem:[#allocation7 + $0x10a4] ss:$124 sps:$4 sm:$0xff]  }
 0x1d4   : > { %v6850_v8 = vadd.f32 %v6849_v60, %v6756_v12  ;;  %7554 = vmatpush1.bf16.msra.mxu1 %v13643_v38  ;;  %v6758_v19 = vpop.f32.mrf.mxu0  ;;  %7462 = vmatprep.subr.bf16.mxu0 %v13648_v39  ;;  %v9997_v28 = vrot.slane %v6846_v52, 3  ;;  %v13661_v38 = vld [vmem:[#allocation7 + $0x1198] ss:$124 sps:$4 sm:$0xff]  }
 0x1d5   : > { %v9925_v17 = vld [vmem:[#allocation2 + $0x810] sm:$0xfc]  ;;  %v6851_v20 = vpop.f32.mrf.mxu1  ;;  %7555 = vmatprep.subr.bf16.mxu1 %v13651_v46  ;;  %7322 = vmatprep.mubr.bf16.mxu0 %v15618_v11 }
 0x1d6   : > { %v9944_v24 = vrot.slane %v9925_v17, 2  ;;  %v9947_v22 = vrot.slane %v6850_v8, 2  ;;  %v6852_v2 = vadd.f32 %v6851_v20, %v6758_v19  ;;  %7415 = vmatprep.mubr.bf16.mxu1 %v15622_v32  ;;  %v6760_v4 = vpop.f32.mrf.mxu0  ;;  %v15636_v46 = vld [vmem:[%s15287_s16 + $0x40] ss:$16 sps:$4 sm:$0xff]   ;;  %v15647_v19 = vld [vmem:[%s15287_s16 + $0x64] ss:$16 sps:$4 sm:$0xff]  }
 0x1d7   : > { %v9977_v31 = vld [vmem:[#allocation2 + $0x800] sm:$0xf8]  ;;  %v6853_v9 = vpop.f32.mrf.mxu1  ;;  %7463 = vmatpush1.bf16.msra.mxu0 %v13646_v6  ;;  %v15651_v20 = vld [vmem:[%s15287_s16 + $0x6c] ss:$16 sps:$4 sm:$0xff]  }
 0x1d8   : > { %v9996_v48 = vrot.slane %v9977_v31, 3  ;;  %v9946_v16 = vsel %vm9943_vm1, %v9944_v24, %v9945_v21  ;;  %v9948_v57 = vsel %vm9943_vm1, %v9945_v21, %v9947_v22  ;;  %v9999_v58 = vrot.slane %v6852_v2, 3  ;;  %7556 = vmatpush1.bf16.msra.mxu1 %v13649_v56  ;;  %v6762_v49 = vpop.f32.mrf.mxu0  ;;  %7464 = vmatprep.subr.bf16.mxu0 %v13654_v0  ;;  %v13664_v24 = vld [vmem:[#allocation7 + $0x120] ss:$124 sps:$4 sm:$0xff]  }
 0x1d9   : > { %v9969_v61 = vadd.f32 %v9946_v16, %v15531_v43  ;;  %v9970_v62 = vadd.f32 %v9948_v57, %v15534_v14  ;;  %v6854_v29 = vadd.f32 %v6853_v9, %v6760_v4  ;;  %v6855_v34 = vpop.f32.mrf.mxu1  ;;  %7557 = vmatprep.subr.bf16.mxu1 %v13657_v63  ;;  %v13667_v21 = vld [vmem:[#allocation7 + $0x10a0] ss:$124 sps:$4 sm:$0xff]  }
 0x1da   : > { %v9998_v51 = vsel %vm9995_vm2, %v9996_v48, %v9997_v28  ;;  %v10000_v36 = vsel %vm9995_vm2, %v9997_v28, %v9999_v58  ;;  %v6856_v10 = vadd.f32 %v6855_v34, %v6762_v49  ;;  %v6766_v14 = vpop.f32.mrf.mxu0  ;;  %7323 = vmatmul.mubr.bf16.gmra.mxu0 %v15636_v46  ;;  %v15662_v34 = vld [vmem:[%s15287_s16 + $0x60] ss:$16 sps:$4 sm:$0xff]  }
 0x1db   : > { %v15631_v41 = vadd.f32 %v9998_v51, %v9969_v61  ;;  %v15633_v42 = vadd.f32 %v10000_v36, %v9970_v62  ;;  %v9949_v43 = vrot.slane %v6854_v29, 2  ;;  %v6859_v39 = vpop.f32.mrf.mxu1  ;;  %7416 = vmatmul.mubr.bf16.gmra.mxu1 %v15640_v15  ;;  %7465 = vmatpush1.bf16.msra.mxu0 %v13652_v3  ;;  %v13672_v3 = vld [vmem:[#allocation7 + $0x2c] ss:$124 sps:$4 sm:$0xff]   ;;  %v13681_v36 = vld [vmem:[#allocation7 + $0x1e34] ss:$124 sps:$4 sm:$0xff]  }
 0x1dc   : > { %v10001_v52 = vrot.slane %v6856_v10, 3  ;;  %v6860_v6 = vadd.f32 %v6859_v39, %v6766_v14  ;;  %7558 = vmatpush1.bf16.msra.mxu1 %v13655_v27  ;;  %v6768_v12 = vpop.f32.mrf.mxu0  ;;  %7466 = vmatprep.subr.bf16.mxu0 %v13660_v35  ;;  %v13675_v27 = vld [vmem:[#allocation7 + $0xfac] ss:$124 sps:$4 sm:$0xff]  }
 0x1dd   : > { %v9950_v56 = vsel %vm9943_vm1, %v9947_v22, %v9949_v43  ;;  %v6861_v60 = vpop.f32.mrf.mxu1  ;;  %7559 = vmatprep.subr.bf16.mxu1 %v13663_v44  ;;  %7332 = vmatprep.mubr.bf16.mxu0 %v15647_v19  ;;  %v13673_v61 = vld [vmem:[#allocation7 + $0xfa8] ss:$124 sps:$4 sm:$0xff]  }
 0x1de   : > { %v9971_v0 = vadd.f32 %v9950_v56, %v15542_v53  ;;  %v10002_v63 = vsel %vm9995_vm2, %v9999_v58, %v10001_v52  ;;  %v9951_v8 = vrot.slane %v6860_v6, 2  ;;  %v6862_v17 = vadd.f32 %v6861_v60, %v6768_v12  ;;  %7425 = vmatprep.mubr.bf16.mxu1 %v15651_v20  ;;  %v6770_v22 = vpop.f32.mrf.mxu0  ;;  %v13670_v58 = vld [vmem:[#allocation7 + $0x28] ss:$124 sps:$4 sm:$0xff]   ;;  %v15677_v56 = vld [vmem:[%s15287_s16 + $0x8c] ss:$16 sps:$4 sm:$0xff]  }
 0x1df   : > { %v6863_v2 = vpop.f32.mrf.mxu1  ;;  %7467 = vmatpush1.bf16.msra.mxu0 %v13658_v37  ;;  %v15666_v51 = vld [vmem:[%s15287_s16 + $0x68] ss:$16 sps:$4 sm:$0xff]   ;;  %v15673_v6 = vld [vmem:[%s15287_s16 + $0x84] ss:$16 sps:$4 sm:$0xff]   ;;  %v13676_v12 = vld [vmem:[#allocation7 + $0xeb0] ss:$124 sps:$4 sm:$0xff]  }
 0x1e0   : > { %v15654_v31 = vadd.f32 %v10002_v63, %v9971_v0  ;;  %v9952_v53 = vsel %vm9943_vm1, %v9949_v43, %v9951_v8  ;;  %v10003_v28 = vrot.slane %v6862_v17, 3  ;;  %v6864_v4 = vadd.f32 %v6863_v2, %v6770_v22  ;;  %7560 = vmatpush1.bf16.msra.mxu1 %v13661_v38  ;;  %v6772_v35 = vpop.f32.mrf.mxu0  ;;  %7468 = vmatprep.subr.bf16.mxu0 %v13666_v50  ;;  %v13679_v60 = vld [vmem:[#allocation7 + $0x1e30] ss:$124 sps:$4 sm:$0xff]   ;;  %v13687_v17 = vld [vmem:[#allocation7 + $0x1d3c] ss:$124 sps:$4 sm:$0xff]  }
 0x1e1   : > { %v9972_v9 = vadd.f32 %v9952_v53, %v15546_v55  ;;  %v6865_v44 = vpop.f32.mrf.mxu1  ;;  %7561 = vmatprep.subr.bf16.mxu1 %v13669_v47  ;;  %v13678_v55 = vld [vmem:[#allocation7 + $0xeb4] ss:$124 sps:$4 sm:$0xff]  }
 0x1e2   : > { %v10004_v48 = vsel %vm9995_vm2, %v10001_v52, %v10003_v28  ;;  %v9953_v16 = vrot.slane %v6864_v4, 2  ;;  %v6866_v57 = vadd.f32 %v6865_v44, %v6772_v35  ;;  %v6776_v29 = vpop.f32.mrf.mxu0  ;;  %7333 = vmatmul.mubr.bf16.gmra.mxu0 %v15662_v34  ;;  %v13685_v35 = vld [vmem:[#allocation7 + $0x1d38] ss:$124 sps:$4 sm:$0xff]  }
 0x1e3   : > { %v15659_v62 = vadd.f32 %v10004_v48, %v9972_v9  ;;  %v6869_v49 = vpop.f32.mrf.mxu1  ;;  %7426 = vmatmul.mubr.bf16.gmra.mxu1 %v15666_v51  ;;  %7469 = vmatpush1.bf16.msra.mxu0 %v13664_v24  ;;  %v13682_v9 = vld [vmem:[#allocation7 + $0xdb8] ss:$124 sps:$4 sm:$0xff]  }
 0x1e4   : > { %v9954_v10 = vsel %vm9943_vm1, %v9951_v8, %v9953_v16  ;;  %v10005_v37 = vrot.slane %v6866_v57, 3  ;;  %v6870_v38 = vadd.f32 %v6869_v49, %v6776_v29  ;;  %7562 = vmatpush1.bf16.msra.mxu1 %v13667_v21  ;;  %v6778_v14 = vpop.f32.mrf.mxu0  ;;  %7470 = vmatprep.subr.bf16.mxu0 %v13672_v3  ;;  %v13684_v8 = vld [vmem:[#allocation7 + $0xdbc] ss:$124 sps:$4 sm:$0xff]   ;;  %v15693_v57 = vld [vmem:[%s15287_s16 + $0x80] ss:$16 sps:$4 sm:$0xff]  }
 0x1e5   : > { %v9973_v43 = vadd.f32 %v9954_v10, %v15554_v1  ;;  %v6871_v39 = vpop.f32.mrf.mxu1  ;;  %7563 = vmatprep.subr.bf16.mxu1 %v13675_v27  ;;  %7342 = vmatprep.mubr.bf16.mxu0 %v15673_v6 }
 0x1e6   : > { %v10006_v50 = vsel %vm9995_vm2, %v10003_v28, %v10005_v37  ;;  %v9955_v47 = vrot.slane %v6870_v38, 2  ;;  %v6872_v52 = vadd.f32 %v6871_v39, %v6778_v14  ;;  %7435 = vmatprep.mubr.bf16.mxu1 %v15677_v56  ;;  %v6780_v1 = vpop.f32.mrf.mxu0  ;;  %v13688_v14 = vld [vmem:[#allocation7 + $0xcc0] ss:$124 sps:$4 sm:$0xff]  }
 0x1e7   : > { %v15680_v0 = vadd.f32 %v10006_v50, %v9973_v43  ;;  %v6873_v63 = vpop.f32.mrf.mxu1  ;;  %7471 = vmatpush1.bf16.msra.mxu0 %v13670_v58  ;;  %v13690_v58 = vld [vmem:[#allocation7 + $0xcc4] ss:$124 sps:$4 sm:$0xff]  }
 0x1e8   : > { %v9956_v24 = vsel %vm9943_vm1, %v9953_v16, %v9955_v47  ;;  %v10007_v21 = vrot.slane %v6872_v52, 3  ;;  %v15683_v22 = vadd.f32 %v6873_v63, %v6780_v1  ;;  %7564 = vmatpush1.bf16.msra.mxu1 %v13673_v61  ;;  %v6782_v3 = vpop.f32.mrf.mxu0  ;;  %7472 = vmatprep.subr.bf16.mxu0 %v13678_v55  ;;  %v13693_v61 = vld [vmem:[#allocation7 + $0x1c44] ss:$124 sps:$4 sm:$0xff]   ;;  %v13696_v52 = vld [vmem:[#allocation7 + $0xbcc] ss:$124 sps:$4 sm:$0xff]  }
 0x1e9   : > { %v9974_v2 = vadd.f32 %v9956_v24, %v15562_v13  ;;  %v6875_v27 = vpop.f32.mrf.mxu1  ;;  %7565 = vmatprep.subr.bf16.mxu1 %v13681_v36  ;;  %v15697_v13 = vld [vmem:[%s15287_s16 + $0x88] ss:$16 sps:$4 sm:$0xff]   ;;  %v13691_v39 = vld [vmem:[#allocation7 + $0x1c40] ss:$124 sps:$4 sm:$0xff]   ;;  %v15709_v50 = vld [vmem:[%s15287_s16 + $0xa4] ss:$16 sps:$4 sm:$0xff]  }
 0x1ea   : > { %v10008_v53 = vsel %vm9995_vm2, %v10005_v37, %v10007_v21  ;;  %v9957_v28 = vrot.slane %v15683_v22, 2  ;;  %v15688_v4 = vadd.f32 %v6875_v27, %v6782_v3  ;;  %v6786_v48 = vpop.f32.mrf.mxu0  ;;  %7343 = vmatmul.mubr.bf16.gmra.mxu0 %v15693_v57  ;;  %v13697_v24 = vld [vmem:[#allocation7 + $0x1b48] ss:$124 sps:$4 sm:$0xff]  }
 0x1eb   : > { %v15690_v44 = vadd.f32 %v10008_v53, %v9974_v2  ;;  %v6879_v16 = vpop.f32.mrf.mxu1  ;;  %7436 = vmatmul.mubr.bf16.gmra.mxu1 %v15697_v13  ;;  %7473 = vmatpush2.bf16.msra.mxu0 %v13676_v12  ;;  %v13699_v12 = vld [vmem:[#allocation7 + $0x1b4c] ss:$124 sps:$4 sm:$0xff]   ;;  %v13705_v2 = vld [vmem:[#allocation7 + $0x1a54] ss:$124 sps:$4 sm:$0xff]  }
 0x1ec   : > { %v9958_v29 = vsel %vm9943_vm1, %v9955_v47, %v9957_v28  ;;  %v10009_v49 = vrot.slane %v15688_v4, 3  ;;  %v6880_v55 = vadd.f32 %v6879_v16, %v6786_v48  ;;  %7566 = vmatpush2.bf16.msra.mxu1 %v13679_v60  ;;  %v6788_v10 = vpop.f32.mrf.mxu0  ;;  %7474 = vmatprep.subr.bf16.mxu0 %v13684_v8  ;;  %v15713_v47 = vld [vmem:[%s15287_s16 + $0xac] ss:$16 sps:$4 sm:$0xff]  }
 0x1ed   : > { %v9975_v36 = vadd.f32 %v9958_v29, %v15570_v33  ;;  %v6881_v37 = vpop.f32.mrf.mxu1  ;;  %7567 = vmatprep.subr.bf16.mxu1 %v13687_v17  ;;  %7352 = vmatprep.mubr.bf16.mxu0 %v15709_v50  ;;  %v13694_v17 = vld [vmem:[#allocation7 + $0xbc8] ss:$124 sps:$4 sm:$0xff]   ;;  %v13700_v29 = vld [vmem:[#allocation7 + $0xad0] ss:$124 sps:$4 sm:$0xff]  }
 0x1ee   : > { %v10010_v38 = vsel %vm9995_vm2, %v10007_v21, %v10009_v49  ;;  %9728 = vst [vmem:[#allocation2 + $0x60] sm:$0xff] %v6880_v55  ;;  %v6882_v43 = vadd.f32 %v6881_v37, %v6788_v10  ;;  %7445 = vmatprep.mubr.bf16.mxu1 %v15713_v47  ;;  %v6790_v60 = vpop.f32.mrf.mxu0  ;;  %v13702_v21 = vld [vmem:[#allocation7 + $0xad4] ss:$124 sps:$4 sm:$0xff]   ;;  %v13708_v10 = vld [vmem:[#allocation7 + $0x9dc] ss:$124 sps:$4 sm:$0xff]  }
 0x1ef   : > { %v15716_v33 = vadd.f32 %v10010_v38, %v9975_v36  ;;  %v6883_v1 = vpop.f32.mrf.mxu1  ;;  %7475 = vmatpush2.bf16.msra.mxu0 %v13682_v9  ;;  %v13703_v55 = vld [vmem:[#allocation7 + $0x1a50] ss:$124 sps:$4 sm:$0xff]   ;;  %v13721_v60 = vld [vmem:[#allocation7 + $0x1768] ss:$124 sps:$4 sm:$0xff]  }
 0x1f0   : > { %9729 = vst [vmem:[#allocation2 + $0x5f0] sm:$0xff] %v6882_v43  ;;  %7568 = vmatpush2.bf16.msra.mxu1 %v13685_v35  ;;  %7476 = vmatprep.subr.bf16.mxu0 %v13690_v58  ;;  %v6792_v63 = vpop.f32.mrf.mxu0  ;;  %v13709_v43 = vld [vmem:[#allocation7 + $0x1958] ss:$124 sps:$4 sm:$0xff]   ;;  %v13723_v4 = vld [vmem:[#allocation7 + $0x176c] ss:$124 sps:$4 sm:$0xff]  }
 0x1f1   : > { %7569 = vmatprep.subr.bf16.mxu1 %v13693_v61  ;;  %v6885_v8 = vpop.f32.mrf.mxu1  ;;  %v13726_v1 = vld [vmem:[#allocation7 + $0x6fc] ss:$124 sps:$4 sm:$0xff]  }
 0x1f2   : > { %v6796_v3 = vpop.f32.mrf.mxu0  ;;  %7353 = vmatmul.mubr.bf16.gmra.mxu0 %v15573_v40  ;;  %v13729_v63 = vld [vmem:[#allocation7 + $0x167c] ss:$124 sps:$4 sm:$0xff]  }
 0x1f3   : > { %v6889_v27 = vpop.f32.mrf.mxu1  ;;  %7446 = vmatmul.mubr.bf16.gmra.mxu1 %v15577_v45  ;;  %7477 = vmatpush2.bf16.msra.mxu0 %v13688_v14  ;;  %v13714_v14 = vld [vmem:[#allocation7 + $0x8e4] ss:$124 sps:$4 sm:$0xff]   ;;  %v13724_v8 = vld [vmem:[#allocation7 + $0x6f8] ss:$124 sps:$4 sm:$0xff]  }
 0x1f4   : > { %7570 = vmatpush2.bf16.msra.mxu1 %v13691_v39  ;;  %7478 = vmatprep.subr.bf16.mxu0 %v13696_v52  ;;  %v6798_v9 = vpop.f32.mrf.mxu0  ;;  %v13712_v39 = vld [vmem:[#allocation7 + $0x8e0] ss:$124 sps:$4 sm:$0xff]  }
 0x1f5   : > { %v9933_v53 = vld [vmem:[#allocation2 + $0x60] sm:$0x3]  ;;  %7571 = vmatprep.subr.bf16.mxu1 %v13699_v12  ;;  %v6891_v35 = vpop.f32.mrf.mxu1  ;;  %7488 = vmatprep.mubr.bf16.mxu0 %v15581_v59  ;;  %v13720_v12 = vld [vmem:[#allocation7 + $0x7ec] ss:$124 sps:$4 sm:$0xff]  }
 0x1f6   : > { %v9959_v48 = vrot.slane %v9933_v53, 2  ;;  %7581 = vmatprep.mubr.bf16.mxu1 %v15585_v5  ;;  %v6800_v58 = vpop.f32.mrf.mxu0  ;;  %v13711_v59 = vld [vmem:[#allocation7 + $0x195c] ss:$124 sps:$4 sm:$0xff]   ;;  %v13738_v9 = vld [vmem:[#allocation7 + $0x50c] ss:$124 sps:$4 sm:$0xff]  }
 0x1f7   : > { %v9985_v16 = vld [vmem:[#allocation2 + $0x5f0] sm:$0x7]  ;;  %v6893_v61 = vpop.f32.mrf.mxu1  ;;  %7479 = vmatpush2.bf16.msra.mxu0 %v13694_v17  ;;  %v13715_v52 = vld [vmem:[#allocation7 + $0x1860] ss:$124 sps:$4 sm:$0xff]   ;;  %v13727_v17 = vld [vmem:[#allocation7 + $0x1678] ss:$124 sps:$4 sm:$0xff]  }
 0x1f8   : > { %v9960_v40 = vsel %vm9943_vm1, %v9957_v28, %v9959_v48  ;;  %v10011_v45 = vrot.slane %v9985_v16, 3  ;;  %7572 = vmatpush2.bf16.msra.mxu1 %v13697_v24  ;;  %7480 = vmatprep.subr.bf16.mxu0 %v13702_v21  ;;  %v6802_v37 = vpop.f32.mrf.mxu0  ;;  %v13706_v28 = vld [vmem:[#allocation7 + $0x9d8] ss:$124 sps:$4 sm:$0xff]   ;;  %v13732_v24 = vld [vmem:[#allocation7 + $0x604] ss:$124 sps:$4 sm:$0xff]  }
 0x1f9   : > { %v9976_v36 = vadd.f32 %v9960_v40, %v15591_v23  ;;  %7573 = vmatprep.subr.bf16.mxu1 %v13705_v2  ;;  %v6895_v5 = vpop.f32.mrf.mxu1  ;;  %v13717_v23 = vld [vmem:[#allocation7 + $0x1864] ss:$124 sps:$4 sm:$0xff]   ;;  %v13741_v35 = vld [vmem:[#allocation7 + $0x148c] ss:$124 sps:$4 sm:$0xff]  }
 0x1fa   : > { %v10012_v38 = vsel %vm9995_vm2, %v10009_v49, %v10011_v45  ;;  %v13718_v49 = vld [vmem:[#allocation7 + $0x7e8] ss:$124 sps:$4 sm:$0xff]   ;;  %v13730_v2 = vld [vmem:[#allocation7 + $0x600] ss:$124 sps:$4 sm:$0xff]   ;;  %v13742_v5 = vld [vmem:[#allocation7 + $0x410] ss:$124 sps:$4 sm:$0xff]  }
 0x1fb   : > { %v15729_v22 = vadd.f32 %v10012_v38, %v9976_v36  ;;  %7481 = vmatpush2.bf16.msra.mxu0 %v13700_v29  ;;  %v13735_v21 = vld [vmem:[#allocation7 + $0x1584] ss:$124 sps:$4 sm:$0xff]   ;;  %v13745_v38 = vld [vmem:[#allocation7 + $0x1390] ss:$124 sps:$4 sm:$0xff]  }
 0x1fc   : > { %7574 = vmatpush2.bf16.msra.mxu1 %v13703_v55  ;;  %7482 = vmatprep.subr.bf16.mxu0 %v13708_v10  ;;  %v13733_v3 = vld [vmem:[#allocation7 + $0x1580] ss:$124 sps:$4 sm:$0xff]   ;;  %v13736_v40 = vld [vmem:[#allocation7 + $0x508] ss:$124 sps:$4 sm:$0xff]   ;;  %v13747_v55 = vld [vmem:[#allocation7 + $0x1394] ss:$124 sps:$4 sm:$0xff]  }
 0x1fd   : > { %7575 = vmatprep.subr.bf16.mxu1 %v13711_v59  ;;  %v13739_v45 = vld [vmem:[#allocation7 + $0x1488] ss:$124 sps:$4 sm:$0xff]  }
 0x1ff   : > { %7483 = vmatpush2.bf16.msra.mxu0 %v13706_v28 }
 0x200   : > { %7576 = vmatpush2.bf16.msra.mxu1 %v13709_v43  ;;  %7484 = vmatprep.subr.bf16.mxu0 %v13714_v14  ;;  %v13753_v43 = vld [vmem:[#allocation7 + $0x129c] ss:$124 sps:$4 sm:$0xff]  }
 0x201   : > { %7577 = vmatprep.subr.bf16.mxu1 %v13717_v23 }
 0x203   : > { %7485 = vmatpush2.bf16.msra.mxu0 %v13712_v39 }
 0x204   : > { %7578 = vmatpush2.bf16.msra.mxu1 %v13715_v52  ;;  %7486 = vmatprep.subr.bf16.mxu0 %v13720_v12 }
 0x205   : > { %7579 = vmatprep.subr.bf16.mxu1 %v13723_v4 }
 0x207   : > { %7487 = vmatpush2.bf16.msra.mxu0 %v13718_v49 }
 0x208   : > { %7580 = vmatpush2.bf16.msra.mxu1 %v13721_v60  ;;  %7642 = vmatprep.subr.bf16.mxu0 %v13726_v1 }
 0x209   : > { %7735 = vmatprep.subr.bf16.mxu1 %v13729_v63 }
 0x20a   : > { %v6932_v27 = vpop.f32.mrf.mxu0  ;;  %7489 = vmatmul.mubr.bf16.vlgmr.msra.gmra.mxu0 %v15594_v25 }
 0x20b   : > { %v7025_v53 = vpop.f32.mrf.mxu1  ;;  %7582 = vmatmul.mubr.bf16.vlgmr.msra.gmra.mxu1 %v15598_v26  ;;  %7643 = vmatpush1.bf16.msra.mxu0 %v13724_v8  ;;  %v13744_v26 = vld [vmem:[#allocation7 + $0x414] ss:$124 sps:$4 sm:$0xff]  }
 0x20c   : > { %v7026_v48 = vadd.f32 %v7025_v53, %v6932_v27  ;;  %7736 = vmatpush1.bf16.msra.mxu1 %v13727_v17  ;;  %v6934_v16 = vpop.f32.mrf.mxu0  ;;  %7644 = vmatprep.subr.bf16.mxu0 %v13732_v24  ;;  %v13756_v24 = vld [vmem:[#allocation7 + $0x224] ss:$124 sps:$4 sm:$0xff]  }
 0x20d   : > { %v7027_v58 = vpop.f32.mrf.mxu1  ;;  %7737 = vmatprep.subr.bf16.mxu1 %v13735_v21  ;;  %7498 = vmatprep.mubr.bf16.mxu0 %v15602_v30  ;;  %v13759_v21 = vld [vmem:[#allocation7 + $0x11a4] ss:$124 sps:$4 sm:$0xff]  }
 0x20e   : > { %9482 = vst [vmem:[#allocation2 + $0x760] sm:$0xff] %v7026_v48  ;;  %v7028_v61 = vadd.f32 %v7027_v58, %v6934_v16  ;;  %7591 = vmatprep.mubr.bf16.mxu1 %v15606_v54  ;;  %v6936_v25 = vpop.f32.mrf.mxu0  ;;  %v13750_v54 = vld [vmem:[#allocation7 + $0x31c] ss:$124 sps:$4 sm:$0xff]  }
 0x20f   : > { %v7029_v29 = vpop.f32.mrf.mxu1  ;;  %7645 = vmatpush1.bf16.msra.mxu0 %v13730_v2 }
 0x210   : > { %9483 = vst [vmem:[#allocation2 + $0x328] sm:$0xff] %v7028_v61  ;;  %v7030_v36 = vadd.f32 %v7029_v29, %v6936_v25  ;;  %7738 = vmatpush1.bf16.msra.mxu1 %v13733_v3  ;;  %v6938_v10 = vpop.f32.mrf.mxu0  ;;  %7646 = vmatprep.subr.bf16.mxu0 %v13738_v9 }
 0x211   : > { %v7031_v59 = vpop.f32.mrf.mxu1  ;;  %7739 = vmatprep.subr.bf16.mxu1 %v13741_v35 }
 0x212   : > { %v7032_v37 = vadd.f32 %v7031_v59, %v6938_v10  ;;  %v6942_v30 = vpop.f32.mrf.mxu0  ;;  %7499 = vmatmul.mubr.bf16.gmra.mxu0 %v15610_v7  ;;  %v10049_v4 = vrot.slane %v7030_v36, 4  ;;  %v13748_v7 = vld [vmem:[#allocation7 + $0x318] ss:$124 sps:$4 sm:$0xff]  }
 0x213   : > { %v7035_v28 = vpop.f32.mrf.mxu1  ;;  %7592 = vmatmul.mubr.bf16.gmra.mxu1 %v15614_v18  ;;  %7647 = vmatpush1.bf16.msra.mxu0 %v13736_v40  ;;  %v13751_v18 = vld [vmem:[#allocation7 + $0x1298] ss:$124 sps:$4 sm:$0xff]   ;;  %v13754_v40 = vld [vmem:[#allocation7 + $0x220] ss:$124 sps:$4 sm:$0xff]  }
 0x214   : > { %v7036_v14 = vadd.f32 %v7035_v28, %v6942_v30  ;;  %7740 = vmatpush1.bf16.msra.mxu1 %v13739_v45  ;;  %v6944_v39 = vpop.f32.mrf.mxu0  ;;  %7648 = vmatprep.subr.bf16.mxu0 %v13744_v26  ;;  %v10101_v63 = vrot.slane %v7032_v37, 5  ;;  %v13757_v45 = vld [vmem:[#allocation7 + $0x11a0] ss:$124 sps:$4 sm:$0xff]  }
 0x215   : > { %v10029_v23 = vld [vmem:[#allocation2 + $0x760] sm:$0xf0]  ;;  %v7037_v52 = vpop.f32.mrf.mxu1  ;;  %7741 = vmatprep.subr.bf16.mxu1 %v13747_v55  ;;  %7508 = vmatprep.mubr.bf16.mxu0 %v15618_v11 }
 0x216   : > { %v10048_v12 = vrot.slane %v10029_v23, 4  ;;  %v10051_v49 = vrot.slane %v7036_v14, 4  ;;  %v7038_v60 = vadd.f32 %v7037_v52, %v6944_v39  ;;  %7601 = vmatprep.mubr.bf16.mxu1 %v15622_v32  ;;  %v6946_v8 = vpop.f32.mrf.mxu0  ;;  %v13768_v39 = vld [vmem:[#allocation7 + $0x34] ss:$124 sps:$4 sm:$0xff]  }
 0x217   : > { %v10081_v1 = vld [vmem:[#allocation2 + $0x328] sm:$0xe0]  ;;  %v7039_v17 = vpop.f32.mrf.mxu1  ;;  %7649 = vmatpush1.bf16.msra.mxu0 %v13742_v5  ;;  %v13771_v52 = vld [vmem:[#allocation7 + $0xfb4] ss:$124 sps:$4 sm:$0xff]  }
 0x218   : > { %v10100_v2 = vrot.slane %v10081_v1, 5  ;;  %v10050_v3 = vsel %vm10047_vm3, %v10048_v12, %v10049_v4  ;;  %v10052_v27 = vsel %vm10047_vm3, %v10049_v4, %v10051_v49  ;;  %v10103_v53 = vrot.slane %v7038_v60, 5  ;;  %7742 = vmatpush1.bf16.msra.mxu1 %v13745_v38  ;;  %v6948_v35 = vpop.f32.mrf.mxu0  ;;  %7650 = vmatprep.subr.bf16.mxu0 %v13750_v54  ;;  %v13760_v54 = vld [vmem:[#allocation7 + $0x128] ss:$124 sps:$4 sm:$0xff]  }
 0x219   : > { %v10073_v11 = vadd.f32 %v10050_v3, %v15631_v41  ;;  %v10074_v32 = vadd.f32 %v10052_v27, %v15633_v42  ;;  %v7040_v9 = vadd.f32 %v7039_v17, %v6946_v8  ;;  %v7041_v48 = vpop.f32.mrf.mxu1  ;;  %7743 = vmatprep.subr.bf16.mxu1 %v13753_v43  ;;  %v13762_v41 = vld [vmem:[#allocation7 + $0x12c] ss:$124 sps:$4 sm:$0xff]  }
 0x21a   : > { %v10102_v16 = vsel %vm10099_vm4, %v10100_v2, %v10101_v63  ;;  %v10104_v58 = vsel %vm10099_vm4, %v10101_v63, %v10103_v53  ;;  %v7042_v61 = vadd.f32 %v7041_v48, %v6948_v35  ;;  %v6952_v26 = vpop.f32.mrf.mxu0  ;;  %7509 = vmatmul.mubr.bf16.gmra.mxu0 %v15636_v46  ;;  %v13765_v42 = vld [vmem:[#allocation7 + $0x10ac] ss:$124 sps:$4 sm:$0xff]   ;;  %v13774_v2 = vld [vmem:[#allocation7 + $0xebc] ss:$124 sps:$4 sm:$0xff]  }
 0x21b   : > { %v15745_v25 = vadd.f32 %v10104_v58, %v10074_v32  ;;  %v10053_v29 = vrot.slane %v7040_v9, 4  ;;  %v7045_v55 = vpop.f32.mrf.mxu1  ;;  %7602 = vmatmul.mubr.bf16.gmra.mxu1 %v15640_v15  ;;  %v15749_v36 = vadd.f32 %v10102_v16, %v10073_v11  ;;  %7651 = vmatpush1.bf16.msra.mxu0 %v13748_v7  ;;  %v13763_v43 = vld [vmem:[#allocation7 + $0x10a8] ss:$124 sps:$4 sm:$0xff]   ;;  %v13766_v63 = vld [vmem:[#allocation7 + $0x30] ss:$124 sps:$4 sm:$0xff]  }
 0x21c   : > { %v10105_v10 = vrot.slane %v7042_v61, 5  ;;  %v7046_v59 = vadd.f32 %v7045_v55, %v6952_v26  ;;  %7744 = vmatpush1.bf16.msra.mxu1 %v13751_v18  ;;  %v6954_v5 = vpop.f32.mrf.mxu0  ;;  %7652 = vmatprep.subr.bf16.mxu0 %v13756_v24  ;;  %v13769_v8 = vld [vmem:[#allocation7 + $0xfb0] ss:$124 sps:$4 sm:$0xff]   ;;  %v13775_v16 = vld [vmem:[#allocation7 + $0x1e38] ss:$124 sps:$4 sm:$0xff]  }
 0x21d   : > { %v10054_v37 = vsel %vm10047_vm3, %v10051_v49, %v10053_v29  ;;  %v7047_v38 = vpop.f32.mrf.mxu1  ;;  %7745 = vmatprep.subr.bf16.mxu1 %v13759_v21  ;;  %7518 = vmatprep.mubr.bf16.mxu0 %v15647_v19 }
 0x21e   : > { %v10075_v30 = vadd.f32 %v10054_v37, %v15654_v31  ;;  %v10106_v46 = vsel %vm10099_vm4, %v10103_v53, %v10105_v10  ;;  %v10055_v28 = vrot.slane %v7046_v59, 4  ;;  %v7048_v15 = vadd.f32 %v7047_v38, %v6954_v5  ;;  %7611 = vmatprep.mubr.bf16.mxu1 %v15651_v20  ;;  %v6956_v14 = vpop.f32.mrf.mxu0  ;;  %v13778_v37 = vld [vmem:[#allocation7 + $0xdc0] ss:$124 sps:$4 sm:$0xff]  }
 0x21f   : > { %v7049_v23 = vpop.f32.mrf.mxu1  ;;  %7653 = vmatpush1.bf16.msra.mxu0 %v13754_v40  ;;  %v13780_v40 = vld [vmem:[#allocation7 + $0xdc4] ss:$124 sps:$4 sm:$0xff]  }
 0x220   : > { %v10056_v12 = vsel %vm10047_vm3, %v10053_v29, %v10055_v28  ;;  %v10107_v4 = vrot.slane %v7048_v15, 5  ;;  %v7050_v49 = vadd.f32 %v7049_v23, %v6956_v14  ;;  %7746 = vmatpush1.bf16.msra.mxu1 %v13757_v45  ;;  %v15757_v31 = vadd.f32 %v10106_v46, %v10075_v30  ;;  %v6958_v7 = vpop.f32.mrf.mxu0  ;;  %7654 = vmatprep.subr.bf16.mxu0 %v13762_v41  ;;  %v13783_v45 = vld [vmem:[#allocation7 + $0x1d44] ss:$124 sps:$4 sm:$0xff]  }
 0x221   : > { %v10076_v60 = vadd.f32 %v10056_v12, %v15659_v62  ;;  %v7051_v19 = vpop.f32.mrf.mxu1  ;;  %7747 = vmatprep.subr.bf16.mxu1 %v13765_v42  ;;  %v13777_v62 = vld [vmem:[#allocation7 + $0x1e3c] ss:$124 sps:$4 sm:$0xff]   ;;  %v13787_v12 = vld [vmem:[#allocation7 + $0x1c48] ss:$124 sps:$4 sm:$0xff]  }
 0x222   : > { %v10108_v20 = vsel %vm10099_vm4, %v10105_v10, %v10107_v4  ;;  %v10057_v18 = vrot.slane %v7050_v49, 4  ;;  %v7052_v1 = vadd.f32 %v7051_v19, %v6958_v7  ;;  %v6962_v24 = vpop.f32.mrf.mxu0  ;;  %7519 = vmatmul.mubr.bf16.gmra.mxu0 %v15662_v34  ;;  %v13781_v5 = vld [vmem:[#allocation7 + $0x1d40] ss:$124 sps:$4 sm:$0xff]   ;;  %v13795_v49 = vld [vmem:[#allocation7 + $0x1b54] ss:$124 sps:$4 sm:$0xff]  }
 0x223   : > { %v15761_v17 = vadd.f32 %v10108_v20, %v10076_v60  ;;  %v7055_v21 = vpop.f32.mrf.mxu1  ;;  %7612 = vmatmul.mubr.bf16.gmra.mxu1 %v15666_v51  ;;  %7655 = vmatpush1.bf16.msra.mxu0 %v13760_v54  ;;  %v13772_v51 = vld [vmem:[#allocation7 + $0xeb8] ss:$124 sps:$4 sm:$0xff]  }
 0x224   : > { %v10058_v3 = vsel %vm10047_vm3, %v10055_v28, %v10057_v18  ;;  %v10109_v27 = vrot.slane %v7052_v1, 5  ;;  %v7056_v53 = vadd.f32 %v7055_v21, %v6962_v24  ;;  %7748 = vmatpush1.bf16.msra.mxu1 %v13763_v43  ;;  %v6964_v32 = vpop.f32.mrf.mxu0  ;;  %7656 = vmatprep.subr.bf16.mxu0 %v13768_v39  ;;  %v13789_v28 = vld [vmem:[#allocation7 + $0x1c4c] ss:$124 sps:$4 sm:$0xff]   ;;  %v15797_v24 = vld [vmem:[%s15287_s16 + $0xa0] ss:$16 sps:$4 sm:$0xff]  }
 0x225   : > { %v10077_v11 = vadd.f32 %v10058_v3, %v15680_v0  ;;  %v7057_v9 = vpop.f32.mrf.mxu1  ;;  %7749 = vmatprep.subr.bf16.mxu1 %v13771_v52  ;;  %7528 = vmatprep.mubr.bf16.mxu0 %v15673_v6  ;;  %v13784_v52 = vld [vmem:[#allocation7 + $0xcc8] ss:$124 sps:$4 sm:$0xff]   ;;  %v13793_v1 = vld [vmem:[#allocation7 + $0x1b50] ss:$124 sps:$4 sm:$0xff]  }
 0x226   : > { %v10110_v35 = vsel %vm10099_vm4, %v10107_v4, %v10109_v27  ;;  %v10059_v48 = vrot.slane %v7056_v53, 4  ;;  %v7058_v34 = vadd.f32 %v7057_v9, %v6964_v32  ;;  %7621 = vmatprep.mubr.bf16.mxu1 %v15677_v56  ;;  %v6966_v58 = vpop.f32.mrf.mxu0  ;;  %v13792_v4 = vld [vmem:[#allocation7 + $0xbd4] ss:$124 sps:$4 sm:$0xff]   ;;  %v15801_v21 = vld [vmem:[%s15287_s16 + $0xa8] ss:$16 sps:$4 sm:$0xff]  }
 0x227   : > { %v7059_v61 = vpop.f32.mrf.mxu1  ;;  %v15770_v29 = vadd.f32 %v10110_v35, %v10077_v11  ;;  %7657 = vmatpush1.bf16.msra.mxu0 %v13766_v63  ;;  %v13801_v63 = vld [vmem:[#allocation7 + $0x1a5c] ss:$124 sps:$4 sm:$0xff]   ;;  %v15805_v32 = vld [vmem:[%s15287_s16 + $0x4] ss:$16 sps:$4 sm:$0xff]  }
 0x228   : > { %v10060_v0 = vsel %vm10047_vm3, %v10057_v18, %v10059_v48  ;;  %v10111_v26 = vrot.slane %v7058_v34, 5  ;;  %v15773_v55 = vadd.f32 %v7059_v61, %v6966_v58  ;;  %7750 = vmatpush1.bf16.msra.mxu1 %v13769_v8  ;;  %v6968_v6 = vpop.f32.mrf.mxu0  ;;  %7658 = vmatprep.subr.bf16.mxu0 %v13774_v2  ;;  %v13790_v18 = vld [vmem:[#allocation7 + $0xbd0] ss:$124 sps:$4 sm:$0xff]   ;;  %v13796_v53 = vld [vmem:[#allocation7 + $0xad8] ss:$124 sps:$4 sm:$0xff]  }
 0x229   : > { %v10078_v41 = vadd.f32 %v10060_v0, %v15690_v44  ;;  %v7061_v42 = vpop.f32.mrf.mxu1  ;;  %7751 = vmatprep.subr.bf16.mxu1 %v13777_v62  ;;  %v13786_v44 = vld [vmem:[#allocation7 + $0xccc] ss:$124 sps:$4 sm:$0xff]   ;;  %v13799_v11 = vld [vmem:[#allocation7 + $0x1a58] ss:$124 sps:$4 sm:$0xff]   ;;  %v13807_v34 = vld [vmem:[#allocation7 + $0x1964] ss:$124 sps:$4 sm:$0xff]  }
 0x22a   : > { %v10112_v56 = vsel %vm10099_vm4, %v10109_v27, %v10111_v26  ;;  %v10061_v10 = vrot.slane %v15773_v55, 4  ;;  %v15778_v59 = vadd.f32 %v7061_v42, %v6968_v6  ;;  %v6972_v30 = vpop.f32.mrf.mxu0  ;;  %7529 = vmatmul.mubr.bf16.gmra.mxu0 %v15693_v57  ;;  %v15809_v9 = vld [vmem:[%s15287_s16 + $0xc] ss:$16 sps:$4 sm:$0xff]  }
 0x22b   : > { %v15780_v38 = vadd.f32 %v10112_v56, %v10078_v41  ;;  %v7065_v46 = vpop.f32.mrf.mxu1  ;;  %7622 = vmatmul.mubr.bf16.gmra.mxu1 %v15697_v13  ;;  %7659 = vmatpush2.bf16.msra.mxu0 %v13772_v51  ;;  %v13802_v41 = vld [vmem:[#allocation7 + $0x9e0] ss:$124 sps:$4 sm:$0xff]   ;;  %v13810_v55 = vld [vmem:[#allocation7 + $0x8ec] ss:$124 sps:$4 sm:$0xff]  }
 0x22c   : > { %v10062_v15 = vsel %vm10047_vm3, %v10059_v48, %v10061_v10  ;;  %v10113_v54 = vrot.slane %v15778_v59, 5  ;;  %v7066_v43 = vadd.f32 %v7065_v46, %v6972_v30  ;;  %7752 = vmatpush2.bf16.msra.mxu1 %v13775_v16  ;;  %v6974_v23 = vpop.f32.mrf.mxu0  ;;  %7660 = vmatprep.subr.bf16.mxu0 %v13780_v40  ;;  %v13804_v48 = vld [vmem:[#allocation7 + $0x9e4] ss:$124 sps:$4 sm:$0xff]   ;;  %v13813_v56 = vld [vmem:[#allocation7 + $0x186c] ss:$124 sps:$4 sm:$0xff]  }
 0x22d   : > { %v10079_v14 = vadd.f32 %v10062_v15, %v15716_v33  ;;  %v7067_v39 = vpop.f32.mrf.mxu1  ;;  %7753 = vmatprep.subr.bf16.mxu1 %v13783_v45  ;;  %7538 = vmatprep.mubr.bf16.mxu0 %v15709_v50  ;;  %v13798_v50 = vld [vmem:[#allocation7 + $0xadc] ss:$124 sps:$4 sm:$0xff]   ;;  %v13819_v59 = vld [vmem:[#allocation7 + $0x1774] ss:$124 sps:$4 sm:$0xff]   ;;  %v13822_v46 = vld [vmem:[#allocation7 + $0x704] ss:$124 sps:$4 sm:$0xff]  }
 0x22e   : > { %v10114_v57 = vsel %vm10099_vm4, %v10111_v26, %v10113_v54  ;;  %9730 = vst [vmem:[#allocation2 + $0x6d8] sm:$0xff] %v7066_v43  ;;  %v7068_v13 = vadd.f32 %v7067_v39, %v6974_v23  ;;  %7631 = vmatprep.mubr.bf16.mxu1 %v15713_v47  ;;  %v6976_v60 = vpop.f32.mrf.mxu0  ;;  %v13805_v6 = vld [vmem:[#allocation7 + $0x1960] ss:$124 sps:$4 sm:$0xff]   ;;  %v13817_v30 = vld [vmem:[#allocation7 + $0x1770] ss:$124 sps:$4 sm:$0xff]  }
 0x22f   : > { %v7069_v33 = vpop.f32.mrf.mxu1  ;;  %v15794_v7 = vadd.f32 %v10114_v57, %v10079_v14  ;;  %7661 = vmatpush2.bf16.msra.mxu0 %v13778_v37  ;;  %v13816_v37 = vld [vmem:[#allocation7 + $0x7f4] ss:$124 sps:$4 sm:$0xff]   ;;  %v13823_v15 = vld [vmem:[#allocation7 + $0x1680] ss:$124 sps:$4 sm:$0xff]   ;;  %v13831_v43 = vld [vmem:[#allocation7 + $0x158c] ss:$124 sps:$4 sm:$0xff]  }
 0x230   : > { %9731 = vst [vmem:[#allocation2 + $0x998] sm:$0xff] %v7068_v13  ;;  %7754 = vmatpush2.bf16.msra.mxu1 %v13781_v5  ;;  %7662 = vmatprep.subr.bf16.mxu0 %v13786_v44  ;;  %v6978_v19 = vpop.f32.mrf.mxu0  ;;  %v13814_v5 = vld [vmem:[#allocation7 + $0x7f0] ss:$124 sps:$4 sm:$0xff]   ;;  %v13825_v44 = vld [vmem:[#allocation7 + $0x1684] ss:$124 sps:$4 sm:$0xff]  }
 0x231   : > { %7755 = vmatprep.subr.bf16.mxu1 %v13789_v28  ;;  %v7071_v20 = vpop.f32.mrf.mxu1  ;;  %v13820_v28 = vld [vmem:[#allocation7 + $0x700] ss:$124 sps:$4 sm:$0xff]   ;;  %v13826_v14 = vld [vmem:[#allocation7 + $0x608] ss:$124 sps:$4 sm:$0xff]  }
 0x232   : > { %v6982_v47 = vpop.f32.mrf.mxu0  ;;  %7539 = vmatmul.mubr.bf16.gmra.mxu0 %v15797_v24  ;;  %v13829_v23 = vld [vmem:[#allocation7 + $0x1588] ss:$124 sps:$4 sm:$0xff]   ;;  %v15822_v13 = vld [vmem:[%s15287_s16] ss:$16 sps:$4 sm:$0xff]  }
 0x233   : > { %v7075_v8 = vpop.f32.mrf.mxu1  ;;  %7632 = vmatmul.mubr.bf16.gmra.mxu1 %v15801_v21  ;;  %7663 = vmatpush2.bf16.msra.mxu0 %v13784_v52  ;;  %v15826_v52 = vld [vmem:[%s15287_s16 + $0x8] ss:$16 sps:$4 sm:$0xff]   ;;  %v15830_v20 = vld [vmem:[%s15287_s16 + $0x24] ss:$16 sps:$4 sm:$0xff]  }
 0x234   : > { %7756 = vmatpush2.bf16.msra.mxu1 %v13787_v12  ;;  %7664 = vmatprep.subr.bf16.mxu0 %v13792_v4  ;;  %v6984_v62 = vpop.f32.mrf.mxu0  ;;  %v13834_v12 = vld [vmem:[#allocation7 + $0x514] ss:$124 sps:$4 sm:$0xff]   ;;  %v13840_v8 = vld [vmem:[#allocation7 + $0x41c] ss:$124 sps:$4 sm:$0xff]  }
 0x235   : > { %v10037_v2 = vld [vmem:[#allocation2 + $0x6d8] sm:$0xf]  ;;  %7757 = vmatprep.subr.bf16.mxu1 %v13795_v49  ;;  %v7077_v3 = vpop.f32.mrf.mxu1  ;;  %7674 = vmatprep.mubr.bf16.mxu0 %v15805_v32 }
 0x236   : > { %v10063_v27 = vrot.slane %v10037_v2, 4  ;;  %7767 = vmatprep.mubr.bf16.mxu1 %v15809_v9  ;;  %v6986_v51 = vpop.f32.mrf.mxu0  ;;  %v13837_v4 = vld [vmem:[#allocation7 + $0x1494] ss:$124 sps:$4 sm:$0xff]   ;;  %v13843_v2 = vld [vmem:[#allocation7 + $0x139c] ss:$124 sps:$4 sm:$0xff]  }
 0x237   : > { %v10089_v35 = vld [vmem:[#allocation2 + $0x998] sm:$0x1f]  ;;  %v7079_v16 = vpop.f32.mrf.mxu1  ;;  %7665 = vmatpush2.bf16.msra.mxu0 %v13790_v18  ;;  %v15834_v18 = vld [vmem:[%s15287_s16 + $0x2c] ss:$16 sps:$4 sm:$0xff]   ;;  %v15838_v51 = vld [vmem:[%s15287_s16 + $0x20] ss:$16 sps:$4 sm:$0xff]  }
 0x238   : > { %v10064_v58 = vsel %vm10047_vm3, %v10061_v10, %v10063_v27  ;;  %v10115_v61 = vrot.slane %v10089_v35, 5  ;;  %7758 = vmatpush2.bf16.msra.mxu1 %v13793_v1  ;;  %7666 = vmatprep.subr.bf16.mxu0 %v13798_v50  ;;  %v6988_v45 = vpop.f32.mrf.mxu0  ;;  %v13811_v10 = vld [vmem:[#allocation7 + $0x1868] ss:$124 sps:$4 sm:$0xff]   ;;  %v13832_v1 = vld [vmem:[#allocation7 + $0x510] ss:$124 sps:$4 sm:$0xff]  }
 0x239   : > { %v10080_v40 = vadd.f32 %v10064_v58, %v15729_v22  ;;  %7759 = vmatprep.subr.bf16.mxu1 %v13801_v63  ;;  %v7081_v0 = vpop.f32.mrf.mxu1  ;;  %v13808_v22 = vld [vmem:[#allocation7 + $0x8e8] ss:$124 sps:$4 sm:$0xff]   ;;  %v13835_v50 = vld [vmem:[#allocation7 + $0x1490] ss:$124 sps:$4 sm:$0xff]   ;;  %v13841_v35 = vld [vmem:[#allocation7 + $0x1398] ss:$124 sps:$4 sm:$0xff]  }
 0x23a   : > { %v10116_v26 = vsel %vm10099_vm4, %v10113_v54, %v10115_v61  ;;  %v13828_v54 = vld [vmem:[#allocation7 + $0x60c] ss:$124 sps:$4 sm:$0xff]   ;;  %v13846_v58 = vld [vmem:[#allocation7 + $0x324] ss:$124 sps:$4 sm:$0xff]  }
 0x23b   : > { %v15819_v42 = vadd.f32 %v10116_v26, %v10080_v40  ;;  %7667 = vmatpush2.bf16.msra.mxu0 %v13796_v53  ;;  %v15842_v16 = vld [vmem:[%s15287_s16 + $0x28] ss:$16 sps:$4 sm:$0xff]   ;;  %v13849_v61 = vld [vmem:[#allocation7 + $0x12a4] ss:$124 sps:$4 sm:$0xff]  }
 0x23c   : > { %7760 = vmatpush2.bf16.msra.mxu1 %v13799_v11  ;;  %7668 = vmatprep.subr.bf16.mxu0 %v13804_v48  ;;  %v13838_v11 = vld [vmem:[#allocation7 + $0x418] ss:$124 sps:$4 sm:$0xff]  }
 0x23d   : > { %7761 = vmatprep.subr.bf16.mxu1 %v13807_v34 }
 0x23f   : > { %7669 = vmatpush2.bf16.msra.mxu0 %v13802_v41 }
 0x240   : > { %7762 = vmatpush2.bf16.msra.mxu1 %v13805_v6  ;;  %7670 = vmatprep.subr.bf16.mxu0 %v13810_v55 }
 0x241   : > { %7763 = vmatprep.subr.bf16.mxu1 %v13813_v56 }
 0x243   : > { %7671 = vmatpush2.bf16.msra.mxu0 %v13808_v22  ;;  %v15848_v22 = vld [vmem:[%s15287_s16 + $0x44] ss:$16 sps:$4 sm:$0xff]  }
 0x244   : > { %7764 = vmatpush2.bf16.msra.mxu1 %v13811_v10  ;;  %7672 = vmatprep.subr.bf16.mxu0 %v13816_v37  ;;  %v15852_v10 = vld [vmem:[%s15287_s16 + $0x4c] ss:$16 sps:$4 sm:$0xff]  }
 0x245   : > { %7765 = vmatprep.subr.bf16.mxu1 %v13819_v59  ;;  %v13844_v37 = vld [vmem:[#allocation7 + $0x320] ss:$124 sps:$4 sm:$0xff]  }
 0x246   : > { %v13847_v59 = vld [vmem:[#allocation7 + $0x12a0] ss:$124 sps:$4 sm:$0xff]  }
 0x247   : > { %7673 = vmatpush2.bf16.msra.mxu0 %v13814_v5 }
 0x248   : > { %7766 = vmatpush2.bf16.msra.mxu1 %v13817_v30  ;;  %7828 = vmatprep.subr.bf16.mxu0 %v13822_v46 }
 0x249   : > { %7921 = vmatprep.subr.bf16.mxu1 %v13825_v44 }
 0x24a   : > { %v7118_v39 = vpop.f32.mrf.mxu0  ;;  %7675 = vmatmul.mubr.bf16.vlgmr.msra.gmra.mxu0 %v15822_v13 }
 0x24b   : > { %v7211_v57 = vpop.f32.mrf.mxu1  ;;  %7768 = vmatmul.mubr.bf16.vlgmr.msra.gmra.mxu1 %v15826_v52  ;;  %7829 = vmatpush1.bf16.msra.mxu0 %v13820_v28  ;;  %v13852_v28 = vld [vmem:[#allocation7 + $0x22c] ss:$124 sps:$4 sm:$0xff]  }
 0x24c   : > { %v7212_v49 = vadd.f32 %v7211_v57, %v7118_v39  ;;  %7922 = vmatpush1.bf16.msra.mxu1 %v13823_v15  ;;  %v7120_v60 = vpop.f32.mrf.mxu0  ;;  %7830 = vmatprep.subr.bf16.mxu0 %v13828_v54  ;;  %v13855_v15 = vld [vmem:[#allocation7 + $0x11ac] ss:$124 sps:$4 sm:$0xff]  }
 0x24d   : > { %v7213_v33 = vpop.f32.mrf.mxu1  ;;  %7923 = vmatprep.subr.bf16.mxu1 %v13831_v43  ;;  %7684 = vmatprep.mubr.bf16.mxu0 %v15830_v20 }
 0x24e   : > { %9484 = vst [vmem:[#allocation2 + $0x440] sm:$0xff] %v7212_v49  ;;  %v7214_v19 = vadd.f32 %v7213_v33, %v7120_v60  ;;  %7777 = vmatprep.mubr.bf16.mxu1 %v15834_v18  ;;  %v7122_v63 = vpop.f32.mrf.mxu0  ;;  %v13850_v33 = vld [vmem:[#allocation7 + $0x228] ss:$124 sps:$4 sm:$0xff]  }
 0x24f   : > { %v7215_v47 = vpop.f32.mrf.mxu1  ;;  %7831 = vmatpush1.bf16.msra.mxu0 %v13826_v14 }
 0x250   : > { %9485 = vst [vmem:[#allocation2 + $0xb78] sm:$0xff] %v7214_v19  ;;  %v7216_v62 = vadd.f32 %v7215_v47, %v7122_v63  ;;  %7924 = vmatpush1.bf16.msra.mxu1 %v13829_v23  ;;  %v7124_v3 = vpop.f32.mrf.mxu0  ;;  %7832 = vmatprep.subr.bf16.mxu0 %v13834_v12  ;;  %v13853_v19 = vld [vmem:[#allocation7 + $0x11a8] ss:$124 sps:$4 sm:$0xff]  }
 0x251   : > { %v7217_v27 = vpop.f32.mrf.mxu1  ;;  %7925 = vmatprep.subr.bf16.mxu1 %v13837_v4 }
 0x252   : > { %v7218_v53 = vadd.f32 %v7217_v27, %v7124_v3  ;;  %v7128_v48 = vpop.f32.mrf.mxu0  ;;  %7685 = vmatmul.mubr.bf16.gmra.mxu0 %v15838_v51  ;;  %v10153_v6 = vrot.slane %v7216_v62, 6  ;;  %v15867_v62 = vld [vmem:[%s15287_s16 + $0x48] ss:$16 sps:$4 sm:$0xff]  }
 0x253   : > { %v7221_v34 = vpop.f32.mrf.mxu1  ;;  %7778 = vmatmul.mubr.bf16.gmra.mxu1 %v15842_v16  ;;  %7833 = vmatpush1.bf16.msra.mxu0 %v13832_v1 }
 0x254   : > { %v7222_v40 = vadd.f32 %v7221_v34, %v7128_v48  ;;  %7926 = vmatpush1.bf16.msra.mxu1 %v13835_v50  ;;  %v7130_v0 = vpop.f32.mrf.mxu0  ;;  %7834 = vmatprep.subr.bf16.mxu0 %v13840_v8  ;;  %v10205_v30 = vrot.slane %v7218_v53, 7 }
 0x255   : > { %v10133_v45 = vld [vmem:[#allocation2 + $0x440] sm:$0xc0]  ;;  %v7223_v26 = vpop.f32.mrf.mxu1  ;;  %7927 = vmatprep.subr.bf16.mxu1 %v13843_v2  ;;  %7694 = vmatprep.mubr.bf16.mxu0 %v15848_v22  ;;  %v15863_v2 = vld [vmem:[%s15287_s16 + $0x40] ss:$16 sps:$4 sm:$0xff]  }
 0x256   : > { %v10152_v41 = vrot.slane %v10133_v45, 6  ;;  %v10155_v55 = vrot.slane %v7222_v40, 6  ;;  %v15845_v56 = vadd.f32 %v7223_v26, %v7130_v0  ;;  %7787 = vmatprep.mubr.bf16.mxu1 %v15852_v10  ;;  %v7132_v46 = vpop.f32.mrf.mxu0  ;;  %v15876_v40 = vld [vmem:[%s15287_s16 + $0x64] ss:$16 sps:$4 sm:$0xff]   ;;  %v15880_v45 = vld [vmem:[%s15287_s16 + $0x6c] ss:$16 sps:$4 sm:$0xff]  }
 0x257   : > { %v10185_v5 = vld [vmem:[#allocation2 + $0xb78] sm:$0x80]  ;;  %v7225_v44 = vpop.f32.mrf.mxu1  ;;  %7835 = vmatpush1.bf16.msra.mxu0 %v13838_v11  ;;  %v13856_v0 = vld [vmem:[#allocation7 + $0x130] ss:$124 sps:$4 sm:$0xff]  }
 0x258   : > { %v10204_v54 = vrot.slane %v10185_v5, 7  ;;  %v10154_v43 = vsel %vm10151_vm5, %v10152_v41, %v10153_v6  ;;  %v10156_v14 = vsel %vm10151_vm5, %v10153_v6, %v10155_v55  ;;  %v10207_v23 = vrot.slane %v15845_v56, 7  ;;  %7928 = vmatpush1.bf16.msra.mxu1 %v13841_v35  ;;  %v7134_v57 = vpop.f32.mrf.mxu0  ;;  %7836 = vmatprep.subr.bf16.mxu0 %v13846_v58  ;;  %v13859_v26 = vld [vmem:[#allocation7 + $0x10b0] ss:$124 sps:$4 sm:$0xff]  }
 0x259   : > { %v7226_v39 = vadd.f32 %v7225_v44, %v7132_v46  ;;  %v7227_v12 = vpop.f32.mrf.mxu1  ;;  %7929 = vmatprep.subr.bf16.mxu1 %v13849_v61  ;;  %v10177_v4 = vadd.f32 %v10154_v43, %v15749_v36  ;;  %v10178_v49 = vadd.f32 %v10156_v14, %v15745_v25  ;;  %v13858_v25 = vld [vmem:[#allocation7 + $0x134] ss:$124 sps:$4 sm:$0xff]  }
 0x25a   : > { %v7228_v60 = vadd.f32 %v7227_v12, %v7134_v57  ;;  %v10206_v1 = vsel %vm10203_vm6, %v10204_v54, %v10205_v30  ;;  %v10208_v50 = vsel %vm10203_vm6, %v10205_v30, %v10207_v23  ;;  %v7138_v47 = vpop.f32.mrf.mxu0  ;;  %7695 = vmatmul.mubr.bf16.gmra.mxu0 %v15863_v2  ;;  %v13861_v36 = vld [vmem:[#allocation7 + $0x10b4] ss:$124 sps:$4 sm:$0xff]  }
 0x25b   : > { %v10157_v63 = vrot.slane %v7226_v39, 6  ;;  %v7231_v8 = vpop.f32.mrf.mxu1  ;;  %7788 = vmatmul.mubr.bf16.gmra.mxu1 %v15867_v62  ;;  %v15870_v3 = vadd.f32 %v10206_v1, %v10177_v4  ;;  %v15872_v27 = vadd.f32 %v10208_v50, %v10178_v49  ;;  %7837 = vmatpush1.bf16.msra.mxu0 %v13844_v37  ;;  %v13864_v37 = vld [vmem:[#allocation7 + $0x3c] ss:$124 sps:$4 sm:$0xff]   ;;  %v15891_v4 = vld [vmem:[%s15287_s16 + $0x60] ss:$16 sps:$4 sm:$0xff]  }
 0x25c   : > { %v10209_v53 = vrot.slane %v7228_v60, 7  ;;  %v7232_v11 = vadd.f32 %v7231_v8, %v7138_v47  ;;  %7930 = vmatpush1.bf16.msra.mxu1 %v13847_v59  ;;  %v7140_v48 = vpop.f32.mrf.mxu0  ;;  %7838 = vmatprep.subr.bf16.mxu0 %v13852_v28  ;;  %v13867_v59 = vld [vmem:[#allocation7 + $0xfbc] ss:$124 sps:$4 sm:$0xff]   ;;  %v13870_v60 = vld [vmem:[#allocation7 + $0xec4] ss:$124 sps:$4 sm:$0xff]  }
 0x25d   : > { %v10158_v35 = vsel %vm10151_vm5, %v10155_v55, %v10157_v63  ;;  %v7233_v34 = vpop.f32.mrf.mxu1  ;;  %7931 = vmatprep.subr.bf16.mxu1 %v13855_v15  ;;  %7704 = vmatprep.mubr.bf16.mxu0 %v15876_v40  ;;  %v13862_v14 = vld [vmem:[#allocation7 + $0x38] ss:$124 sps:$4 sm:$0xff]  }
 0x25e   : > { %v10159_v58 = vrot.slane %v7232_v11, 6  ;;  %v7234_v61 = vadd.f32 %v7233_v34, %v7140_v48  ;;  %7797 = vmatprep.mubr.bf16.mxu1 %v15880_v45  ;;  %v10179_v41 = vadd.f32 %v10158_v35, %v15757_v31  ;;  %v10210_v6 = vsel %vm10203_vm6, %v10207_v23, %v10209_v53  ;;  %v7142_v55 = vpop.f32.mrf.mxu0  ;;  %v13865_v23 = vld [vmem:[#allocation7 + $0xfb8] ss:$124 sps:$4 sm:$0xff]   ;;  %v15907_v11 = vld [vmem:[%s15287_s16 + $0x8c] ss:$16 sps:$4 sm:$0xff]  }
 0x25f   : > { %v7235_v56 = vpop.f32.mrf.mxu1  ;;  %7839 = vmatpush1.bf16.msra.mxu0 %v13850_v33  ;;  %v15895_v49 = vld [vmem:[%s15287_s16 + $0x68] ss:$16 sps:$4 sm:$0xff]   ;;  %v13873_v33 = vld [vmem:[#allocation7 + $0x1e44] ss:$124 sps:$4 sm:$0xff]  }
 0x260   : > { %v10160_v5 = vsel %vm10151_vm5, %v10157_v63, %v10159_v58  ;;  %v10211_v30 = vrot.slane %v7234_v61, 7  ;;  %v7236_v46 = vadd.f32 %v7235_v56, %v7142_v55  ;;  %7932 = vmatpush1.bf16.msra.mxu1 %v13853_v19  ;;  %v15886_v44 = vadd.f32 %v10210_v6, %v10179_v41  ;;  %v7144_v28 = vpop.f32.mrf.mxu0  ;;  %7840 = vmatprep.subr.bf16.mxu0 %v13858_v25  ;;  %v13868_v35 = vld [vmem:[#allocation7 + $0xec0] ss:$124 sps:$4 sm:$0xff]  }
 0x261   : > { %v7237_v15 = vpop.f32.mrf.mxu1  ;;  %7933 = vmatprep.subr.bf16.mxu1 %v13861_v36  ;;  %v10180_v31 = vadd.f32 %v10160_v5, %v15761_v17  ;;  %v13871_v48 = vld [vmem:[#allocation7 + $0x1e40] ss:$124 sps:$4 sm:$0xff]  }
 0x262   : > { %v10161_v54 = vrot.slane %v7236_v46, 6  ;;  %v7238_v43 = vadd.f32 %v7237_v15, %v7144_v28  ;;  %v10212_v39 = vsel %vm10203_vm6, %v10209_v53, %v10211_v30  ;;  %v7148_v57 = vpop.f32.mrf.mxu0  ;;  %7705 = vmatmul.mubr.bf16.gmra.mxu0 %v15891_v4  ;;  %v15903_v53 = vld [vmem:[%s15287_s16 + $0x84] ss:$16 sps:$4 sm:$0xff]  }
 0x263   : > { %v7241_v12 = vpop.f32.mrf.mxu1  ;;  %7798 = vmatmul.mubr.bf16.gmra.mxu1 %v15895_v49  ;;  %v15898_v17 = vadd.f32 %v10212_v39, %v10180_v31  ;;  %7841 = vmatpush1.bf16.msra.mxu0 %v13856_v0  ;;  %v13876_v0 = vld [vmem:[#allocation7 + $0xdcc] ss:$124 sps:$4 sm:$0xff]  }
 0x264   : > { %v10162_v19 = vsel %vm10151_vm5, %v10159_v58, %v10161_v54  ;;  %v10213_v1 = vrot.slane %v7238_v43, 7  ;;  %v7242_v50 = vadd.f32 %v7241_v12, %v7148_v57  ;;  %7934 = vmatpush1.bf16.msra.mxu1 %v13859_v26  ;;  %v7150_v63 = vpop.f32.mrf.mxu0  ;;  %7842 = vmatprep.subr.bf16.mxu0 %v13864_v37  ;;  %v13879_v26 = vld [vmem:[#allocation7 + $0x1d4c] ss:$124 sps:$4 sm:$0xff]   ;;  %v15922_v43 = vld [vmem:[%s15287_s16 + $0x80] ss:$16 sps:$4 sm:$0xff]  }
 0x265   : > { %v7243_v47 = vpop.f32.mrf.mxu1  ;;  %7935 = vmatprep.subr.bf16.mxu1 %v13867_v59  ;;  %v10181_v8 = vadd.f32 %v10162_v19, %v15770_v29  ;;  %7714 = vmatprep.mubr.bf16.mxu0 %v15903_v53  ;;  %v13874_v46 = vld [vmem:[#allocation7 + $0xdc8] ss:$124 sps:$4 sm:$0xff]  }
 0x266   : > { %v10163_v25 = vrot.slane %v7242_v50, 6  ;;  %v7244_v36 = vadd.f32 %v7243_v47, %v7150_v63  ;;  %7807 = vmatprep.mubr.bf16.mxu1 %v15907_v11  ;;  %v10214_v34 = vsel %vm10203_vm6, %v10211_v30, %v10213_v1  ;;  %v7152_v58 = vpop.f32.mrf.mxu0  ;;  %v13877_v28 = vld [vmem:[#allocation7 + $0x1d48] ss:$124 sps:$4 sm:$0xff]   ;;  %v13880_v63 = vld [vmem:[#allocation7 + $0xcd0] ss:$124 sps:$4 sm:$0xff]  }
 0x267   : > { %v7245_v61 = vpop.f32.mrf.mxu1  ;;  %v15911_v41 = vadd.f32 %v10214_v34, %v10181_v8  ;;  %7843 = vmatpush1.bf16.msra.mxu0 %v13862_v14  ;;  %v15926_v14 = vld [vmem:[%s15287_s16 + $0x88] ss:$16 sps:$4 sm:$0xff]   ;;  %v13883_v47 = vld [vmem:[#allocation7 + $0x1c50] ss:$124 sps:$4 sm:$0xff]   ;;  %v15937_v8 = vld [vmem:[%s15287_s16 + $0xa4] ss:$16 sps:$4 sm:$0xff]  }
 0x268   : > { %v10164_v29 = vsel %vm10151_vm5, %v10161_v54, %v10163_v25  ;;  %v10215_v6 = vrot.slane %v7244_v36, 7  ;;  %v15914_v55 = vadd.f32 %v7245_v61, %v7152_v58  ;;  %7936 = vmatpush1.bf16.msra.mxu1 %v13865_v23  ;;  %v7154_v56 = vpop.f32.mrf.mxu0  ;;  %7844 = vmatprep.subr.bf16.mxu0 %v13870_v60  ;;  %v13882_v23 = vld [vmem:[#allocation7 + $0xcd4] ss:$124 sps:$4 sm:$0xff]  }
 0x269   : > { %v7247_v37 = vpop.f32.mrf.mxu1  ;;  %7937 = vmatprep.subr.bf16.mxu1 %v13873_v33  ;;  %v10182_v59 = vadd.f32 %v10164_v29, %v15780_v38  ;;  %v13885_v38 = vld [vmem:[#allocation7 + $0x1c54] ss:$124 sps:$4 sm:$0xff]  }
 0x26a   : > { %v10165_v5 = vrot.slane %v15914_v55, 6  ;;  %v15918_v30 = vadd.f32 %v7247_v37, %v7154_v56  ;;  %v10216_v15 = vsel %vm10203_vm6, %v10213_v1, %v10215_v6  ;;  %v7158_v31 = vpop.f32.mrf.mxu0  ;;  %7715 = vmatmul.mubr.bf16.gmra.mxu0 %v15922_v43  ;;  %v13889_v29 = vld [vmem:[#allocation7 + $0x1b58] ss:$124 sps:$4 sm:$0xff]   ;;  %v13894_v56 = vld [vmem:[#allocation7 + $0xae4] ss:$124 sps:$4 sm:$0xff]  }
 0x26b   : > { %v7251_v54 = vpop.f32.mrf.mxu1  ;;  %7808 = vmatmul.mubr.bf16.gmra.mxu1 %v15926_v14  ;;  %v15929_v39 = vadd.f32 %v10216_v15, %v10182_v59  ;;  %7845 = vmatpush2.bf16.msra.mxu0 %v13868_v35  ;;  %v13888_v35 = vld [vmem:[#allocation7 + $0xbdc] ss:$124 sps:$4 sm:$0xff]   ;;  %v13897_v37 = vld [vmem:[#allocation7 + $0x1a64] ss:$124 sps:$4 sm:$0xff]  }
 0x26c   : > { %v10166_v57 = vsel %vm10151_vm5, %v10163_v25, %v10165_v5  ;;  %v10217_v12 = vrot.slane %v15918_v30, 7  ;;  %v7252_v60 = vadd.f32 %v7251_v54, %v7158_v31  ;;  %7938 = vmatpush2.bf16.msra.mxu1 %v13871_v48  ;;  %v7160_v33 = vpop.f32.mrf.mxu0  ;;  %7846 = vmatprep.subr.bf16.mxu0 %v13876_v0  ;;  %v15941_v25 = vld [vmem:[%s15287_s16 + $0xac] ss:$16 sps:$4 sm:$0xff]   ;;  %v13910_v30 = vld [vmem:[#allocation7 + $0x7f8] ss:$124 sps:$4 sm:$0xff]  }
 0x26d   : > { %v7253_v19 = vpop.f32.mrf.mxu1  ;;  %7939 = vmatprep.subr.bf16.mxu1 %v13879_v26  ;;  %v10183_v1 = vadd.f32 %v10166_v57, %v15794_v7  ;;  %7724 = vmatprep.mubr.bf16.mxu0 %v15937_v8  ;;  %v13891_v48 = vld [vmem:[#allocation7 + $0x1b5c] ss:$124 sps:$4 sm:$0xff]   ;;  %v13900_v57 = vld [vmem:[#allocation7 + $0x9ec] ss:$124 sps:$4 sm:$0xff]  }
 0x26e   : > { %9732 = vst [vmem:[#allocation2 + $0x270] sm:$0xff] %v7252_v60  ;;  %v7254_v50 = vadd.f32 %v7253_v19, %v7160_v33  ;;  %7817 = vmatprep.mubr.bf16.mxu1 %v15941_v25  ;;  %v10218_v36 = vsel %vm10203_vm6, %v10215_v6, %v10217_v12  ;;  %v7162_v34 = vpop.f32.mrf.mxu0  ;;  %v13886_v26 = vld [vmem:[#allocation7 + $0xbd8] ss:$124 sps:$4 sm:$0xff]   ;;  %v13892_v54 = vld [vmem:[#allocation7 + $0xae0] ss:$124 sps:$4 sm:$0xff]  }
 0x26f   : > { %v7255_v7 = vpop.f32.mrf.mxu1  ;;  %v15947_v58 = vadd.f32 %v10218_v36, %v10183_v1  ;;  %7847 = vmatpush2.bf16.msra.mxu0 %v13874_v46  ;;  %v13903_v60 = vld [vmem:[#allocation7 + $0x196c] ss:$124 sps:$4 sm:$0xff]   ;;  %v13906_v36 = vld [vmem:[#allocation7 + $0x8f4] ss:$124 sps:$4 sm:$0xff]   ;;  %v13915_v34 = vld [vmem:[#allocation7 + $0x177c] ss:$124 sps:$4 sm:$0xff]  }
 0x270   : > { %9733 = vst [vmem:[#allocation2 + $0x2b8] sm:$0xff] %v7254_v50  ;;  %7940 = vmatpush2.bf16.msra.mxu1 %v13877_v28  ;;  %7848 = vmatprep.subr.bf16.mxu0 %v13882_v23  ;;  %v7164_v61 = vpop.f32.mrf.mxu0  ;;  %v13895_v23 = vld [vmem:[#allocation7 + $0x1a60] ss:$124 sps:$4 sm:$0xff]   ;;  %v13918_v7 = vld [vmem:[#allocation7 + $0x70c] ss:$124 sps:$4 sm:$0xff]  }
 0x271   : > { %7941 = vmatprep.subr.bf16.mxu1 %v13885_v38  ;;  %v7257_v0 = vpop.f32.mrf.mxu1  ;;  %v13921_v61 = vld [vmem:[#allocation7 + $0x168c] ss:$124 sps:$4 sm:$0xff]  }
 0x272   : > { %v7168_v59 = vpop.f32.mrf.mxu0  ;;  %7725 = vmatmul.mubr.bf16.gmra.mxu0 %v15797_v24  ;;  %v13916_v0 = vld [vmem:[#allocation7 + $0x708] ss:$124 sps:$4 sm:$0xff]  }
 0x273   : > { %v7261_v15 = vpop.f32.mrf.mxu1  ;;  %7818 = vmatmul.mubr.bf16.gmra.mxu1 %v15801_v21  ;;  %7849 = vmatpush2.bf16.msra.mxu0 %v13880_v63  ;;  %v13898_v63 = vld [vmem:[#allocation7 + $0x9e8] ss:$124 sps:$4 sm:$0xff]   ;;  %v13925_v59 = vld [vmem:[#allocation7 + $0x1590] ss:$124 sps:$4 sm:$0xff]  }
 0x274   : > { %7942 = vmatpush2.bf16.msra.mxu1 %v13883_v47  ;;  %7850 = vmatprep.subr.bf16.mxu0 %v13888_v35  ;;  %v7170_v46 = vpop.f32.mrf.mxu0  ;;  %v13909_v35 = vld [vmem:[#allocation7 + $0x1874] ss:$124 sps:$4 sm:$0xff]  }
 0x275   : > { %v10141_v6 = vld [vmem:[#allocation2 + $0x270] sm:$0x3f]  ;;  %7943 = vmatprep.subr.bf16.mxu1 %v13891_v48  ;;  %v7263_v28 = vpop.f32.mrf.mxu1  ;;  %7860 = vmatprep.mubr.bf16.mxu0 %v15805_v32  ;;  %v13930_v46 = vld [vmem:[#allocation7 + $0x51c] ss:$124 sps:$4 sm:$0xff]  }
 0x276   : > { %v10167_v31 = vrot.slane %v10141_v6, 6  ;;  %7953 = vmatprep.mubr.bf16.mxu1 %v15809_v9  ;;  %v7172_v24 = vpop.f32.mrf.mxu0  ;;  %v13901_v9 = vld [vmem:[#allocation7 + $0x1968] ss:$124 sps:$4 sm:$0xff]   ;;  %v13907_v48 = vld [vmem:[#allocation7 + $0x1870] ss:$124 sps:$4 sm:$0xff]  }
 0x277   : > { %v10193_v38 = vld [vmem:[#allocation2 + $0x2b8] sm:$0x7f]  ;;  %v7265_v33 = vpop.f32.mrf.mxu1  ;;  %7851 = vmatpush2.bf16.msra.mxu0 %v13886_v26  ;;  %v13919_v26 = vld [vmem:[#allocation7 + $0x1688] ss:$124 sps:$4 sm:$0xff]  }
 0x278   : > { %v10168_v21 = vsel %vm10151_vm5, %v10165_v5, %v10167_v31  ;;  %v10219_v19 = vrot.slane %v10193_v38, 7  ;;  %7944 = vmatpush2.bf16.msra.mxu1 %v13889_v29  ;;  %7852 = vmatprep.subr.bf16.mxu0 %v13894_v56  ;;  %v7174_v1 = vpop.f32.mrf.mxu0  ;;  %v13904_v5 = vld [vmem:[#allocation7 + $0x8f0] ss:$124 sps:$4 sm:$0xff]   ;;  %v13933_v28 = vld [vmem:[#allocation7 + $0x149c] ss:$124 sps:$4 sm:$0xff]  }
 0x279   : > { %7945 = vmatprep.subr.bf16.mxu1 %v13897_v37  ;;  %v7267_v50 = vpop.f32.mrf.mxu1  ;;  %v10184_v32 = vadd.f32 %v10168_v21, %v15819_v42  ;;  %v13912_v42 = vld [vmem:[#allocation7 + $0x7fc] ss:$124 sps:$4 sm:$0xff]   ;;  %v13924_v29 = vld [vmem:[#allocation7 + $0x614] ss:$124 sps:$4 sm:$0xff]   ;;  %v13936_v24 = vld [vmem:[#allocation7 + $0x424] ss:$124 sps:$4 sm:$0xff]  }
 0x27a   : > { %v10220_v47 = vsel %vm10203_vm6, %v10217_v12, %v10219_v19  ;;  %v13913_v12 = vld [vmem:[#allocation7 + $0x1778] ss:$124 sps:$4 sm:$0xff]   ;;  %v13922_v37 = vld [vmem:[#allocation7 + $0x610] ss:$124 sps:$4 sm:$0xff]   ;;  %v13937_v50 = vld [vmem:[#allocation7 + $0x13a0] ss:$124 sps:$4 sm:$0xff]  }
 0x27b   : > { %v15960_v55 = vadd.f32 %v10220_v47, %v10184_v32  ;;  %7853 = vmatpush2.bf16.msra.mxu0 %v13892_v54  ;;  %v13927_v56 = vld [vmem:[#allocation7 + $0x1594] ss:$124 sps:$4 sm:$0xff]  }
 0x27c   : > { %7946 = vmatpush2.bf16.msra.mxu1 %v13895_v23  ;;  %7854 = vmatprep.subr.bf16.mxu0 %v13900_v57  ;;  %v13928_v23 = vld [vmem:[#allocation7 + $0x518] ss:$124 sps:$4 sm:$0xff]  }
 0x27d   : > { %7947 = vmatprep.subr.bf16.mxu1 %v13903_v60  ;;  %v13931_v38 = vld [vmem:[#allocation7 + $0x1498] ss:$124 sps:$4 sm:$0xff]  }
 0x27f   : > { %7855 = vmatpush2.bf16.msra.mxu0 %v13898_v63  ;;  %v13942_v63 = vld [vmem:[#allocation7 + $0x32c] ss:$124 sps:$4 sm:$0xff]  }
 0x280   : > { %7948 = vmatpush2.bf16.msra.mxu1 %v13901_v9  ;;  %7856 = vmatprep.subr.bf16.mxu0 %v13906_v36  ;;  %v13945_v9 = vld [vmem:[#allocation7 + $0x12ac] ss:$124 sps:$4 sm:$0xff]  }
 0x281   : > { %7949 = vmatprep.subr.bf16.mxu1 %v13909_v35 }
 0x283   : > { %7857 = vmatpush2.bf16.msra.mxu0 %v13904_v5 }
 0x284   : > { %7950 = vmatpush2.bf16.msra.mxu1 %v13907_v48  ;;  %7858 = vmatprep.subr.bf16.mxu0 %v13912_v42  ;;  %v13943_v48 = vld [vmem:[#allocation7 + $0x12a8] ss:$124 sps:$4 sm:$0xff]  }
 0x285   : > { %7951 = vmatprep.subr.bf16.mxu1 %v13915_v34  ;;  %v13948_v34 = vld [vmem:[#allocation7 + $0x234] ss:$124 sps:$4 sm:$0xff]  }
 0x287   : > { %7859 = vmatpush2.bf16.msra.mxu0 %v13910_v30  ;;  %v13951_v30 = vld [vmem:[#allocation7 + $0x11b4] ss:$124 sps:$4 sm:$0xff]  }
 0x288   : > { %7952 = vmatpush2.bf16.msra.mxu1 %v13913_v12  ;;  %8014 = vmatprep.subr.bf16.mxu0 %v13918_v7 }
 0x289   : > { %8107 = vmatprep.subr.bf16.mxu1 %v13921_v61 }
 0x28a   : > { %v7304_v15 = vpop.f32.mrf.mxu0  ;;  %7861 = vmatmul.mubr.bf16.vlgmr.msra.gmra.mxu0 %v15822_v13  ;;  %v13939_v13 = vld [vmem:[#allocation7 + $0x13a4] ss:$124 sps:$4 sm:$0xff]  }
 0x28b   : > { %v7397_v6 = vpop.f32.mrf.mxu1  ;;  %7954 = vmatmul.mubr.bf16.vlgmr.msra.gmra.mxu1 %v15826_v52  ;;  %8015 = vmatpush1.bf16.msra.mxu0 %v13916_v0  ;;  %v13957_v15 = vld [vmem:[#allocation7 + $0x10bc] ss:$124 sps:$4 sm:$0xff]  }
 0x28c   : > { %8108 = vmatpush1.bf16.msra.mxu1 %v13919_v26  ;;  %v7306_v31 = vpop.f32.mrf.mxu0  ;;  %8016 = vmatprep.subr.bf16.mxu0 %v13924_v29  ;;  %v13949_v29 = vld [vmem:[#allocation7 + $0x11b0] ss:$124 sps:$4 sm:$0xff]  }
 0x28d   : > { %v7399_v54 = vpop.f32.mrf.mxu1  ;;  %8109 = vmatprep.subr.bf16.mxu1 %v13927_v56  ;;  %7870 = vmatprep.mubr.bf16.mxu0 %v15830_v20  ;;  %v13934_v20 = vld [vmem:[#allocation7 + $0x420] ss:$124 sps:$4 sm:$0xff]  }
 0x28e   : > { %7963 = vmatprep.mubr.bf16.mxu1 %v15834_v18  ;;  %v7308_v57 = vpop.f32.mrf.mxu0 }
 0x28f   : > { %v7401_v60 = vpop.f32.mrf.mxu1  ;;  %8017 = vmatpush1.bf16.msra.mxu0 %v13922_v37 }
 0x290   : > { %v7402_v33 = vadd.f32 %v7401_v60, %v7308_v57  ;;  %8110 = vmatpush1.bf16.msra.mxu1 %v13925_v59  ;;  %v7310_v52 = vpop.f32.mrf.mxu0  ;;  %8018 = vmatprep.subr.bf16.mxu0 %v13930_v46  ;;  %v13954_v59 = vld [vmem:[#allocation7 + $0x13c] ss:$124 sps:$4 sm:$0xff]  }
 0x291   : > { %v7403_v21 = vpop.f32.mrf.mxu1  ;;  %8111 = vmatprep.subr.bf16.mxu1 %v13933_v28  ;;  %v13955_v57 = vld [vmem:[#allocation7 + $0x10b8] ss:$124 sps:$4 sm:$0xff]  }
 0x292   : > { %v15967_v19 = vadd.f32 %v15870_v3, %v7402_v33  ;;  %v7404_v1 = vadd.f32 %v7403_v21, %v7310_v52  ;;  %v7314_v18 = vpop.f32.mrf.mxu0  ;;  %7871 = vmatmul.mubr.bf16.gmra.mxu0 %v15838_v51  ;;  %v13940_v51 = vld [vmem:[#allocation7 + $0x328] ss:$124 sps:$4 sm:$0xff]  }
 0x293   : > { %v7407_v32 = vpop.f32.mrf.mxu1  ;;  %7964 = vmatmul.mubr.bf16.gmra.mxu1 %v15842_v16  ;;  %8019 = vmatpush1.bf16.msra.mxu0 %v13928_v23  ;;  %v13960_v52 = vld [vmem:[#allocation7 + $0x44] ss:$124 sps:$4 sm:$0xff]  }
 0x294   : > { %9518 = vst [vmem:[#allocation2 + $0x730] sm:$0xff] %v7404_v1  ;;  %v7408_v47 = vadd.f32 %v7407_v32, %v7314_v18  ;;  %8112 = vmatpush1.bf16.msra.mxu1 %v13931_v38  ;;  %v7316_v36 = vpop.f32.mrf.mxu0  ;;  %8020 = vmatprep.subr.bf16.mxu0 %v13936_v24  ;;  %v13963_v21 = vld [vmem:[#allocation7 + $0xfc4] ss:$124 sps:$4 sm:$0xff]  }
 0x295   : > { %v7409_v35 = vpop.f32.mrf.mxu1  ;;  %8113 = vmatprep.subr.bf16.mxu1 %v13939_v13  ;;  %7880 = vmatprep.mubr.bf16.mxu0 %v15848_v22  ;;  %v13946_v22 = vld [vmem:[#allocation7 + $0x230] ss:$124 sps:$4 sm:$0xff]   ;;  %v13958_v32 = vld [vmem:[#allocation7 + $0x40] ss:$124 sps:$4 sm:$0xff]  }
 0x296   : > { %v10246_v3 = vadd.f32 %v15872_v27, %v7408_v47  ;;  %v7410_v5 = vadd.f32 %v7409_v35, %v7316_v36  ;;  %7973 = vmatprep.mubr.bf16.mxu1 %v15852_v10  ;;  %v7318_v16 = vpop.f32.mrf.mxu0  ;;  %v13966_v36 = vld [vmem:[#allocation7 + $0xecc] ss:$124 sps:$4 sm:$0xff]  }
 0x297   : > { %v7411_v42 = vpop.f32.mrf.mxu1  ;;  %8021 = vmatpush1.bf16.msra.mxu0 %v13934_v20  ;;  %v13969_v35 = vld [vmem:[#allocation7 + $0x1e4c] ss:$124 sps:$4 sm:$0xff]  }
 0x298   : > { %v7412_v12 = vadd.f32 %v7411_v42, %v7318_v16  ;;  %8114 = vmatpush1.bf16.msra.mxu1 %v13937_v50  ;;  %v7320_v7 = vpop.f32.mrf.mxu0  ;;  %8022 = vmatprep.subr.bf16.mxu0 %v13942_v63  ;;  %v10272_v0 = vrot.slane %v7410_v5, 1  ;;  %v13961_v63 = vld [vmem:[#allocation7 + $0xfc0] ss:$124 sps:$4 sm:$0xff]  }
 0x299   : > { %v7413_v61 = vpop.f32.mrf.mxu1  ;;  %8115 = vmatprep.subr.bf16.mxu1 %v13945_v9 }
 0x29a   : > { %v10247_v27 = vadd.f32 %v15886_v44, %v7412_v12  ;;  %v7414_v26 = vadd.f32 %v7413_v61, %v7320_v7  ;;  %v7324_v56 = vpop.f32.mrf.mxu0  ;;  %7881 = vmatmul.mubr.bf16.gmra.mxu0 %v15863_v2  ;;  %v13972_v7 = vld [vmem:[#allocation7 + $0xdd4] ss:$124 sps:$4 sm:$0xff]  }
 0x29b   : > { %v10253_v10 = vld [vmem:[#allocation2 + $0x730] sm:$0xfe]  ;;  %v7417_v37 = vpop.f32.mrf.mxu1  ;;  %7974 = vmatmul.mubr.bf16.gmra.mxu1 %v15867_v62  ;;  %8023 = vmatpush1.bf16.msra.mxu0 %v13940_v51 }
 0x29c   : > { %v10271_v6 = vrot.slane %v10253_v10, 1  ;;  %v10274_v46 = vrot.slane %v7414_v26, 1  ;;  %v7418_v28 = vadd.f32 %v7417_v37, %v7324_v56  ;;  %8116 = vmatpush1.bf16.msra.mxu1 %v13943_v48  ;;  %v7326_v31 = vpop.f32.mrf.mxu0  ;;  %8024 = vmatprep.subr.bf16.mxu0 %v13948_v34  ;;  %v13952_v62 = vld [vmem:[#allocation7 + $0x138] ss:$124 sps:$4 sm:$0xff]   ;;  %v13973_v10 = vld [vmem:[#allocation7 + $0x1d50] ss:$124 sps:$4 sm:$0xff]  }
 0x29d   : > { %v7419_v54 = vpop.f32.mrf.mxu1  ;;  %8117 = vmatprep.subr.bf16.mxu1 %v13951_v30  ;;  %7890 = vmatprep.mubr.bf16.mxu0 %v15876_v40  ;;  %v13975_v61 = vld [vmem:[#allocation7 + $0x1d54] ss:$124 sps:$4 sm:$0xff]  }
 0x29e   : > { %v10273_v44 = vsel %vm9891_vm0, %v10271_v6, %v10272_v0  ;;  %v10275_v23 = vsel %vm9891_vm0, %v10272_v0, %v10274_v46  ;;  %v10248_v38 = vadd.f32 %v15898_v17, %v7418_v28  ;;  %v7420_v2 = vadd.f32 %v7419_v54, %v7326_v31  ;;  %v7328_v13 = vpop.f32.mrf.mxu0  ;;  %7983 = vmatprep.mubr.bf16.mxu1 %v15880_v45  ;;  %v13981_v6 = vld [vmem:[#allocation7 + $0x1c5c] ss:$124 sps:$4 sm:$0xff]  }
 0x29f   : > { %v15982_v60 = vadd.f32 %v10273_v44, %v15967_v19  ;;  %v15984_v24 = vadd.f32 %v10275_v23, %v10246_v3  ;;  %v7421_v33 = vpop.f32.mrf.mxu1  ;;  %8025 = vmatpush1.bf16.msra.mxu0 %v13946_v22 }
 0x2a0   : > { %v10276_v1 = vrot.slane %v7420_v2, 1  ;;  %v7422_v20 = vadd.f32 %v7421_v33, %v7328_v13  ;;  %8118 = vmatpush1.bf16.msra.mxu1 %v13949_v29  ;;  %v7330_v17 = vpop.f32.mrf.mxu0  ;;  %8026 = vmatprep.subr.bf16.mxu0 %v13954_v59  ;;  %v13970_v29 = vld [vmem:[#allocation7 + $0xdd0] ss:$124 sps:$4 sm:$0xff]   ;;  %v13987_v13 = vld [vmem:[#allocation7 + $0x1b64] ss:$124 sps:$4 sm:$0xff]  }
 0x2a1   : > { %v7423_v50 = vpop.f32.mrf.mxu1  ;;  %8119 = vmatprep.subr.bf16.mxu1 %v13957_v15  ;;  %v13978_v15 = vld [vmem:[#allocation7 + $0xcdc] ss:$124 sps:$4 sm:$0xff]  }
 0x2a2   : > { %v10277_v40 = vsel %vm9891_vm0, %v10274_v46, %v10276_v1  ;;  %v10249_v19 = vadd.f32 %v15911_v41, %v7422_v20  ;;  %v7424_v18 = vadd.f32 %v7423_v50, %v7330_v17  ;;  %v7334_v45 = vpop.f32.mrf.mxu0  ;;  %7891 = vmatmul.mubr.bf16.gmra.mxu0 %v15891_v4  ;;  %v13964_v4 = vld [vmem:[#allocation7 + $0xec8] ss:$124 sps:$4 sm:$0xff]  }
 0x2a3   : > { %v15989_v9 = vadd.f32 %v10277_v40, %v10247_v27  ;;  %v7427_v47 = vpop.f32.mrf.mxu1  ;;  %7984 = vmatmul.mubr.bf16.gmra.mxu1 %v15895_v49  ;;  %8027 = vmatpush1.bf16.msra.mxu0 %v13952_v62  ;;  %v13967_v49 = vld [vmem:[#allocation7 + $0x1e48] ss:$124 sps:$4 sm:$0xff]  }
 0x2a4   : > { %v10278_v3 = vrot.slane %v7424_v18, 1  ;;  %v7428_v5 = vadd.f32 %v7427_v47, %v7334_v45  ;;  %8120 = vmatpush1.bf16.msra.mxu1 %v13955_v57  ;;  %v7336_v51 = vpop.f32.mrf.mxu0  ;;  %8028 = vmatprep.subr.bf16.mxu0 %v13960_v52  ;;  %v13984_v57 = vld [vmem:[#allocation7 + $0xbe4] ss:$124 sps:$4 sm:$0xff]   ;;  %v13990_v17 = vld [vmem:[#allocation7 + $0xaec] ss:$124 sps:$4 sm:$0xff]  }
 0x2a5   : > { %v7429_v48 = vpop.f32.mrf.mxu1  ;;  %8121 = vmatprep.subr.bf16.mxu1 %v13963_v21  ;;  %7900 = vmatprep.mubr.bf16.mxu0 %v15903_v53  ;;  %v13993_v50 = vld [vmem:[#allocation7 + $0x1a6c] ss:$124 sps:$4 sm:$0xff]   ;;  %v16020_v18 = vld [vmem:[%s15287_s16 + $0xa0] ss:$16 sps:$4 sm:$0xff]  }
 0x2a6   : > { %v10279_v41 = vsel %vm9891_vm0, %v10276_v1, %v10278_v3  ;;  %v10250_v16 = vadd.f32 %v15929_v39, %v7428_v5  ;;  %v7430_v42 = vadd.f32 %v7429_v48, %v7336_v51  ;;  %7993 = vmatprep.mubr.bf16.mxu1 %v15907_v11  ;;  %v7338_v30 = vpop.f32.mrf.mxu0  ;;  %v13985_v1 = vld [vmem:[#allocation7 + $0x1b60] ss:$124 sps:$4 sm:$0xff]   ;;  %v13988_v47 = vld [vmem:[#allocation7 + $0xae8] ss:$124 sps:$4 sm:$0xff]   ;;  %v13996_v5 = vld [vmem:[#allocation7 + $0x9f4] ss:$124 sps:$4 sm:$0xff]  }
 0x2a7   : > { %v15997_v34 = vadd.f32 %v10279_v41, %v10248_v38  ;;  %v7431_v12 = vpop.f32.mrf.mxu1  ;;  %8029 = vmatpush1.bf16.msra.mxu0 %v13958_v32  ;;  %v13979_v38 = vld [vmem:[#allocation7 + $0x1c58] ss:$124 sps:$4 sm:$0xff]  }
 0x2a8   : > { %v10280_v0 = vrot.slane %v7430_v42, 1  ;;  %v7432_v27 = vadd.f32 %v7431_v12, %v7338_v30  ;;  %8122 = vmatpush1.bf16.msra.mxu1 %v13961_v63  ;;  %v7340_v26 = vpop.f32.mrf.mxu0  ;;  %8030 = vmatprep.subr.bf16.mxu0 %v13966_v36  ;;  %v16024_v32 = vld [vmem:[%s15287_s16 + $0xa8] ss:$16 sps:$4 sm:$0xff]   ;;  %v13999_v51 = vld [vmem:[#allocation7 + $0x1974] ss:$124 sps:$4 sm:$0xff]  }
 0x2a9   : > { %v7433_v22 = vpop.f32.mrf.mxu1  ;;  %8123 = vmatprep.subr.bf16.mxu1 %v13969_v35  ;;  %v13991_v36 = vld [vmem:[#allocation7 + $0x1a68] ss:$124 sps:$4 sm:$0xff]   ;;  %v14002_v12 = vld [vmem:[#allocation7 + $0x8fc] ss:$124 sps:$4 sm:$0xff]  }
 0x2aa   : > { %v10281_v53 = vsel %vm9891_vm0, %v10278_v3, %v10280_v0  ;;  %v10251_v11 = vadd.f32 %v15947_v58, %v7432_v27  ;;  %v7434_v39 = vadd.f32 %v7433_v22, %v7340_v26  ;;  %v7344_v37 = vpop.f32.mrf.mxu0  ;;  %7901 = vmatmul.mubr.bf16.gmra.mxu0 %v15922_v43  ;;  %v13976_v43 = vld [vmem:[#allocation7 + $0xcd8] ss:$124 sps:$4 sm:$0xff]   ;;  %v16032_v3 = vld [vmem:[%s15287_s16 + $0xc] ss:$16 sps:$4 sm:$0xff]  }
 0x2ab   : > { %v16001_v56 = vadd.f32 %v10281_v53, %v10249_v19  ;;  %v7437_v59 = vpop.f32.mrf.mxu1  ;;  %7994 = vmatmul.mubr.bf16.gmra.mxu1 %v15926_v14  ;;  %8031 = vmatpush2.bf16.msra.mxu0 %v13964_v4  ;;  %v16028_v35 = vld [vmem:[%s15287_s16 + $0x4] ss:$16 sps:$4 sm:$0xff]   ;;  %v13994_v4 = vld [vmem:[#allocation7 + $0x9f0] ss:$124 sps:$4 sm:$0xff]  }
 0x2ac   : > { %v10282_v46 = vrot.slane %v7434_v39, 1  ;;  %v7438_v28 = vadd.f32 %v7437_v59, %v7344_v37  ;;  %8124 = vmatpush2.bf16.msra.mxu1 %v13967_v49  ;;  %v7346_v31 = vpop.f32.mrf.mxu0  ;;  %8032 = vmatprep.subr.bf16.mxu0 %v13972_v7  ;;  %v13997_v49 = vld [vmem:[#allocation7 + $0x1970] ss:$124 sps:$4 sm:$0xff]   ;;  %v14005_v7 = vld [vmem:[#allocation7 + $0x187c] ss:$124 sps:$4 sm:$0xff]  }
 0x2ad   : > { %v7439_v54 = vpop.f32.mrf.mxu1  ;;  %8125 = vmatprep.subr.bf16.mxu1 %v13975_v61  ;;  %7910 = vmatprep.mubr.bf16.mxu0 %v15937_v8  ;;  %v14000_v26 = vld [vmem:[#allocation7 + $0x8f8] ss:$124 sps:$4 sm:$0xff]   ;;  %v14008_v53 = vld [vmem:[#allocation7 + $0x804] ss:$124 sps:$4 sm:$0xff]   ;;  %v14012_v59 = vld [vmem:[#allocation7 + $0x710] ss:$124 sps:$4 sm:$0xff]  }
 0x2ae   : > { %v10283_v58 = vsel %vm9891_vm0, %v10280_v0, %v10282_v46  ;;  %v16007_v44 = vadd.f32 %v15960_v55, %v7438_v28  ;;  %v16009_v23 = vadd.f32 %v7439_v54, %v7346_v31  ;;  %8003 = vmatprep.mubr.bf16.mxu1 %v15941_v25  ;;  %v7348_v2 = vpop.f32.mrf.mxu0  ;;  %v13982_v25 = vld [vmem:[#allocation7 + $0xbe0] ss:$124 sps:$4 sm:$0xff]   ;;  %v14003_v22 = vld [vmem:[#allocation7 + $0x1878] ss:$124 sps:$4 sm:$0xff]  }
 0x2af   : > { %v16013_v14 = vadd.f32 %v10283_v58, %v10250_v16  ;;  %v7441_v62 = vpop.f32.mrf.mxu1  ;;  %8033 = vmatpush2.bf16.msra.mxu0 %v13970_v29  ;;  %v14006_v39 = vld [vmem:[#allocation7 + $0x800] ss:$124 sps:$4 sm:$0xff]   ;;  %v14017_v37 = vld [vmem:[#allocation7 + $0x1694] ss:$124 sps:$4 sm:$0xff]  }
 0x2b0   : > { %v10284_v33 = vrot.slane %v16009_v23, 1  ;;  %8126 = vmatpush2.bf16.msra.mxu1 %v13973_v10  ;;  %v7350_v55 = vpop.f32.mrf.mxu0  ;;  %8034 = vmatprep.subr.bf16.mxu0 %v13978_v15  ;;  %v14009_v29 = vld [vmem:[#allocation7 + $0x1780] ss:$124 sps:$4 sm:$0xff]   ;;  %v14014_v10 = vld [vmem:[#allocation7 + $0x714] ss:$124 sps:$4 sm:$0xff]  }
 0x2b1   : > { %v7443_v52 = vpop.f32.mrf.mxu1  ;;  %8127 = vmatprep.subr.bf16.mxu1 %v13981_v6  ;;  %v14015_v15 = vld [vmem:[#allocation7 + $0x1690] ss:$124 sps:$4 sm:$0xff]   ;;  %v14020_v6 = vld [vmem:[#allocation7 + $0x61c] ss:$124 sps:$4 sm:$0xff]  }
 0x2b2   : > { %v10285_v8 = vsel %vm9891_vm0, %v10282_v46, %v10284_v33  ;;  %v7444_v21 = vadd.f32 %v7443_v52, %v7350_v55  ;;  %v7354_v40 = vpop.f32.mrf.mxu0  ;;  %7911 = vmatmul.mubr.bf16.gmra.mxu0 %v16020_v18  ;;  %v14023_v46 = vld [vmem:[#allocation7 + $0x159c] ss:$124 sps:$4 sm:$0xff]  }
 0x2b3   : > { %v16017_v20 = vadd.f32 %v10285_v8, %v10251_v11  ;;  %v7447_v19 = vpop.f32.mrf.mxu1  ;;  %8004 = vmatmul.mubr.bf16.gmra.mxu1 %v16024_v32  ;;  %8035 = vmatpush2.bf16.msra.mxu0 %v13976_v43  ;;  %v14011_v11 = vld [vmem:[#allocation7 + $0x1784] ss:$124 sps:$4 sm:$0xff]   ;;  %v14018_v28 = vld [vmem:[#allocation7 + $0x618] ss:$124 sps:$4 sm:$0xff]  }
 0x2b4   : > { %9766 = vst [vmem:[#allocation2 + $0x7a0] sm:$0xff] %v7444_v21  ;;  %8128 = vmatpush2.bf16.msra.mxu1 %v13979_v38  ;;  %8036 = vmatprep.subr.bf16.mxu0 %v13984_v57  ;;  %v7356_v63 = vpop.f32.mrf.mxu0  ;;  %v14021_v31 = vld [vmem:[#allocation7 + $0x1598] ss:$124 sps:$4 sm:$0xff]   ;;  %v14026_v43 = vld [vmem:[#allocation7 + $0x524] ss:$124 sps:$4 sm:$0xff]  }
 0x2b5   : > { %8129 = vmatprep.subr.bf16.mxu1 %v13987_v13  ;;  %v7449_v45 = vpop.f32.mrf.mxu1  ;;  %8046 = vmatprep.mubr.bf16.mxu0 %v16028_v35  ;;  %v16044_v23 = vld [vmem:[%s15287_s16 + $0x8] ss:$16 sps:$4 sm:$0xff]   ;;  %v14029_v38 = vld [vmem:[#allocation7 + $0x14a4] ss:$124 sps:$4 sm:$0xff]   ;;  %v16052_v13 = vld [vmem:[%s15287_s16 + $0x2c] ss:$16 sps:$4 sm:$0xff]  }
 0x2b6   : > { %8139 = vmatprep.mubr.bf16.mxu1 %v16032_v3  ;;  %v7358_v48 = vpop.f32.mrf.mxu0  ;;  %v16048_v57 = vld [vmem:[%s15287_s16 + $0x24] ss:$16 sps:$4 sm:$0xff]   ;;  %v14027_v55 = vld [vmem:[#allocation7 + $0x14a0] ss:$124 sps:$4 sm:$0xff]   ;;  %v14032_v21 = vld [vmem:[#allocation7 + $0x42c] ss:$124 sps:$4 sm:$0xff]  }
 0x2b7   : > { %v7451_v41 = vpop.f32.mrf.mxu1  ;;  %8037 = vmatpush2.bf16.msra.mxu0 %v13982_v25  ;;  %v14035_v25 = vld [vmem:[#allocation7 + $0x13ac] ss:$124 sps:$4 sm:$0xff]   ;;  %v14041_v48 = vld [vmem:[#allocation7 + $0x12b4] ss:$124 sps:$4 sm:$0xff]  }
 0x2b8   : > { %8130 = vmatpush2.bf16.msra.mxu1 %v13985_v1  ;;  %8038 = vmatprep.subr.bf16.mxu0 %v13990_v17  ;;  %v7360_v16 = vpop.f32.mrf.mxu0  ;;  %v14030_v19 = vld [vmem:[#allocation7 + $0x428] ss:$124 sps:$4 sm:$0xff]  }
 0x2b9   : > { %8131 = vmatprep.subr.bf16.mxu1 %v13993_v50  ;;  %v7453_v42 = vpop.f32.mrf.mxu1  ;;  %v14033_v63 = vld [vmem:[#allocation7 + $0x13a8] ss:$124 sps:$4 sm:$0xff]  }
 0x2bb   : > { %v10261_v30 = vld [vmem:[#allocation2 + $0x7a0] sm:$0x1]  ;;  %8039 = vmatpush2.bf16.msra.mxu0 %v13988_v47 }
 0x2bc   : > { %v10286_v61 = vrot.slane %v10261_v30, 1  ;;  %8132 = vmatpush2.bf16.msra.mxu1 %v13991_v36  ;;  %8040 = vmatprep.subr.bf16.mxu0 %v13996_v5  ;;  %v16056_v36 = vld [vmem:[%s15287_s16 + $0x20] ss:$16 sps:$4 sm:$0xff]   ;;  %v16060_v5 = vld [vmem:[%s15287_s16 + $0x28] ss:$16 sps:$4 sm:$0xff]  }
 0x2bd   : > { %8133 = vmatprep.subr.bf16.mxu1 %v13999_v51  ;;  %v14038_v51 = vld [vmem:[#allocation7 + $0x334] ss:$124 sps:$4 sm:$0xff]   ;;  %v16068_v30 = vld [vmem:[%s15287_s16 + $0x4c] ss:$16 sps:$4 sm:$0xff]  }
 0x2be   : > { %v10287_v0 = vsel %vm9891_vm0, %v10284_v33, %v10286_v61  ;;  %v14024_v33 = vld [vmem:[#allocation7 + $0x520] ss:$124 sps:$4 sm:$0xff]  }
 0x2bf   : > { %v16037_v27 = vadd.f32 %v10287_v0, %v16007_v44  ;;  %8041 = vmatpush2.bf16.msra.mxu0 %v13994_v4  ;;  %v16040_v44 = vld [vmem:[%s15287_s16] ss:$16 sps:$4 sm:$0xff]  }
 0x2c0   : > { %8134 = vmatpush2.bf16.msra.mxu1 %v13997_v49  ;;  %8042 = vmatprep.subr.bf16.mxu0 %v14002_v12  ;;  %v16064_v49 = vld [vmem:[%s15287_s16 + $0x44] ss:$16 sps:$4 sm:$0xff]   ;;  %v14036_v12 = vld [vmem:[#allocation7 + $0x330] ss:$124 sps:$4 sm:$0xff]  }
 0x2c1   : > { %8135 = vmatprep.subr.bf16.mxu1 %v14005_v7  ;;  %v14039_v7 = vld [vmem:[#allocation7 + $0x12b0] ss:$124 sps:$4 sm:$0xff]  }
 0x2c3   : > { %8043 = vmatpush2.bf16.msra.mxu0 %v14000_v26  ;;  %v14044_v26 = vld [vmem:[#allocation7 + $0x23c] ss:$124 sps:$4 sm:$0xff]  }
 0x2c4   : > { %8136 = vmatpush2.bf16.msra.mxu1 %v14003_v22  ;;  %8044 = vmatprep.subr.bf16.mxu0 %v14008_v53  ;;  %v14047_v22 = vld [vmem:[#allocation7 + $0x11bc] ss:$124 sps:$4 sm:$0xff]  }
 0x2c5   : > { %8137 = vmatprep.subr.bf16.mxu1 %v14011_v11 }
 0x2c7   : > { %8045 = vmatpush2.bf16.msra.mxu0 %v14006_v39 }
 0x2c8   : > { %8138 = vmatpush2.bf16.msra.mxu1 %v14009_v29  ;;  %8200 = vmatprep.subr.bf16.mxu0 %v14014_v10 }
 0x2c9   : > { %8293 = vmatprep.subr.bf16.mxu1 %v14017_v37 }
 0x2ca   : > { %v7490_v54 = vpop.f32.mrf.mxu0  ;;  %8047 = vmatmul.mubr.bf16.vlgmr.msra.gmra.mxu0 %v16040_v44 }
 0x2cb   : > { %v7583_v58 = vpop.f32.mrf.mxu1  ;;  %8140 = vmatmul.mubr.bf16.vlgmr.msra.gmra.mxu1 %v16044_v23  ;;  %8201 = vmatpush1.bf16.msra.mxu0 %v14012_v59 }
 0x2cc   : > { %8294 = vmatpush1.bf16.msra.mxu1 %v14015_v15  ;;  %v7492_v2 = vpop.f32.mrf.mxu0  ;;  %8202 = vmatprep.subr.bf16.mxu0 %v14020_v6 }
 0x2cd   : > { %v7585_v62 = vpop.f32.mrf.mxu1  ;;  %8295 = vmatprep.subr.bf16.mxu1 %v14023_v46  ;;  %8056 = vmatprep.mubr.bf16.mxu0 %v16048_v57  ;;  %v14042_v46 = vld [vmem:[#allocation7 + $0x238] ss:$124 sps:$4 sm:$0xff]   ;;  %v14050_v2 = vld [vmem:[#allocation7 + $0x144] ss:$124 sps:$4 sm:$0xff]  }
 0x2ce   : > { %8149 = vmatprep.mubr.bf16.mxu1 %v16052_v13  ;;  %v7494_v52 = vpop.f32.mrf.mxu0  ;;  %v14053_v62 = vld [vmem:[#allocation7 + $0x10c4] ss:$124 sps:$4 sm:$0xff]  }
 0x2cf   : > { %v7587_v8 = vpop.f32.mrf.mxu1  ;;  %8203 = vmatpush1.bf16.msra.mxu0 %v14018_v28  ;;  %v14045_v28 = vld [vmem:[#allocation7 + $0x11b8] ss:$124 sps:$4 sm:$0xff]  }
 0x2d0   : > { %v7588_v1 = vadd.f32 %v7587_v8, %v7494_v52  ;;  %8296 = vmatpush1.bf16.msra.mxu1 %v14021_v31  ;;  %v7496_v17 = vpop.f32.mrf.mxu0  ;;  %8204 = vmatprep.subr.bf16.mxu0 %v14026_v43  ;;  %v16072_v43 = vld [vmem:[%s15287_s16 + $0x40] ss:$16 sps:$4 sm:$0xff]  }
 0x2d1   : > { %v7589_v50 = vpop.f32.mrf.mxu1  ;;  %8297 = vmatprep.subr.bf16.mxu1 %v14029_v38  ;;  %v16076_v38 = vld [vmem:[%s15287_s16 + $0x48] ss:$16 sps:$4 sm:$0xff]  }
 0x2d2   : > { %9519 = vst [vmem:[#allocation2 + $0x5f8] sm:$0xff] %v7588_v1  ;;  %v7590_v40 = vadd.f32 %v7589_v50, %v7496_v17  ;;  %v7500_v45 = vpop.f32.mrf.mxu0  ;;  %8057 = vmatmul.mubr.bf16.gmra.mxu0 %v16056_v36 }
 0x2d3   : > { %v7593_v47 = vpop.f32.mrf.mxu1  ;;  %8150 = vmatmul.mubr.bf16.gmra.mxu1 %v16060_v5  ;;  %8205 = vmatpush1.bf16.msra.mxu0 %v14024_v33 }
 0x2d4   : > { %9520 = vst [vmem:[#allocation2 + $0xa08] sm:$0xff] %v7590_v40  ;;  %v7594_v41 = vadd.f32 %v7593_v47, %v7500_v45  ;;  %8298 = vmatpush1.bf16.msra.mxu1 %v14027_v55  ;;  %v7502_v16 = vpop.f32.mrf.mxu0  ;;  %8206 = vmatprep.subr.bf16.mxu0 %v14032_v21  ;;  %v16086_v45 = vld [vmem:[%s15287_s16 + $0x64] ss:$16 sps:$4 sm:$0xff]   ;;  %v16090_v47 = vld [vmem:[%s15287_s16 + $0x6c] ss:$16 sps:$4 sm:$0xff]  }
 0x2d5   : > { %v7595_v42 = vpop.f32.mrf.mxu1  ;;  %8299 = vmatprep.subr.bf16.mxu1 %v14035_v25  ;;  %8066 = vmatprep.mubr.bf16.mxu0 %v16064_v49 }
 0x2d6   : > { %v7596_v4 = vadd.f32 %v7595_v42, %v7502_v16  ;;  %8159 = vmatprep.mubr.bf16.mxu1 %v16068_v30  ;;  %v7504_v61 = vpop.f32.mrf.mxu0  ;;  %v10323_v53 = vrot.slane %v7594_v41, 2 }
 0x2d7   : > { %v7597_v0 = vpop.f32.mrf.mxu1  ;;  %8207 = vmatpush1.bf16.msra.mxu0 %v14030_v19 }
 0x2d8   : > { %v7598_v11 = vadd.f32 %v7597_v0, %v7504_v61  ;;  %8300 = vmatpush1.bf16.msra.mxu1 %v14033_v63  ;;  %v7506_v29 = vpop.f32.mrf.mxu0  ;;  %8208 = vmatprep.subr.bf16.mxu0 %v14038_v51  ;;  %v10374_v59 = vrot.slane %v7596_v4, 3  ;;  %v14056_v4 = vld [vmem:[#allocation7 + $0x4c] ss:$124 sps:$4 sm:$0xff]  }
 0x2d9   : > { %v10304_v39 = vld [vmem:[#allocation2 + $0x5f8] sm:$0xfc]  ;;  %v7599_v10 = vpop.f32.mrf.mxu1  ;;  %8301 = vmatprep.subr.bf16.mxu1 %v14041_v48 }
 0x2da   : > { %v10322_v37 = vrot.slane %v10304_v39, 2  ;;  %v10325_v15 = vrot.slane %v7598_v11, 2  ;;  %v7600_v6 = vadd.f32 %v7599_v10, %v7506_v29  ;;  %v7510_v54 = vpop.f32.mrf.mxu0  ;;  %8067 = vmatmul.mubr.bf16.gmra.mxu0 %v16072_v43  ;;  %v14054_v10 = vld [vmem:[#allocation7 + $0x48] ss:$124 sps:$4 sm:$0xff]  }
 0x2db   : > { %v10355_v31 = vld [vmem:[#allocation2 + $0xa08] sm:$0xf8]  ;;  %v7603_v58 = vpop.f32.mrf.mxu1  ;;  %8160 = vmatmul.mubr.bf16.gmra.mxu1 %v16076_v38  ;;  %8209 = vmatpush1.bf16.msra.mxu0 %v14036_v12 }
 0x2dc   : > { %v10373_v33 = vrot.slane %v10355_v31, 3  ;;  %v10324_v55 = vsel %vm9943_vm1, %v10322_v37, %v10323_v53  ;;  %v10326_v52 = vsel %vm9943_vm1, %v10323_v53, %v10325_v15  ;;  %v10376_v8 = vrot.slane %v7600_v6, 3  ;;  %8302 = vmatpush1.bf16.msra.mxu1 %v14039_v7  ;;  %v7512_v17 = vpop.f32.mrf.mxu0  ;;  %8210 = vmatprep.subr.bf16.mxu0 %v14044_v26  ;;  %v14059_v12 = vld [vmem:[#allocation7 + $0xfcc] ss:$124 sps:$4 sm:$0xff]   ;;  %v16101_v31 = vld [vmem:[%s15287_s16 + $0x60] ss:$16 sps:$4 sm:$0xff]  }
 0x2dd   : > { %v10347_v21 = vadd.f32 %v10324_v55, %v15982_v60  ;;  %v10348_v25 = vadd.f32 %v10326_v52, %v15984_v24  ;;  %v7604_v1 = vadd.f32 %v7603_v58, %v7510_v54  ;;  %v7605_v50 = vpop.f32.mrf.mxu1  ;;  %8303 = vmatprep.subr.bf16.mxu1 %v14047_v22  ;;  %8076 = vmatprep.mubr.bf16.mxu0 %v16086_v45  ;;  %v14048_v60 = vld [vmem:[#allocation7 + $0x140] ss:$124 sps:$4 sm:$0xff]   ;;  %v14057_v37 = vld [vmem:[#allocation7 + $0xfc8] ss:$124 sps:$4 sm:$0xff]  }
 0x2de   : > { %v10375_v40 = vsel %vm9995_vm2, %v10373_v33, %v10374_v59  ;;  %v10377_v19 = vsel %vm9995_vm2, %v10374_v59, %v10376_v8  ;;  %v7606_v63 = vadd.f32 %v7605_v50, %v7512_v17  ;;  %8169 = vmatprep.mubr.bf16.mxu1 %v16090_v47  ;;  %v14051_v24 = vld [vmem:[#allocation7 + $0x10c0] ss:$124 sps:$4 sm:$0xff]   ;;  %v7514_v16 = vpop.f32.mrf.mxu0  ;;  %v14060_v17 = vld [vmem:[#allocation7 + $0xed0] ss:$124 sps:$4 sm:$0xff]  }
 0x2df   : > { %v16093_v51 = vadd.f32 %v10375_v40, %v10347_v21  ;;  %v16095_v48 = vadd.f32 %v10377_v19, %v10348_v25  ;;  %v10327_v41 = vrot.slane %v7604_v1, 2  ;;  %v7607_v42 = vpop.f32.mrf.mxu1  ;;  %8211 = vmatpush1.bf16.msra.mxu0 %v14042_v46  ;;  %v16105_v46 = vld [vmem:[%s15287_s16 + $0x68] ss:$16 sps:$4 sm:$0xff]   ;;  %v16114_v25 = vld [vmem:[%s15287_s16 + $0x84] ss:$16 sps:$4 sm:$0xff]  }
 0x2e0   : > { %v10378_v7 = vrot.slane %v7606_v63, 3  ;;  %v7608_v61 = vadd.f32 %v7607_v42, %v7514_v16  ;;  %8304 = vmatpush1.bf16.msra.mxu1 %v14045_v28  ;;  %v7516_v26 = vpop.f32.mrf.mxu0  ;;  %8212 = vmatprep.subr.bf16.mxu0 %v14050_v2  ;;  %v14065_v28 = vld [vmem:[#allocation7 + $0x1e54] ss:$124 sps:$4 sm:$0xff]   ;;  %v16118_v1 = vld [vmem:[%s15287_s16 + $0x8c] ss:$16 sps:$4 sm:$0xff]  }
 0x2e1   : > { %v10328_v0 = vsel %vm9943_vm1, %v10325_v15, %v10327_v41  ;;  %v7609_v22 = vpop.f32.mrf.mxu1  ;;  %8305 = vmatprep.subr.bf16.mxu1 %v14053_v62  ;;  %v14062_v15 = vld [vmem:[#allocation7 + $0xed4] ss:$124 sps:$4 sm:$0xff]   ;;  %v14068_v63 = vld [vmem:[#allocation7 + $0xddc] ss:$124 sps:$4 sm:$0xff]  }
 0x2e2   : > { %v10349_v53 = vadd.f32 %v10328_v0, %v15989_v9  ;;  %v10379_v11 = vsel %vm9995_vm2, %v10376_v8, %v10378_v7  ;;  %v10329_v39 = vrot.slane %v7608_v61, 2  ;;  %v7610_v29 = vadd.f32 %v7609_v22, %v7516_v26  ;;  %v7520_v59 = vpop.f32.mrf.mxu0  ;;  %8077 = vmatmul.mubr.bf16.gmra.mxu0 %v16101_v31  ;;  %v14063_v50 = vld [vmem:[#allocation7 + $0x1e50] ss:$124 sps:$4 sm:$0xff]   ;;  %v14066_v26 = vld [vmem:[#allocation7 + $0xdd8] ss:$124 sps:$4 sm:$0xff]  }
 0x2e3   : > { %v7613_v6 = vpop.f32.mrf.mxu1  ;;  %8170 = vmatmul.mubr.bf16.gmra.mxu1 %v16105_v46  ;;  %8213 = vmatpush1.bf16.msra.mxu0 %v14048_v60  ;;  %v14071_v60 = vld [vmem:[#allocation7 + $0x1d5c] ss:$124 sps:$4 sm:$0xff]  }
 0x2e4   : > { %v16108_v9 = vadd.f32 %v10379_v11, %v10349_v53  ;;  %v10330_v54 = vsel %vm9943_vm1, %v10327_v41, %v10329_v39  ;;  %v10380_v58 = vrot.slane %v7610_v29, 3  ;;  %v7614_v2 = vadd.f32 %v7613_v6, %v7520_v59  ;;  %8306 = vmatpush1.bf16.msra.mxu1 %v14051_v24  ;;  %v7522_v33 = vpop.f32.mrf.mxu0  ;;  %8214 = vmatprep.subr.bf16.mxu0 %v14056_v4  ;;  %v14069_v22 = vld [vmem:[#allocation7 + $0x1d58] ss:$124 sps:$4 sm:$0xff]   ;;  %v16129_v29 = vld [vmem:[%s15287_s16 + $0x80] ss:$16 sps:$4 sm:$0xff]  }
 0x2e5   : > { %v10350_v62 = vadd.f32 %v10330_v54, %v15997_v34  ;;  %v7615_v55 = vpop.f32.mrf.mxu1  ;;  %8307 = vmatprep.subr.bf16.mxu1 %v14059_v12  ;;  %8086 = vmatprep.mubr.bf16.mxu0 %v16114_v25 }
 0x2e6   : > { %v10381_v52 = vsel %vm9995_vm2, %v10378_v7, %v10380_v58  ;;  %v10331_v8 = vrot.slane %v7614_v2, 2  ;;  %v7616_v21 = vadd.f32 %v7615_v55, %v7522_v33  ;;  %8179 = vmatprep.mubr.bf16.mxu1 %v16118_v1  ;;  %v7524_v34 = vpop.f32.mrf.mxu0  ;;  %v16145_v55 = vld [vmem:[%s15287_s16 + $0xa4] ss:$16 sps:$4 sm:$0xff]  }
 0x2e7   : > { %v16121_v40 = vadd.f32 %v10381_v52, %v10350_v62  ;;  %v7617_v19 = vpop.f32.mrf.mxu1  ;;  %8215 = vmatpush1.bf16.msra.mxu0 %v14054_v10  ;;  %v16133_v10 = vld [vmem:[%s15287_s16 + $0x88] ss:$16 sps:$4 sm:$0xff]   ;;  %v16149_v52 = vld [vmem:[%s15287_s16 + $0xac] ss:$16 sps:$4 sm:$0xff]  }
 0x2e8   : > { %v10332_v24 = vsel %vm9943_vm1, %v10329_v39, %v10331_v8  ;;  %v10382_v41 = vrot.slane %v7616_v21, 3  ;;  %v7618_v16 = vadd.f32 %v7617_v19, %v7524_v34  ;;  %8308 = vmatpush1.bf16.msra.mxu1 %v14057_v37  ;;  %v7526_v4 = vpop.f32.mrf.mxu0  ;;  %8216 = vmatprep.subr.bf16.mxu0 %v14062_v15  ;;  %v14077_v37 = vld [vmem:[#allocation7 + $0x1c64] ss:$124 sps:$4 sm:$0xff]   ;;  %v14080_v34 = vld [vmem:[#allocation7 + $0xbec] ss:$124 sps:$4 sm:$0xff]  }
 0x2e9   : > { %v10351_v42 = vadd.f32 %v10332_v24, %v16001_v56  ;;  %v7619_v12 = vpop.f32.mrf.mxu1  ;;  %8309 = vmatprep.subr.bf16.mxu1 %v14065_v28  ;;  %v14074_v56 = vld [vmem:[#allocation7 + $0xce4] ss:$124 sps:$4 sm:$0xff]   ;;  %v14083_v19 = vld [vmem:[#allocation7 + $0x1b6c] ss:$124 sps:$4 sm:$0xff]  }
 0x2ea   : > { %v10383_v7 = vsel %vm9995_vm2, %v10380_v58, %v10382_v41  ;;  %v10333_v61 = vrot.slane %v7618_v16, 2  ;;  %v7620_v0 = vadd.f32 %v7619_v12, %v7526_v4  ;;  %v7530_v11 = vpop.f32.mrf.mxu0  ;;  %8087 = vmatmul.mubr.bf16.gmra.mxu0 %v16129_v29 }
 0x2eb   : > { %v16126_v53 = vadd.f32 %v10383_v7, %v10351_v42  ;;  %v7623_v39 = vpop.f32.mrf.mxu1  ;;  %8180 = vmatmul.mubr.bf16.gmra.mxu1 %v16133_v10  ;;  %8217 = vmatpush2.bf16.msra.mxu0 %v14060_v17  ;;  %v14078_v7 = vld [vmem:[#allocation7 + $0xbe8] ss:$124 sps:$4 sm:$0xff]  }
 0x2ec   : > { %v10334_v59 = vsel %vm9943_vm1, %v10331_v8, %v10333_v61  ;;  %v10384_v6 = vrot.slane %v7620_v0, 3  ;;  %v16137_v15 = vadd.f32 %v7623_v39, %v7530_v11  ;;  %8310 = vmatpush2.bf16.msra.mxu1 %v14063_v50  ;;  %v7532_v54 = vpop.f32.mrf.mxu0  ;;  %8218 = vmatprep.subr.bf16.mxu0 %v14068_v63  ;;  %v14072_v8 = vld [vmem:[#allocation7 + $0xce0] ss:$124 sps:$4 sm:$0xff]   ;;  %v14081_v0 = vld [vmem:[#allocation7 + $0x1b68] ss:$124 sps:$4 sm:$0xff]  }
 0x2ed   : > { %v10352_v28 = vadd.f32 %v10334_v59, %v16013_v14  ;;  %v7625_v58 = vpop.f32.mrf.mxu1  ;;  %8311 = vmatprep.subr.bf16.mxu1 %v14071_v60  ;;  %8096 = vmatprep.mubr.bf16.mxu0 %v16145_v55  ;;  %v14075_v14 = vld [vmem:[#allocation7 + $0x1c60] ss:$124 sps:$4 sm:$0xff]   ;;  %v14087_v59 = vld [vmem:[#allocation7 + $0x1a70] ss:$124 sps:$4 sm:$0xff]  }
 0x2ee   : > { %v10385_v2 = vsel %vm9995_vm2, %v10382_v41, %v10384_v6  ;;  %v10335_v62 = vrot.slane %v16137_v15, 2  ;;  %v16142_v33 = vadd.f32 %v7625_v58, %v7532_v54  ;;  %8189 = vmatprep.mubr.bf16.mxu1 %v16149_v52  ;;  %v7534_v17 = vpop.f32.mrf.mxu0 }
 0x2ef   : > { %v16152_v21 = vadd.f32 %v10385_v2, %v10352_v28  ;;  %v7627_v50 = vpop.f32.mrf.mxu1  ;;  %8219 = vmatpush2.bf16.msra.mxu0 %v14066_v26  ;;  %v14089_v26 = vld [vmem:[#allocation7 + $0x1a74] ss:$124 sps:$4 sm:$0xff]  }
 0x2f0   : > { %v10336_v63 = vsel %vm9943_vm1, %v10333_v61, %v10335_v62  ;;  %v10386_v60 = vrot.slane %v16142_v33, 3  ;;  %v7628_v24 = vadd.f32 %v7627_v50, %v7534_v17  ;;  %8312 = vmatpush2.bf16.msra.mxu1 %v14069_v22  ;;  %v7536_v16 = vpop.f32.mrf.mxu0  ;;  %8220 = vmatprep.subr.bf16.mxu0 %v14074_v56  ;;  %v14086_v61 = vld [vmem:[#allocation7 + $0xaf4] ss:$124 sps:$4 sm:$0xff]   ;;  %v14098_v50 = vld [vmem:[#allocation7 + $0x904] ss:$124 sps:$4 sm:$0xff]  }
 0x2f1   : > { %v10353_v41 = vadd.f32 %v10336_v63, %v16017_v20  ;;  %v7629_v42 = vpop.f32.mrf.mxu1  ;;  %8313 = vmatprep.subr.bf16.mxu1 %v14077_v37  ;;  %v14084_v37 = vld [vmem:[#allocation7 + $0xaf0] ss:$124 sps:$4 sm:$0xff]  }
 0x2f2   : > { %v10387_v4 = vsel %vm9995_vm2, %v10384_v6, %v10386_v60  ;;  %9767 = vst [vmem:[#allocation2 + $0x6f0] sm:$0xff] %v7628_v24  ;;  %v7630_v12 = vadd.f32 %v7629_v42, %v7536_v16  ;;  %8097 = vmatmul.mubr.bf16.gmra.mxu0 %v16020_v18  ;;  %v7540_v22 = vpop.f32.mrf.mxu0  ;;  %v14092_v18 = vld [vmem:[#allocation7 + $0x9fc] ss:$124 sps:$4 sm:$0xff]   ;;  %v14107_v16 = vld [vmem:[#allocation7 + $0x178c] ss:$124 sps:$4 sm:$0xff]  }
 0x2f3   : > { %v16158_v11 = vadd.f32 %v10387_v4, %v10353_v41  ;;  %8190 = vmatmul.mubr.bf16.gmra.mxu1 %v16024_v32  ;;  %v7633_v20 = vpop.f32.mrf.mxu1  ;;  %8221 = vmatpush2.bf16.msra.mxu0 %v14072_v8  ;;  %v14095_v6 = vld [vmem:[#allocation7 + $0x197c] ss:$124 sps:$4 sm:$0xff]   ;;  %v14102_v42 = vld [vmem:[#allocation7 + $0x808] ss:$124 sps:$4 sm:$0xff]  }
 0x2f4   : > { %9768 = vst [vmem:[#allocation2 + $0xa90] sm:$0xff] %v7630_v12  ;;  %8314 = vmatpush2.bf16.msra.mxu1 %v14075_v14  ;;  %8222 = vmatprep.subr.bf16.mxu0 %v14080_v34  ;;  %v7542_v39 = vpop.f32.mrf.mxu0  ;;  %v14101_v34 = vld [vmem:[#allocation7 + $0x1884] ss:$124 sps:$4 sm:$0xff]   ;;  %v14110_v4 = vld [vmem:[#allocation7 + $0x71c] ss:$124 sps:$4 sm:$0xff]  }
 0x2f5   : > { %8315 = vmatprep.subr.bf16.mxu1 %v14083_v19  ;;  %v7635_v56 = vpop.f32.mrf.mxu1  ;;  %8232 = vmatprep.mubr.bf16.mxu0 %v16028_v35  ;;  %v14090_v35 = vld [vmem:[#allocation7 + $0x9f8] ss:$124 sps:$4 sm:$0xff]   ;;  %v14096_v24 = vld [vmem:[#allocation7 + $0x900] ss:$124 sps:$4 sm:$0xff]  }
 0x2f6   : > { %8325 = vmatprep.mubr.bf16.mxu1 %v16032_v3  ;;  %v7544_v32 = vpop.f32.mrf.mxu0  ;;  %v14093_v3 = vld [vmem:[#allocation7 + $0x1978] ss:$124 sps:$4 sm:$0xff]   ;;  %v14099_v41 = vld [vmem:[#allocation7 + $0x1880] ss:$124 sps:$4 sm:$0xff]  }
 0x2f7   : > { %v7637_v15 = vpop.f32.mrf.mxu1  ;;  %8223 = vmatpush2.bf16.msra.mxu0 %v14078_v7  ;;  %v14113_v12 = vld [vmem:[#allocation7 + $0x169c] ss:$124 sps:$4 sm:$0xff]  }
 0x2f8   : > { %8316 = vmatpush2.bf16.msra.mxu1 %v14081_v0  ;;  %8224 = vmatprep.subr.bf16.mxu0 %v14086_v61  ;;  %v7546_v54 = vpop.f32.mrf.mxu0  ;;  %v14111_v7 = vld [vmem:[#allocation7 + $0x1698] ss:$124 sps:$4 sm:$0xff]   ;;  %v14116_v0 = vld [vmem:[#allocation7 + $0x624] ss:$124 sps:$4 sm:$0xff]  }
 0x2f9   : > { %v10312_v28 = vld [vmem:[#allocation2 + $0x6f0] sm:$0x3]  ;;  %8317 = vmatprep.subr.bf16.mxu1 %v14089_v26  ;;  %v7639_v58 = vpop.f32.mrf.mxu1  ;;  %v14119_v61 = vld [vmem:[#allocation7 + $0x15a4] ss:$124 sps:$4 sm:$0xff]  }
 0x2fa   : > { %v10337_v2 = vrot.slane %v10312_v28, 2  ;;  %v14114_v20 = vld [vmem:[#allocation7 + $0x620] ss:$124 sps:$4 sm:$0xff]   ;;  %v14128_v58 = vld [vmem:[#allocation7 + $0x434] ss:$124 sps:$4 sm:$0xff]  }
 0x2fb   : > { %v10363_v33 = vld [vmem:[#allocation2 + $0xa90] sm:$0x7]  ;;  %8225 = vmatpush2.bf16.msra.mxu0 %v14084_v37  ;;  %v14117_v39 = vld [vmem:[#allocation7 + $0x15a0] ss:$124 sps:$4 sm:$0xff]  }
 0x2fc   : > { %v10338_v8 = vsel %vm9943_vm1, %v10335_v62, %v10337_v2  ;;  %v10388_v14 = vrot.slane %v10363_v33, 3  ;;  %8318 = vmatpush2.bf16.msra.mxu1 %v14087_v59  ;;  %8226 = vmatprep.subr.bf16.mxu0 %v14092_v18  ;;  %v14104_v62 = vld [vmem:[#allocation7 + $0x80c] ss:$124 sps:$4 sm:$0xff]   ;;  %v14131_v2 = vld [vmem:[#allocation7 + $0x13b4] ss:$124 sps:$4 sm:$0xff]  }
 0x2fd   : > { %v10354_v17 = vadd.f32 %v10338_v8, %v16037_v27  ;;  %8319 = vmatprep.subr.bf16.mxu1 %v14095_v6  ;;  %v14105_v27 = vld [vmem:[#allocation7 + $0x1788] ss:$124 sps:$4 sm:$0xff]  }
 0x2fe   : > { %v10389_v19 = vsel %vm9995_vm2, %v10386_v60, %v10388_v14  ;;  %v14108_v60 = vld [vmem:[#allocation7 + $0x718] ss:$124 sps:$4 sm:$0xff]   ;;  %v14122_v59 = vld [vmem:[#allocation7 + $0x52c] ss:$124 sps:$4 sm:$0xff]  }
 0x2ff   : > { %v16167_v63 = vadd.f32 %v10389_v19, %v10354_v17  ;;  %8227 = vmatpush2.bf16.msra.mxu0 %v14090_v35  ;;  %v14125_v18 = vld [vmem:[#allocation7 + $0x14ac] ss:$124 sps:$4 sm:$0xff]  }
 0x300   : > { %8320 = vmatpush2.bf16.msra.mxu1 %v14093_v3  ;;  %8228 = vmatprep.subr.bf16.mxu0 %v14098_v50  ;;  %v14129_v35 = vld [vmem:[#allocation7 + $0x13b0] ss:$124 sps:$4 sm:$0xff]   ;;  %v14134_v50 = vld [vmem:[#allocation7 + $0x33c] ss:$124 sps:$4 sm:$0xff]  }
 0x301   : > { %8321 = vmatprep.subr.bf16.mxu1 %v14101_v34  ;;  %v14137_v34 = vld [vmem:[#allocation7 + $0x12bc] ss:$124 sps:$4 sm:$0xff]  }
 0x303   : > { %8229 = vmatpush2.bf16.msra.mxu0 %v14096_v24 }
 0x304   : > { %8322 = vmatpush2.bf16.msra.mxu1 %v14099_v41  ;;  %8230 = vmatprep.subr.bf16.mxu0 %v14104_v62  ;;  %v14132_v62 = vld [vmem:[#allocation7 + $0x338] ss:$124 sps:$4 sm:$0xff]  }
 0x305   : > { %8323 = vmatprep.subr.bf16.mxu1 %v14107_v16  ;;  %v14135_v16 = vld [vmem:[#allocation7 + $0x12b8] ss:$124 sps:$4 sm:$0xff]  }
 0x307   : > { %8231 = vmatpush2.bf16.msra.mxu0 %v14102_v42 }
 0x308   : > { %8324 = vmatpush2.bf16.msra.mxu1 %v14105_v27  ;;  %8386 = vmatprep.subr.bf16.mxu0 %v14110_v4 }
 0x309   : > { %8479 = vmatprep.subr.bf16.mxu1 %v14113_v12  ;;  %v14140_v12 = vld [vmem:[#allocation7 + $0x244] ss:$124 sps:$4 sm:$0xff]  }
 0x30a   : > { %v7676_v26 = vpop.f32.mrf.mxu0  ;;  %8233 = vmatmul.mubr.bf16.vlgmr.msra.gmra.mxu0 %v16040_v44  ;;  %v14120_v44 = vld [vmem:[#allocation7 + $0x528] ss:$124 sps:$4 sm:$0xff]  }
 0x30b   : > { %v7769_v22 = vpop.f32.mrf.mxu1  ;;  %8326 = vmatmul.mubr.bf16.vlgmr.msra.gmra.mxu1 %v16044_v23  ;;  %8387 = vmatpush1.bf16.msra.mxu0 %v14108_v60  ;;  %v14123_v23 = vld [vmem:[#allocation7 + $0x14a8] ss:$124 sps:$4 sm:$0xff]  }
 0x30c   : > { %8480 = vmatpush1.bf16.msra.mxu1 %v14111_v7  ;;  %v7678_v56 = vpop.f32.mrf.mxu0  ;;  %8388 = vmatprep.subr.bf16.mxu0 %v14116_v0  ;;  %v14143_v60 = vld [vmem:[#allocation7 + $0x11c4] ss:$124 sps:$4 sm:$0xff]  }
 0x30d   : > { %v7771_v37 = vpop.f32.mrf.mxu1  ;;  %8481 = vmatprep.subr.bf16.mxu1 %v14119_v61  ;;  %8242 = vmatprep.mubr.bf16.mxu0 %v16048_v57 }
 0x30e   : > { %8335 = vmatprep.mubr.bf16.mxu1 %v16052_v13  ;;  %v7680_v6 = vpop.f32.mrf.mxu0  ;;  %v14126_v13 = vld [vmem:[#allocation7 + $0x430] ss:$124 sps:$4 sm:$0xff]  }
 0x30f   : > { %v7773_v32 = vpop.f32.mrf.mxu1  ;;  %8389 = vmatpush1.bf16.msra.mxu0 %v14114_v20 }
 0x310   : > { %v7774_v15 = vadd.f32 %v7773_v32, %v7680_v6  ;;  %8482 = vmatpush1.bf16.msra.mxu1 %v14117_v39  ;;  %v7682_v28 = vpop.f32.mrf.mxu0  ;;  %8390 = vmatprep.subr.bf16.mxu0 %v14122_v59  ;;  %v14138_v59 = vld [vmem:[#allocation7 + $0x240] ss:$124 sps:$4 sm:$0xff]  }
 0x311   : > { %v7775_v54 = vpop.f32.mrf.mxu1  ;;  %8483 = vmatprep.subr.bf16.mxu1 %v14125_v18  ;;  %v14141_v18 = vld [vmem:[#allocation7 + $0x11c0] ss:$124 sps:$4 sm:$0xff]  }
 0x312   : > { %9521 = vst [vmem:[#allocation2 + $0xb00] sm:$0xff] %v7774_v15  ;;  %v7776_v33 = vadd.f32 %v7775_v54, %v7682_v28  ;;  %v7686_v8 = vpop.f32.mrf.mxu0  ;;  %8243 = vmatmul.mubr.bf16.gmra.mxu0 %v16056_v36 }
 0x313   : > { %v7779_v14 = vpop.f32.mrf.mxu1  ;;  %8336 = vmatmul.mubr.bf16.gmra.mxu1 %v16060_v5  ;;  %8391 = vmatpush1.bf16.msra.mxu0 %v14120_v44 }
 0x314   : > { %9522 = vst [vmem:[#allocation2 + $0x850] sm:$0xff] %v7776_v33  ;;  %v7780_v57 = vadd.f32 %v7779_v14, %v7686_v8  ;;  %8484 = vmatpush1.bf16.msra.mxu1 %v14123_v23  ;;  %v7688_v3 = vpop.f32.mrf.mxu0  ;;  %8392 = vmatprep.subr.bf16.mxu0 %v14128_v58 }
 0x315   : > { %v7781_v17 = vpop.f32.mrf.mxu1  ;;  %8485 = vmatprep.subr.bf16.mxu1 %v14131_v2  ;;  %8252 = vmatprep.mubr.bf16.mxu0 %v16064_v49 }
 0x316   : > { %v7782_v19 = vadd.f32 %v7781_v17, %v7688_v3  ;;  %8345 = vmatprep.mubr.bf16.mxu1 %v16068_v30  ;;  %v7690_v36 = vpop.f32.mrf.mxu0  ;;  %v10425_v5 = vrot.slane %v7780_v57, 4 }
 0x317   : > { %v7783_v24 = vpop.f32.mrf.mxu1  ;;  %8393 = vmatpush1.bf16.msra.mxu0 %v14126_v13  ;;  %v14144_v13 = vld [vmem:[#allocation7 + $0x148] ss:$124 sps:$4 sm:$0xff]  }
 0x318   : > { %v7784_v41 = vadd.f32 %v7783_v24, %v7690_v36  ;;  %8486 = vmatpush1.bf16.msra.mxu1 %v14129_v35  ;;  %v7692_v27 = vpop.f32.mrf.mxu0  ;;  %8394 = vmatprep.subr.bf16.mxu0 %v14134_v50  ;;  %v10476_v0 = vrot.slane %v7782_v19, 5  ;;  %v14147_v35 = vld [vmem:[#allocation7 + $0x10c8] ss:$124 sps:$4 sm:$0xff]  }
 0x319   : > { %v10406_v42 = vld [vmem:[#allocation2 + $0xb00] sm:$0xf0]  ;;  %v7785_v4 = vpop.f32.mrf.mxu1  ;;  %8487 = vmatprep.subr.bf16.mxu1 %v14137_v34 }
 0x31a   : > { %v10424_v7 = vrot.slane %v10406_v42, 4  ;;  %v10427_v49 = vrot.slane %v7784_v41, 4  ;;  %v7786_v61 = vadd.f32 %v7785_v4, %v7692_v27  ;;  %v7696_v26 = vpop.f32.mrf.mxu0  ;;  %8253 = vmatmul.mubr.bf16.gmra.mxu0 %v16072_v43  ;;  %v14146_v43 = vld [vmem:[#allocation7 + $0x14c] ss:$124 sps:$4 sm:$0xff]  }
 0x31b   : > { %v10457_v30 = vld [vmem:[#allocation2 + $0x850] sm:$0xe0]  ;;  %v7789_v22 = vpop.f32.mrf.mxu1  ;;  %8346 = vmatmul.mubr.bf16.gmra.mxu1 %v16076_v38  ;;  %8395 = vmatpush1.bf16.msra.mxu0 %v14132_v62  ;;  %v14149_v38 = vld [vmem:[#allocation7 + $0x10cc] ss:$124 sps:$4 sm:$0xff]  }
 0x31c   : > { %v10475_v20 = vrot.slane %v10457_v30, 5  ;;  %v10426_v39 = vsel %vm10047_vm3, %v10424_v7, %v10425_v5  ;;  %v10428_v56 = vsel %vm10047_vm3, %v10425_v5, %v10427_v49  ;;  %v10478_v37 = vrot.slane %v7786_v61, 5  ;;  %8488 = vmatpush1.bf16.msra.mxu1 %v14135_v16  ;;  %v7698_v44 = vpop.f32.mrf.mxu0  ;;  %8396 = vmatprep.subr.bf16.mxu0 %v14140_v12  ;;  %v14150_v4 = vld [vmem:[#allocation7 + $0x50] ss:$124 sps:$4 sm:$0xff]  }
 0x31d   : > { %v10449_v6 = vadd.f32 %v10426_v39, %v16093_v51  ;;  %v10450_v32 = vadd.f32 %v10428_v56, %v16095_v48  ;;  %v7790_v15 = vadd.f32 %v7789_v22, %v7696_v26  ;;  %v7791_v23 = vpop.f32.mrf.mxu1  ;;  %8489 = vmatprep.subr.bf16.mxu1 %v14143_v60  ;;  %8262 = vmatprep.mubr.bf16.mxu0 %v16086_v45  ;;  %v14152_v45 = vld [vmem:[#allocation7 + $0x54] ss:$124 sps:$4 sm:$0xff]  }
 0x31e   : > { %v10477_v28 = vsel %vm10099_vm4, %v10475_v20, %v10476_v0  ;;  %v10479_v54 = vsel %vm10099_vm4, %v10476_v0, %v10478_v37  ;;  %v7792_v58 = vadd.f32 %v7791_v23, %v7698_v44  ;;  %8355 = vmatprep.mubr.bf16.mxu1 %v16090_v47  ;;  %v7700_v48 = vpop.f32.mrf.mxu0  ;;  %v14155_v47 = vld [vmem:[#allocation7 + $0xfd4] ss:$124 sps:$4 sm:$0xff]   ;;  %v14158_v0 = vld [vmem:[#allocation7 + $0xedc] ss:$124 sps:$4 sm:$0xff]  }
 0x31f   : > { %v16187_v2 = vadd.f32 %v10477_v28, %v10449_v6  ;;  %v10429_v51 = vrot.slane %v7790_v15, 4  ;;  %v7793_v33 = vpop.f32.mrf.mxu1  ;;  %v16189_v8 = vadd.f32 %v10479_v54, %v10450_v32  ;;  %8397 = vmatpush1.bf16.msra.mxu0 %v14138_v59  ;;  %v14156_v56 = vld [vmem:[#allocation7 + $0xed8] ss:$124 sps:$4 sm:$0xff]  }
 0x320   : > { %v10480_v14 = vrot.slane %v7792_v58, 5  ;;  %v7794_v57 = vadd.f32 %v7793_v33, %v7700_v48  ;;  %8490 = vmatpush1.bf16.msra.mxu1 %v14141_v18  ;;  %v7702_v17 = vpop.f32.mrf.mxu0  ;;  %8398 = vmatprep.subr.bf16.mxu0 %v14146_v43  ;;  %v14162_v58 = vld [vmem:[#allocation7 + $0xde0] ss:$124 sps:$4 sm:$0xff]  }
 0x321   : > { %v10430_v3 = vsel %vm10047_vm3, %v10427_v49, %v10429_v51  ;;  %v7795_v50 = vpop.f32.mrf.mxu1  ;;  %8491 = vmatprep.subr.bf16.mxu1 %v14149_v38 }
 0x322   : > { %v10451_v34 = vadd.f32 %v10430_v3, %v16108_v9  ;;  %v10481_v19 = vsel %vm10099_vm4, %v10478_v37, %v10480_v14  ;;  %v10431_v36 = vrot.slane %v7794_v57, 4  ;;  %v7796_v24 = vadd.f32 %v7795_v50, %v7702_v17  ;;  %v7706_v5 = vpop.f32.mrf.mxu0  ;;  %8263 = vmatmul.mubr.bf16.gmra.mxu0 %v16101_v31  ;;  %v14153_v9 = vld [vmem:[#allocation7 + $0xfd0] ss:$124 sps:$4 sm:$0xff]   ;;  %v14161_v31 = vld [vmem:[#allocation7 + $0x1e5c] ss:$124 sps:$4 sm:$0xff]  }
 0x323   : > { %v7799_v41 = vpop.f32.mrf.mxu1  ;;  %8356 = vmatmul.mubr.bf16.gmra.mxu1 %v16105_v46  ;;  %8399 = vmatpush1.bf16.msra.mxu0 %v14144_v13  ;;  %v14159_v37 = vld [vmem:[#allocation7 + $0x1e58] ss:$124 sps:$4 sm:$0xff]   ;;  %v14170_v57 = vld [vmem:[#allocation7 + $0xcec] ss:$124 sps:$4 sm:$0xff]  }
 0x324   : > { %v16196_v62 = vadd.f32 %v10481_v19, %v10451_v34  ;;  %v10432_v16 = vsel %vm10047_vm3, %v10429_v51, %v10431_v36  ;;  %v10482_v42 = vrot.slane %v7796_v24, 5  ;;  %v7800_v27 = vadd.f32 %v7799_v41, %v7706_v5  ;;  %8492 = vmatpush1.bf16.msra.mxu1 %v14147_v35  ;;  %v7708_v60 = vpop.f32.mrf.mxu0  ;;  %8400 = vmatprep.subr.bf16.mxu0 %v14152_v45  ;;  %v14165_v51 = vld [vmem:[#allocation7 + $0x1d60] ss:$124 sps:$4 sm:$0xff]   ;;  %v14173_v13 = vld [vmem:[#allocation7 + $0x1c6c] ss:$124 sps:$4 sm:$0xff]  }
 0x325   : > { %v10452_v12 = vadd.f32 %v10432_v16, %v16121_v40  ;;  %v7801_v7 = vpop.f32.mrf.mxu1  ;;  %8493 = vmatprep.subr.bf16.mxu1 %v14155_v47  ;;  %8272 = vmatprep.mubr.bf16.mxu0 %v16114_v25  ;;  %v14164_v25 = vld [vmem:[#allocation7 + $0xde4] ss:$124 sps:$4 sm:$0xff]   ;;  %v14179_v5 = vld [vmem:[#allocation7 + $0x1b74] ss:$124 sps:$4 sm:$0xff]  }
 0x326   : > { %v10483_v46 = vsel %vm10099_vm4, %v10480_v14, %v10482_v42  ;;  %v10433_v49 = vrot.slane %v7800_v27, 4  ;;  %v7802_v61 = vadd.f32 %v7801_v7, %v7708_v60  ;;  %8365 = vmatprep.mubr.bf16.mxu1 %v16118_v1  ;;  %v7710_v30 = vpop.f32.mrf.mxu0  ;;  %v14167_v1 = vld [vmem:[#allocation7 + $0x1d64] ss:$124 sps:$4 sm:$0xff]   ;;  %v14177_v60 = vld [vmem:[#allocation7 + $0x1b70] ss:$124 sps:$4 sm:$0xff]  }
 0x327   : > { %v7803_v26 = vpop.f32.mrf.mxu1  ;;  %v16203_v22 = vadd.f32 %v10483_v46, %v10452_v12  ;;  %8401 = vmatpush1.bf16.msra.mxu0 %v14150_v4  ;;  %v14168_v34 = vld [vmem:[#allocation7 + $0xce8] ss:$124 sps:$4 sm:$0xff]   ;;  %v16233_v27 = vld [vmem:[%s15287_s16 + $0xa0] ss:$16 sps:$4 sm:$0xff]   ;;  %v14182_v7 = vld [vmem:[#allocation7 + $0xafc] ss:$124 sps:$4 sm:$0xff]  }
 0x328   : > { %v10434_v40 = vsel %vm10047_vm3, %v10431_v36, %v10433_v49  ;;  %v10484_v20 = vrot.slane %v7802_v61, 5  ;;  %v7804_v39 = vadd.f32 %v7803_v26, %v7710_v30  ;;  %8494 = vmatpush1.bf16.msra.mxu1 %v14153_v9  ;;  %v7712_v18 = vpop.f32.mrf.mxu0  ;;  %8402 = vmatprep.subr.bf16.mxu0 %v14158_v0  ;;  %v14171_v19 = vld [vmem:[#allocation7 + $0x1c68] ss:$124 sps:$4 sm:$0xff]   ;;  %v14174_v12 = vld [vmem:[#allocation7 + $0xbf0] ss:$124 sps:$4 sm:$0xff]  }
 0x329   : > { %v10453_v59 = vadd.f32 %v10434_v40, %v16126_v53  ;;  %v7805_v6 = vpop.f32.mrf.mxu1  ;;  %8495 = vmatprep.subr.bf16.mxu1 %v14161_v31  ;;  %v14185_v0 = vld [vmem:[#allocation7 + $0x1a7c] ss:$124 sps:$4 sm:$0xff]  }
 0x32a   : > { %v10485_v32 = vsel %vm10099_vm4, %v10482_v42, %v10484_v20  ;;  %v10435_v15 = vrot.slane %v7804_v39, 4  ;;  %v7806_v44 = vadd.f32 %v7805_v6, %v7712_v18  ;;  %v7716_v43 = vpop.f32.mrf.mxu0  ;;  %8273 = vmatmul.mubr.bf16.gmra.mxu0 %v16129_v29  ;;  %v16245_v61 = vld [vmem:[%s15287_s16 + $0xc] ss:$16 sps:$4 sm:$0xff]   ;;  %v14180_v40 = vld [vmem:[#allocation7 + $0xaf8] ss:$124 sps:$4 sm:$0xff]  }
 0x32b   : > { %v16208_v23 = vadd.f32 %v10485_v32, %v10453_v59  ;;  %v7809_v38 = vpop.f32.mrf.mxu1  ;;  %8366 = vmatmul.mubr.bf16.gmra.mxu1 %v16133_v10  ;;  %8403 = vmatpush2.bf16.msra.mxu0 %v14156_v56  ;;  %v14188_v56 = vld [vmem:[#allocation7 + $0xa04] ss:$124 sps:$4 sm:$0xff]  }
 0x32c   : > { %v10436_v53 = vsel %vm10047_vm3, %v10433_v49, %v10435_v15  ;;  %v10486_v28 = vrot.slane %v7806_v44, 5  ;;  %v16213_v54 = vadd.f32 %v7809_v38, %v7716_v43  ;;  %8496 = vmatpush2.bf16.msra.mxu1 %v14159_v37  ;;  %v7718_v33 = vpop.f32.mrf.mxu0  ;;  %8404 = vmatprep.subr.bf16.mxu0 %v14164_v25  ;;  %v16241_v49 = vld [vmem:[%s15287_s16 + $0x4] ss:$16 sps:$4 sm:$0xff]   ;;  %v14189_v44 = vld [vmem:[#allocation7 + $0x1980] ss:$124 sps:$4 sm:$0xff]  }
 0x32d   : > { %v10454_v48 = vadd.f32 %v10436_v53, %v16152_v21  ;;  %v7811_v14 = vpop.f32.mrf.mxu1  ;;  %8497 = vmatprep.subr.bf16.mxu1 %v14167_v1  ;;  %8282 = vmatprep.mubr.bf16.mxu0 %v16145_v55  ;;  %v14191_v37 = vld [vmem:[#allocation7 + $0x1984] ss:$124 sps:$4 sm:$0xff]   ;;  %v14194_v38 = vld [vmem:[#allocation7 + $0x90c] ss:$124 sps:$4 sm:$0xff]  }
 0x32e   : > { %v10487_v29 = vsel %vm10099_vm4, %v10484_v20, %v10486_v28  ;;  %v10437_v10 = vrot.slane %v16213_v54, 4  ;;  %v16218_v35 = vadd.f32 %v7811_v14, %v7718_v33  ;;  %8375 = vmatprep.mubr.bf16.mxu1 %v16149_v52  ;;  %v7720_v3 = vpop.f32.mrf.mxu0  ;;  %v14176_v52 = vld [vmem:[#allocation7 + $0xbf4] ss:$124 sps:$4 sm:$0xff]   ;;  %v14197_v53 = vld [vmem:[#allocation7 + $0x188c] ss:$124 sps:$4 sm:$0xff]  }
 0x32f   : > { %v7813_v17 = vpop.f32.mrf.mxu1  ;;  %v16222_v50 = vadd.f32 %v10487_v29, %v10454_v48  ;;  %8405 = vmatpush2.bf16.msra.mxu0 %v14162_v58  ;;  %v14183_v20 = vld [vmem:[#allocation7 + $0x1a78] ss:$124 sps:$4 sm:$0xff]   ;;  %v14192_v58 = vld [vmem:[#allocation7 + $0x908] ss:$124 sps:$4 sm:$0xff]   ;;  %v14201_v14 = vld [vmem:[#allocation7 + $0x1790] ss:$124 sps:$4 sm:$0xff]  }
 0x330   : > { %v10438_v21 = vsel %vm10047_vm3, %v10435_v15, %v10437_v10  ;;  %v10488_v45 = vrot.slane %v16218_v35, 5  ;;  %v7814_v47 = vadd.f32 %v7813_v17, %v7720_v3  ;;  %8498 = vmatpush2.bf16.msra.mxu1 %v14165_v51  ;;  %v7722_v55 = vpop.f32.mrf.mxu0  ;;  %8406 = vmatprep.subr.bf16.mxu0 %v14170_v57  ;;  %v14186_v15 = vld [vmem:[#allocation7 + $0xa00] ss:$124 sps:$4 sm:$0xff]   ;;  %v14195_v51 = vld [vmem:[#allocation7 + $0x1888] ss:$124 sps:$4 sm:$0xff]  }
 0x331   : > { %v10455_v36 = vadd.f32 %v10438_v21, %v16158_v11  ;;  %v7815_v24 = vpop.f32.mrf.mxu1  ;;  %8499 = vmatprep.subr.bf16.mxu1 %v14173_v13  ;;  %v16237_v11 = vld [vmem:[%s15287_s16 + $0xa8] ss:$16 sps:$4 sm:$0xff]   ;;  %v14200_v48 = vld [vmem:[#allocation7 + $0x814] ss:$124 sps:$4 sm:$0xff]   ;;  %v14206_v57 = vld [vmem:[#allocation7 + $0x724] ss:$124 sps:$4 sm:$0xff]  }
 0x332   : > { %v10489_v41 = vsel %vm10099_vm4, %v10486_v28, %v10488_v45  ;;  %9769 = vst [vmem:[#allocation2 + $0xb50] sm:$0xff] %v7814_v47  ;;  %v7816_v16 = vadd.f32 %v7815_v24, %v7722_v55  ;;  %8283 = vmatmul.mubr.bf16.gmra.mxu0 %v16233_v27  ;;  %v7726_v4 = vpop.f32.mrf.mxu0  ;;  %v14203_v33 = vld [vmem:[#allocation7 + $0x1794] ss:$124 sps:$4 sm:$0xff]   ;;  %v14209_v13 = vld [vmem:[#allocation7 + $0x16a4] ss:$124 sps:$4 sm:$0xff]  }
 0x333   : > { %v16230_v42 = vadd.f32 %v10489_v41, %v10455_v36  ;;  %8376 = vmatmul.mubr.bf16.gmra.mxu1 %v16237_v11  ;;  %v7819_v9 = vpop.f32.mrf.mxu1  ;;  %8407 = vmatpush2.bf16.msra.mxu0 %v14168_v34  ;;  %v14204_v29 = vld [vmem:[#allocation7 + $0x720] ss:$124 sps:$4 sm:$0xff]   ;;  %v14212_v35 = vld [vmem:[#allocation7 + $0x62c] ss:$124 sps:$4 sm:$0xff]   ;;  %v14218_v24 = vld [vmem:[#allocation7 + $0x534] ss:$124 sps:$4 sm:$0xff]  }
 0x334   : > { %9770 = vst [vmem:[#allocation2 + $0x948] sm:$0xff] %v7816_v16  ;;  %8500 = vmatpush2.bf16.msra.mxu1 %v14171_v19  ;;  %8408 = vmatprep.subr.bf16.mxu0 %v14176_v52  ;;  %v7728_v31 = vpop.f32.mrf.mxu0  ;;  %v14215_v3 = vld [vmem:[#allocation7 + $0x15ac] ss:$124 sps:$4 sm:$0xff]   ;;  %v14221_v52 = vld [vmem:[#allocation7 + $0x14b4] ss:$124 sps:$4 sm:$0xff]  }
 0x335   : > { %8501 = vmatprep.subr.bf16.mxu1 %v14179_v5  ;;  %v7821_v46 = vpop.f32.mrf.mxu1  ;;  %8418 = vmatprep.mubr.bf16.mxu0 %v16241_v49  ;;  %v16260_v47 = vld [vmem:[%s15287_s16 + $0x8] ss:$16 sps:$4 sm:$0xff]   ;;  %v16264_v5 = vld [vmem:[%s15287_s16 + $0x24] ss:$16 sps:$4 sm:$0xff]   ;;  %v16268_v41 = vld [vmem:[%s15287_s16 + $0x2c] ss:$16 sps:$4 sm:$0xff]  }
 0x336   : > { %8511 = vmatprep.mubr.bf16.mxu1 %v16245_v61  ;;  %v7730_v30 = vpop.f32.mrf.mxu0  ;;  %v14210_v34 = vld [vmem:[#allocation7 + $0x628] ss:$124 sps:$4 sm:$0xff]   ;;  %v14224_v31 = vld [vmem:[#allocation7 + $0x43c] ss:$124 sps:$4 sm:$0xff]  }
 0x337   : > { %v7823_v26 = vpop.f32.mrf.mxu1  ;;  %8409 = vmatpush2.bf16.msra.mxu0 %v14174_v12  ;;  %v14213_v19 = vld [vmem:[#allocation7 + $0x15a8] ss:$124 sps:$4 sm:$0xff]   ;;  %v14216_v12 = vld [vmem:[#allocation7 + $0x530] ss:$124 sps:$4 sm:$0xff]   ;;  %v14227_v46 = vld [vmem:[#allocation7 + $0x13bc] ss:$124 sps:$4 sm:$0xff]  }
 0x338   : > { %8502 = vmatpush2.bf16.msra.mxu1 %v14177_v60  ;;  %8410 = vmatprep.subr.bf16.mxu0 %v14182_v7  ;;  %v7732_v59 = vpop.f32.mrf.mxu0  ;;  %v14219_v60 = vld [vmem:[#allocation7 + $0x14b0] ss:$124 sps:$4 sm:$0xff]  }
 0x339   : > { %v10414_v39 = vld [vmem:[#allocation2 + $0xb50] sm:$0xf]  ;;  %8503 = vmatprep.subr.bf16.mxu1 %v14185_v0  ;;  %v7825_v18 = vpop.f32.mrf.mxu1  ;;  %v14225_v59 = vld [vmem:[#allocation7 + $0x13b8] ss:$124 sps:$4 sm:$0xff]  }
 0x33a   : > { %v10439_v6 = vrot.slane %v10414_v39, 4  ;;  %v16276_v39 = vld [vmem:[%s15287_s16 + $0x28] ss:$16 sps:$4 sm:$0xff]  }
 0x33b   : > { %v10465_v25 = vld [vmem:[#allocation2 + $0x948] sm:$0x1f]  ;;  %8411 = vmatpush2.bf16.msra.mxu0 %v14180_v40 }
 0x33c   : > { %v10440_v1 = vsel %vm10047_vm3, %v10437_v10, %v10439_v6  ;;  %v10490_v32 = vrot.slane %v10465_v25, 5  ;;  %8504 = vmatpush2.bf16.msra.mxu1 %v14183_v20  ;;  %8412 = vmatprep.subr.bf16.mxu0 %v14188_v56  ;;  %v14207_v10 = vld [vmem:[#allocation7 + $0x16a0] ss:$124 sps:$4 sm:$0xff]  }
 0x33d   : > { %v10456_v43 = vadd.f32 %v10440_v1, %v16167_v63  ;;  %8505 = vmatprep.subr.bf16.mxu1 %v14191_v37  ;;  %v14198_v63 = vld [vmem:[#allocation7 + $0x810] ss:$124 sps:$4 sm:$0xff]   ;;  %v14222_v37 = vld [vmem:[#allocation7 + $0x438] ss:$124 sps:$4 sm:$0xff]   ;;  %v14230_v25 = vld [vmem:[#allocation7 + $0x344] ss:$124 sps:$4 sm:$0xff]  }
 0x33e   : > { %v10491_v28 = vsel %vm10099_vm4, %v10488_v45, %v10490_v32  ;;  %v16256_v45 = vld [vmem:[%s15287_s16] ss:$16 sps:$4 sm:$0xff]  }
 0x33f   : > { %v16253_v54 = vadd.f32 %v10491_v28, %v10456_v43  ;;  %8413 = vmatpush2.bf16.msra.mxu0 %v14186_v15  ;;  %v16272_v20 = vld [vmem:[%s15287_s16 + $0x20] ss:$16 sps:$4 sm:$0xff]   ;;  %v16280_v15 = vld [vmem:[%s15287_s16 + $0x44] ss:$16 sps:$4 sm:$0xff]  }
 0x340   : > { %8506 = vmatpush2.bf16.msra.mxu1 %v14189_v44  ;;  %8414 = vmatprep.subr.bf16.mxu0 %v14194_v38  ;;  %v14233_v1 = vld [vmem:[#allocation7 + $0x12c4] ss:$124 sps:$4 sm:$0xff]   ;;  %v16284_v44 = vld [vmem:[%s15287_s16 + $0x4c] ss:$16 sps:$4 sm:$0xff]  }
 0x341   : > { %8507 = vmatprep.subr.bf16.mxu1 %v14197_v53 }
 0x343   : > { %8415 = vmatpush2.bf16.msra.mxu0 %v14192_v58  ;;  %v14228_v58 = vld [vmem:[#allocation7 + $0x340] ss:$124 sps:$4 sm:$0xff]  }
 0x344   : > { %8508 = vmatpush2.bf16.msra.mxu1 %v14195_v51  ;;  %8416 = vmatprep.subr.bf16.mxu0 %v14200_v48  ;;  %v14231_v51 = vld [vmem:[#allocation7 + $0x12c0] ss:$124 sps:$4 sm:$0xff]  }
 0x345   : > { %8509 = vmatprep.subr.bf16.mxu1 %v14203_v33 }
 0x347   : > { %8417 = vmatpush2.bf16.msra.mxu0 %v14198_v63 }
 0x348   : > { %8510 = vmatpush2.bf16.msra.mxu1 %v14201_v14  ;;  %8572 = vmatprep.subr.bf16.mxu0 %v14206_v57  ;;  %v14236_v14 = vld [vmem:[#allocation7 + $0x24c] ss:$124 sps:$4 sm:$0xff]  }
 0x349   : > { %8665 = vmatprep.subr.bf16.mxu1 %v14209_v13  ;;  %v14239_v57 = vld [vmem:[#allocation7 + $0x11cc] ss:$124 sps:$4 sm:$0xff]  }
 0x34a   : > { %v7862_v17 = vpop.f32.mrf.mxu0  ;;  %8419 = vmatmul.mubr.bf16.vlgmr.msra.gmra.mxu0 %v16256_v45 }
 0x34b   : > { %v7955_v21 = vpop.f32.mrf.mxu1  ;;  %8512 = vmatmul.mubr.bf16.vlgmr.msra.gmra.mxu1 %v16260_v47  ;;  %8573 = vmatpush1.bf16.msra.mxu0 %v14204_v29 }
 0x34c   : > { %8666 = vmatpush1.bf16.msra.mxu1 %v14207_v10  ;;  %v7864_v36 = vpop.f32.mrf.mxu0  ;;  %8574 = vmatprep.subr.bf16.mxu0 %v14212_v35 }
 0x34d   : > { %v7957_v55 = vpop.f32.mrf.mxu1  ;;  %8667 = vmatprep.subr.bf16.mxu1 %v14215_v3  ;;  %8428 = vmatprep.mubr.bf16.mxu0 %v16264_v5 }
 0x34e   : > { %8521 = vmatprep.mubr.bf16.mxu1 %v16268_v41  ;;  %v7866_v16 = vpop.f32.mrf.mxu0 }
 0x34f   : > { %v7959_v4 = vpop.f32.mrf.mxu1  ;;  %8575 = vmatpush1.bf16.msra.mxu0 %v14210_v34  ;;  %v16288_v34 = vld [vmem:[%s15287_s16 + $0x40] ss:$16 sps:$4 sm:$0xff]  }
 0x350   : > { %v7960_v9 = vadd.f32 %v7959_v4, %v7866_v16  ;;  %8668 = vmatpush1.bf16.msra.mxu1 %v14213_v19  ;;  %v7868_v7 = vpop.f32.mrf.mxu0  ;;  %8576 = vmatprep.subr.bf16.mxu0 %v14218_v24  ;;  %v16292_v19 = vld [vmem:[%s15287_s16 + $0x48] ss:$16 sps:$4 sm:$0xff]  }
 0x351   : > { %v7961_v0 = vpop.f32.mrf.mxu1  ;;  %8669 = vmatprep.subr.bf16.mxu1 %v14221_v52  ;;  %v14234_v16 = vld [vmem:[#allocation7 + $0x248] ss:$124 sps:$4 sm:$0xff]  }
 0x352   : > { %9523 = vst [vmem:[#allocation2 + $0x950] sm:$0xff] %v7960_v9  ;;  %v7962_v30 = vadd.f32 %v7961_v0, %v7868_v7  ;;  %v7872_v26 = vpop.f32.mrf.mxu0  ;;  %8429 = vmatmul.mubr.bf16.gmra.mxu0 %v16272_v20  ;;  %v14237_v4 = vld [vmem:[#allocation7 + $0x11c8] ss:$124 sps:$4 sm:$0xff]   ;;  %v14242_v7 = vld [vmem:[#allocation7 + $0x154] ss:$124 sps:$4 sm:$0xff]  }
 0x353   : > { %v7965_v40 = vpop.f32.mrf.mxu1  ;;  %8522 = vmatmul.mubr.bf16.gmra.mxu1 %v16276_v39  ;;  %8577 = vmatpush1.bf16.msra.mxu0 %v14216_v12  ;;  %v14245_v0 = vld [vmem:[#allocation7 + $0x10d4] ss:$124 sps:$4 sm:$0xff]  }
 0x354   : > { %9524 = vst [vmem:[#allocation2 + $0x778] sm:$0xff] %v7962_v30  ;;  %v7966_v56 = vadd.f32 %v7965_v40, %v7872_v26  ;;  %8670 = vmatpush1.bf16.msra.mxu1 %v14219_v60  ;;  %v7874_v18 = vpop.f32.mrf.mxu0  ;;  %8578 = vmatprep.subr.bf16.mxu0 %v14224_v31  ;;  %v16300_v26 = vld [vmem:[%s15287_s16 + $0x64] ss:$16 sps:$4 sm:$0xff]   ;;  %v16304_v40 = vld [vmem:[%s15287_s16 + $0x6c] ss:$16 sps:$4 sm:$0xff]  }
 0x355   : > { %v7967_v6 = vpop.f32.mrf.mxu1  ;;  %8671 = vmatprep.subr.bf16.mxu1 %v14227_v46  ;;  %8438 = vmatprep.mubr.bf16.mxu0 %v16280_v15 }
 0x356   : > { %v7968_v32 = vadd.f32 %v7967_v6, %v7874_v18  ;;  %8531 = vmatprep.mubr.bf16.mxu1 %v16284_v44  ;;  %v7876_v43 = vpop.f32.mrf.mxu0  ;;  %v10527_v53 = vrot.slane %v7966_v56, 6 }
 0x357   : > { %v7969_v38 = vpop.f32.mrf.mxu1  ;;  %8579 = vmatpush1.bf16.msra.mxu0 %v14222_v37 }
 0x358   : > { %v7970_v28 = vadd.f32 %v7969_v38, %v7876_v43  ;;  %8672 = vmatpush1.bf16.msra.mxu1 %v14225_v59  ;;  %v7878_v33 = vpop.f32.mrf.mxu0  ;;  %8580 = vmatprep.subr.bf16.mxu0 %v14230_v25  ;;  %v10578_v29 = vrot.slane %v7968_v32, 7  ;;  %v14240_v32 = vld [vmem:[#allocation7 + $0x150] ss:$124 sps:$4 sm:$0xff]  }
 0x359   : > { %v10508_v48 = vld [vmem:[#allocation2 + $0x950] sm:$0xc0]  ;;  %v7971_v63 = vpop.f32.mrf.mxu1  ;;  %8673 = vmatprep.subr.bf16.mxu1 %v14233_v1  ;;  %v14243_v43 = vld [vmem:[#allocation7 + $0x10d0] ss:$124 sps:$4 sm:$0xff]  }
 0x35a   : > { %v10526_v13 = vrot.slane %v10508_v48, 6  ;;  %v10529_v10 = vrot.slane %v7970_v28, 6  ;;  %v7972_v35 = vadd.f32 %v7971_v63, %v7878_v33  ;;  %v7882_v17 = vpop.f32.mrf.mxu0  ;;  %8439 = vmatmul.mubr.bf16.gmra.mxu0 %v16288_v34 }
 0x35b   : > { %v10559_v3 = vld [vmem:[#allocation2 + $0x778] sm:$0x80]  ;;  %v7975_v21 = vpop.f32.mrf.mxu1  ;;  %8532 = vmatmul.mubr.bf16.gmra.mxu1 %v16292_v19  ;;  %8581 = vmatpush1.bf16.msra.mxu0 %v14228_v58 }
 0x35c   : > { %v10577_v36 = vrot.slane %v10559_v3, 7  ;;  %v10528_v55 = vsel %vm10151_vm5, %v10526_v13, %v10527_v53  ;;  %v10530_v24 = vsel %vm10151_vm5, %v10527_v53, %v10529_v10  ;;  %v10580_v52 = vrot.slane %v7972_v35, 7  ;;  %8674 = vmatpush1.bf16.msra.mxu1 %v14231_v51  ;;  %v7884_v12 = vpop.f32.mrf.mxu0  ;;  %8582 = vmatprep.subr.bf16.mxu0 %v14236_v14  ;;  %v14248_v58 = vld [vmem:[#allocation7 + $0x5c] ss:$124 sps:$4 sm:$0xff]  }
 0x35d   : > { %v7976_v9 = vadd.f32 %v7975_v21, %v7882_v17  ;;  %v7977_v60 = vpop.f32.mrf.mxu1  ;;  %8675 = vmatprep.subr.bf16.mxu1 %v14239_v57  ;;  %v10551_v31 = vadd.f32 %v10528_v55, %v16187_v2  ;;  %v10552_v46 = vadd.f32 %v10530_v24, %v16189_v8  ;;  %8448 = vmatprep.mubr.bf16.mxu0 %v16300_v26  ;;  %v14251_v51 = vld [vmem:[#allocation7 + $0xfdc] ss:$124 sps:$4 sm:$0xff]  }
 0x35e   : > { %v7978_v30 = vadd.f32 %v7977_v60, %v7884_v12  ;;  %8541 = vmatprep.mubr.bf16.mxu1 %v16304_v40  ;;  %v10579_v56 = vsel %vm10203_vm6, %v10577_v36, %v10578_v29  ;;  %v10581_v37 = vsel %vm10203_vm6, %v10578_v29, %v10580_v52  ;;  %v7886_v18 = vpop.f32.mrf.mxu0  ;;  %v16317_v29 = vld [vmem:[%s15287_s16 + $0x60] ss:$16 sps:$4 sm:$0xff]   ;;  %v16321_v35 = vld [vmem:[%s15287_s16 + $0x68] ss:$16 sps:$4 sm:$0xff]   ;;  %v16329_v60 = vld [vmem:[%s15287_s16 + $0x84] ss:$16 sps:$4 sm:$0xff]  }
 0x35f   : > { %v10531_v59 = vrot.slane %v7976_v9, 6  ;;  %v7979_v6 = vpop.f32.mrf.mxu1  ;;  %v16309_v25 = vadd.f32 %v10579_v56, %v10551_v31  ;;  %v16311_v2 = vadd.f32 %v10581_v37, %v10552_v46  ;;  %8583 = vmatpush1.bf16.msra.mxu0 %v14234_v16  ;;  %v14249_v21 = vld [vmem:[#allocation7 + $0xfd8] ss:$124 sps:$4 sm:$0xff]   ;;  %v14257_v16 = vld [vmem:[#allocation7 + $0x1e64] ss:$124 sps:$4 sm:$0xff]  }
 0x360   : > { %v10582_v8 = vrot.slane %v7978_v30, 7  ;;  %v7980_v1 = vadd.f32 %v7979_v6, %v7886_v18  ;;  %8676 = vmatpush1.bf16.msra.mxu1 %v14237_v4  ;;  %v7888_v53 = vpop.f32.mrf.mxu0  ;;  %8584 = vmatprep.subr.bf16.mxu0 %v14242_v7  ;;  %v16333_v7 = vld [vmem:[%s15287_s16 + $0x8c] ss:$16 sps:$4 sm:$0xff]  }
 0x361   : > { %v10532_v38 = vsel %vm10151_vm5, %v10529_v10, %v10531_v59  ;;  %v7981_v28 = vpop.f32.mrf.mxu1  ;;  %8677 = vmatprep.subr.bf16.mxu1 %v14245_v0  ;;  %v14255_v18 = vld [vmem:[#allocation7 + $0x1e60] ss:$124 sps:$4 sm:$0xff]  }
 0x362   : > { %v10533_v48 = vrot.slane %v7980_v1, 6  ;;  %v7982_v33 = vadd.f32 %v7981_v28, %v7888_v53  ;;  %v10553_v63 = vadd.f32 %v10532_v38, %v16196_v62  ;;  %v10583_v14 = vsel %vm10203_vm6, %v10580_v52, %v10582_v8  ;;  %v7892_v57 = vpop.f32.mrf.mxu0  ;;  %8449 = vmatmul.mubr.bf16.gmra.mxu0 %v16317_v29  ;;  %v14246_v62 = vld [vmem:[#allocation7 + $0x58] ss:$124 sps:$4 sm:$0xff]   ;;  %v14254_v52 = vld [vmem:[#allocation7 + $0xee4] ss:$124 sps:$4 sm:$0xff]  }
 0x363   : > { %v7985_v13 = vpop.f32.mrf.mxu1  ;;  %8542 = vmatmul.mubr.bf16.gmra.mxu1 %v16321_v35  ;;  %8585 = vmatpush1.bf16.msra.mxu0 %v14240_v32  ;;  %v14260_v32 = vld [vmem:[#allocation7 + $0xdec] ss:$124 sps:$4 sm:$0xff]  }
 0x364   : > { %v10534_v10 = vsel %vm10151_vm5, %v10531_v59, %v10533_v48  ;;  %v10584_v3 = vrot.slane %v7982_v33, 7  ;;  %v7986_v17 = vadd.f32 %v7985_v13, %v7892_v57  ;;  %8678 = vmatpush1.bf16.msra.mxu1 %v14243_v43  ;;  %v16325_v36 = vadd.f32 %v10583_v14, %v10553_v63  ;;  %v7894_v55 = vpop.f32.mrf.mxu0  ;;  %8586 = vmatprep.subr.bf16.mxu0 %v14248_v58  ;;  %v14252_v59 = vld [vmem:[#allocation7 + $0xee0] ss:$124 sps:$4 sm:$0xff]   ;;  %v16347_v33 = vld [vmem:[%s15287_s16 + $0x88] ss:$16 sps:$4 sm:$0xff]  }
 0x365   : > { %v7987_v24 = vpop.f32.mrf.mxu1  ;;  %8679 = vmatprep.subr.bf16.mxu1 %v14251_v51  ;;  %v10554_v4 = vadd.f32 %v10534_v10, %v16203_v22  ;;  %8458 = vmatprep.mubr.bf16.mxu0 %v16329_v60  ;;  %v14258_v13 = vld [vmem:[#allocation7 + $0xde8] ss:$124 sps:$4 sm:$0xff]  }
 0x366   : > { %v10535_v9 = vrot.slane %v7986_v17, 6  ;;  %v7988_v12 = vadd.f32 %v7987_v24, %v7894_v55  ;;  %8551 = vmatprep.mubr.bf16.mxu1 %v16333_v7  ;;  %v10585_v0 = vsel %vm10203_vm6, %v10582_v8, %v10584_v3  ;;  %v7896_v31 = vpop.f32.mrf.mxu0  ;;  %v14263_v8 = vld [vmem:[#allocation7 + $0x1d6c] ss:$124 sps:$4 sm:$0xff]  }
 0x367   : > { %v7989_v46 = vpop.f32.mrf.mxu1  ;;  %v16337_v30 = vadd.f32 %v10585_v0, %v10554_v4  ;;  %8587 = vmatpush1.bf16.msra.mxu0 %v14246_v62  ;;  %v14261_v10 = vld [vmem:[#allocation7 + $0x1d68] ss:$124 sps:$4 sm:$0xff]   ;;  %v14266_v62 = vld [vmem:[#allocation7 + $0xcf4] ss:$124 sps:$4 sm:$0xff]   ;;  %v16364_v4 = vld [vmem:[%s15287_s16 + $0xac] ss:$16 sps:$4 sm:$0xff]  }
 0x368   : > { %v10536_v56 = vsel %vm10151_vm5, %v10533_v48, %v10535_v9  ;;  %v10586_v37 = vrot.slane %v7988_v12, 7  ;;  %v7990_v22 = vadd.f32 %v7989_v46, %v7896_v31  ;;  %8680 = vmatpush1.bf16.msra.mxu1 %v14249_v21  ;;  %v7898_v6 = vpop.f32.mrf.mxu0  ;;  %8588 = vmatprep.subr.bf16.mxu0 %v14254_v52  ;;  %v16343_v48 = vld [vmem:[%s15287_s16 + $0x80] ss:$16 sps:$4 sm:$0xff]  }
 0x369   : > { %v7991_v1 = vpop.f32.mrf.mxu1  ;;  %8681 = vmatprep.subr.bf16.mxu1 %v14257_v16  ;;  %v10555_v43 = vadd.f32 %v10536_v56, %v16208_v23  ;;  %v14269_v21 = vld [vmem:[#allocation7 + $0x1c74] ss:$124 sps:$4 sm:$0xff]  }
 0x36a   : > { %v10537_v38 = vrot.slane %v7990_v22, 6  ;;  %v7992_v53 = vadd.f32 %v7991_v1, %v7898_v6  ;;  %v10587_v28 = vsel %vm10203_vm6, %v10584_v3, %v10586_v37  ;;  %v7902_v58 = vpop.f32.mrf.mxu0  ;;  %8459 = vmatmul.mubr.bf16.gmra.mxu0 %v16343_v48  ;;  %v16360_v16 = vld [vmem:[%s15287_s16 + $0xa4] ss:$16 sps:$4 sm:$0xff]   ;;  %v14264_v22 = vld [vmem:[#allocation7 + $0xcf0] ss:$124 sps:$4 sm:$0xff]  }
 0x36b   : > { %v7995_v51 = vpop.f32.mrf.mxu1  ;;  %8552 = vmatmul.mubr.bf16.gmra.mxu1 %v16347_v33  ;;  %v16350_v63 = vadd.f32 %v10587_v28, %v10555_v43  ;;  %8589 = vmatpush2.bf16.msra.mxu0 %v14252_v59  ;;  %v14267_v59 = vld [vmem:[#allocation7 + $0x1c70] ss:$124 sps:$4 sm:$0xff]   ;;  %v14272_v1 = vld [vmem:[#allocation7 + $0xbfc] ss:$124 sps:$4 sm:$0xff]  }
 0x36c   : > { %v10538_v14 = vsel %vm10151_vm5, %v10535_v9, %v10537_v38  ;;  %v10588_v23 = vrot.slane %v7992_v53, 7  ;;  %v16353_v57 = vadd.f32 %v7995_v51, %v7902_v58  ;;  %8682 = vmatpush2.bf16.msra.mxu1 %v14255_v18  ;;  %v7904_v3 = vpop.f32.mrf.mxu0  ;;  %8590 = vmatprep.subr.bf16.mxu0 %v14260_v32  ;;  %v14275_v32 = vld [vmem:[#allocation7 + $0x1b7c] ss:$124 sps:$4 sm:$0xff]  }
 0x36d   : > { %v7997_v17 = vpop.f32.mrf.mxu1  ;;  %8683 = vmatprep.subr.bf16.mxu1 %v14263_v8  ;;  %v10556_v55 = vadd.f32 %v10538_v14, %v16222_v50  ;;  %8468 = vmatprep.mubr.bf16.mxu0 %v16360_v16  ;;  %v14270_v58 = vld [vmem:[#allocation7 + $0xbf8] ss:$124 sps:$4 sm:$0xff]   ;;  %v14281_v14 = vld [vmem:[#allocation7 + $0x1a84] ss:$124 sps:$4 sm:$0xff]  }
 0x36e   : > { %v10539_v24 = vrot.slane %v16353_v57, 6  ;;  %v16357_v52 = vadd.f32 %v7997_v17, %v7904_v3  ;;  %8561 = vmatprep.mubr.bf16.mxu1 %v16364_v4  ;;  %v10589_v9 = vsel %vm10203_vm6, %v10586_v37, %v10588_v23  ;;  %v7906_v12 = vpop.f32.mrf.mxu0  ;;  %v14273_v51 = vld [vmem:[#allocation7 + $0x1b78] ss:$124 sps:$4 sm:$0xff]   ;;  %v14284_v17 = vld [vmem:[#allocation7 + $0xa0c] ss:$124 sps:$4 sm:$0xff]  }
 0x36f   : > { %v7999_v0 = vpop.f32.mrf.mxu1  ;;  %v16368_v31 = vadd.f32 %v10589_v9, %v10556_v55  ;;  %8591 = vmatpush2.bf16.msra.mxu0 %v14258_v13 }
 0x370   : > { %v10540_v50 = vsel %vm10151_vm5, %v10537_v38, %v10539_v24  ;;  %v10590_v46 = vrot.slane %v16357_v52, 7  ;;  %v8000_v56 = vadd.f32 %v7999_v0, %v7906_v12  ;;  %8684 = vmatpush2.bf16.msra.mxu1 %v14261_v10  ;;  %v7908_v18 = vpop.f32.mrf.mxu0  ;;  %8592 = vmatprep.subr.bf16.mxu0 %v14266_v62  ;;  %v14279_v10 = vld [vmem:[#allocation7 + $0x1a80] ss:$124 sps:$4 sm:$0xff]   ;;  %v14287_v62 = vld [vmem:[#allocation7 + $0x198c] ss:$124 sps:$4 sm:$0xff]  }
 0x371   : > { %v8001_v6 = vpop.f32.mrf.mxu1  ;;  %8685 = vmatprep.subr.bf16.mxu1 %v14269_v21  ;;  %v10557_v37 = vadd.f32 %v10540_v50, %v16230_v42  ;;  %v14278_v42 = vld [vmem:[#allocation7 + $0xb04] ss:$124 sps:$4 sm:$0xff]   ;;  %v14290_v50 = vld [vmem:[#allocation7 + $0x914] ss:$124 sps:$4 sm:$0xff]  }
 0x372   : > { %9771 = vst [vmem:[#allocation2 + $0x1e0] sm:$0xff] %v8000_v56  ;;  %v8002_v8 = vadd.f32 %v8001_v6, %v7908_v18  ;;  %v10591_v43 = vsel %vm10203_vm6, %v10588_v23, %v10590_v46  ;;  %8469 = vmatmul.mubr.bf16.gmra.mxu0 %v16233_v27  ;;  %v7912_v38 = vpop.f32.mrf.mxu0  ;;  %v14276_v23 = vld [vmem:[#allocation7 + $0xb00] ss:$124 sps:$4 sm:$0xff]   ;;  %v14285_v0 = vld [vmem:[#allocation7 + $0x1988] ss:$124 sps:$4 sm:$0xff]  }
 0x373   : > { %8562 = vmatmul.mubr.bf16.gmra.mxu1 %v16237_v11  ;;  %v8005_v53 = vpop.f32.mrf.mxu1  ;;  %v16376_v28 = vadd.f32 %v10591_v43, %v10557_v37  ;;  %8593 = vmatpush2.bf16.msra.mxu0 %v14264_v22  ;;  %v14293_v56 = vld [vmem:[#allocation7 + $0x1894] ss:$124 sps:$4 sm:$0xff]   ;;  %v14302_v43 = vld [vmem:[#allocation7 + $0x72c] ss:$124 sps:$4 sm:$0xff]  }
 0x374   : > { %9772 = vst [vmem:[#allocation2 + $0x2e0] sm:$0xff] %v8002_v8  ;;  %8686 = vmatpush2.bf16.msra.mxu1 %v14267_v59  ;;  %8594 = vmatprep.subr.bf16.mxu0 %v14272_v1  ;;  %v7914_v57 = vpop.f32.mrf.mxu0  ;;  %v14288_v6 = vld [vmem:[#allocation7 + $0x910] ss:$124 sps:$4 sm:$0xff]   ;;  %v14294_v37 = vld [vmem:[#allocation7 + $0x818] ss:$124 sps:$4 sm:$0xff]  }
 0x375   : > { %8687 = vmatprep.subr.bf16.mxu1 %v14275_v32  ;;  %v8007_v13 = vpop.f32.mrf.mxu1  ;;  %8604 = vmatprep.mubr.bf16.mxu0 %v16241_v49  ;;  %v14291_v1 = vld [vmem:[#allocation7 + $0x1890] ss:$124 sps:$4 sm:$0xff]   ;;  %v14299_v32 = vld [vmem:[#allocation7 + $0x179c] ss:$124 sps:$4 sm:$0xff]   ;;  %v14303_v38 = vld [vmem:[#allocation7 + $0x16a8] ss:$124 sps:$4 sm:$0xff]  }
 0x376   : > { %8697 = vmatprep.mubr.bf16.mxu1 %v16245_v61  ;;  %v7916_v27 = vpop.f32.mrf.mxu0  ;;  %v14282_v61 = vld [vmem:[#allocation7 + $0xa08] ss:$124 sps:$4 sm:$0xff]   ;;  %v14297_v8 = vld [vmem:[#allocation7 + $0x1798] ss:$124 sps:$4 sm:$0xff]   ;;  %v14309_v57 = vld [vmem:[#allocation7 + $0x15b0] ss:$124 sps:$4 sm:$0xff]  }
 0x377   : > { %v8009_v11 = vpop.f32.mrf.mxu1  ;;  %8595 = vmatpush2.bf16.msra.mxu0 %v14270_v58  ;;  %v14308_v53 = vld [vmem:[#allocation7 + $0x634] ss:$124 sps:$4 sm:$0xff]  }
 0x378   : > { %8688 = vmatpush2.bf16.msra.mxu1 %v14273_v51  ;;  %8596 = vmatprep.subr.bf16.mxu0 %v14278_v42  ;;  %v7918_v21 = vpop.f32.mrf.mxu0  ;;  %v14311_v58 = vld [vmem:[#allocation7 + $0x15b4] ss:$124 sps:$4 sm:$0xff]   ;;  %v14314_v11 = vld [vmem:[#allocation7 + $0x53c] ss:$124 sps:$4 sm:$0xff]  }
 0x379   : > { %v10516_v3 = vld [vmem:[#allocation2 + $0x1e0] sm:$0x3f]  ;;  %8689 = vmatprep.subr.bf16.mxu1 %v14281_v14  ;;  %v8011_v55 = vpop.f32.mrf.mxu1  ;;  %v14306_v14 = vld [vmem:[#allocation7 + $0x630] ss:$124 sps:$4 sm:$0xff]  }
 0x37a   : > { %v10541_v52 = vrot.slane %v10516_v3, 6  ;;  %v14320_v21 = vld [vmem:[#allocation7 + $0x444] ss:$124 sps:$4 sm:$0xff]  }
 0x37b   : > { %v10567_v9 = vld [vmem:[#allocation2 + $0x2e0] sm:$0x7f]  ;;  %8597 = vmatpush2.bf16.msra.mxu0 %v14276_v23 }
 0x37c   : > { %v10542_v12 = vsel %vm10151_vm5, %v10539_v24, %v10541_v52  ;;  %v10592_v49 = vrot.slane %v10567_v9, 7  ;;  %8690 = vmatpush2.bf16.msra.mxu1 %v14279_v10  ;;  %8598 = vmatprep.subr.bf16.mxu0 %v14284_v17  ;;  %v14296_v24 = vld [vmem:[#allocation7 + $0x81c] ss:$124 sps:$4 sm:$0xff]   ;;  %v14323_v55 = vld [vmem:[#allocation7 + $0x13c4] ss:$124 sps:$4 sm:$0xff]  }
 0x37d   : > { %8691 = vmatprep.subr.bf16.mxu1 %v14287_v62  ;;  %v10558_v22 = vadd.f32 %v10542_v12, %v16253_v54  ;;  %v14305_v54 = vld [vmem:[#allocation7 + $0x16ac] ss:$124 sps:$4 sm:$0xff]   ;;  %v14317_v23 = vld [vmem:[#allocation7 + $0x14bc] ss:$124 sps:$4 sm:$0xff]  }
 0x37e   : > { %v10593_v59 = vsel %vm10203_vm6, %v10590_v46, %v10592_v49  ;;  %v14300_v46 = vld [vmem:[#allocation7 + $0x728] ss:$124 sps:$4 sm:$0xff]   ;;  %v14321_v12 = vld [vmem:[#allocation7 + $0x13c0] ss:$124 sps:$4 sm:$0xff]  }
 0x37f   : > { %v16383_v18 = vadd.f32 %v10593_v59, %v10558_v22  ;;  %8599 = vmatpush2.bf16.msra.mxu0 %v14282_v61 }
 0x380   : > { %8692 = vmatpush2.bf16.msra.mxu1 %v14285_v0  ;;  %8600 = vmatprep.subr.bf16.mxu0 %v14290_v50  ;;  %v14326_v0 = vld [vmem:[#allocation7 + $0x34c] ss:$124 sps:$4 sm:$0xff]  }
 0x381   : > { %8693 = vmatprep.subr.bf16.mxu1 %v14293_v56  ;;  %v14329_v50 = vld [vmem:[#allocation7 + $0x12cc] ss:$124 sps:$4 sm:$0xff]  }
 0x383   : > { %8601 = vmatpush2.bf16.msra.mxu0 %v14288_v6  ;;  %v14324_v6 = vld [vmem:[#allocation7 + $0x348] ss:$124 sps:$4 sm:$0xff]  }
 0x384   : > { %8694 = vmatpush2.bf16.msra.mxu1 %v14291_v1  ;;  %8602 = vmatprep.subr.bf16.mxu0 %v14296_v24  ;;  %v14327_v1 = vld [vmem:[#allocation7 + $0x12c8] ss:$124 sps:$4 sm:$0xff]  }
 0x385   : > { %8695 = vmatprep.subr.bf16.mxu1 %v14299_v32 }
 0x387   : > { %8603 = vmatpush2.bf16.msra.mxu0 %v14294_v37  ;;  %v14332_v37 = vld [vmem:[#allocation7 + $0x254] ss:$124 sps:$4 sm:$0xff]  }
 0x388   : > { %8696 = vmatpush2.bf16.msra.mxu1 %v14297_v8  ;;  %8758 = vmatprep.subr.bf16.mxu0 %v14302_v43 }
 0x389   : > { %8851 = vmatprep.subr.bf16.mxu1 %v14305_v54 }
 0x38a   : > { %v8048_v51 = vpop.f32.mrf.mxu0  ;;  %8605 = vmatmul.mubr.bf16.vlgmr.msra.gmra.mxu0 %v16256_v45  ;;  %v14312_v45 = vld [vmem:[#allocation7 + $0x538] ss:$124 sps:$4 sm:$0xff]  }
 0x38b   : > { %v8141_v42 = vpop.f32.mrf.mxu1  ;;  %8698 = vmatmul.mubr.bf16.vlgmr.msra.gmra.mxu1 %v16260_v47  ;;  %8759 = vmatpush1.bf16.msra.mxu0 %v14300_v46  ;;  %v14315_v47 = vld [vmem:[#allocation7 + $0x14b8] ss:$124 sps:$4 sm:$0xff]   ;;  %v14330_v46 = vld [vmem:[#allocation7 + $0x250] ss:$124 sps:$4 sm:$0xff]  }
 0x38c   : > { %8852 = vmatpush1.bf16.msra.mxu1 %v14303_v38  ;;  %v8050_v13 = vpop.f32.mrf.mxu0  ;;  %8760 = vmatprep.subr.bf16.mxu0 %v14308_v53  ;;  %v14333_v38 = vld [vmem:[#allocation7 + $0x11d0] ss:$124 sps:$4 sm:$0xff]   ;;  %v14338_v51 = vld [vmem:[#allocation7 + $0x15c] ss:$124 sps:$4 sm:$0xff]  }
 0x38d   : > { %v8143_v27 = vpop.f32.mrf.mxu1  ;;  %8853 = vmatprep.subr.bf16.mxu1 %v14311_v58  ;;  %8614 = vmatprep.mubr.bf16.mxu0 %v16264_v5  ;;  %v14341_v42 = vld [vmem:[#allocation7 + $0x10dc] ss:$124 sps:$4 sm:$0xff]  }
 0x38e   : > { %8707 = vmatprep.mubr.bf16.mxu1 %v16268_v41  ;;  %v8052_v10 = vpop.f32.mrf.mxu0  ;;  %v14318_v41 = vld [vmem:[#allocation7 + $0x440] ss:$124 sps:$4 sm:$0xff]  }
 0x38f   : > { %v8145_v3 = vpop.f32.mrf.mxu1  ;;  %8761 = vmatpush1.bf16.msra.mxu0 %v14306_v14  ;;  %v14336_v10 = vld [vmem:[#allocation7 + $0x158] ss:$124 sps:$4 sm:$0xff]  }
 0x390   : > { %8854 = vmatpush1.bf16.msra.mxu1 %v14309_v57  ;;  %v8054_v17 = vpop.f32.mrf.mxu0  ;;  %8762 = vmatprep.subr.bf16.mxu0 %v14314_v11  ;;  %v14339_v3 = vld [vmem:[#allocation7 + $0x10d8] ss:$124 sps:$4 sm:$0xff]  }
 0x391   : > { %v8147_v62 = vpop.f32.mrf.mxu1  ;;  %8855 = vmatprep.subr.bf16.mxu1 %v14317_v23  ;;  %v14347_v17 = vld [vmem:[#allocation7 + $0xfe4] ss:$124 sps:$4 sm:$0xff]  }
 0x392   : > { %v8058_v52 = vpop.f32.mrf.mxu0  ;;  %8615 = vmatmul.mubr.bf16.gmra.mxu0 %v16272_v20 }
 0x393   : > { %v8151_v9 = vpop.f32.mrf.mxu1  ;;  %8708 = vmatmul.mubr.bf16.gmra.mxu1 %v16276_v39  ;;  %8763 = vmatpush1.bf16.msra.mxu0 %v14312_v45 }
 0x394   : > { %v8152_v5 = vadd.f32 %v8151_v9, %v8058_v52  ;;  %8856 = vmatpush1.bf16.msra.mxu1 %v14315_v47  ;;  %v8060_v49 = vpop.f32.mrf.mxu0  ;;  %8764 = vmatprep.subr.bf16.mxu0 %v14320_v21 }
 0x395   : > { %v8153_v61 = vpop.f32.mrf.mxu1  ;;  %8857 = vmatprep.subr.bf16.mxu1 %v14323_v55  ;;  %8624 = vmatprep.mubr.bf16.mxu0 %v16280_v15 }
 0x396   : > { %v16392_v56 = vadd.f32 %v16309_v25, %v8152_v5  ;;  %v8154_v22 = vadd.f32 %v8153_v61, %v8060_v49  ;;  %8717 = vmatprep.mubr.bf16.mxu1 %v16284_v44  ;;  %v8062_v20 = vpop.f32.mrf.mxu0  ;;  %v14335_v25 = vld [vmem:[#allocation7 + $0x11d4] ss:$124 sps:$4 sm:$0xff]   ;;  %v14345_v49 = vld [vmem:[#allocation7 + $0xfe0] ss:$124 sps:$4 sm:$0xff]  }
 0x397   : > { %v8155_v39 = vpop.f32.mrf.mxu1  ;;  %8765 = vmatpush1.bf16.msra.mxu0 %v14318_v41 }
 0x398   : > { %9557 = vst [vmem:[#allocation2 + $0x678] sm:$0xff] %v8154_v22  ;;  %v8156_v59 = vadd.f32 %v8155_v39, %v8062_v20  ;;  %8858 = vmatpush1.bf16.msra.mxu1 %v14321_v12  ;;  %v8064_v24 = vpop.f32.mrf.mxu0  ;;  %8766 = vmatprep.subr.bf16.mxu0 %v14326_v0  ;;  %v14353_v22 = vld [vmem:[#allocation7 + $0x1e6c] ss:$124 sps:$4 sm:$0xff]  }
 0x399   : > { %v8157_v32 = vpop.f32.mrf.mxu1  ;;  %8859 = vmatprep.subr.bf16.mxu1 %v14329_v50  ;;  %v14350_v50 = vld [vmem:[#allocation7 + $0xeec] ss:$124 sps:$4 sm:$0xff]  }
 0x39a   : > { %v10619_v8 = vadd.f32 %v16311_v2, %v8156_v59  ;;  %v8158_v43 = vadd.f32 %v8157_v32, %v8064_v24  ;;  %v8068_v15 = vpop.f32.mrf.mxu0  ;;  %8625 = vmatmul.mubr.bf16.gmra.mxu0 %v16288_v34  ;;  %v14348_v24 = vld [vmem:[#allocation7 + $0xee8] ss:$124 sps:$4 sm:$0xff]  }
 0x39b   : > { %v8161_v54 = vpop.f32.mrf.mxu1  ;;  %8718 = vmatmul.mubr.bf16.gmra.mxu1 %v16292_v19  ;;  %8767 = vmatpush1.bf16.msra.mxu0 %v14324_v6  ;;  %v14351_v32 = vld [vmem:[#allocation7 + $0x1e68] ss:$124 sps:$4 sm:$0xff]  }
 0x39c   : > { %v8162_v44 = vadd.f32 %v8161_v54, %v8068_v15  ;;  %8860 = vmatpush1.bf16.msra.mxu1 %v14327_v1  ;;  %v8070_v53 = vpop.f32.mrf.mxu0  ;;  %8768 = vmatprep.subr.bf16.mxu0 %v14332_v37  ;;  %v10645_v14 = vrot.slane %v8158_v43, 1 }
 0x39d   : > { %v8163_v58 = vpop.f32.mrf.mxu1  ;;  %8861 = vmatprep.subr.bf16.mxu1 %v14335_v25  ;;  %8634 = vmatprep.mubr.bf16.mxu0 %v16300_v26 }
 0x39e   : > { %v10620_v2 = vadd.f32 %v16325_v36, %v8162_v44  ;;  %v8164_v57 = vadd.f32 %v8163_v58, %v8070_v53  ;;  %8727 = vmatprep.mubr.bf16.mxu1 %v16304_v40  ;;  %v8072_v19 = vpop.f32.mrf.mxu0  ;;  %v14344_v36 = vld [vmem:[#allocation7 + $0x64] ss:$124 sps:$4 sm:$0xff]   ;;  %v14354_v53 = vld [vmem:[#allocation7 + $0xdf0] ss:$124 sps:$4 sm:$0xff]  }
 0x39f   : > { %v10626_v34 = vld [vmem:[#allocation2 + $0x678] sm:$0xfe]  ;;  %v8165_v13 = vpop.f32.mrf.mxu1  ;;  %8769 = vmatpush1.bf16.msra.mxu0 %v14330_v46  ;;  %v14357_v58 = vld [vmem:[#allocation7 + $0x1d70] ss:$124 sps:$4 sm:$0xff]  }
 0x3a0   : > { %v10644_v27 = vrot.slane %v10626_v34, 1  ;;  %v10647_v11 = vrot.slane %v8164_v57, 1  ;;  %v8166_v23 = vadd.f32 %v8165_v13, %v8072_v19  ;;  %8862 = vmatpush1.bf16.msra.mxu1 %v14333_v38  ;;  %v8074_v45 = vpop.f32.mrf.mxu0  ;;  %8770 = vmatprep.subr.bf16.mxu0 %v14338_v51 }
 0x3a1   : > { %v8167_v47 = vpop.f32.mrf.mxu1  ;;  %8863 = vmatprep.subr.bf16.mxu1 %v14341_v42 }
 0x3a2   : > { %v10621_v26 = vadd.f32 %v16337_v30, %v8166_v23  ;;  %v8168_v62 = vadd.f32 %v8167_v47, %v8074_v45  ;;  %v10646_v40 = vsel %vm9891_vm0, %v10644_v27, %v10645_v14  ;;  %v10648_v21 = vsel %vm9891_vm0, %v10645_v14, %v10647_v11  ;;  %v8078_v55 = vpop.f32.mrf.mxu0  ;;  %8635 = vmatmul.mubr.bf16.gmra.mxu0 %v16317_v29  ;;  %v14342_v30 = vld [vmem:[#allocation7 + $0x60] ss:$124 sps:$4 sm:$0xff]   ;;  %v14363_v23 = vld [vmem:[#allocation7 + $0x1c78] ss:$124 sps:$4 sm:$0xff]  }
 0x3a3   : > { %v8171_v52 = vpop.f32.mrf.mxu1  ;;  %8728 = vmatmul.mubr.bf16.gmra.mxu1 %v16321_v35  ;;  %v16408_v9 = vadd.f32 %v10646_v40, %v16392_v56  ;;  %v16410_v5 = vadd.f32 %v10648_v21, %v10619_v8  ;;  %8771 = vmatpush1.bf16.msra.mxu0 %v14336_v10  ;;  %v14359_v8 = vld [vmem:[#allocation7 + $0x1d74] ss:$124 sps:$4 sm:$0xff]   ;;  %v14365_v14 = vld [vmem:[#allocation7 + $0x1c7c] ss:$124 sps:$4 sm:$0xff]  }
 0x3a4   : > { %v10649_v41 = vrot.slane %v8168_v62, 1  ;;  %v8172_v12 = vadd.f32 %v8171_v52, %v8078_v55  ;;  %8864 = vmatpush1.bf16.msra.mxu1 %v14339_v3  ;;  %v8080_v61 = vpop.f32.mrf.mxu0  ;;  %8772 = vmatprep.subr.bf16.mxu0 %v14344_v36  ;;  %v16437_v62 = vld [vmem:[%s15287_s16 + $0xa8] ss:$16 sps:$4 sm:$0xff]   ;;  %v14369_v55 = vld [vmem:[#allocation7 + $0x1b80] ss:$124 sps:$4 sm:$0xff]  }
 0x3a5   : > { %v8173_v0 = vpop.f32.mrf.mxu1  ;;  %8865 = vmatprep.subr.bf16.mxu1 %v14347_v17  ;;  %8644 = vmatprep.mubr.bf16.mxu0 %v16329_v60 }
 0x3a6   : > { %v10650_v29 = vsel %vm9891_vm0, %v10647_v11, %v10649_v41  ;;  %v10622_v35 = vadd.f32 %v16350_v63, %v8172_v12  ;;  %v8174_v56 = vadd.f32 %v8173_v0, %v8080_v61  ;;  %8737 = vmatprep.mubr.bf16.mxu1 %v16333_v7  ;;  %v8082_v39 = vpop.f32.mrf.mxu0  ;;  %v14356_v63 = vld [vmem:[#allocation7 + $0xdf4] ss:$124 sps:$4 sm:$0xff]   ;;  %v14374_v12 = vld [vmem:[#allocation7 + $0xb0c] ss:$124 sps:$4 sm:$0xff]  }
 0x3a7   : > { %v16416_v20 = vadd.f32 %v10650_v29, %v10620_v2  ;;  %v8175_v59 = vpop.f32.mrf.mxu1  ;;  %8773 = vmatpush1.bf16.msra.mxu0 %v14342_v30  ;;  %v14360_v11 = vld [vmem:[#allocation7 + $0xcf8] ss:$124 sps:$4 sm:$0xff]   ;;  %v14377_v30 = vld [vmem:[#allocation7 + $0x1a8c] ss:$124 sps:$4 sm:$0xff]  }
 0x3a8   : > { %v10651_v6 = vrot.slane %v8174_v56, 1  ;;  %v8176_v1 = vadd.f32 %v8175_v59, %v8082_v39  ;;  %8866 = vmatpush1.bf16.msra.mxu1 %v14345_v49  ;;  %v8084_v37 = vpop.f32.mrf.mxu0  ;;  %8774 = vmatprep.subr.bf16.mxu0 %v14350_v50  ;;  %v16444_v0 = vld [vmem:[%s15287_s16 + $0x4] ss:$16 sps:$4 sm:$0xff]   ;;  %v16448_v50 = vld [vmem:[%s15287_s16 + $0xc] ss:$16 sps:$4 sm:$0xff]  }
 0x3a9   : > { %v8177_v25 = vpop.f32.mrf.mxu1  ;;  %8867 = vmatprep.subr.bf16.mxu1 %v14353_v22  ;;  %v14372_v56 = vld [vmem:[#allocation7 + $0xb08] ss:$124 sps:$4 sm:$0xff]   ;;  %v14380_v59 = vld [vmem:[#allocation7 + $0xa14] ss:$124 sps:$4 sm:$0xff]  }
 0x3aa   : > { %v10652_v60 = vsel %vm9891_vm0, %v10649_v41, %v10651_v6  ;;  %v10623_v7 = vadd.f32 %v16368_v31, %v8176_v1  ;;  %v8178_v43 = vadd.f32 %v8177_v25, %v8084_v37  ;;  %v8088_v54 = vpop.f32.mrf.mxu0  ;;  %8645 = vmatmul.mubr.bf16.gmra.mxu0 %v16343_v48  ;;  %v14362_v31 = vld [vmem:[#allocation7 + $0xcfc] ss:$124 sps:$4 sm:$0xff]   ;;  %v14375_v39 = vld [vmem:[#allocation7 + $0x1a88] ss:$124 sps:$4 sm:$0xff]   ;;  %v14381_v37 = vld [vmem:[#allocation7 + $0x1990] ss:$124 sps:$4 sm:$0xff]  }
 0x3ab   : > { %v16420_v15 = vadd.f32 %v10652_v60, %v10621_v26  ;;  %v8181_v44 = vpop.f32.mrf.mxu1  ;;  %8738 = vmatmul.mubr.bf16.gmra.mxu1 %v16347_v33  ;;  %8775 = vmatpush2.bf16.msra.mxu0 %v14348_v24  ;;  %v16433_v26 = vld [vmem:[%s15287_s16 + $0xa0] ss:$16 sps:$4 sm:$0xff]   ;;  %v14386_v25 = vld [vmem:[#allocation7 + $0x91c] ss:$124 sps:$4 sm:$0xff]  }
 0x3ac   : > { %v10653_v46 = vrot.slane %v8178_v43, 1  ;;  %v8182_v38 = vadd.f32 %v8181_v44, %v8088_v54  ;;  %8868 = vmatpush2.bf16.msra.mxu1 %v14351_v32  ;;  %v8090_v51 = vpop.f32.mrf.mxu0  ;;  %8776 = vmatprep.subr.bf16.mxu0 %v14356_v63  ;;  %v14378_v32 = vld [vmem:[#allocation7 + $0xa10] ss:$124 sps:$4 sm:$0xff]   ;;  %v14389_v63 = vld [vmem:[#allocation7 + $0x189c] ss:$124 sps:$4 sm:$0xff]  }
 0x3ad   : > { %v8183_v42 = vpop.f32.mrf.mxu1  ;;  %8869 = vmatprep.subr.bf16.mxu1 %v14359_v8  ;;  %8654 = vmatprep.mubr.bf16.mxu0 %v16360_v16  ;;  %v14368_v16 = vld [vmem:[#allocation7 + $0xc04] ss:$124 sps:$4 sm:$0xff]   ;;  %v14387_v43 = vld [vmem:[#allocation7 + $0x1898] ss:$124 sps:$4 sm:$0xff]  }
 0x3ae   : > { %v10624_v2 = vadd.f32 %v16376_v28, %v8182_v38  ;;  %v8184_v57 = vadd.f32 %v8183_v42, %v8090_v51  ;;  %8747 = vmatprep.mubr.bf16.mxu1 %v16364_v4  ;;  %v10654_v48 = vsel %vm9891_vm0, %v10651_v6, %v10653_v46  ;;  %v8092_v33 = vpop.f32.mrf.mxu0  ;;  %v14371_v4 = vld [vmem:[#allocation7 + $0x1b84] ss:$124 sps:$4 sm:$0xff]   ;;  %v14383_v6 = vld [vmem:[#allocation7 + $0x1994] ss:$124 sps:$4 sm:$0xff]  }
 0x3af   : > { %v8185_v34 = vpop.f32.mrf.mxu1  ;;  %v16428_v19 = vadd.f32 %v10654_v48, %v10622_v35  ;;  %8777 = vmatpush2.bf16.msra.mxu0 %v14354_v53  ;;  %v14392_v54 = vld [vmem:[#allocation7 + $0x824] ss:$124 sps:$4 sm:$0xff]   ;;  %v14398_v51 = vld [vmem:[#allocation7 + $0x734] ss:$124 sps:$4 sm:$0xff]  }
 0x3b0   : > { %v10655_v13 = vrot.slane %v8184_v57, 1  ;;  %v8186_v27 = vadd.f32 %v8185_v34, %v8092_v33  ;;  %8870 = vmatpush2.bf16.msra.mxu1 %v14357_v58  ;;  %v8094_v28 = vpop.f32.mrf.mxu0  ;;  %8778 = vmatprep.subr.bf16.mxu0 %v14362_v31  ;;  %v14395_v44 = vld [vmem:[#allocation7 + $0x17a4] ss:$124 sps:$4 sm:$0xff]   ;;  %v14401_v42 = vld [vmem:[#allocation7 + $0x16b4] ss:$124 sps:$4 sm:$0xff]  }
 0x3b1   : > { %v8187_v10 = vpop.f32.mrf.mxu1  ;;  %8871 = vmatprep.subr.bf16.mxu1 %v14365_v14  ;;  %v14390_v53 = vld [vmem:[#allocation7 + $0x820] ss:$124 sps:$4 sm:$0xff]   ;;  %v14396_v31 = vld [vmem:[#allocation7 + $0x730] ss:$124 sps:$4 sm:$0xff]  }
 0x3b2   : > { %v10625_v3 = vadd.f32 %v16383_v18, %v8186_v27  ;;  %v8188_v45 = vadd.f32 %v8187_v10, %v8094_v28  ;;  %v10656_v47 = vsel %vm9891_vm0, %v10653_v46, %v10655_v13  ;;  %v8098_v36 = vpop.f32.mrf.mxu0  ;;  %8655 = vmatmul.mubr.bf16.gmra.mxu0 %v16433_v26  ;;  %v14366_v18 = vld [vmem:[#allocation7 + $0xc00] ss:$124 sps:$4 sm:$0xff]   ;;  %v14399_v14 = vld [vmem:[#allocation7 + $0x16b0] ss:$124 sps:$4 sm:$0xff]   ;;  %v14402_v27 = vld [vmem:[#allocation7 + $0x638] ss:$124 sps:$4 sm:$0xff]  }
 0x3b3   : > { %v8191_v17 = vpop.f32.mrf.mxu1  ;;  %8748 = vmatmul.mubr.bf16.gmra.mxu1 %v16437_v62  ;;  %v16440_v40 = vadd.f32 %v10656_v47, %v10623_v7  ;;  %8779 = vmatpush2.bf16.msra.mxu0 %v14360_v11  ;;  %v14384_v7 = vld [vmem:[#allocation7 + $0x918] ss:$124 sps:$4 sm:$0xff]   ;;  %v14393_v58 = vld [vmem:[#allocation7 + $0x17a0] ss:$124 sps:$4 sm:$0xff]  }
 0x3b4   : > { %v10657_v21 = vrot.slane %v8188_v45, 1  ;;  %8872 = vmatpush2.bf16.msra.mxu1 %v14363_v23  ;;  %v8100_v52 = vpop.f32.mrf.mxu0  ;;  %8780 = vmatprep.subr.bf16.mxu0 %v14368_v16  ;;  %v14407_v57 = vld [vmem:[#allocation7 + $0x15bc] ss:$124 sps:$4 sm:$0xff]   ;;  %v16457_v34 = vld [vmem:[%s15287_s16] ss:$16 sps:$4 sm:$0xff]  }
 0x3b5   : > { %v8193_v41 = vpop.f32.mrf.mxu1  ;;  %8873 = vmatprep.subr.bf16.mxu1 %v14371_v4  ;;  %8790 = vmatprep.mubr.bf16.mxu0 %v16444_v0  ;;  %v14405_v11 = vld [vmem:[#allocation7 + $0x15b8] ss:$124 sps:$4 sm:$0xff]   ;;  %v14410_v10 = vld [vmem:[#allocation7 + $0x544] ss:$124 sps:$4 sm:$0xff]  }
 0x3b6   : > { %v10658_v49 = vsel %vm9891_vm0, %v10655_v13, %v10657_v21  ;;  %v8194_v61 = vadd.f32 %v8193_v41, %v8100_v52  ;;  %8883 = vmatprep.mubr.bf16.mxu1 %v16448_v50  ;;  %v8102_v22 = vpop.f32.mrf.mxu0  ;;  %v16461_v13 = vld [vmem:[%s15287_s16 + $0x8] ss:$16 sps:$4 sm:$0xff]   ;;  %v14413_v16 = vld [vmem:[#allocation7 + $0x14c4] ss:$124 sps:$4 sm:$0xff]  }
 0x3b7   : > { %v8195_v29 = vpop.f32.mrf.mxu1  ;;  %v16451_v35 = vadd.f32 %v10658_v49, %v10624_v2  ;;  %8781 = vmatpush2.bf16.msra.mxu0 %v14366_v18  ;;  %v14404_v2 = vld [vmem:[#allocation7 + $0x63c] ss:$124 sps:$4 sm:$0xff]   ;;  %v16465_v4 = vld [vmem:[%s15287_s16 + $0x24] ss:$16 sps:$4 sm:$0xff]   ;;  %v14419_v52 = vld [vmem:[#allocation7 + $0x13cc] ss:$124 sps:$4 sm:$0xff]  }
 0x3b8   : > { %9805 = vst [vmem:[#allocation2 + $0x208] sm:$0xff] %v8194_v61  ;;  %8874 = vmatpush2.bf16.msra.mxu1 %v14369_v55  ;;  %8782 = vmatprep.subr.bf16.mxu0 %v14374_v12  ;;  %v8104_v1 = vpop.f32.mrf.mxu0  ;;  %v14408_v36 = vld [vmem:[#allocation7 + $0x540] ss:$124 sps:$4 sm:$0xff]   ;;  %v14416_v55 = vld [vmem:[#allocation7 + $0x44c] ss:$124 sps:$4 sm:$0xff]  }
 0x3b9   : > { %8875 = vmatprep.subr.bf16.mxu1 %v14377_v30  ;;  %v8197_v24 = vpop.f32.mrf.mxu1  ;;  %v14411_v17 = vld [vmem:[#allocation7 + $0x14c0] ss:$124 sps:$4 sm:$0xff]   ;;  %v16477_v49 = vld [vmem:[%s15287_s16 + $0x28] ss:$16 sps:$4 sm:$0xff]  }
 0x3ba   : > { %v16473_v30 = vld [vmem:[%s15287_s16 + $0x20] ss:$16 sps:$4 sm:$0xff]   ;;  %v14414_v22 = vld [vmem:[#allocation7 + $0x448] ss:$124 sps:$4 sm:$0xff]  }
 0x3bb   : > { %8783 = vmatpush2.bf16.msra.mxu0 %v14372_v56  ;;  %v14417_v29 = vld [vmem:[#allocation7 + $0x13c8] ss:$124 sps:$4 sm:$0xff]  }
 0x3bc   : > { %8876 = vmatpush2.bf16.msra.mxu1 %v14375_v39  ;;  %8784 = vmatprep.subr.bf16.mxu0 %v14380_v59  ;;  %v14422_v59 = vld [vmem:[#allocation7 + $0x354] ss:$124 sps:$4 sm:$0xff]  }
 0x3bd   : > { %8877 = vmatprep.subr.bf16.mxu1 %v14383_v6  ;;  %v14425_v6 = vld [vmem:[#allocation7 + $0x12d4] ss:$124 sps:$4 sm:$0xff]  }
 0x3be   : > { %v16481_v24 = vld [vmem:[%s15287_s16 + $0x44] ss:$16 sps:$4 sm:$0xff]  }
 0x3bf   : > { %v10634_v8 = vld [vmem:[#allocation2 + $0x208] sm:$0x1]  ;;  %8785 = vmatpush2.bf16.msra.mxu0 %v14378_v32  ;;  %v16485_v32 = vld [vmem:[%s15287_s16 + $0x4c] ss:$16 sps:$4 sm:$0xff]  }
 0x3c0   : > { %v10659_v60 = vrot.slane %v10634_v8, 1  ;;  %8878 = vmatpush2.bf16.msra.mxu1 %v14381_v37  ;;  %8786 = vmatprep.subr.bf16.mxu0 %v14386_v25  ;;  %v14420_v8 = vld [vmem:[#allocation7 + $0x350] ss:$124 sps:$4 sm:$0xff]  }
 0x3c1   : > { %8879 = vmatprep.subr.bf16.mxu1 %v14389_v63 }
 0x3c2   : > { %v10660_v46 = vsel %vm9891_vm0, %v10657_v21, %v10659_v60  ;;  %v14423_v60 = vld [vmem:[#allocation7 + $0x12d0] ss:$124 sps:$4 sm:$0xff]  }
 0x3c3   : > { %v16454_v38 = vadd.f32 %v10660_v46, %v10625_v3  ;;  %8787 = vmatpush2.bf16.msra.mxu0 %v14384_v7  ;;  %v16469_v3 = vld [vmem:[%s15287_s16 + $0x2c] ss:$16 sps:$4 sm:$0xff]  }
 0x3c4   : > { %8880 = vmatpush2.bf16.msra.mxu1 %v14387_v43  ;;  %8788 = vmatprep.subr.bf16.mxu0 %v14392_v54  ;;  %v14428_v54 = vld [vmem:[#allocation7 + $0x25c] ss:$124 sps:$4 sm:$0xff]  }
 0x3c5   : > { %8881 = vmatprep.subr.bf16.mxu1 %v14395_v44  ;;  %v14431_v44 = vld [vmem:[#allocation7 + $0x11dc] ss:$124 sps:$4 sm:$0xff]  }
 0x3c7   : > { %8789 = vmatpush2.bf16.msra.mxu0 %v14390_v53 }
 0x3c8   : > { %8882 = vmatpush2.bf16.msra.mxu1 %v14393_v58  ;;  %8944 = vmatprep.subr.bf16.mxu0 %v14398_v51  ;;  %v16489_v51 = vld [vmem:[%s15287_s16 + $0x40] ss:$16 sps:$4 sm:$0xff]  }
 0x3c9   : > { %9037 = vmatprep.subr.bf16.mxu1 %v14401_v42  ;;  %v16493_v42 = vld [vmem:[%s15287_s16 + $0x48] ss:$16 sps:$4 sm:$0xff]  }
 0x3ca   : > { %v8234_v48 = vpop.f32.mrf.mxu0  ;;  %8791 = vmatmul.mubr.bf16.vlgmr.msra.gmra.mxu0 %v16457_v34 }
 0x3cb   : > { %v8327_v33 = vpop.f32.mrf.mxu1  ;;  %8884 = vmatmul.mubr.bf16.vlgmr.msra.gmra.mxu1 %v16461_v13  ;;  %8945 = vmatpush1.bf16.msra.mxu0 %v14396_v31 }
 0x3cc   : > { %9038 = vmatpush1.bf16.msra.mxu1 %v14399_v14  ;;  %v8236_v23 = vpop.f32.mrf.mxu0  ;;  %8946 = vmatprep.subr.bf16.mxu0 %v14404_v2  ;;  %v14426_v2 = vld [vmem:[#allocation7 + $0x258] ss:$124 sps:$4 sm:$0xff]  }
 0x3cd   : > { %v8329_v28 = vpop.f32.mrf.mxu1  ;;  %9039 = vmatprep.subr.bf16.mxu1 %v14407_v57  ;;  %8800 = vmatprep.mubr.bf16.mxu0 %v16465_v4  ;;  %v14429_v57 = vld [vmem:[#allocation7 + $0x11d8] ss:$124 sps:$4 sm:$0xff]   ;;  %v14437_v23 = vld [vmem:[#allocation7 + $0x10e4] ss:$124 sps:$4 sm:$0xff]  }
 0x3ce   : > { %8893 = vmatprep.mubr.bf16.mxu1 %v16469_v3  ;;  %v8238_v45 = vpop.f32.mrf.mxu0 }
 0x3cf   : > { %v8331_v47 = vpop.f32.mrf.mxu1  ;;  %8947 = vmatpush1.bf16.msra.mxu0 %v14402_v27 }
 0x3d0   : > { %9040 = vmatpush1.bf16.msra.mxu1 %v14405_v11  ;;  %v8240_v21 = vpop.f32.mrf.mxu0  ;;  %8948 = vmatprep.subr.bf16.mxu0 %v14410_v10  ;;  %v14434_v11 = vld [vmem:[#allocation7 + $0x164] ss:$124 sps:$4 sm:$0xff]  }
 0x3d1   : > { %v8333_v18 = vpop.f32.mrf.mxu1  ;;  %9041 = vmatprep.subr.bf16.mxu1 %v14413_v16  ;;  %v16497_v47 = vld [vmem:[%s15287_s16 + $0x64] ss:$16 sps:$4 sm:$0xff]  }
 0x3d2   : > { %v8244_v41 = vpop.f32.mrf.mxu0  ;;  %8801 = vmatmul.mubr.bf16.gmra.mxu0 %v16473_v30 }
 0x3d3   : > { %v8337_v12 = vpop.f32.mrf.mxu1  ;;  %8894 = vmatmul.mubr.bf16.gmra.mxu1 %v16477_v49  ;;  %8949 = vmatpush1.bf16.msra.mxu0 %v14408_v36  ;;  %v16501_v36 = vld [vmem:[%s15287_s16 + $0x6c] ss:$16 sps:$4 sm:$0xff]  }
 0x3d4   : > { %v8338_v61 = vadd.f32 %v8337_v12, %v8244_v41  ;;  %9042 = vmatpush1.bf16.msra.mxu1 %v14411_v17  ;;  %v8246_v56 = vpop.f32.mrf.mxu0  ;;  %8950 = vmatprep.subr.bf16.mxu0 %v14416_v55  ;;  %v14432_v12 = vld [vmem:[#allocation7 + $0x160] ss:$124 sps:$4 sm:$0xff]  }
 0x3d5   : > { %v8339_v39 = vpop.f32.mrf.mxu1  ;;  %9043 = vmatprep.subr.bf16.mxu1 %v14419_v52  ;;  %8810 = vmatprep.mubr.bf16.mxu0 %v16481_v24 }
 0x3d6   : > { %9558 = vst [vmem:[#allocation2 + $0x8f8] sm:$0xff] %v8338_v61  ;;  %v8340_v1 = vadd.f32 %v8339_v39, %v8246_v56  ;;  %8903 = vmatprep.mubr.bf16.mxu1 %v16485_v32  ;;  %v8248_v37 = vpop.f32.mrf.mxu0  ;;  %v14435_v61 = vld [vmem:[#allocation7 + $0x10e0] ss:$124 sps:$4 sm:$0xff]   ;;  %v14440_v39 = vld [vmem:[#allocation7 + $0x6c] ss:$124 sps:$4 sm:$0xff]  }
 0x3d7   : > { %v8341_v25 = vpop.f32.mrf.mxu1  ;;  %8951 = vmatpush1.bf16.msra.mxu0 %v14414_v22 }
 0x3d8   : > { %9559 = vst [vmem:[#allocation2 + $0x200] sm:$0xff] %v8340_v1  ;;  %v8342_v63 = vadd.f32 %v8341_v25, %v8248_v37  ;;  %9044 = vmatpush1.bf16.msra.mxu1 %v14417_v29  ;;  %v8250_v7 = vpop.f32.mrf.mxu0  ;;  %8952 = vmatprep.subr.bf16.mxu0 %v14422_v59  ;;  %v14443_v59 = vld [vmem:[#allocation7 + $0xfec] ss:$124 sps:$4 sm:$0xff]  }
 0x3d9   : > { %v8343_v43 = vpop.f32.mrf.mxu1  ;;  %9045 = vmatprep.subr.bf16.mxu1 %v14425_v6 }
 0x3da   : > { %v8344_v46 = vadd.f32 %v8343_v43, %v8250_v7  ;;  %v8254_v53 = vpop.f32.mrf.mxu0  ;;  %8811 = vmatmul.mubr.bf16.gmra.mxu0 %v16489_v51  ;;  %v10696_v31 = vrot.slane %v8342_v63, 2  ;;  %v16510_v43 = vld [vmem:[%s15287_s16 + $0x60] ss:$16 sps:$4 sm:$0xff]  }
 0x3db   : > { %v8347_v58 = vpop.f32.mrf.mxu1  ;;  %8904 = vmatmul.mubr.bf16.gmra.mxu1 %v16493_v42  ;;  %8953 = vmatpush1.bf16.msra.mxu0 %v14420_v8 }
 0x3dc   : > { %v8348_v14 = vadd.f32 %v8347_v58, %v8254_v53  ;;  %9046 = vmatpush1.bf16.msra.mxu1 %v14423_v60  ;;  %v8256_v33 = vpop.f32.mrf.mxu0  ;;  %8954 = vmatprep.subr.bf16.mxu0 %v14428_v54  ;;  %v10747_v10 = vrot.slane %v8344_v46, 3  ;;  %v16514_v54 = vld [vmem:[%s15287_s16 + $0x68] ss:$16 sps:$4 sm:$0xff]  }
 0x3dd   : > { %v10677_v48 = vld [vmem:[#allocation2 + $0x8f8] sm:$0xfc]  ;;  %v8349_v27 = vpop.f32.mrf.mxu1  ;;  %9047 = vmatprep.subr.bf16.mxu1 %v14431_v44  ;;  %8820 = vmatprep.mubr.bf16.mxu0 %v16497_v47  ;;  %v14438_v58 = vld [vmem:[#allocation7 + $0x68] ss:$124 sps:$4 sm:$0xff]  }
 0x3de   : > { %v10695_v28 = vrot.slane %v10677_v48, 2  ;;  %v10698_v16 = vrot.slane %v8348_v14, 2  ;;  %v8350_v45 = vadd.f32 %v8349_v27, %v8256_v33  ;;  %8913 = vmatprep.mubr.bf16.mxu1 %v16501_v36  ;;  %v8258_v21 = vpop.f32.mrf.mxu0  ;;  %v14446_v33 = vld [vmem:[#allocation7 + $0xef4] ss:$124 sps:$4 sm:$0xff]  }
 0x3df   : > { %v10728_v17 = vld [vmem:[#allocation2 + $0x200] sm:$0xf8]  ;;  %v8351_v18 = vpop.f32.mrf.mxu1  ;;  %8955 = vmatpush1.bf16.msra.mxu0 %v14426_v2  ;;  %v14449_v27 = vld [vmem:[#allocation7 + $0x1e74] ss:$124 sps:$4 sm:$0xff]  }
 0x3e0   : > { %v10746_v55 = vrot.slane %v10728_v17, 3  ;;  %v10749_v52 = vrot.slane %v8350_v45, 3  ;;  %v8352_v41 = vadd.f32 %v8351_v18, %v8258_v21  ;;  %9048 = vmatpush1.bf16.msra.mxu1 %v14429_v57  ;;  %v10697_v22 = vsel %vm9943_vm1, %v10695_v28, %v10696_v31  ;;  %v8260_v29 = vpop.f32.mrf.mxu0  ;;  %8956 = vmatprep.subr.bf16.mxu0 %v14434_v11 }
 0x3e1   : > { %v8353_v56 = vpop.f32.mrf.mxu1  ;;  %9049 = vmatprep.subr.bf16.mxu1 %v14437_v23  ;;  %v10699_v6 = vsel %vm9943_vm1, %v10696_v31, %v10698_v16  ;;  %v10720_v1 = vadd.f32 %v10697_v22, %v16408_v9  ;;  %v14441_v31 = vld [vmem:[#allocation7 + $0xfe8] ss:$124 sps:$4 sm:$0xff]  }
 0x3e2   : > { %v10700_v37 = vrot.slane %v8352_v41, 2  ;;  %v8354_v25 = vadd.f32 %v8353_v56, %v8260_v29  ;;  %v10721_v63 = vadd.f32 %v10699_v6, %v16410_v5  ;;  %v10748_v8 = vsel %vm9995_vm2, %v10746_v55, %v10747_v10  ;;  %v8264_v60 = vpop.f32.mrf.mxu0  ;;  %8821 = vmatmul.mubr.bf16.gmra.mxu0 %v16510_v43  ;;  %v14447_v41 = vld [vmem:[#allocation7 + $0x1e70] ss:$124 sps:$4 sm:$0xff]   ;;  %v14452_v29 = vld [vmem:[#allocation7 + $0xdfc] ss:$124 sps:$4 sm:$0xff]  }
 0x3e3   : > { %v8357_v7 = vpop.f32.mrf.mxu1  ;;  %8914 = vmatmul.mubr.bf16.gmra.mxu1 %v16514_v54  ;;  %v10750_v44 = vsel %vm9995_vm2, %v10747_v10, %v10749_v52  ;;  %v16518_v46 = vadd.f32 %v10748_v8, %v10720_v1  ;;  %8957 = vmatpush1.bf16.msra.mxu0 %v14432_v12  ;;  %v16526_v10 = vld [vmem:[%s15287_s16 + $0x84] ss:$16 sps:$4 sm:$0xff]   ;;  %v14455_v56 = vld [vmem:[#allocation7 + $0x1d7c] ss:$124 sps:$4 sm:$0xff]  }
 0x3e4   : > { %v10701_v9 = vsel %vm9943_vm1, %v10698_v16, %v10700_v37  ;;  %v10751_v53 = vrot.slane %v8354_v25, 3  ;;  %v8358_v5 = vadd.f32 %v8357_v7, %v8264_v60  ;;  %9050 = vmatpush1.bf16.msra.mxu1 %v14435_v61  ;;  %v16521_v14 = vadd.f32 %v10750_v44, %v10721_v63  ;;  %v8266_v57 = vpop.f32.mrf.mxu0  ;;  %8958 = vmatprep.subr.bf16.mxu0 %v14440_v39  ;;  %v16530_v16 = vld [vmem:[%s15287_s16 + $0x8c] ss:$16 sps:$4 sm:$0xff]   ;;  %v16541_v63 = vld [vmem:[%s15287_s16 + $0x80] ss:$16 sps:$4 sm:$0xff]  }
 0x3e5   : > { %v10722_v2 = vadd.f32 %v10701_v9, %v16416_v20  ;;  %v8359_v48 = vpop.f32.mrf.mxu1  ;;  %9051 = vmatprep.subr.bf16.mxu1 %v14443_v59  ;;  %8830 = vmatprep.mubr.bf16.mxu0 %v16526_v10  ;;  %v16545_v8 = vld [vmem:[%s15287_s16 + $0x88] ss:$16 sps:$4 sm:$0xff]  }
 0x3e6   : > { %v10752_v11 = vsel %vm9995_vm2, %v10749_v52, %v10751_v53  ;;  %v10702_v23 = vrot.slane %v8358_v5, 2  ;;  %v8360_v28 = vadd.f32 %v8359_v48, %v8266_v57  ;;  %8923 = vmatprep.mubr.bf16.mxu1 %v16530_v16  ;;  %v8268_v20 = vpop.f32.mrf.mxu0  ;;  %v14444_v52 = vld [vmem:[#allocation7 + $0xef0] ss:$124 sps:$4 sm:$0xff]   ;;  %v14450_v7 = vld [vmem:[#allocation7 + $0xdf8] ss:$124 sps:$4 sm:$0xff]  }
 0x3e7   : > { %v16533_v45 = vadd.f32 %v10752_v11, %v10722_v2  ;;  %v8361_v17 = vpop.f32.mrf.mxu1  ;;  %8959 = vmatpush1.bf16.msra.mxu0 %v14438_v58  ;;  %v14453_v44 = vld [vmem:[#allocation7 + $0x1d78] ss:$124 sps:$4 sm:$0xff]   ;;  %v14458_v58 = vld [vmem:[#allocation7 + $0xd04] ss:$124 sps:$4 sm:$0xff]  }
 0x3e8   : > { %v10703_v21 = vsel %vm9943_vm1, %v10700_v37, %v10702_v23  ;;  %v10753_v18 = vrot.slane %v8360_v28, 3  ;;  %v8362_v55 = vadd.f32 %v8361_v17, %v8268_v20  ;;  %9052 = vmatpush1.bf16.msra.mxu1 %v14441_v31  ;;  %v8270_v61 = vpop.f32.mrf.mxu0  ;;  %8960 = vmatprep.subr.bf16.mxu0 %v14446_v33  ;;  %v14461_v31 = vld [vmem:[#allocation7 + $0x1c84] ss:$124 sps:$4 sm:$0xff]  }
 0x3e9   : > { %v10723_v12 = vadd.f32 %v10703_v21, %v16420_v15  ;;  %v8363_v22 = vpop.f32.mrf.mxu1  ;;  %9053 = vmatprep.subr.bf16.mxu1 %v14449_v27  ;;  %v16551_v33 = vld [vmem:[%s15287_s16 + $0xa4] ss:$16 sps:$4 sm:$0xff]   ;;  %v16555_v27 = vld [vmem:[%s15287_s16 + $0xac] ss:$16 sps:$4 sm:$0xff]  }
 0x3ea   : > { %v10754_v39 = vsel %vm9995_vm2, %v10751_v53, %v10753_v18  ;;  %v10704_v59 = vrot.slane %v8362_v55, 2  ;;  %v8364_v6 = vadd.f32 %v8363_v22, %v8270_v61  ;;  %v8274_v37 = vpop.f32.mrf.mxu0  ;;  %8831 = vmatmul.mubr.bf16.gmra.mxu0 %v16541_v63  ;;  %v14459_v55 = vld [vmem:[#allocation7 + $0x1c80] ss:$124 sps:$4 sm:$0xff]   ;;  %v14464_v61 = vld [vmem:[#allocation7 + $0xc0c] ss:$124 sps:$4 sm:$0xff]  }
 0x3eb   : > { %v16538_v1 = vadd.f32 %v10754_v39, %v10723_v12  ;;  %v8367_v25 = vpop.f32.mrf.mxu1  ;;  %8924 = vmatmul.mubr.bf16.gmra.mxu1 %v16545_v8  ;;  %8961 = vmatpush2.bf16.msra.mxu0 %v14444_v52  ;;  %v14467_v22 = vld [vmem:[#allocation7 + $0x1b8c] ss:$124 sps:$4 sm:$0xff]  }
 0x3ec   : > { %v10755_v15 = vrot.slane %v8364_v6, 3  ;;  %v8368_v60 = vadd.f32 %v8367_v25, %v8274_v37  ;;  %9054 = vmatpush2.bf16.msra.mxu1 %v14447_v41  ;;  %v10705_v9 = vsel %vm9943_vm1, %v10702_v23, %v10704_v59  ;;  %v8276_v53 = vpop.f32.mrf.mxu0  ;;  %8962 = vmatprep.subr.bf16.mxu0 %v14452_v29 }
 0x3ed   : > { %v8369_v5 = vpop.f32.mrf.mxu1  ;;  %9055 = vmatprep.subr.bf16.mxu1 %v14455_v56  ;;  %v10724_v2 = vadd.f32 %v10705_v9, %v16428_v19  ;;  %8840 = vmatprep.mubr.bf16.mxu0 %v16551_v33  ;;  %v14456_v19 = vld [vmem:[#allocation7 + $0xd00] ss:$124 sps:$4 sm:$0xff]  }
 0x3ee   : > { %v10706_v57 = vrot.slane %v8368_v60, 2  ;;  %v8370_v48 = vadd.f32 %v8369_v5, %v8276_v53  ;;  %8933 = vmatprep.mubr.bf16.mxu1 %v16555_v27  ;;  %v10756_v11 = vsel %vm9995_vm2, %v10753_v18, %v10755_v15  ;;  %v8278_v23 = vpop.f32.mrf.mxu0  ;;  %v14473_v5 = vld [vmem:[#allocation7 + $0x1a94] ss:$124 sps:$4 sm:$0xff]  }
 0x3ef   : > { %v8371_v28 = vpop.f32.mrf.mxu1  ;;  %v16559_v20 = vadd.f32 %v10756_v11, %v10724_v2  ;;  %8963 = vmatpush2.bf16.msra.mxu0 %v14450_v7  ;;  %v14465_v7 = vld [vmem:[#allocation7 + $0x1b88] ss:$124 sps:$4 sm:$0xff]   ;;  %v14471_v11 = vld [vmem:[#allocation7 + $0x1a90] ss:$124 sps:$4 sm:$0xff]  }
 0x3f0   : > { %v10757_v17 = vrot.slane %v8370_v48, 3  ;;  %v16561_v21 = vadd.f32 %v8371_v28, %v8278_v23  ;;  %9056 = vmatpush2.bf16.msra.mxu1 %v14453_v44  ;;  %v10707_v52 = vsel %vm9943_vm1, %v10704_v59, %v10706_v57  ;;  %v8280_v41 = vpop.f32.mrf.mxu0  ;;  %8964 = vmatprep.subr.bf16.mxu0 %v14458_v58  ;;  %v14479_v23 = vld [vmem:[#allocation7 + $0x199c] ss:$124 sps:$4 sm:$0xff]  }
 0x3f1   : > { %v8373_v12 = vpop.f32.mrf.mxu1  ;;  %9057 = vmatprep.subr.bf16.mxu1 %v14461_v31  ;;  %v10725_v18 = vadd.f32 %v10707_v52, %v16440_v40  ;;  %v14462_v40 = vld [vmem:[#allocation7 + $0xc08] ss:$124 sps:$4 sm:$0xff]  }
 0x3f2   : > { %v10708_v29 = vrot.slane %v16561_v21, 2  ;;  %v16566_v56 = vadd.f32 %v8373_v12, %v8280_v41  ;;  %v10758_v39 = vsel %vm9995_vm2, %v10755_v15, %v10757_v17  ;;  %v8284_v6 = vpop.f32.mrf.mxu0  ;;  %8841 = vmatmul.mubr.bf16.gmra.mxu0 %v16433_v26  ;;  %v14470_v15 = vld [vmem:[#allocation7 + $0xb14] ss:$124 sps:$4 sm:$0xff]  }
 0x3f3   : > { %v8377_v37 = vpop.f32.mrf.mxu1  ;;  %8934 = vmatmul.mubr.bf16.gmra.mxu1 %v16437_v62  ;;  %v16571_v59 = vadd.f32 %v10758_v39, %v10725_v18  ;;  %8965 = vmatpush2.bf16.msra.mxu0 %v14456_v19  ;;  %v14482_v19 = vld [vmem:[#allocation7 + $0x924] ss:$124 sps:$4 sm:$0xff]   ;;  %v14491_v39 = vld [vmem:[#allocation7 + $0x17ac] ss:$124 sps:$4 sm:$0xff]  }
 0x3f4   : > { %v10759_v25 = vrot.slane %v16566_v56, 3  ;;  %v8378_v60 = vadd.f32 %v8377_v37, %v8284_v6  ;;  %9058 = vmatpush2.bf16.msra.mxu1 %v14459_v55  ;;  %v10709_v44 = vsel %vm9943_vm1, %v10706_v57, %v10708_v29  ;;  %v8286_v9 = vpop.f32.mrf.mxu0  ;;  %8966 = vmatprep.subr.bf16.mxu0 %v14464_v61  ;;  %v14468_v57 = vld [vmem:[#allocation7 + $0xb10] ss:$124 sps:$4 sm:$0xff]   ;;  %v14485_v55 = vld [vmem:[#allocation7 + $0x18a4] ss:$124 sps:$4 sm:$0xff]  }
 0x3f5   : > { %v8379_v53 = vpop.f32.mrf.mxu1  ;;  %9059 = vmatprep.subr.bf16.mxu1 %v14467_v22  ;;  %v10726_v26 = vadd.f32 %v10709_v44, %v16451_v35  ;;  %8976 = vmatprep.mubr.bf16.mxu0 %v16444_v0  ;;  %v14476_v35 = vld [vmem:[#allocation7 + $0xa1c] ss:$124 sps:$4 sm:$0xff]   ;;  %v14488_v56 = vld [vmem:[#allocation7 + $0x82c] ss:$124 sps:$4 sm:$0xff]  }
 0x3f6   : > { %9806 = vst [vmem:[#allocation2 + $0x80] sm:$0xff] %v8378_v60  ;;  %v8380_v62 = vadd.f32 %v8379_v53, %v8286_v9  ;;  %9069 = vmatprep.mubr.bf16.mxu1 %v16448_v50  ;;  %v10760_v58 = vsel %vm9995_vm2, %v10757_v17, %v10759_v25  ;;  %v8288_v31 = vpop.f32.mrf.mxu0  ;;  %v14474_v0 = vld [vmem:[#allocation7 + $0xa18] ss:$124 sps:$4 sm:$0xff]   ;;  %v14480_v61 = vld [vmem:[#allocation7 + $0x920] ss:$124 sps:$4 sm:$0xff]  }
 0x3f7   : > { %v8381_v2 = vpop.f32.mrf.mxu1  ;;  %v16579_v48 = vadd.f32 %v10760_v58, %v10726_v26  ;;  %8967 = vmatpush2.bf16.msra.mxu0 %v14462_v40  ;;  %v14477_v50 = vld [vmem:[#allocation7 + $0x1998] ss:$124 sps:$4 sm:$0xff]   ;;  %v14483_v22 = vld [vmem:[#allocation7 + $0x18a0] ss:$124 sps:$4 sm:$0xff]   ;;  %v14486_v40 = vld [vmem:[#allocation7 + $0x828] ss:$124 sps:$4 sm:$0xff]  }
 0x3f8   : > { %9807 = vst [vmem:[#allocation2 + $0x20] sm:$0xff] %v8380_v62  ;;  %9060 = vmatpush2.bf16.msra.mxu1 %v14465_v7  ;;  %8968 = vmatprep.subr.bf16.mxu0 %v14470_v15  ;;  %v8290_v28 = vpop.f32.mrf.mxu0  ;;  %v14489_v7 = vld [vmem:[#allocation7 + $0x17a8] ss:$124 sps:$4 sm:$0xff]   ;;  %v14494_v44 = vld [vmem:[#allocation7 + $0x73c] ss:$124 sps:$4 sm:$0xff]  }
 0x3f9   : > { %9061 = vmatprep.subr.bf16.mxu1 %v14473_v5  ;;  %v8383_v21 = vpop.f32.mrf.mxu1  ;;  %v14497_v9 = vld [vmem:[#allocation7 + $0x16bc] ss:$124 sps:$4 sm:$0xff]   ;;  %v14500_v15 = vld [vmem:[#allocation7 + $0x644] ss:$124 sps:$4 sm:$0xff]   ;;  %v14506_v2 = vld [vmem:[#allocation7 + $0x54c] ss:$124 sps:$4 sm:$0xff]  }
 0x3fa   : > { %v14495_v53 = vld [vmem:[#allocation7 + $0x16b8] ss:$124 sps:$4 sm:$0xff]   ;;  %v14498_v26 = vld [vmem:[#allocation7 + $0x640] ss:$124 sps:$4 sm:$0xff]  }
 0x3fb   : > { %8969 = vmatpush2.bf16.msra.mxu0 %v14468_v57  ;;  %v14501_v62 = vld [vmem:[#allocation7 + $0x15c0] ss:$124 sps:$4 sm:$0xff]   ;;  %v14509_v57 = vld [vmem:[#allocation7 + $0x14cc] ss:$124 sps:$4 sm:$0xff]   ;;  %v14512_v21 = vld [vmem:[#allocation7 + $0x454] ss:$124 sps:$4 sm:$0xff]  }
 0x3fc   : > { %9062 = vmatpush2.bf16.msra.mxu1 %v14471_v11  ;;  %8970 = vmatprep.subr.bf16.mxu0 %v14476_v35 }
 0x3fd   : > { %v10685_v17 = vld [vmem:[#allocation2 + $0x80] sm:$0x3]  ;;  %9063 = vmatprep.subr.bf16.mxu1 %v14479_v23 }
 0x3fe   : > { %v10710_v52 = vrot.slane %v10685_v17, 2 }
 0x3ff   : > { %v10736_v41 = vld [vmem:[#allocation2 + $0x20] sm:$0x7]  ;;  %8971 = vmatpush2.bf16.msra.mxu0 %v14474_v0  ;;  %v14515_v0 = vld [vmem:[#allocation7 + $0x13d4] ss:$124 sps:$4 sm:$0xff]  }
 0x400   : > { %v10761_v12 = vrot.slane %v10736_v41, 3  ;;  %9064 = vmatpush2.bf16.msra.mxu1 %v14477_v50  ;;  %v10711_v18 = vsel %vm9943_vm1, %v10708_v29, %v10710_v52  ;;  %8972 = vmatprep.subr.bf16.mxu0 %v14482_v19  ;;  %v14492_v29 = vld [vmem:[#allocation7 + $0x738] ss:$124 sps:$4 sm:$0xff]   ;;  %v14513_v19 = vld [vmem:[#allocation7 + $0x13d0] ss:$124 sps:$4 sm:$0xff]  }
 0x401   : > { %9065 = vmatprep.subr.bf16.mxu1 %v14485_v55  ;;  %v10727_v6 = vadd.f32 %v10711_v18, %v16454_v38  ;;  %v14503_v38 = vld [vmem:[#allocation7 + $0x15c4] ss:$124 sps:$4 sm:$0xff]   ;;  %v14518_v41 = vld [vmem:[#allocation7 + $0x35c] ss:$124 sps:$4 sm:$0xff]  }
 0x402   : > { %v10762_v37 = vsel %vm9995_vm2, %v10759_v25, %v10761_v12  ;;  %v14521_v12 = vld [vmem:[#allocation7 + $0x12dc] ss:$124 sps:$4 sm:$0xff]  }
 0x403   : > { %v16584_v60 = vadd.f32 %v10762_v37, %v10727_v6  ;;  %8973 = vmatpush2.bf16.msra.mxu0 %v14480_v61  ;;  %v14516_v18 = vld [vmem:[#allocation7 + $0x358] ss:$124 sps:$4 sm:$0xff]   ;;  %v14524_v37 = vld [vmem:[#allocation7 + $0x264] ss:$124 sps:$4 sm:$0xff]  }
 0x404   : > { %9066 = vmatpush2.bf16.msra.mxu1 %v14483_v22  ;;  %8974 = vmatprep.subr.bf16.mxu0 %v14488_v56  ;;  %v14519_v56 = vld [vmem:[#allocation7 + $0x12d8] ss:$124 sps:$4 sm:$0xff]  }
 0x405   : > { %9067 = vmatprep.subr.bf16.mxu1 %v14491_v39 }
 0x407   : > { %8975 = vmatpush2.bf16.msra.mxu0 %v14486_v40  ;;  %v14527_v40 = vld [vmem:[#allocation7 + $0x11e4] ss:$124 sps:$4 sm:$0xff]  }
 0x408   : > { %9068 = vmatpush2.bf16.msra.mxu1 %v14489_v7  ;;  %9130 = vmatprep.subr.bf16.mxu0 %v14494_v44 }
 0x409   : > { %9223 = vmatprep.subr.bf16.mxu1 %v14497_v9 }
 0x40a   : > { %v8420_v5 = vpop.f32.mrf.mxu0  ;;  %8977 = vmatmul.mubr.bf16.vlgmr.msra.gmra.mxu0 %v16457_v34  ;;  %v14504_v34 = vld [vmem:[#allocation7 + $0x548] ss:$124 sps:$4 sm:$0xff]  }
 0x40b   : > { %v8513_v25 = vpop.f32.mrf.mxu1  ;;  %9070 = vmatmul.mubr.bf16.vlgmr.msra.gmra.mxu1 %v16461_v13  ;;  %9131 = vmatpush1.bf16.msra.mxu0 %v14492_v29  ;;  %v14507_v13 = vld [vmem:[#allocation7 + $0x14c8] ss:$124 sps:$4 sm:$0xff]   ;;  %v14522_v29 = vld [vmem:[#allocation7 + $0x260] ss:$124 sps:$4 sm:$0xff]  }
 0x40c   : > { %9224 = vmatpush1.bf16.msra.mxu1 %v14495_v53  ;;  %v8422_v58 = vpop.f32.mrf.mxu0  ;;  %9132 = vmatprep.subr.bf16.mxu0 %v14500_v15  ;;  %v14525_v53 = vld [vmem:[#allocation7 + $0x11e0] ss:$124 sps:$4 sm:$0xff]   ;;  %v14530_v25 = vld [vmem:[#allocation7 + $0x16c] ss:$124 sps:$4 sm:$0xff]  }
 0x40d   : > { %v8515_v31 = vpop.f32.mrf.mxu1  ;;  %9225 = vmatprep.subr.bf16.mxu1 %v14503_v38  ;;  %8986 = vmatprep.mubr.bf16.mxu0 %v16465_v4 }
 0x40e   : > { %9079 = vmatprep.mubr.bf16.mxu1 %v16469_v3  ;;  %v8424_v11 = vpop.f32.mrf.mxu0  ;;  %v14510_v3 = vld [vmem:[#allocation7 + $0x450] ss:$124 sps:$4 sm:$0xff]  }
 0x40f   : > { %v8517_v35 = vpop.f32.mrf.mxu1  ;;  %9133 = vmatpush1.bf16.msra.mxu0 %v14498_v26  ;;  %v14533_v26 = vld [vmem:[#allocation7 + $0x10ec] ss:$124 sps:$4 sm:$0xff]  }
 0x410   : > { %9226 = vmatpush1.bf16.msra.mxu1 %v14501_v62  ;;  %v8426_v23 = vpop.f32.mrf.mxu0  ;;  %9134 = vmatprep.subr.bf16.mxu0 %v14506_v2  ;;  %v14531_v11 = vld [vmem:[#allocation7 + $0x10e8] ss:$124 sps:$4 sm:$0xff]  }
 0x411   : > { %v8519_v28 = vpop.f32.mrf.mxu1  ;;  %9227 = vmatprep.subr.bf16.mxu1 %v14509_v57  ;;  %v14528_v57 = vld [vmem:[#allocation7 + $0x168] ss:$124 sps:$4 sm:$0xff]  }
 0x412   : > { %v8430_v50 = vpop.f32.mrf.mxu0  ;;  %8987 = vmatmul.mubr.bf16.gmra.mxu0 %v16473_v30  ;;  %v14536_v28 = vld [vmem:[#allocation7 + $0x74] ss:$124 sps:$4 sm:$0xff]  }
 0x413   : > { %v8523_v17 = vpop.f32.mrf.mxu1  ;;  %9080 = vmatmul.mubr.bf16.gmra.mxu1 %v16477_v49  ;;  %9135 = vmatpush1.bf16.msra.mxu0 %v14504_v34 }
 0x414   : > { %v8524_v4 = vadd.f32 %v8523_v17, %v8430_v50  ;;  %9228 = vmatpush1.bf16.msra.mxu1 %v14507_v13  ;;  %v8432_v55 = vpop.f32.mrf.mxu0  ;;  %9136 = vmatprep.subr.bf16.mxu0 %v14512_v21 }
 0x415   : > { %v8525_v52 = vpop.f32.mrf.mxu1  ;;  %9229 = vmatprep.subr.bf16.mxu1 %v14515_v0  ;;  %8996 = vmatprep.mubr.bf16.mxu0 %v16481_v24 }
 0x416   : > { %9560 = vst [vmem:[#allocation2 + $0x428] sm:$0xff] %v8524_v4  ;;  %v8526_v61 = vadd.f32 %v8525_v52, %v8432_v55  ;;  %9089 = vmatprep.mubr.bf16.mxu1 %v16485_v32  ;;  %v8434_v30 = vpop.f32.mrf.mxu0  ;;  %v14534_v55 = vld [vmem:[#allocation7 + $0x70] ss:$124 sps:$4 sm:$0xff]  }
 0x417   : > { %v8527_v22 = vpop.f32.mrf.mxu1  ;;  %9137 = vmatpush1.bf16.msra.mxu0 %v14510_v3  ;;  %v14537_v52 = vld [vmem:[#allocation7 + $0xff0] ss:$124 sps:$4 sm:$0xff]  }
 0x418   : > { %9561 = vst [vmem:[#allocation2 + $0x348] sm:$0xff] %v8526_v61  ;;  %v8528_v49 = vadd.f32 %v8527_v22, %v8434_v30  ;;  %9230 = vmatpush1.bf16.msra.mxu1 %v14513_v19  ;;  %v8436_v39 = vpop.f32.mrf.mxu0  ;;  %9138 = vmatprep.subr.bf16.mxu0 %v14518_v41  ;;  %v14545_v61 = vld [vmem:[#allocation7 + $0x1e7c] ss:$124 sps:$4 sm:$0xff]  }
 0x419   : > { %v8529_v6 = vpop.f32.mrf.mxu1  ;;  %9231 = vmatprep.subr.bf16.mxu1 %v14521_v12  ;;  %v14542_v12 = vld [vmem:[#allocation7 + $0xefc] ss:$124 sps:$4 sm:$0xff]  }
 0x41a   : > { %v8530_v7 = vadd.f32 %v8529_v6, %v8436_v39  ;;  %v8440_v44 = vpop.f32.mrf.mxu0  ;;  %8997 = vmatmul.mubr.bf16.gmra.mxu0 %v16489_v51  ;;  %v10798_v24 = vrot.slane %v8528_v49, 4  ;;  %v14540_v6 = vld [vmem:[#allocation7 + $0xef8] ss:$124 sps:$4 sm:$0xff]  }
 0x41b   : > { %v8533_v9 = vpop.f32.mrf.mxu1  ;;  %9090 = vmatmul.mubr.bf16.gmra.mxu1 %v16493_v42  ;;  %9139 = vmatpush1.bf16.msra.mxu0 %v14516_v18 }
 0x41c   : > { %9592 = vst [vmem:[#allocation2 + $0x1b8] sm:$0xff] %v8530_v7  ;;  %v8534_v32 = vadd.f32 %v8533_v9, %v8440_v44  ;;  %9232 = vmatpush1.bf16.msra.mxu1 %v14519_v56  ;;  %v8442_v38 = vpop.f32.mrf.mxu0  ;;  %9140 = vmatprep.subr.bf16.mxu0 %v14524_v37  ;;  %v14543_v37 = vld [vmem:[#allocation7 + $0x1e78] ss:$124 sps:$4 sm:$0xff]   ;;  %v14551_v9 = vld [vmem:[#allocation7 + $0x1d84] ss:$124 sps:$4 sm:$0xff]  }
 0x41d   : > { %v10779_v15 = vld [vmem:[#allocation2 + $0x428] sm:$0xf0]  ;;  %v8535_v5 = vpop.f32.mrf.mxu1  ;;  %9233 = vmatprep.subr.bf16.mxu1 %v14527_v40  ;;  %9006 = vmatprep.mubr.bf16.mxu0 %v16497_v47  ;;  %v14539_v47 = vld [vmem:[#allocation7 + $0xff4] ss:$124 sps:$4 sm:$0xff]  }
 0x41e   : > { %v10797_v62 = vrot.slane %v10779_v15, 4  ;;  %v10800_v58 = vrot.slane %v8534_v32, 4  ;;  %v8536_v31 = vadd.f32 %v8535_v5, %v8442_v38  ;;  %9099 = vmatprep.mubr.bf16.mxu1 %v16501_v36  ;;  %v8444_v51 = vpop.f32.mrf.mxu0 }
 0x41f   : > { %v8537_v42 = vpop.f32.mrf.mxu1  ;;  %9141 = vmatpush1.bf16.msra.mxu0 %v14522_v29 }
 0x420   : > { %9623 = vst [vmem:[#allocation2 + $0x8a0] sm:$0xff] %v8536_v31  ;;  %v8538_v2 = vadd.f32 %v8537_v42, %v8444_v51  ;;  %9234 = vmatpush1.bf16.msra.mxu1 %v14525_v53  ;;  %v10799_v35 = vsel %vm10047_vm3, %v10797_v62, %v10798_v24  ;;  %v10801_v34 = vsel %vm10047_vm3, %v10798_v24, %v10800_v58  ;;  %v8446_v13 = vpop.f32.mrf.mxu0 }
 0x421   : > { %v8539_v23 = vpop.f32.mrf.mxu1  ;;  %9142 = vmatprep.subr.bf16.mxu0 %v14530_v25  ;;  %9235 = vmatprep.subr.bf16.mxu1 %v14533_v26  ;;  %v16601_v36 = vadd.f32 %v10799_v35, %v16518_v46  ;;  %v16604_v21 = vadd.f32 %v10801_v34, %v16521_v14  ;;  %v14546_v25 = vld [vmem:[#allocation7 + $0xe00] ss:$124 sps:$4 sm:$0xff]  }
 0x422   : > { %v10802_v0 = vrot.slane %v8538_v2, 4  ;;  %v8540_v50 = vadd.f32 %v8539_v23, %v8446_v13  ;;  %v8450_v17 = vpop.f32.mrf.mxu0  ;;  %9007 = vmatmul.mubr.bf16.gmra.mxu0 %v16510_v43  ;;  %v14549_v26 = vld [vmem:[#allocation7 + $0x1d80] ss:$124 sps:$4 sm:$0xff]   ;;  %v14552_v13 = vld [vmem:[#allocation7 + $0xd08] ss:$124 sps:$4 sm:$0xff]  }
 0x423   : > { %v8543_v4 = vpop.f32.mrf.mxu1  ;;  %9100 = vmatmul.mubr.bf16.gmra.mxu1 %v16514_v54  ;;  %9143 = vmatpush1.bf16.msra.mxu0 %v14528_v57  ;;  %v14555_v23 = vld [vmem:[#allocation7 + $0x1c88] ss:$124 sps:$4 sm:$0xff]  }
 0x424   : > { %v10803_v3 = vsel %vm10047_vm3, %v10800_v58, %v10802_v0  ;;  %v8544_v19 = vadd.f32 %v8543_v4, %v8450_v17  ;;  %9236 = vmatpush1.bf16.msra.mxu1 %v14531_v11  ;;  %v8452_v41 = vpop.f32.mrf.mxu0  ;;  %9144 = vmatprep.subr.bf16.mxu0 %v14536_v28  ;;  %v10853_v30 = vrot.slane %v8540_v50, 5 }
 0x425   : > { %v10824_v46 = vadd.f32 %v10803_v3, %v16533_v45  ;;  %v8545_v14 = vpop.f32.mrf.mxu1  ;;  %9237 = vmatprep.subr.bf16.mxu1 %v14539_v47  ;;  %9016 = vmatprep.mubr.bf16.mxu0 %v16526_v10 }
 0x426   : > { %v10804_v22 = vrot.slane %v8544_v19, 4  ;;  %v16610_v43 = vadd.f32 %v8545_v14, %v8452_v41  ;;  %9109 = vmatprep.mubr.bf16.mxu1 %v16530_v16  ;;  %v8454_v54 = vpop.f32.mrf.mxu0  ;;  %v14548_v16 = vld [vmem:[#allocation7 + $0xe04] ss:$124 sps:$4 sm:$0xff]   ;;  %v14561_v41 = vld [vmem:[#allocation7 + $0x1b90] ss:$124 sps:$4 sm:$0xff]  }
 0x427   : > { %v8547_v49 = vpop.f32.mrf.mxu1  ;;  %v16614_v18 = vld [vmem:[#allocation2 + $0x8a0] sm:$0xff]  ;;  %9145 = vmatpush1.bf16.msra.mxu0 %v14534_v55  ;;  %v16650_v55 = vld [vmem:[%s15287_s16 + $0xa8] ss:$16 sps:$4 sm:$0xff]  }
 0x428   : > { %v10805_v45 = vsel %vm10047_vm3, %v10802_v0, %v10804_v22  ;;  %v10855_v56 = vrot.slane %v16610_v43, 5  ;;  %v8548_v39 = vadd.f32 %v8547_v49, %v8454_v54  ;;  %9238 = vmatpush1.bf16.msra.mxu1 %v14537_v52  ;;  %v10851_v40 = vrot.slane %v16614_v18, 5  ;;  %v8456_v10 = vpop.f32.mrf.mxu0  ;;  %9146 = vmatprep.subr.bf16.mxu0 %v14542_v12  ;;  %v14563_v0 = vld [vmem:[#allocation7 + $0x1b94] ss:$124 sps:$4 sm:$0xff]   ;;  %v14569_v54 = vld [vmem:[#allocation7 + $0x1a9c] ss:$124 sps:$4 sm:$0xff]  }
 0x429   : > { %v10825_v7 = vadd.f32 %v10805_v45, %v16538_v1  ;;  %v8549_v44 = vpop.f32.mrf.mxu1  ;;  %9239 = vmatprep.subr.bf16.mxu1 %v14545_v61  ;;  %v16646_v19 = vld [vmem:[%s15287_s16 + $0xa0] ss:$16 sps:$4 sm:$0xff]  }
 0x42a   : > { %v10856_v24 = vsel %vm10099_vm4, %v10853_v30, %v10855_v56  ;;  %v10806_v32 = vrot.slane %v8548_v39, 4  ;;  %v8550_v29 = vadd.f32 %v8549_v44, %v8456_v10  ;;  %v8460_v15 = vpop.f32.mrf.mxu0  ;;  %9017 = vmatmul.mubr.bf16.gmra.mxu0 %v16541_v63  ;;  %v10854_v1 = vsel %vm10099_vm4, %v10851_v40, %v10853_v30  ;;  %v14554_v63 = vld [vmem:[#allocation7 + $0xd0c] ss:$124 sps:$4 sm:$0xff]  }
 0x42b   : > { %v16623_v53 = vadd.f32 %v10856_v24, %v10825_v7  ;;  %v8553_v38 = vpop.f32.mrf.mxu1  ;;  %9110 = vmatmul.mubr.bf16.gmra.mxu1 %v16545_v8  ;;  %9147 = vmatpush2.bf16.msra.mxu0 %v14540_v6  ;;  %v16630_v62 = vadd.f32 %v10854_v1, %v10824_v46  ;;  %v14557_v8 = vld [vmem:[#allocation7 + $0x1c8c] ss:$124 sps:$4 sm:$0xff]   ;;  %v16662_v6 = vld [vmem:[%s15287_s16 + $0x4] ss:$16 sps:$4 sm:$0xff]  }
 0x42c   : > { %9716 = vst [vmem:[#allocation2 + $0x1f8] sm:$0xff] %v8550_v29  ;;  %v8554_v5 = vadd.f32 %v8553_v38, %v8460_v15  ;;  %9240 = vmatpush2.bf16.msra.mxu1 %v14543_v37  ;;  %v10807_v58 = vsel %vm10047_vm3, %v10804_v22, %v10806_v32  ;;  %v8462_v31 = vpop.f32.mrf.mxu0  ;;  %9148 = vmatprep.subr.bf16.mxu0 %v14548_v16  ;;  %v14566_v22 = vld [vmem:[#allocation7 + $0xb1c] ss:$124 sps:$4 sm:$0xff]   ;;  %v14572_v29 = vld [vmem:[#allocation7 + $0xa24] ss:$124 sps:$4 sm:$0xff]  }
 0x42d   : > { %v8555_v51 = vpop.f32.mrf.mxu1  ;;  %9241 = vmatprep.subr.bf16.mxu1 %v14551_v9  ;;  %v10826_v42 = vadd.f32 %v10807_v58, %v16559_v20  ;;  %9026 = vmatprep.mubr.bf16.mxu0 %v16551_v33  ;;  %v14560_v33 = vld [vmem:[#allocation7 + $0xc14] ss:$124 sps:$4 sm:$0xff]   ;;  %v16666_v37 = vld [vmem:[%s15287_s16 + $0xc] ss:$16 sps:$4 sm:$0xff]   ;;  %v14575_v15 = vld [vmem:[#allocation7 + $0x19a4] ss:$124 sps:$4 sm:$0xff]  }
 0x42e   : > { %v10808_v2 = vrot.slane %v8554_v5, 4  ;;  %v8556_v57 = vadd.f32 %v8555_v51, %v8462_v31  ;;  %9119 = vmatprep.mubr.bf16.mxu1 %v16555_v27  ;;  %v8464_v11 = vpop.f32.mrf.mxu0  ;;  %v14564_v9 = vld [vmem:[#allocation7 + $0xb18] ss:$124 sps:$4 sm:$0xff]   ;;  %v14570_v5 = vld [vmem:[#allocation7 + $0xa20] ss:$124 sps:$4 sm:$0xff]  }
 0x42f   : > { %v8557_v35 = vpop.f32.mrf.mxu1  ;;  %9149 = vmatpush2.bf16.msra.mxu0 %v14546_v25  ;;  %v14567_v24 = vld [vmem:[#allocation7 + $0x1a98] ss:$124 sps:$4 sm:$0xff]   ;;  %v14573_v25 = vld [vmem:[#allocation7 + $0x19a0] ss:$124 sps:$4 sm:$0xff]   ;;  %v14578_v58 = vld [vmem:[#allocation7 + $0x92c] ss:$124 sps:$4 sm:$0xff]  }
 0x430   : > { %9747 = vst [vmem:[#allocation2 + $0x9b8] sm:$0xff] %v8556_v57  ;;  %v16636_v34 = vadd.f32 %v8557_v35, %v8464_v11  ;;  %9242 = vmatpush2.bf16.msra.mxu1 %v14549_v26  ;;  %v10809_v28 = vsel %vm10047_vm3, %v10806_v32, %v10808_v2  ;;  %v8466_v20 = vpop.f32.mrf.mxu0  ;;  %9150 = vmatprep.subr.bf16.mxu0 %v14554_v63  ;;  %v14581_v31 = vld [vmem:[#allocation7 + $0x18ac] ss:$124 sps:$4 sm:$0xff]   ;;  %v14584_v11 = vld [vmem:[#allocation7 + $0x834] ss:$124 sps:$4 sm:$0xff]  }
 0x431   : > { %v8559_v47 = vpop.f32.mrf.mxu1  ;;  %9243 = vmatprep.subr.bf16.mxu1 %v14557_v8  ;;  %v16640_v27 = vadd.f32 %v10809_v28, %v16571_v59  ;;  %v14558_v59 = vld [vmem:[#allocation7 + $0xc10] ss:$124 sps:$4 sm:$0xff]  }
 0x432   : > { %v10810_v50 = vrot.slane %v16636_v34, 4  ;;  %v16643_v17 = vadd.f32 %v8559_v47, %v8466_v20  ;;  %v8470_v4 = vpop.f32.mrf.mxu0  ;;  %9027 = vmatmul.mubr.bf16.gmra.mxu0 %v16646_v19  ;;  %v14587_v35 = vld [vmem:[#allocation7 + $0x17b4] ss:$124 sps:$4 sm:$0xff]   ;;  %v14588_v34 = vld [vmem:[#allocation7 + $0xf00] ss:$124 sps:$4 sm:$0xff]  }
 0x433   : > { %v8563_v3 = vpop.f32.mrf.mxu1  ;;  %9120 = vmatmul.mubr.bf16.gmra.mxu1 %v16650_v55  ;;  %v16653_v52 = vld [vmem:[#allocation2 + $0x1f8] sm:$0xff]  ;;  %9151 = vmatpush2.bf16.msra.mxu0 %v14552_v13  ;;  %v14582_v20 = vld [vmem:[#allocation7 + $0x830] ss:$124 sps:$4 sm:$0xff]  }
 0x434   : > { %v8564_v46 = vadd.f32 %v8563_v3, %v8470_v4  ;;  %9244 = vmatpush2.bf16.msra.mxu1 %v14555_v23  ;;  %v10857_v14 = vrot.slane %v16653_v52, 5  ;;  %v10811_v12 = vsel %vm10047_vm3, %v10808_v2, %v10810_v50  ;;  %v8472_v61 = vpop.f32.mrf.mxu0  ;;  %9152 = vmatprep.subr.bf16.mxu0 %v14560_v33  ;;  %v10861_v45 = vrot.slane %v16643_v17, 5  ;;  %v14579_v2 = vld [vmem:[#allocation7 + $0x18a8] ss:$124 sps:$4 sm:$0xff]   ;;  %v14585_v47 = vld [vmem:[#allocation7 + $0x17b0] ss:$124 sps:$4 sm:$0xff]  }
 0x435   : > { %v8565_v30 = vpop.f32.mrf.mxu1  ;;  %9245 = vmatprep.subr.bf16.mxu1 %v14563_v0  ;;  %v10828_v49 = vadd.f32 %v10811_v12, %v16579_v48  ;;  %9162 = vmatprep.mubr.bf16.mxu0 %v16662_v6  ;;  %v14589_v33 = vld [vmem:[#allocation7 + $0x1e80] ss:$124 sps:$4 sm:$0xff]   ;;  %v14593_v17 = vld [vmem:[#allocation7 + $0x1d88] ss:$124 sps:$4 sm:$0xff]  }
 0x436   : > { %9808 = vst [vmem:[#allocation2 + $0x518] sm:$0xff] %v8564_v46  ;;  %v8566_v39 = vadd.f32 %v8565_v30, %v8472_v61  ;;  %9255 = vmatprep.mubr.bf16.mxu1 %v16666_v37  ;;  %v10858_v7 = vsel %vm10099_vm4, %v10855_v56, %v10857_v14  ;;  %v8474_v10 = vpop.f32.mrf.mxu0  ;;  %v14591_v0 = vld [vmem:[#allocation7 + $0x16c0] ss:$124 sps:$4 sm:$0xff]  }
 0x437   : > { %v8567_v48 = vpop.f32.mrf.mxu1  ;;  %v16674_v44 = vld [vmem:[#allocation2 + $0x9b8] sm:$0xff]  ;;  %v16676_v16 = vadd.f32 %v10858_v7, %v10826_v42  ;;  %9153 = vmatpush2.bf16.msra.mxu0 %v14558_v59  ;;  %v14576_v42 = vld [vmem:[#allocation7 + $0x928] ss:$124 sps:$4 sm:$0xff]   ;;  %v16692_v46 = vld [vmem:[%s15287_s16] ss:$16 sps:$4 sm:$0xff]  }
 0x438   : > { %9809 = vst [vmem:[#allocation2 + $0xf8] sm:$0xff] %v8566_v39  ;;  %9246 = vmatpush2.bf16.msra.mxu1 %v14561_v41  ;;  %v10859_v32 = vrot.slane %v16674_v44, 5  ;;  %9154 = vmatprep.subr.bf16.mxu0 %v14566_v22  ;;  %v8476_v43 = vpop.f32.mrf.mxu0  ;;  %v16696_v59 = vld [vmem:[%s15287_s16 + $0x8] ss:$16 sps:$4 sm:$0xff]   ;;  %v16700_v41 = vld [vmem:[%s15287_s16 + $0x24] ss:$16 sps:$4 sm:$0xff]  }
 0x439   : > { %9247 = vmatprep.subr.bf16.mxu1 %v14569_v54  ;;  %v8569_v38 = vpop.f32.mrf.mxu1  ;;  %v16704_v12 = vld [vmem:[%s15287_s16 + $0x2c] ss:$16 sps:$4 sm:$0xff]   ;;  %v14594_v22 = vld [vmem:[#allocation7 + $0x648] ss:$124 sps:$4 sm:$0xff]  }
 0x43a   : > { %v10862_v56 = vsel %vm10099_vm4, %v10859_v32, %v10861_v45  ;;  %v14595_v54 = vld [vmem:[#allocation7 + $0x15c8] ss:$124 sps:$4 sm:$0xff]  }
 0x43b   : > { %v16682_v1 = vadd.f32 %v10862_v56, %v10828_v49  ;;  %9155 = vmatpush2.bf16.msra.mxu0 %v14564_v9  ;;  %v14596_v49 = vld [vmem:[#allocation7 + $0xd10] ss:$124 sps:$4 sm:$0xff]  }
 0x43c   : > { %9248 = vmatpush2.bf16.msra.mxu1 %v14567_v24  ;;  %9156 = vmatprep.subr.bf16.mxu0 %v14572_v29  ;;  %v14598_v9 = vld [vmem:[#allocation7 + $0x550] ss:$124 sps:$4 sm:$0xff]   ;;  %v14600_v29 = vld [vmem:[#allocation7 + $0xc18] ss:$124 sps:$4 sm:$0xff]  }
 0x43d   : > { %v10787_v26 = vld [vmem:[#allocation2 + $0x518] sm:$0xf]  ;;  %9249 = vmatprep.subr.bf16.mxu1 %v14575_v15  ;;  %v14599_v24 = vld [vmem:[#allocation7 + $0x14d0] ss:$124 sps:$4 sm:$0xff]  }
 0x43e   : > { %v10812_v51 = vrot.slane %v10787_v26, 4  ;;  %v14601_v15 = vld [vmem:[#allocation7 + $0x1b98] ss:$124 sps:$4 sm:$0xff]   ;;  %v16708_v56 = vld [vmem:[%s15287_s16 + $0x20] ss:$16 sps:$4 sm:$0xff]  }
 0x43f   : > { %v10838_v63 = vld [vmem:[#allocation2 + $0xf8] sm:$0x1f]  ;;  %9157 = vmatpush2.bf16.msra.mxu0 %v14570_v5 }
 0x440   : > { %v10863_v8 = vrot.slane %v10838_v63, 5  ;;  %9250 = vmatpush2.bf16.msra.mxu1 %v14573_v25  ;;  %v10813_v57 = vsel %vm10047_vm3, %v10810_v50, %v10812_v51  ;;  %9158 = vmatprep.subr.bf16.mxu0 %v14578_v58  ;;  %v14592_v50 = vld [vmem:[#allocation7 + $0xe08] ss:$124 sps:$4 sm:$0xff]   ;;  %v16720_v58 = vld [vmem:[%s15287_s16 + $0x4c] ss:$16 sps:$4 sm:$0xff]  }
 0x441   : > { %9251 = vmatprep.subr.bf16.mxu1 %v14581_v31  ;;  %v10829_v13 = vadd.f32 %v10813_v57, %v16584_v60  ;;  %v14590_v60 = vld [vmem:[#allocation7 + $0x740] ss:$124 sps:$4 sm:$0xff]   ;;  %v16712_v5 = vld [vmem:[%s15287_s16 + $0x28] ss:$16 sps:$4 sm:$0xff]   ;;  %v16716_v26 = vld [vmem:[%s15287_s16 + $0x44] ss:$16 sps:$4 sm:$0xff]  }
 0x442   : > { %v10864_v23 = vsel %vm10099_vm4, %v10861_v45, %v10863_v8  ;;  %v14597_v45 = vld [vmem:[#allocation7 + $0x1c90] ss:$124 sps:$4 sm:$0xff]   ;;  %v14602_v63 = vld [vmem:[#allocation7 + $0x458] ss:$124 sps:$4 sm:$0xff]   ;;  %v14605_v57 = vld [vmem:[#allocation7 + $0x1aa0] ss:$124 sps:$4 sm:$0xff]  }
 0x443   : > { %v16689_v28 = vadd.f32 %v10864_v23, %v10829_v13  ;;  %9159 = vmatpush2.bf16.msra.mxu0 %v14576_v42  ;;  %v14603_v8 = vld [vmem:[#allocation7 + $0x13d8] ss:$124 sps:$4 sm:$0xff]  }
 0x444   : > { %9252 = vmatpush2.bf16.msra.mxu1 %v14579_v2  ;;  %9160 = vmatprep.subr.bf16.mxu0 %v14584_v11  ;;  %v14604_v2 = vld [vmem:[#allocation7 + $0xb20] ss:$124 sps:$4 sm:$0xff]  }
 0x445   : > { %9253 = vmatprep.subr.bf16.mxu1 %v14587_v35 }
 0x447   : > { %9161 = vmatpush2.bf16.msra.mxu0 %v14582_v20 }
 0x448   : > { %9254 = vmatpush2.bf16.msra.mxu1 %v14585_v47  ;;  %12834 = vmatprep.subr.bf16.mxu0 %v14588_v34  ;;  %v14606_v47 = vld [vmem:[#allocation7 + $0x360] ss:$124 sps:$4 sm:$0xff]  }
 0x449   : > { %12886 = vmatprep.subr.bf16.mxu1 %v14589_v33  ;;  %v14607_v34 = vld [vmem:[#allocation7 + $0x12e0] ss:$124 sps:$4 sm:$0xff]  }
 0x44a   : > { %v8606_v4 = vpop.f32.mrf.mxu0  ;;  %9163 = vmatmul.mubr.bf16.vlgmr.msra.gmra.mxu0 %v16692_v46 }
 0x44b   : > { %v8699_v3 = vpop.f32.mrf.mxu1  ;;  %9256 = vmatmul.mubr.bf16.vlgmr.msra.gmra.mxu1 %v16696_v59  ;;  %9172 = vmatprep.mubr.bf16.mxu0 %v16700_v41  ;;  %v16724_v4 = vld [vmem:[%s15287_s16 + $0x40] ss:$16 sps:$4 sm:$0xff]  }
 0x44c   : > { %9265 = vmatprep.mubr.bf16.mxu1 %v16704_v12  ;;  %v8608_v61 = vpop.f32.mrf.mxu0  ;;  %12835 = vmatpush3.bf16.msra.mxu0 %v14590_v60  ;;  %v14608_v60 = vld [vmem:[#allocation7 + $0xa28] ss:$124 sps:$4 sm:$0xff]  }
 0x44d   : > { %v8701_v30 = vpop.f32.mrf.mxu1  ;;  %12887 = vmatpush3.bf16.msra.mxu1 %v14591_v0  ;;  %12836 = vmatprep.subr.bf16.mxu0 %v14592_v50  ;;  %v14609_v0 = vld [vmem:[#allocation7 + $0x19a8] ss:$124 sps:$4 sm:$0xff]  }
 0x44e   : > { %12888 = vmatprep.subr.bf16.mxu1 %v14593_v17  ;;  %v8610_v39 = vpop.f32.mrf.mxu0  ;;  %v16728_v3 = vld [vmem:[%s15287_s16 + $0x48] ss:$16 sps:$4 sm:$0xff]   ;;  %v16732_v30 = vld [vmem:[%s15287_s16 + $0x64] ss:$16 sps:$4 sm:$0xff]  }
 0x44f   : > { %v8703_v7 = vpop.f32.mrf.mxu1  ;;  %v14611_v39 = vld [vmem:[#allocation7 + $0x11e8] ss:$124 sps:$4 sm:$0xff]  }
 0x450   : > { %v8612_v10 = vpop.f32.mrf.mxu0  ;;  %12837 = vmatpush3.bf16.msra.mxu0 %v14594_v22  ;;  %v16736_v22 = vld [vmem:[%s15287_s16 + $0x6c] ss:$16 sps:$4 sm:$0xff]  }
 0x451   : > { %v8705_v48 = vpop.f32.mrf.mxu1  ;;  %12889 = vmatpush3.bf16.msra.mxu1 %v14595_v54  ;;  %12838 = vmatprep.subr.bf16.mxu0 %v14596_v49  ;;  %v14612_v10 = vld [vmem:[#allocation7 + $0x930] ss:$124 sps:$4 sm:$0xff]  }
 0x452   : > { %12890 = vmatprep.subr.bf16.mxu1 %v14597_v45  ;;  %v8616_v43 = vpop.f32.mrf.mxu0  ;;  %9173 = vmatmul.mubr.bf16.gmra.mxu0 %v16708_v56  ;;  %v14610_v45 = vld [vmem:[#allocation7 + $0x268] ss:$124 sps:$4 sm:$0xff]   ;;  %v14613_v48 = vld [vmem:[#allocation7 + $0x18b0] ss:$124 sps:$4 sm:$0xff]  }
 0x453   : > { %v8709_v38 = vpop.f32.mrf.mxu1  ;;  %9266 = vmatmul.mubr.bf16.gmra.mxu1 %v16712_v5  ;;  %9182 = vmatprep.mubr.bf16.mxu0 %v16716_v26 }
 0x454   : > { %v8710_v25 = vadd.f32 %v8709_v38, %v8616_v43  ;;  %9275 = vmatprep.mubr.bf16.mxu1 %v16720_v58  ;;  %v8618_v31 = vpop.f32.mrf.mxu0  ;;  %12839 = vmatpush3.bf16.msra.mxu0 %v14598_v9  ;;  %v14614_v38 = vld [vmem:[#allocation7 + $0x170] ss:$124 sps:$4 sm:$0xff]  }
 0x455   : > { %v8711_v51 = vpop.f32.mrf.mxu1  ;;  %12891 = vmatpush3.bf16.msra.mxu1 %v14599_v24  ;;  %12840 = vmatprep.subr.bf16.mxu0 %v14600_v29 }
 0x456   : > { %9562 = vst [vmem:[#allocation2 + $0x258] sm:$0xff] %v8710_v25  ;;  %v8712_v42 = vadd.f32 %v8711_v51, %v8618_v31  ;;  %12892 = vmatprep.subr.bf16.mxu1 %v14601_v15  ;;  %v8620_v11 = vpop.f32.mrf.mxu0  ;;  %v14615_v25 = vld [vmem:[#allocation7 + $0x10f0] ss:$124 sps:$4 sm:$0xff]   ;;  %v14616_v51 = vld [vmem:[#allocation7 + $0x838] ss:$124 sps:$4 sm:$0xff]  }
 0x457   : > { %v8713_v35 = vpop.f32.mrf.mxu1 }
 0x458   : > { %9563 = vst [vmem:[#allocation2 + $0x930] sm:$0xff] %v8712_v42  ;;  %v8714_v13 = vadd.f32 %v8713_v35, %v8620_v11  ;;  %v8622_v23 = vpop.f32.mrf.mxu0  ;;  %12841 = vmatpush3.bf16.msra.mxu0 %v14602_v63  ;;  %v14617_v63 = vld [vmem:[#allocation7 + $0x17b8] ss:$124 sps:$4 sm:$0xff]  }
 0x459   : > { %v8715_v20 = vpop.f32.mrf.mxu1  ;;  %12893 = vmatpush3.bf16.msra.mxu1 %v14603_v8  ;;  %12842 = vmatprep.subr.bf16.mxu0 %v14604_v2  ;;  %v16740_v2 = vld [vmem:[%s15287_s16 + $0x60] ss:$16 sps:$4 sm:$0xff]  }
 0x45a   : > { %9593 = vst [vmem:[#allocation2 + $0xb20] sm:$0xff] %v8714_v13  ;;  %v8716_v33 = vadd.f32 %v8715_v20, %v8622_v23  ;;  %12894 = vmatprep.subr.bf16.mxu1 %v14605_v57  ;;  %v8626_v50 = vpop.f32.mrf.mxu0  ;;  %9183 = vmatmul.mubr.bf16.gmra.mxu0 %v16724_v4  ;;  %v16744_v57 = vld [vmem:[%s15287_s16 + $0x68] ss:$16 sps:$4 sm:$0xff]   ;;  %v16750_v13 = vld [vmem:[%s15287_s16 + $0x84] ss:$16 sps:$4 sm:$0xff]  }
 0x45b   : > { %v8719_v17 = vpop.f32.mrf.mxu1  ;;  %9276 = vmatmul.mubr.bf16.gmra.mxu1 %v16728_v3  ;;  %9192 = vmatprep.mubr.bf16.mxu0 %v16732_v30  ;;  %v16754_v23 = vld [vmem:[%s15287_s16 + $0x8c] ss:$16 sps:$4 sm:$0xff]  }
 0x45c   : > { %9594 = vst [vmem:[#allocation2 + $0x630] sm:$0xff] %v8716_v33  ;;  %v8720_v61 = vadd.f32 %v8719_v17, %v8626_v50  ;;  %9285 = vmatprep.mubr.bf16.mxu1 %v16736_v22  ;;  %v8628_v54 = vpop.f32.mrf.mxu0  ;;  %12843 = vmatpush3.bf16.msra.mxu0 %v14606_v47  ;;  %v14619_v33 = vld [vmem:[#allocation7 + $0xff8] ss:$124 sps:$4 sm:$0xff]  }
 0x45d   : > { %v8721_v49 = vpop.f32.mrf.mxu1  ;;  %12895 = vmatpush3.bf16.msra.mxu1 %v14607_v34  ;;  %12844 = vmatprep.subr.bf16.mxu0 %v14608_v60  ;;  %v14618_v34 = vld [vmem:[#allocation7 + $0x78] ss:$124 sps:$4 sm:$0xff]  }
 0x45e   : > { %9624 = vst [vmem:[#allocation2 + $0xb40] sm:$0xff] %v8720_v61  ;;  %v8722_v7 = vadd.f32 %v8721_v49, %v8628_v54  ;;  %12896 = vmatprep.subr.bf16.mxu1 %v14609_v0  ;;  %v8630_v9 = vpop.f32.mrf.mxu0 }
 0x45f   : > { %v8723_v24 = vpop.f32.mrf.mxu1 }
 0x460   : > { %9625 = vst [vmem:[#allocation2 + $0x770] sm:$0xff] %v8722_v7  ;;  %v8724_v29 = vadd.f32 %v8723_v24, %v8630_v9  ;;  %v8632_v15 = vpop.f32.mrf.mxu0  ;;  %12845 = vmatpush3.bf16.msra.mxu0 %v14610_v45 }
 0x461   : > { %v8725_v43 = vpop.f32.mrf.mxu1  ;;  %12897 = vmatpush3.bf16.msra.mxu1 %v14611_v39  ;;  %12846 = vmatprep.subr.bf16.mxu0 %v14612_v10 }
 0x462   : > { %v8726_v31 = vadd.f32 %v8725_v43, %v8632_v15  ;;  %12898 = vmatprep.subr.bf16.mxu1 %v14613_v48  ;;  %v8636_v8 = vpop.f32.mrf.mxu0  ;;  %9193 = vmatmul.mubr.bf16.gmra.mxu0 %v16740_v2  ;;  %v10904_v11 = vrot.slane %v8724_v29, 6 }
 0x463   : > { %v8729_v42 = vpop.f32.mrf.mxu1  ;;  %9286 = vmatmul.mubr.bf16.gmra.mxu1 %v16744_v57  ;;  %9202 = vmatprep.mubr.bf16.mxu0 %v16750_v13 }
 0x464   : > { %v16747_v35 = vadd.f32 %v8729_v42, %v8636_v8  ;;  %9295 = vmatprep.mubr.bf16.mxu1 %v16754_v23  ;;  %v8638_v20 = vpop.f32.mrf.mxu0  ;;  %12847 = vmatpush3.bf16.msra.mxu0 %v14614_v38  ;;  %v10955_v0 = vrot.slane %v8726_v31, 7 }
 0x465   : > { %v8731_v47 = vpop.f32.mrf.mxu1  ;;  %12899 = vmatpush3.bf16.msra.mxu1 %v14615_v25  ;;  %v16757_v60 = vld [vmem:[#allocation2 + $0xb40] sm:$0xff]  ;;  %12848 = vmatprep.subr.bf16.mxu0 %v14616_v51 }
 0x466   : > { %v10906_v50 = vrot.slane %v16747_v35, 6  ;;  %v16760_v17 = vadd.f32 %v8731_v47, %v8638_v20  ;;  %12900 = vmatprep.subr.bf16.mxu1 %v14617_v63  ;;  %v10902_v61 = vrot.slane %v16757_v60, 6  ;;  %v8640_v54 = vpop.f32.mrf.mxu0  ;;  %v16775_v63 = vld [vmem:[%s15287_s16 + $0x80] ss:$16 sps:$4 sm:$0xff]   ;;  %v16788_v35 = vld [vmem:[%s15287_s16 + $0xa4] ss:$16 sps:$4 sm:$0xff]  }
 0x467   : > { %v8733_v49 = vpop.f32.mrf.mxu1  ;;  %v16763_v45 = vld [vmem:[#allocation2 + $0x770] sm:$0xff] }
 0x468   : > { %v10907_v39 = vsel %vm10151_vm5, %v10904_v11, %v10906_v50  ;;  %v10957_v7 = vrot.slane %v16760_v17, 7  ;;  %v8734_v10 = vadd.f32 %v8733_v49, %v8640_v54  ;;  %v8642_v48 = vpop.f32.mrf.mxu0  ;;  %12849 = vmatpush3.bf16.msra.mxu0 %v14618_v34  ;;  %v10905_v29 = vsel %vm10151_vm5, %v10902_v61, %v10904_v11 }
 0x469   : > { %v8735_v9 = vpop.f32.mrf.mxu1  ;;  %12901 = vmatpush3.bf16.msra.mxu1 %v14619_v33  ;;  %v10927_v24 = vadd.f32 %v10907_v39, %v16623_v53  ;;  %v10953_v15 = vrot.slane %v16763_v45, 7  ;;  %v10926_v25 = vadd.f32 %v10905_v29, %v16630_v62  ;;  %v16779_v53 = vld [vmem:[%s15287_s16 + $0x88] ss:$16 sps:$4 sm:$0xff]   ;;  %v16792_v62 = vld [vmem:[%s15287_s16 + $0xac] ss:$16 sps:$4 sm:$0xff]  }
 0x46a   : > { %9717 = vst [vmem:[#allocation2 + $0x900] sm:$0xff] %v8734_v10  ;;  %v8736_v43 = vadd.f32 %v8735_v9, %v8642_v48  ;;  %v10958_v38 = vsel %vm10203_vm6, %v10955_v0, %v10957_v7  ;;  %v8646_v31 = vpop.f32.mrf.mxu0  ;;  %9203 = vmatmul.mubr.bf16.gmra.mxu0 %v16775_v63 }
 0x46b   : > { %v8739_v51 = vpop.f32.mrf.mxu1  ;;  %9296 = vmatmul.mubr.bf16.gmra.mxu1 %v16779_v53  ;;  %v16782_v8 = vadd.f32 %v10958_v38, %v10927_v24  ;;  %v10956_v42 = vsel %vm10203_vm6, %v10953_v15, %v10955_v0  ;;  %9212 = vmatprep.mubr.bf16.mxu0 %v16788_v35 }
 0x46c   : > { %9718 = vst [vmem:[#allocation2 + $0x150] sm:$0xff] %v8736_v43  ;;  %v8740_v11 = vadd.f32 %v8739_v51, %v8646_v31  ;;  %9305 = vmatprep.mubr.bf16.mxu1 %v16792_v62  ;;  %v16795_v20 = vadd.f32 %v10956_v42, %v10926_v25  ;;  %v8648_v47 = vpop.f32.mrf.mxu0 }
 0x46d   : > { %v8741_v34 = vpop.f32.mrf.mxu1 }
 0x46e   : > { %9748 = vst [vmem:[#allocation2 + $0x7d8] sm:$0xff] %v8740_v11  ;;  %v8742_v33 = vadd.f32 %v8741_v34, %v8648_v47  ;;  %v8650_v17 = vpop.f32.mrf.mxu0 }
 0x46f   : > { %v8743_v54 = vpop.f32.mrf.mxu1 }
 0x470   : > { %9749 = vst [vmem:[#allocation2 + $0x980] sm:$0xff] %v8742_v33  ;;  %v8744_v0 = vadd.f32 %v8743_v54, %v8650_v17  ;;  %v8652_v49 = vpop.f32.mrf.mxu0 }
 0x471   : > { %v8745_v39 = vpop.f32.mrf.mxu1  ;;  %v16797_v10 = vld [vmem:[#allocation2 + $0x900] sm:$0xff] }
 0x472   : > { %v8746_v48 = vadd.f32 %v8745_v39, %v8652_v49  ;;  %v10908_v9 = vrot.slane %v16797_v10, 6  ;;  %v8656_v24 = vpop.f32.mrf.mxu0  ;;  %9213 = vmatmul.mubr.bf16.gmra.mxu0 %v16646_v19  ;;  %v10912_v38 = vrot.slane %v8744_v0, 6 }
 0x473   : > { %v8749_v29 = vpop.f32.mrf.mxu1  ;;  %9306 = vmatmul.mubr.bf16.gmra.mxu1 %v16650_v55  ;;  %v16802_v43 = vld [vmem:[#allocation2 + $0x150] sm:$0xff]  ;;  %9348 = vmatprep.mubr.bf16.mxu0 %v16662_v6 }
 0x474   : > { %9780 = vst [vmem:[#allocation2 + $0x790] sm:$0xff] %v8746_v48  ;;  %v8750_v25 = vadd.f32 %v8749_v29, %v8656_v24  ;;  %9429 = vmatprep.mubr.bf16.mxu1 %v16666_v37  ;;  %v10909_v31 = vsel %vm10151_vm5, %v10906_v50, %v10908_v9  ;;  %v10959_v51 = vrot.slane %v16802_v43, 7  ;;  %v8658_v42 = vpop.f32.mrf.mxu0 }
 0x475   : > { %v8751_v11 = vpop.f32.mrf.mxu1  ;;  %v16810_v47 = vld [vmem:[#allocation2 + $0x7d8] sm:$0xff]  ;;  %v10928_v34 = vadd.f32 %v10909_v31, %v16676_v16  ;;  %v10932_v31 = vld [vmem:[#allocation2 + $0x930] sm:$0x80] }
 0x476   : > { %9810 = vst [vmem:[#allocation2 + $0x958] sm:$0xff] %v8750_v25  ;;  %v8752_v33 = vadd.f32 %v8751_v11, %v8658_v42  ;;  %v10910_v17 = vrot.slane %v16810_v47, 6  ;;  %v10960_v6 = vsel %vm10203_vm6, %v10957_v7, %v10959_v51  ;;  %v8660_v37 = vpop.f32.mrf.mxu0  ;;  %v10933_v42 = vld [vmem:[#allocation2 + $0x630] sm:$0xff] }
 0x477   : > { %v8753_v54 = vpop.f32.mrf.mxu1  ;;  %v16817_v0 = vadd.f32 %v10960_v6, %v10928_v34  ;;  %v10950_v37 = vrot.slane %v10932_v31, 7 }
 0x478   : > { %9811 = vst [vmem:[#allocation2 + $0x4b0] sm:$0xff] %v8752_v33  ;;  %v10913_v50 = vsel %vm10151_vm5, %v10910_v17, %v10912_v38  ;;  %v8662_v49 = vpop.f32.mrf.mxu0  ;;  %v10951_v54 = vrot.slane %v10933_v42, 7 }
 0x479   : > { %v8755_v39 = vpop.f32.mrf.mxu1  ;;  %v16823_v16 = vadd.f32 %v10913_v50, %v16682_v1  ;;  %v10830_v1 = vld [vmem:[#allocation2 + $0x348] sm:$0xe0] }
 0x47a   : > { %9349 = vmatmul.mubr.bf16.vlgmr.msra.gmra.mxu0 %v16692_v46  ;;  %v10831_v46 = vld [vmem:[#allocation2 + $0x1b8] sm:$0xff] }
 0x47b   : > { %9430 = vmatmul.mubr.bf16.vlgmr.msra.gmra.mxu1 %v16696_v59  ;;  %9356 = vmatprep.mubr.bf16.mxu0 %v16700_v41  ;;  %v10881_v59 = vld [vmem:[#allocation2 + $0x258] sm:$0xc0]  ;;  %v10882_v41 = vld [vmem:[#allocation2 + $0xb20] sm:$0xff] }
 0x47c   : > { %9437 = vmatprep.mubr.bf16.mxu1 %v16704_v12 }
 0x47d   : > { %v10889_v7 = vld [vmem:[#allocation2 + $0x958] sm:$0x3f] }
 0x47e   : > { %v10914_v48 = vrot.slane %v10889_v7, 6 }
 0x480   : > { %v10915_v24 = vsel %vm10151_vm5, %v10912_v38, %v10914_v48  ;;  %v10849_v38 = vrot.slane %v10831_v46, 5 }
 0x481   : > { %v16831_v29 = vadd.f32 %v10915_v24, %v16689_v28  ;;  %v10848_v28 = vrot.slane %v10830_v1, 5  ;;  %v10952_v24 = vsel %vm10203_vm6, %v10950_v37, %v10951_v54 }
 0x482   : > { %9357 = vmatmul.mubr.bf16.gmra.mxu0 %v16708_v56  ;;  %v10852_v49 = vsel %vm10099_vm4, %v10849_v38, %v10851_v40 }
 0x483   : > { %9438 = vmatmul.mubr.bf16.gmra.mxu1 %v16712_v5  ;;  %9364 = vmatprep.mubr.bf16.mxu0 %v16716_v26  ;;  %v10899_v26 = vrot.slane %v10881_v59, 6  ;;  %v10850_v33 = vsel %vm10099_vm4, %v10848_v28, %v10849_v38 }
 0x484   : > { %9445 = vmatprep.mubr.bf16.mxu1 %v16720_v58  ;;  %v10900_v58 = vrot.slane %v10882_v41, 6 }
 0x48a   : > { %v8792_v12 = vpop.f32.mrf.mxu0  ;;  %9365 = vmatmul.mubr.bf16.gmra.mxu0 %v16724_v4 }
 0x48b   : > { %v8885_v25 = vpop.f32.mrf.mxu1  ;;  %9446 = vmatmul.mubr.bf16.gmra.mxu1 %v16728_v3  ;;  %9372 = vmatprep.mubr.bf16.mxu0 %v16732_v30  ;;  %v10901_v3 = vsel %vm10151_vm5, %v10899_v26, %v10900_v58  ;;  %v10873_v30 = vadd.f32 %v10850_v33, %v16601_v36  ;;  %v10903_v36 = vsel %vm10151_vm5, %v10900_v58, %v10902_v61 }
 0x48c   : > { %9453 = vmatprep.mubr.bf16.mxu1 %v16736_v22  ;;  %v8794_v56 = vpop.f32.mrf.mxu0 }
 0x48d   : > { %v8887_v5 = vpop.f32.mrf.mxu1  ;;  %v10924_v39 = vadd.f32 %v10901_v3, %v10873_v30 }
 0x48e   : > { %v8796_v11 = vpop.f32.mrf.mxu0 }
 0x48f   : > { %v8889_v34 = vpop.f32.mrf.mxu1  ;;  %v10975_v40 = vadd.f32 %v10952_v24, %v10924_v39 }
 0x490   : > { %v8798_v6 = vpop.f32.mrf.mxu0 }
 0x491   : > { %v8891_v4 = vpop.f32.mrf.mxu1 }
 0x492   : > { %v8802_v50 = vpop.f32.mrf.mxu0  ;;  %9373 = vmatmul.mubr.bf16.gmra.mxu0 %v16740_v2  ;;  %v10874_v2 = vadd.f32 %v10852_v49, %v16604_v21 }
 0x493   : > { %v8895_v22 = vpop.f32.mrf.mxu1  ;;  %9454 = vmatmul.mubr.bf16.gmra.mxu1 %v16744_v57  ;;  %9380 = vmatprep.mubr.bf16.mxu0 %v16750_v13 }
 0x494   : > { %9461 = vmatprep.mubr.bf16.mxu1 %v16754_v23  ;;  %v8804_v7 = vpop.f32.mrf.mxu0  ;;  %v10925_v46 = vadd.f32 %v10903_v36, %v10874_v2  ;;  %v10954_v23 = vsel %vm10203_vm6, %v10951_v54, %v10953_v15 }
 0x495   : > { %v8897_v48 = vpop.f32.mrf.mxu1 }
 0x496   : > { %v8806_v57 = vpop.f32.mrf.mxu0  ;;  %v10976_v61 = vadd.f32 %v10954_v23, %v10925_v46 }
 0x497   : > { %v8899_v1 = vpop.f32.mrf.mxu1 }
 0x498   : > { %v8900_v18 = vadd.f32 %v8899_v1, %v8806_v57  ;;  %v8808_v59 = vpop.f32.mrf.mxu0 }
 0x499   : > { %v8901_v13 = vpop.f32.mrf.mxu1 }
 0x49a   : > { %v8902_v41 = vadd.f32 %v8901_v13, %v8808_v59  ;;  %v10991_v12 = vadd.f32 %v10975_v40, %v8900_v18  ;;  %v8812_v60 = vpop.f32.mrf.mxu0  ;;  %9381 = vmatmul.mubr.bf16.gmra.mxu0 %v16775_v63 }
 0x49b   : > { %v8905_v25 = vpop.f32.mrf.mxu1  ;;  %9462 = vmatmul.mubr.bf16.gmra.mxu1 %v16779_v53  ;;  %9388 = vmatprep.mubr.bf16.mxu0 %v16788_v35 }
 0x49c   : > { %9596 = vst [vmem:[#allocation2 + $0x338] sm:$0xff] %v8902_v41  ;;  %v8906_v21 = vadd.f32 %v8905_v25, %v8812_v60  ;;  %9469 = vmatprep.mubr.bf16.mxu1 %v16792_v62  ;;  %v8814_v28 = vpop.f32.mrf.mxu0 }
 0x49d   : > { %v8907_v38 = vpop.f32.mrf.mxu1 }
 0x49e   : > { %v8908_v45 = vadd.f32 %v8907_v38, %v8814_v28  ;;  %v10992_v56 = vadd.f32 %v10976_v61, %v8906_v21  ;;  %v8816_v15 = vpop.f32.mrf.mxu0 }
 0x49f   : > { %v8909_v5 = vpop.f32.mrf.mxu1 }
 0x4a0   : > { %v8910_v26 = vadd.f32 %v8909_v5, %v8816_v15  ;;  %v8818_v58 = vpop.f32.mrf.mxu0  ;;  %v11018_v53 = vrot.slane %v8908_v45, 1 }
 0x4a1   : > { %v8911_v31 = vpop.f32.mrf.mxu1 }
 0x4a2   : > { %v8912_v42 = vadd.f32 %v8911_v31, %v8818_v58  ;;  %v10993_v63 = vadd.f32 %v16795_v20, %v8910_v26  ;;  %v8822_v11 = vpop.f32.mrf.mxu0  ;;  %9389 = vmatmul.mubr.bf16.gmra.mxu0 %v16646_v19 }
 0x4a3   : > { %v8915_v34 = vpop.f32.mrf.mxu1  ;;  %9470 = vmatmul.mubr.bf16.gmra.mxu1 %v16650_v55  ;;  %v10999_v35 = vld [vmem:[#allocation2 + $0x338] sm:$0xfe] }
 0x4a4   : > { %v8916_v62 = vadd.f32 %v8915_v34, %v8822_v11  ;;  %v11017_v33 = vrot.slane %v10999_v35, 1  ;;  %v11020_v6 = vrot.slane %v8912_v42, 1  ;;  %v8824_v4 = vpop.f32.mrf.mxu0 }
 0x4a5   : > { %v8917_v3 = vpop.f32.mrf.mxu1 }
 0x4a6   : > { %v10994_v37 = vadd.f32 %v16782_v8, %v8916_v62  ;;  %v8918_v54 = vadd.f32 %v8917_v3, %v8824_v4  ;;  %v11019_v30 = vsel %vm9891_vm0, %v11017_v33, %v11018_v53  ;;  %v11021_v20 = vsel %vm9891_vm0, %v11018_v53, %v11020_v6  ;;  %v8826_v50 = vpop.f32.mrf.mxu0 }
 0x4a7   : > { %v8919_v22 = vpop.f32.mrf.mxu1  ;;  %v16869_v49 = vadd.f32 %v11019_v30, %v10991_v12  ;;  %v16871_v19 = vadd.f32 %v11021_v20, %v10992_v56 }
 0x4a8   : > { %v11022_v55 = vrot.slane %v8918_v54, 1  ;;  %v8920_v39 = vadd.f32 %v8919_v22, %v8826_v50  ;;  %v8828_v7 = vpop.f32.mrf.mxu0 }
 0x4a9   : > { %v8921_v48 = vpop.f32.mrf.mxu1 }
 0x4aa   : > { %9719 = vst [vmem:[#allocation2 + $0x388] sm:$0xff] %v8920_v39  ;;  %v8922_v36 = vadd.f32 %v8921_v48, %v8828_v7  ;;  %v11023_v24 = vsel %vm9891_vm0, %v11020_v6, %v11022_v55  ;;  %v8832_v8 = vpop.f32.mrf.mxu0 }
 0x4ab   : > { %v8925_v2 = vpop.f32.mrf.mxu1  ;;  %v16874_v57 = vadd.f32 %v11023_v24, %v10993_v63 }
 0x4ac   : > { %v11024_v1 = vrot.slane %v8922_v36, 1  ;;  %v8926_v18 = vadd.f32 %v8925_v2, %v8832_v8  ;;  %v8834_v46 = vpop.f32.mrf.mxu0 }
 0x4ad   : > { %v8927_v40 = vpop.f32.mrf.mxu1 }
 0x4ae   : > { %9750 = vst [vmem:[#allocation2 + $0x9e0] sm:$0xff] %v8926_v18  ;;  %v8928_v59 = vadd.f32 %v8927_v40, %v8834_v46  ;;  %v11025_v13 = vsel %vm9891_vm0, %v11022_v55, %v11024_v1  ;;  %v8836_v23 = vpop.f32.mrf.mxu0  ;;  %v14620_v46 = vld [vmem:[#allocation10 + $0x38] sm:$0xff]  }
 0x4af   : > { %v8929_v41 = vpop.f32.mrf.mxu1  ;;  %v16877_v12 = vadd.f32 %v11025_v13, %v10994_v37  ;;  %12959 = vmatprep.subr.bf16.mxu0 %v14620_v46 }
 0x4b0   : > { %9751 = vst [vmem:[#allocation2 + $0x2c8] sm:$0xff] %v8928_v59  ;;  %v8930_v60 = vadd.f32 %v8929_v41, %v8836_v23  ;;  %v8838_v25 = vpop.f32.mrf.mxu0  ;;  %12960 = vmatpush3.bf16.msra.mxu0 %v14620_v46 }
 0x4b1   : > { %v8931_v21 = vpop.f32.mrf.mxu1  ;;  %v10987_v26 = vld [vmem:[#allocation2 + $0x388] sm:$0xff] }
 0x4b2   : > { %9781 = vst [vmem:[#allocation2 + $0x458] sm:$0xff] %v8930_v60  ;;  %v8932_v61 = vadd.f32 %v8931_v21, %v8838_v25  ;;  %v8842_v28 = vpop.f32.mrf.mxu0  ;;  %v10995_v34 = vadd.f32 %v10987_v26, %v16817_v0  ;;  %v14621_v25 = vld [vmem:[#allocation10 + $0x30] sm:$0xff]  }
 0x4b3   : > { %v8935_v38 = vpop.f32.mrf.mxu1  ;;  %12961 = vmatprep.subr.bf16.mxu0 %v14621_v25 }
 0x4b4   : > { %9782 = vst [vmem:[#allocation2 + $0xaa8] sm:$0xff] %v8932_v61  ;;  %v8936_v45 = vadd.f32 %v8935_v38, %v8842_v28  ;;  %v8844_v56 = vpop.f32.mrf.mxu0  ;;  %12962 = vmatpush3.bf16.msra.mxu0 %v14621_v25 }
 0x4b5   : > { %v8937_v15 = vpop.f32.mrf.mxu1 }
 0x4b6   : > { %9812 = vst [vmem:[#allocation2 + $0x5d0] sm:$0xff] %v8936_v45  ;;  %v8938_v5 = vadd.f32 %v8937_v15, %v8844_v56  ;;  %v8846_v58 = vpop.f32.mrf.mxu0 }
 0x4b7   : > { %v8939_v31 = vpop.f32.mrf.mxu1  ;;  %v16879_v42 = vld [vmem:[#allocation2 + $0x2c8] sm:$0xff] }
 0x4b8   : > { %9813 = vst [vmem:[#allocation2 + $0x6a0] sm:$0xff] %v8938_v5  ;;  %v11026_v63 = vrot.slane %v16879_v42, 1  ;;  %v8848_v53 = vpop.f32.mrf.mxu0 }
 0x4b9   : > { %v8941_v11 = vpop.f32.mrf.mxu1 }
 0x4ba   : > { %v8942_v35 = vadd.f32 %v8941_v11, %v8848_v53  ;;  %v11027_v62 = vsel %vm9891_vm0, %v11024_v1, %v11026_v63  ;;  %v14622_v53 = vld [vmem:[#allocation10 + $0x28] sm:$0xff]  }
 0x4bb   : > { %v16886_v33 = vadd.f32 %v11027_v62, %v10995_v34  ;;  %12963 = vmatprep.subr.bf16.mxu0 %v14622_v53  ;;  %v16914_v47 = vld [vmem:[#allocation2 + $0xaa8] sm:$0xff] }
 0x4bc   : > { %9844 = vst [vmem:[#allocation2 + $0xa98] sm:$0xff] %v8942_v35  ;;  %12964 = vmatpush3.bf16.msra.mxu0 %v14622_v53  ;;  %v11028_v25 = vrot.slane %v16914_v47, 1 }
 0x4ca   : > { %v8978_v6 = vpop.f32.mrf.mxu0 }
 0x4cb   : > { %v9071_v4 = vpop.f32.mrf.mxu1 }
 0x4cc   : > { %v8980_v3 = vpop.f32.mrf.mxu0  ;;  %v16890_v4 = vld [vmem:[#allocation2 + $0x980] sm:$0xff] }
 0x4cd   : > { %v9073_v37 = vpop.f32.mrf.mxu1 }
 0x4ce   : > { %v8982_v54 = vpop.f32.mrf.mxu0 }
 0x4cf   : > { %v9075_v30 = vpop.f32.mrf.mxu1 }
 0x4d0   : > { %v8984_v20 = vpop.f32.mrf.mxu0 }
 0x4d1   : > { %v9077_v50 = vpop.f32.mrf.mxu1 }
 0x4d2   : > { %v8988_v22 = vpop.f32.mrf.mxu0 }
 0x4d3   : > { %v9081_v55 = vpop.f32.mrf.mxu1 }
 0x4d4   : > { %v8990_v39 = vpop.f32.mrf.mxu0 }
 0x4d5   : > { %v9083_v0 = vpop.f32.mrf.mxu1  ;;  %v10860_v39 = vsel %vm10099_vm4, %v10857_v14, %v10859_v32 }
 0x4d6   : > { %v8992_v7 = vpop.f32.mrf.mxu0 }
 0x4d7   : > { %v9085_v48 = vpop.f32.mrf.mxu1 }
 0x4d8   : > { %v9086_v36 = vadd.f32 %v9085_v48, %v8992_v7  ;;  %v8994_v24 = vpop.f32.mrf.mxu0  ;;  %v14623_v48 = vld [vmem:[#allocation10 + $0x20] sm:$0xff]  }
 0x4d9   : > { %v9087_v8 = vpop.f32.mrf.mxu1  ;;  %12965 = vmatprep.subr.bf16.mxu0 %v14623_v48 }
 0x4da   : > { %9597 = vst [vmem:[#allocation2 + $0x230] sm:$0xff] %v9086_v36  ;;  %v9088_v2 = vadd.f32 %v9087_v8, %v8994_v24  ;;  %v8998_v1 = vpop.f32.mrf.mxu0  ;;  %v10961_v24 = vrot.slane %v16890_v4, 7  ;;  %12966 = vmatpush3.bf16.msra.mxu0 %v14623_v48 }
 0x4db   : > { %v9091_v18 = vpop.f32.mrf.mxu1 }
 0x4dc   : > { %9598 = vst [vmem:[#allocation2 + $0x368] sm:$0xff] %v9088_v2  ;;  %v9092_v40 = vadd.f32 %v9091_v18, %v8998_v1  ;;  %v9000_v59 = vpop.f32.mrf.mxu0  ;;  %v10878_v18 = vadd.f32 %v10860_v39, %v16640_v27 }
 0x4dd   : > { %v9093_v13 = vpop.f32.mrf.mxu1 }
 0x4de   : > { %v9094_v23 = vadd.f32 %v9093_v13, %v9000_v59  ;;  %v9002_v41 = vpop.f32.mrf.mxu0  ;;  %v11069_v61 = vrot.slane %v9092_v40, 2  ;;  %v14624_v59 = vld [vmem:[#allocation10 + $0x18] sm:$0xff]  }
 0x4df   : > { %v9095_v60 = vpop.f32.mrf.mxu1  ;;  %12967 = vmatprep.subr.bf16.mxu0 %v14624_v59 }
 0x4e0   : > { %v9096_v21 = vadd.f32 %v9095_v60, %v9002_v41  ;;  %v9004_v28 = vpop.f32.mrf.mxu0  ;;  %v11120_v26 = vrot.slane %v9094_v23, 3  ;;  %12968 = vmatpush3.bf16.msra.mxu0 %v14624_v59  ;;  %v10989_v59 = vld [vmem:[#allocation2 + $0x458] sm:$0xff] }
 0x4e1   : > { %v9097_v38 = vpop.f32.mrf.mxu1  ;;  %v11050_v45 = vld [vmem:[#allocation2 + $0x230] sm:$0xfc] }
 0x4e2   : > { %v9098_v56 = vadd.f32 %v9097_v38, %v9004_v28  ;;  %v11068_v15 = vrot.slane %v11050_v45, 2  ;;  %v11071_v5 = vrot.slane %v9096_v21, 2  ;;  %v9008_v58 = vpop.f32.mrf.mxu0  ;;  %v14625_v45 = vld [vmem:[#allocation10 + $0x10] sm:$0xff]  }
 0x4e3   : > { %v9101_v31 = vpop.f32.mrf.mxu1  ;;  %v11101_v11 = vld [vmem:[#allocation2 + $0x368] sm:$0xf8]  ;;  %12969 = vmatprep.subr.bf16.mxu0 %v14625_v45 }
 0x4e4   : > { %v9102_v34 = vadd.f32 %v9101_v31, %v9008_v58  ;;  %v11070_v35 = vsel %vm9943_vm1, %v11068_v15, %v11069_v61  ;;  %v11072_v62 = vsel %vm9943_vm1, %v11069_v61, %v11071_v5  ;;  %v11119_v6 = vrot.slane %v11101_v11, 3  ;;  %v9010_v3 = vpop.f32.mrf.mxu0  ;;  %v10988_v15 = vld [vmem:[#allocation2 + $0x9e0] sm:$0xff]  ;;  %12970 = vmatpush3.bf16.msra.mxu0 %v14625_v45 }
 0x4e5   : > { %v9103_v37 = vpop.f32.mrf.mxu1  ;;  %v11093_v54 = vadd.f32 %v11070_v35, %v16869_v49  ;;  %v11094_v30 = vadd.f32 %v11072_v62, %v16871_v19  ;;  %v11122_v20 = vrot.slane %v9098_v56, 3  ;;  %v10911_v19 = vsel %vm10151_vm5, %v10908_v9, %v10910_v17 }
 0x4e6   : > { %v9104_v50 = vadd.f32 %v9103_v37, %v9010_v3  ;;  %v11073_v22 = vrot.slane %v9102_v34, 2  ;;  %v11121_v55 = vsel %vm9995_vm2, %v11119_v6, %v11120_v26  ;;  %v9012_v0 = vpop.f32.mrf.mxu0  ;;  %v10929_v23 = vadd.f32 %v10911_v19, %v10878_v18  ;;  %v16937_v37 = vld [vmem:[#allocation2 + $0x790] sm:$0xff] }
 0x4e7   : > { %v9105_v7 = vpop.f32.mrf.mxu1  ;;  %v11123_v36 = vsel %vm9995_vm2, %v11120_v26, %v11122_v20  ;;  %v16901_v49 = vadd.f32 %v11121_v55, %v11093_v54  ;;  %v14626_v26 = vld [vmem:[#allocation10 + $0x8] sm:$0xff]  }
 0x4e8   : > { %v9106_v44 = vadd.f32 %v9105_v7, %v9012_v0  ;;  %v11074_v52 = vsel %vm9943_vm1, %v11071_v5, %v11073_v22  ;;  %v11124_v8 = vrot.slane %v9104_v50, 3  ;;  %v16910_v14 = vadd.f32 %v11123_v36, %v11094_v30  ;;  %v9014_v32 = vpop.f32.mrf.mxu0  ;;  %12971 = vmatprep.subr.bf16.mxu0 %v14626_v26  ;;  %v14627_v36 = vld [vmem:[#allocation10] sm:$0xff]  }
 0x4e9   : > { %v9107_v2 = vpop.f32.mrf.mxu1  ;;  %v11095_v1 = vadd.f32 %v11074_v52, %v16874_v57  ;;  %v10962_v57 = vsel %vm10203_vm6, %v10959_v51, %v10961_v24  ;;  %v10963_v7 = vrot.slane %v16937_v37, 7  ;;  %12972 = vmatpush3.bf16.msra.mxu0 %v14626_v26 }
 0x4ea   : > { %v11075_v10 = vrot.slane %v9106_v44, 2  ;;  %v9108_v46 = vadd.f32 %v9107_v2, %v9014_v32  ;;  %v11125_v9 = vsel %vm9995_vm2, %v11122_v20, %v11124_v8  ;;  %v9018_v17 = vpop.f32.mrf.mxu0  ;;  %v10980_v31 = vadd.f32 %v10962_v57, %v10929_v23  ;;  %v16944_v44 = vld [vmem:[#allocation2 + $0x6a0] sm:$0xff]  ;;  %12973 = vmatprep.subr.bf16.mxu0 %v14627_v36 }
 0x4eb   : > { %v9111_v40 = vpop.f32.mrf.mxu1  ;;  %v16917_v13 = vadd.f32 %v11125_v9, %v11095_v1 }
 0x4ec   : > { %v11126_v27 = vrot.slane %v9108_v46, 3  ;;  %v9112_v41 = vadd.f32 %v9111_v40, %v9018_v17  ;;  %v11076_v60 = vsel %vm9943_vm1, %v11073_v22, %v11075_v10  ;;  %v9020_v21 = vpop.f32.mrf.mxu0  ;;  %v10996_v6 = vadd.f32 %v10988_v15, %v10980_v31 }
 0x4ed   : > { %v9113_v61 = vpop.f32.mrf.mxu1  ;;  %v11096_v28 = vadd.f32 %v11076_v60, %v16877_v12  ;;  %v11029_v12 = vsel %vm9891_vm0, %v11026_v63, %v11028_v25  ;;  %v11030_v46 = vrot.slane %v16944_v44, 1  ;;  %12974 = vmatpush3.bf16.msra.mxu0 %v14627_v36 }
 0x4ee   : > { %v9114_v38 = vadd.f32 %v9113_v61, %v9020_v21  ;;  %v11127_v56 = vsel %vm9995_vm2, %v11124_v8, %v11126_v27  ;;  %v11077_v43 = vrot.slane %v9112_v41, 2  ;;  %v9022_v5 = vpop.f32.mrf.mxu0  ;;  %v11047_v42 = vadd.f32 %v11029_v12, %v10996_v6 }
 0x4ef   : > { %v9115_v51 = vpop.f32.mrf.mxu1  ;;  %v16928_v58 = vadd.f32 %v11127_v56, %v11096_v28  ;;  %v11031_v57 = vsel %vm9891_vm0, %v11028_v25, %v11030_v46 }
 0x4f0   : > { %v9116_v53 = vadd.f32 %v9115_v51, %v9022_v5  ;;  %v11078_v11 = vsel %vm9943_vm1, %v11075_v10, %v11077_v43  ;;  %v11128_v34 = vrot.slane %v9114_v38, 3  ;;  %v9024_v35 = vpop.f32.mrf.mxu0  ;;  %v10964_v10 = vsel %vm10203_vm6, %v10961_v24, %v10963_v7 }
 0x4f1   : > { %v9117_v62 = vpop.f32.mrf.mxu1  ;;  %v11097_v3 = vadd.f32 %v11078_v11, %v16886_v33  ;;  %v10981_v23 = vadd.f32 %v10964_v10, %v16823_v16 }
 0x4f2   : > { %v9118_v54 = vadd.f32 %v9117_v62, %v9024_v35  ;;  %v11079_v30 = vrot.slane %v9116_v53, 2  ;;  %v11129_v20 = vsel %vm9995_vm2, %v11126_v27, %v11128_v34  ;;  %v9028_v50 = vpop.f32.mrf.mxu0 }
 0x4f3   : > { %v9121_v22 = vpop.f32.mrf.mxu1  ;;  %v16940_v63 = vadd.f32 %v11129_v20, %v11097_v3  ;;  %v10997_v4 = vadd.f32 %v10989_v59, %v10981_v23 }
 0x4f4   : > { %v9122_v55 = vadd.f32 %v9121_v22, %v9028_v50  ;;  %v11080_v39 = vsel %vm9943_vm1, %v11077_v43, %v11079_v30  ;;  %v11130_v0 = vrot.slane %v9118_v54, 3  ;;  %v9030_v33 = vpop.f32.mrf.mxu0 }
 0x4f5   : > { %v9123_v48 = vpop.f32.mrf.mxu1  ;;  %v11098_v19 = vadd.f32 %v11080_v39, %v11047_v42  ;;  %v11048_v41 = vadd.f32 %v11031_v57, %v10997_v4 }
 0x4f6   : > { %9814 = vst [vmem:[#allocation2 + $0x718] sm:$0xff] %v9122_v55  ;;  %v9124_v52 = vadd.f32 %v9123_v48, %v9030_v33  ;;  %v11131_v8 = vsel %vm9995_vm2, %v11128_v34, %v11130_v0  ;;  %v9032_v32 = vpop.f32.mrf.mxu0 }
 0x4f7   : > { %v9125_v2 = vpop.f32.mrf.mxu1  ;;  %v16947_v1 = vadd.f32 %v11131_v8, %v11098_v19 }
 0x4f8   : > { %9815 = vst [vmem:[#allocation2 + $0x608] sm:$0xff] %v9124_v52  ;;  %v9126_v18 = vadd.f32 %v9125_v2, %v9032_v32  ;;  %v9034_v9 = vpop.f32.mrf.mxu0 }
 0x4f9   : > { %v9127_v17 = vpop.f32.mrf.mxu1 }
 0x4fa   : > { %9845 = vst [vmem:[#allocation2 + $0x8e0] sm:$0xff] %v9126_v18  ;;  %v9128_v40 = vadd.f32 %v9127_v17, %v9034_v9 }
 0x4fc   : > { %9846 = vst [vmem:[#allocation2 + $0x350] sm:$0xff] %v9128_v40 }
 0x4fd   : > { %v16961_v27 = vld [vmem:[#allocation2 + $0x718] sm:$0xff] }
 0x4fe   : > { %v11081_v24 = vrot.slane %v16961_v27, 2 }
 0x4ff   : > { %v16964_v60 = vld [vmem:[#allocation2 + $0x608] sm:$0xff] }
 0x500   : > { %v11082_v21 = vsel %vm9943_vm1, %v11079_v30, %v11081_v24  ;;  %v11132_v16 = vrot.slane %v16964_v60, 3 }
 0x501   : > { %v11099_v61 = vadd.f32 %v11082_v21, %v11048_v41 }
 0x502   : > { %v11133_v47 = vsel %vm9995_vm2, %v11130_v0, %v11132_v16 }
 0x503   : > { %v16973_v25 = vadd.f32 %v11133_v47, %v11099_v61 }
 0x50a   : > { %v9164_v28 = vpop.f32.mrf.mxu0 }
 0x50b   : > { %v9257_v38 = vpop.f32.mrf.mxu1 }
 0x50c   : > { %v9166_v45 = vpop.f32.mrf.mxu0 }
 0x50d   : > { %v9259_v56 = vpop.f32.mrf.mxu1 }
 0x50e   : > { %v9168_v15 = vpop.f32.mrf.mxu0 }
 0x50f   : > { %v9261_v43 = vpop.f32.mrf.mxu1 }
 0x510   : > { %v9170_v5 = vpop.f32.mrf.mxu0 }
 0x511   : > { %v9263_v51 = vpop.f32.mrf.mxu1 }
 0x512   : > { %v9174_v26 = vpop.f32.mrf.mxu0 }
 0x513   : > { %v9267_v31 = vpop.f32.mrf.mxu1 }
 0x514   : > { %v9176_v53 = vpop.f32.mrf.mxu0 }
 0x515   : > { %v9269_v12 = vpop.f32.mrf.mxu1 }
 0x516   : > { %v9178_v11 = vpop.f32.mrf.mxu0 }
 0x517   : > { %v9271_v34 = vpop.f32.mrf.mxu1 }
 0x518   : > { %v9272_v35 = vadd.f32 %v9271_v34, %v9178_v11  ;;  %v9180_v62 = vpop.f32.mrf.mxu0 }
 0x519   : > { %v9273_v6 = vpop.f32.mrf.mxu1 }
 0x51a   : > { %9599 = vst [vmem:[#allocation2 + $0x378] sm:$0xff] %v9272_v35  ;;  %v9274_v3 = vadd.f32 %v9273_v6, %v9180_v62  ;;  %v9184_v54 = vpop.f32.mrf.mxu0 }
 0x51b   : > { %v9277_v30 = vpop.f32.mrf.mxu1 }
 0x51c   : > { %9600 = vst [vmem:[#allocation2 + $0x990] sm:$0xff] %v9274_v3  ;;  %v16975_v20 = vadd.f32 %v9277_v30, %v9184_v54  ;;  %v9186_v50 = vpop.f32.mrf.mxu0 }
 0x51d   : > { %v9279_v22 = vpop.f32.mrf.mxu1 }
 0x51e   : > { %v16977_v42 = vadd.f32 %v9279_v22, %v9186_v50  ;;  %v9188_v55 = vpop.f32.mrf.mxu0 }
 0x51f   : > { %v9281_v39 = vpop.f32.mrf.mxu1 }
 0x520   : > { %v16979_v0 = vadd.f32 %v9281_v39, %v9188_v55  ;;  %v9190_v33 = vpop.f32.mrf.mxu0 }
 0x521   : > { %v9283_v48 = vpop.f32.mrf.mxu1 }
 0x522   : > { %v16981_v36 = vadd.f32 %v9283_v48, %v9190_v33  ;;  %v9194_v19 = vpop.f32.mrf.mxu0 }
 0x523   : > { %v9287_v52 = vpop.f32.mrf.mxu1 }
 0x524   : > { %v16983_v8 = vadd.f32 %v9287_v52, %v9194_v19  ;;  %v9196_v32 = vpop.f32.mrf.mxu0 }
 0x525   : > { %v9289_v2 = vpop.f32.mrf.mxu1 }
 0x526   : > { %v16985_v18 = vadd.f32 %v9289_v2, %v9196_v32  ;;  %v9198_v10 = vpop.f32.mrf.mxu0 }
 0x527   : > { %v9291_v9 = vpop.f32.mrf.mxu1 }
 0x528   : > { %v16987_v17 = vadd.f32 %v9291_v9, %v9198_v10  ;;  %v9200_v40 = vpop.f32.mrf.mxu0 }
 0x529   : > { %v9293_v59 = vpop.f32.mrf.mxu1 }
 0x52a   : > { %v16989_v23 = vadd.f32 %v9293_v59, %v9200_v40  ;;  %v9204_v57 = vpop.f32.mrf.mxu0  ;;  %v11152_v40 = vld [vmem:[#allocation2 + $0x378] sm:$0xf0] }
 0x52b   : > { %v9297_v4 = vpop.f32.mrf.mxu1 }
 0x52c   : > { %v16991_v41 = vadd.f32 %v9297_v4, %v9204_v57  ;;  %v9206_v21 = vpop.f32.mrf.mxu0 }
 0x52d   : > { %v9299_v61 = vpop.f32.mrf.mxu1 }
 0x52e   : > { %v16993_v47 = vadd.f32 %v9299_v61, %v9206_v21  ;;  %v9208_v28 = vpop.f32.mrf.mxu0 }
 0x52f   : > { %v9301_v38 = vpop.f32.mrf.mxu1 }
 0x530   : > { %v16995_v45 = vadd.f32 %v9301_v38, %v9208_v28  ;;  %v9210_v56 = vpop.f32.mrf.mxu0  ;;  %v11170_v38 = vrot.slane %v11152_v40, 4 }
 0x531   : > { %v9303_v15 = vpop.f32.mrf.mxu1 }
 0x532   : > { %v16997_v43 = vadd.f32 %v9303_v15, %v9210_v56  ;;  %v9214_v5 = vpop.f32.mrf.mxu0  ;;  %v11173_v56 = vrot.slane %v16979_v0, 4  ;;  %v11224_v0 = vrot.slane %v16981_v36, 5 }
 0x533   : > { %v9307_v51 = vpop.f32.mrf.mxu1 }
 0x534   : > { %v16999_v26 = vadd.f32 %v9307_v51, %v9214_v5  ;;  %v9216_v31 = vpop.f32.mrf.mxu0 }
 0x535   : > { %v9309_v53 = vpop.f32.mrf.mxu1 }
 0x536   : > { %v17001_v12 = vadd.f32 %v9309_v53, %v9216_v31  ;;  %v9218_v11 = vpop.f32.mrf.mxu0  ;;  %v11171_v31 = vrot.slane %v16975_v20, 4  ;;  %v11203_v53 = vld [vmem:[#allocation2 + $0x990] sm:$0xe0]  ;;  %v11177_v20 = vrot.slane %v16987_v17, 4 }
 0x537   : > { %v9311_v34 = vpop.f32.mrf.mxu1 }
 0x538   : > { %v9312_v35 = vadd.f32 %v9311_v34, %v9218_v11  ;;  %v9220_v62 = vpop.f32.mrf.mxu0 }
 0x539   : > { %v9313_v6 = vpop.f32.mrf.mxu1 }
 0x53a   : > { %9847 = vst [vmem:[#allocation2 + $0x7d0] sm:$0xff] %v9312_v35  ;;  %v9314_v3 = vadd.f32 %v9313_v6, %v9220_v62  ;;  %v12850_v54 = vpop.f32.mrf.mxu0  ;;  %v11172_v6 = vsel %vm10047_vm3, %v11170_v38, %v11171_v31 }
 0x53b   : > { %v12902_v30 = vpop.f32.mrf.mxu1 }
 0x53c   : > { %9848 = vst [vmem:[#allocation2 + $0x648] sm:$0xff] %v9314_v3  ;;  %v12851_v50 = vpop.f32.mrf.mxu0  ;;  %v11174_v3 = vsel %vm10047_vm3, %v11171_v31, %v11173_v56  ;;  %v11175_v30 = vrot.slane %v16983_v8, 4 }
 0x53d   : > { %v12903_v22 = vpop.f32.mrf.mxu1  ;;  %v11221_v50 = vrot.slane %v11203_v53, 5 }
 0x53e   : > { %v12853_v55 = vpop.f32.mrf.mxu0 }
 0x53f   : > { %v12905_v39 = vpop.f32.mrf.mxu1 }
 0x540   : > { %v12854_v33 = vpop.f32.mrf.mxu0 }
 0x541   : > { %v12906_v48 = vpop.f32.mrf.mxu1 }
 0x542   : > { %v12856_v19 = vpop.f32.mrf.mxu0  ;;  %v11222_v48 = vrot.slane %v16977_v42, 5  ;;  %v11178_v42 = vsel %vm10047_vm3, %v11175_v30, %v11177_v20 }
 0x543   : > { %v12908_v52 = vpop.f32.mrf.mxu1 }
 0x544   : > { %v12857_v32 = vpop.f32.mrf.mxu0  ;;  %v11223_v36 = vsel %vm10099_vm4, %v11221_v50, %v11222_v48  ;;  %v11225_v40 = vsel %vm10099_vm4, %v11222_v48, %v11224_v0  ;;  %v11230_v48 = vrot.slane %v16993_v47, 5 }
 0x545   : > { %v12909_v2 = vpop.f32.mrf.mxu1  ;;  %v11195_v32 = vadd.f32 %v11172_v6, %v16901_v49 }
 0x546   : > { %v12859_v10 = vpop.f32.mrf.mxu0  ;;  %v11196_v2 = vadd.f32 %v11174_v3, %v16910_v14  ;;  %v11198_v3 = vadd.f32 %v11178_v42, %v16928_v58 }
 0x547   : > { %v12911_v9 = vpop.f32.mrf.mxu1 }
 0x548   : > { %v12860_v59 = vpop.f32.mrf.mxu0 }
 0x549   : > { %v12912_v57 = vpop.f32.mrf.mxu1  ;;  %v12861_v4 = vadd.f32 %v12860_v59, %v12859_v10  ;;  %v11226_v10 = vrot.slane %v16985_v18, 5 }
 0x54a   : > { %v12913_v21 = vadd.f32 %v12912_v57, %v12911_v9  ;;  %v12862_v61 = vpop.f32.mrf.mxu0  ;;  %v11176_v9 = vsel %vm10047_vm3, %v11173_v56, %v11175_v30 }
 0x54b   : > { %v12914_v28 = vpop.f32.mrf.mxu1  ;;  %v11197_v56 = vadd.f32 %v11176_v9, %v16917_v13 }
 0x54c   : > { %v9443_v15 = vadd.f32 %v12913_v21, %v12861_v4  ;;  %v12863_v5 = vpop.f32.mrf.mxu0  ;;  %v11228_v21 = vrot.slane %v16989_v23, 5 }
 0x54d   : > { %v12915_v51 = vpop.f32.mrf.mxu1  ;;  %v12864_v11 = vadd.f32 %v12863_v5, %v12862_v61  ;;  %v11246_v5 = vadd.f32 %v11223_v36, %v11195_v32  ;;  %v11181_v32 = vrot.slane %v16995_v45, 4  ;;  %v11232_v45 = vrot.slane %v16997_v43, 5 }
 0x54e   : > { %9601 = vst [vmem:[#allocation2 + $0x400] sm:$0xff] %v9443_v15  ;;  %v12916_v34 = vadd.f32 %v12915_v51, %v12914_v28  ;;  %v12865_v35 = vpop.f32.mrf.mxu0  ;;  %v11227_v15 = vsel %vm10099_vm4, %v11224_v0, %v11226_v10  ;;  %v11247_v51 = vadd.f32 %v11225_v40, %v11196_v2  ;;  %v11229_v50 = vsel %vm10099_vm4, %v11226_v10, %v11228_v21  ;;  %v10940_v0 = vld [vmem:[#allocation2 + $0x4b0] sm:$0x7f] }
 0x54f   : > { %v12917_v62 = vpop.f32.mrf.mxu1  ;;  %v11249_v9 = vadd.f32 %v11229_v50, %v11198_v3  ;;  %v10965_v36 = vrot.slane %v10940_v0, 7 }
 0x550   : > { %v9448_v54 = vadd.f32 %v12916_v34, %v12864_v11  ;;  %v12866_v22 = vpop.f32.mrf.mxu0  ;;  %v11179_v34 = vrot.slane %v16991_v41, 4 }
 0x551   : > { %v12918_v55 = vpop.f32.mrf.mxu1  ;;  %v12867_v39 = vadd.f32 %v12866_v22, %v12865_v35 }
 0x552   : > { %v12919_v33 = vadd.f32 %v12918_v55, %v12917_v62  ;;  %v12868_v19 = vpop.f32.mrf.mxu0  ;;  %v11273_v4 = vrot.slane %v9448_v54, 6  ;;  %v11180_v58 = vsel %vm10047_vm3, %v11177_v20, %v11179_v34  ;;  %v11231_v20 = vsel %vm10099_vm4, %v11228_v21, %v11230_v48 }
 0x553   : > { %v12920_v52 = vpop.f32.mrf.mxu1  ;;  %v11199_v42 = vadd.f32 %v11180_v58, %v16940_v63  ;;  %v10966_v63 = vsel %vm10203_vm6, %v10963_v7, %v10965_v36  ;;  %v11234_v7 = vrot.slane %v17001_v12, 5 }
 0x554   : > { %v9451_v8 = vadd.f32 %v12919_v33, %v12867_v39  ;;  %v12869_v17 = vpop.f32.mrf.mxu0  ;;  %v11248_v39 = vadd.f32 %v11227_v15, %v11197_v56  ;;  %v10982_v58 = vadd.f32 %v10966_v63, %v16831_v29 }
 0x555   : > { %v12921_v59 = vpop.f32.mrf.mxu1  ;;  %v11254_v57 = vld [vmem:[#allocation2 + $0x400] sm:$0xc0]  ;;  %v12870_v49 = vadd.f32 %v12869_v17, %v12868_v19  ;;  %v11250_v3 = vadd.f32 %v11231_v20, %v11199_v42 }
 0x556   : > { %v12922_v61 = vadd.f32 %v12921_v59, %v12920_v52  ;;  %v11272_v14 = vrot.slane %v11254_v57, 6  ;;  %v11275_v28 = vrot.slane %v9451_v8, 6  ;;  %v12871_v18 = vpop.f32.mrf.mxu0 }
 0x557   : > { %v12923_v38 = vpop.f32.mrf.mxu1 }
 0x558   : > { %v9456_v31 = vadd.f32 %v12922_v61, %v12870_v49  ;;  %v11274_v53 = vsel %vm10151_vm5, %v11272_v14, %v11273_v4  ;;  %v11276_v11 = vsel %vm10151_vm5, %v11273_v4, %v11275_v28  ;;  %v12872_v23 = vpop.f32.mrf.mxu0  ;;  %v11007_v49 = vld [vmem:[#allocation2 + $0xa98] sm:$0x1] }
 0x559   : > { %v12924_v35 = vpop.f32.mrf.mxu1  ;;  %v17024_v62 = vadd.f32 %v11274_v53, %v11246_v5  ;;  %v17026_v6 = vadd.f32 %v11276_v11, %v11247_v51  ;;  %v12873_v13 = vadd.f32 %v12872_v23, %v12871_v18  ;;  %v11183_v18 = vrot.slane %v16999_v26, 4 }
 0x55a   : > { %v12925_v54 = vadd.f32 %v12924_v35, %v12923_v38  ;;  %v11277_v30 = vrot.slane %v9456_v31, 6  ;;  %v12874_v22 = vpop.f32.mrf.mxu0  ;;  %v11032_v51 = vrot.slane %v11007_v49, 1  ;;  %v11058_v31 = vld [vmem:[#allocation2 + $0x8e0] sm:$0x3]  ;;  %v11233_v35 = vsel %vm10099_vm4, %v11230_v48, %v11232_v45 }
 0x55b   : > { %v12926_v55 = vpop.f32.mrf.mxu1  ;;  %v11313_v33 = vmul.f32 1.442695, %v17024_v62  ;;  %v11315_v41 = vmul.f32 1.442695, %v17026_v6  ;;  %v11184_v37 = vsel %vm10047_vm3, %v11181_v32, %v11183_v18  ;;  %vm11305_vm7 = vcmp.gt.f32.partialorder %v17024_v62, 0.0 }
 0x55c   : > { %v9459_v19 = vadd.f32 %v12925_v54, %v12873_v13  ;;  %v11278_v52 = vsel %vm10151_vm5, %v11275_v28, %v11277_v30  ;;  %v12875_v2 = vpop.f32.mrf.mxu0  ;;  %v11182_v28 = vsel %vm10047_vm3, %v11179_v34, %v11181_v32  ;;  %v11109_v32 = vld [vmem:[#allocation2 + $0x350] sm:$0x7]  ;;  %v11033_v36 = vsel %vm9891_vm0, %v11030_v46, %v11032_v51 }
 0x55d   : > { %v12927_v8 = vpop.f32.mrf.mxu1  ;;  %v17036_v10 = vadd.f32 %v11278_v52, %v11248_v39  ;;  %14628 = vpow2.f32 %v11313_v33  ;;  %v12876_v40 = vadd.f32 %v12875_v2, %v12874_v22  ;;  %v11200_v23 = vadd.f32 %v11182_v28, %v16947_v1  ;;  %v10990_v33 = vld [vmem:[#allocation2 + $0x5d0] sm:$0xff] }
 0x55e   : > { %v12928_v17 = vadd.f32 %v12927_v8, %v12926_v55  ;;  %14630 = vpow2.f32 %v11315_v41  ;;  %v11279_v59 = vrot.slane %v9459_v19, 6  ;;  %v12877_v57 = vpop.f32.mrf.mxu0  ;;  %v11083_v22 = vrot.slane %v11058_v31, 2 }
 0x55f   : > { %v12929_v47 = vpop.f32.mrf.mxu1  ;;  %v11317_v4 = vmul.f32 1.442695, %v17036_v10  ;;  %v11251_v19 = vadd.f32 %v11233_v35, %v11200_v23  ;;  %v11201_v2 = vadd.f32 %v11184_v37, %v16973_v25  ;;  %v10998_v29 = vadd.f32 %v10990_v33, %v10982_v58 }
 0x560   : > { %v9464_v61 = vadd.f32 %v12928_v17, %v12876_v40  ;;  %v11280_v14 = vsel %vm10151_vm5, %v11277_v30, %v11279_v59  ;;  %v12878_v38 = vpop.f32.mrf.mxu0  ;;  %v11235_v40 = vsel %vm10099_vm4, %v11232_v45, %v11234_v7  ;;  %v11084_v25 = vsel %vm9943_vm1, %v11081_v24, %v11083_v22 }
 0x561   : > { %v12930_v56 = vpop.f32.mrf.mxu1  ;;  %14632 = vpow2.f32 %v11317_v4  ;;  %v17045_v15 = vadd.f32 %v11280_v14, %v11249_v9  ;;  %v12879_v21 = vadd.f32 %v12878_v38, %v12877_v57  ;;  %v11134_v20 = vrot.slane %v11109_v32, 3 }
 0x562   : > { %v12931_v5 = vadd.f32 %v12930_v56, %v12929_v47  ;;  %v11281_v43 = vrot.slane %v9464_v61, 6  ;;  %v12880_v53 = vpop.f32.mrf.mxu0  ;;  %v11160_v47 = vld [vmem:[#allocation2 + $0x7d0] sm:$0xf]  ;;  %v11049_v14 = vadd.f32 %v11033_v36, %v10998_v29  ;;  %v11252_v28 = vadd.f32 %v11235_v40, %v11201_v2 }
 0x563   : > { %v12932_v11 = vpop.f32.mrf.mxu1  ;;  %v11319_v34 = vmul.f32 1.442695, %v17045_v15  ;;  %v11185_v63 = vrot.slane %v11160_v47, 4  ;;  %vm11306_vm8 = vcmp.gt.f32.partialorder %v17026_v6, 0.0  ;;  %vm11307_vm9 = vcmp.gt.f32.partialorder %v17036_v10, 0.0 }
 0x564   : > { %v9467_v13 = vadd.f32 %v12931_v5, %v12879_v21  ;;  %v11282_v54 = vsel %vm10151_vm5, %v11279_v59, %v11281_v43  ;;  %v12881_v30 = vpop.f32.mrf.mxu0  ;;  %v11100_v24 = vadd.f32 %v11084_v25, %v11049_v14  ;;  %v11211_v5 = vld [vmem:[#allocation2 + $0x648] sm:$0x1f]  ;;  %vm11308_vm10 = vcmp.gt.f32.partialorder %v17045_v15, 0.0 }
 0x565   : > { %v12933_v50 = vpop.f32.mrf.mxu1  ;;  %14634 = vpow2.f32 %v11319_v34  ;;  %v17058_v0 = vadd.f32 %v11282_v54, %v11250_v3  ;;  %v12882_v55 = vadd.f32 %v12881_v30, %v12880_v53  ;;  %v11135_v53 = vsel %vm9995_vm2, %v11132_v16, %v11134_v20 }
 0x566   : > { %v12934_v1 = vadd.f32 %v12933_v50, %v12932_v11  ;;  %v11283_v39 = vrot.slane %v9467_v13, 6  ;;  %v12883_v41 = vpop.f32.mrf.mxu0  ;;  %v11186_v3 = vsel %vm10047_vm3, %v11183_v18, %v11185_v63  ;;  %v11236_v13 = vrot.slane %v11211_v5, 5 }
 0x567   : > { %v12935_v48 = vpop.f32.mrf.mxu1  ;;  %v11321_v52 = vmul.f32 1.442695, %v17058_v0  ;;  %v11151_v30 = vadd.f32 %v11135_v53, %v11100_v24  ;;  %vm11309_vm11 = vcmp.gt.f32.partialorder %v17058_v0, 0.0  ;;  %v15080_v14 = vmov 0  }
 0x568   : > { %v17063_v8 = vadd.f32 %v12934_v1, %v12882_v55  ;;  %v11284_v9 = vsel %vm10151_vm5, %v11281_v43, %v11283_v39  ;;  %v12884_v17 = vpop.f32.mrf.mxu0  ;;  %13111 = vset.pattern.permute.xlu0 %v15080_v14 }
 0x569   : > { %v12936_v59 = vpop.f32.mrf.mxu1  ;;  %v17072_v57 = vadd.f32 %v11284_v9, %v11251_v19  ;;  %14636 = vpow2.f32 %v11321_v52  ;;  %v12885_v42 = vadd.f32 %v12884_v17, %v12883_v41  ;;  %v11202_v55 = vadd.f32 %v11186_v3, %v11151_v30 }
 0x56a   : > { %v14629_v4 = vpop.eup %14628  ;;  %v12937_v44 = vadd.f32 %v12936_v59, %v12935_v48  ;;  %v11285_v46 = vrot.slane %v17063_v8, 6 }
 0x56b   : > { %v14631_v49 = vpop.eup %14630  ;;  %v12805_v61 = vadd.f32 -1.0, %v14629_v4  ;;  %v11323_v45 = vmul.f32 1.442695, %v17072_v57  ;;  %vm11310_vm12 = vcmp.gt.f32.partialorder %v17072_v57, 0.0 }
 0x56c   : > { %v9475_v38 = vadd.f32 %v12937_v44, %v12885_v42  ;;  %v12806_v56 = vadd.f32 -1.0, %v14631_v49  ;;  %v11286_v27 = vsel %vm10151_vm5, %v11283_v39, %v11285_v46 }
 0x56d   : > { %v11337_v21 = vmul.f32 1.6732632, %v12805_v61  ;;  %14638 = vpow2.f32 %v11323_v45  ;;  %v11303_v43 = vadd.f32 %v11286_v27, %v11252_v28  ;;  %v15078_v45 = vmov 0.0   ;;  %v12813_v27 = vld [vmem:[#allocation12] ss:$0 sm:$0xff] }
 0x56e   : > { %v14633_v51 = vpop.eup %14632  ;;  %9849 = vst [vmem:[#allocation2 + $0x798] sm:$0xff] %v9475_v38  ;;  %v11338_v31 = vmul.f32 1.6732632, %v12806_v56  ;;  %12983 = vmatprep.subr.mxu1 %v15078_v45  ;;  %12999 = vmatprep.mubr.msk.f32.mxu1 %vm15079_vm15, %v15078_v45 }
 0x56f   : > { %v11345_v11 = vsel %vm11305_vm7, %v17024_v62, %v11337_v21  ;;  %v12807_v34 = vadd.f32 -1.0, %v14633_v51  ;;  %v11325_v50 = vmul.f32 1.442695, %v11303_v43  ;;  %v11237_v62 = vsel %vm10099_vm4, %v11234_v7, %v11236_v13 }
 0x570   : > { %v11346_v23 = vsel %vm11306_vm8, %v17026_v6, %v11338_v31  ;;  %v11353_v35 = vmul.f32 1.050701, %v11345_v11  ;;  %v11253_v48 = vadd.f32 %v11237_v62, %v11202_v55  ;;  %vm11311_vm13 = vcmp.gt.f32.partialorder %v11303_v43, 0.0 }
 0x571   : > { %v11354_v54 = vmul.f32 1.050701, %v11346_v23  ;;  %v11339_v37 = vmul.f32 1.6732632, %v12807_v34  ;;  %14640 = vpow2.f32 %v11325_v50  ;;  %vm11644_vm8 = vcmask 516096  }
 0x572   : > { %v14635_v60 = vpop.eup %14634 }
 0x573   : > { %v11361_v22 = vpack.c.bf16 %v11354_v54, %v11353_v35  ;;  %v12808_v16 = vadd.f32 -1.0, %v14635_v60  ;;  %v11347_v26 = vsel %vm11307_vm9, %v17036_v10, %v11339_v37 }
 0x574   : > { %v11355_v19 = vmul.f32 1.050701, %v11347_v26 }
 0x575   : > { %12975 = vmatprep.mubr.bf16.mxu0 %v11361_v22  ;;  %v11340_v6 = vmul.f32 1.6732632, %v12808_v16  ;;  %v11262_v18 = vld [vmem:[#allocation2 + $0x798] sm:$0x3f] }
 0x576   : > { %v14637_v1 = vpop.eup %14636  ;;  %v11287_v39 = vrot.slane %v11262_v18, 6 }
 0x577   : > { %v11348_v33 = vsel %vm11308_vm10, %v17045_v15, %v11340_v6  ;;  %v12809_v41 = vadd.f32 -1.0, %v14637_v1 }
 0x578   : > { %v11356_v52 = vmul.f32 1.050701, %v11348_v33  ;;  %v11288_v12 = vsel %vm10151_vm5, %v11285_v46, %v11287_v39 }
 0x579   : > { %v11341_v58 = vmul.f32 1.6732632, %v12809_v41  ;;  %v11304_v7 = vadd.f32 %v11288_v12, %v11253_v48 }
 0x57a   : > { %v14639_v32 = vpop.eup %14638  ;;  %v11362_v2 = vpack.c.bf16 %v11356_v52, %v11355_v19 }
 0x57b   : > { %v12810_v8 = vadd.f32 -1.0, %v14639_v32  ;;  %v11327_v10 = vmul.f32 1.442695, %v11304_v7  ;;  %v11349_v36 = vsel %vm11309_vm11, %v17058_v0, %v11341_v58  ;;  %vm11312_vm14 = vcmp.gt.f32.partialorder %v11304_v7, 0.0 }
 0x57c   : > { %12976 = vmatmul.mubr.bf16.vlgmr.msra.gmra.mxu0 %v11362_v2  ;;  %v11357_v40 = vmul.f32 1.050701, %v11349_v36 }
 0x57d   : > { %v11342_v9 = vmul.f32 1.6732632, %v12810_v8  ;;  %14642 = vpow2.f32 %v11327_v10 }
 0x57e   : > { %v14641_v59 = vpop.eup %14640 }
 0x57f   : > { %v11350_v15 = vsel %vm11310_vm12, %v17072_v57, %v11342_v9  ;;  %v12811_v25 = vadd.f32 -1.0, %v14641_v59  ;;  %v11558_v57 = vld [vmem:[#allocation3] sm:$0x1] }
 0x580   : > { %v11358_v17 = vmul.f32 1.050701, %v11350_v15  ;;  %11561 = vperm.xlu0 %13111, %v11558_v57  }
 0x581   : > { %v11343_v47 = vmul.f32 1.6732632, %v12811_v25 }
 0x582   : > { %v11363_v29 = vpack.c.bf16 %v11358_v17, %v11357_v40 }
 0x583   : > { %v11351_v20 = vsel %vm11311_vm13, %v11303_v43, %v11343_v47 }
 0x584   : > { %12979 = vmatprep.mubr.bf16.mxu0 %v11363_v29  ;;  %v11359_v0 = vmul.f32 1.050701, %v11351_v20 }
 0x58a   : > { %v14643_v4 = vpop.eup %14642 }
 0x58b   : > { %v12812_v42 = vadd.f32 -1.0, %v14643_v4 }
 0x58d   : > { %v11344_v44 = vmul.f32 1.6732632, %v12812_v42 }
 0x58f   : > { %v11352_v46 = vsel %vm11312_vm14, %v11304_v7, %v11344_v44 }
 0x590   : > { %v11360_v49 = vmul.f32 1.050701, %v11352_v46 }
 0x592   : > { %v11364_v61 = vpack.c.bf16 %v11360_v49, %v11359_v0 }
 0x594   : > { %12980 = vmatmul.mubr.bf16.gmra.mxu0 %v11364_v61 }
 0x63c   : > { %v12977_v28 = vpop.f32.mrf.mxu0 }
 0x63d   : > { %v11479_v54 = vadd.f32 %v12977_v28, %v12813_v27 }
 0x63e   : > { %v11470_v38 = vpop.f32.mrf.mxu0 }
 0x63f   : > { %v11513_v30 = vmul.f32 1.442695, %v11479_v54  ;;  %v17104_v22 = vadd.f32 %v12813_v27, %v11470_v38  ;;  %vm11503_vm5 = vcmp.gt.f32.partialorder %v11479_v54, 0.0 }
 0x640   : > { %v12978_v56 = vpop.f32.mrf.mxu0 }
 0x641   : > { %v11482_v35 = vadd.f32 %v12978_v56, %v12813_v27  ;;  %v11509_v18 = vmul.f32 1.442695, %v17104_v22  ;;  %vm11501_vm7 = vcmp.gt.f32.partialorder %v17104_v22, 0.0  ;;  %v11557_v56 = vld [vmem:[#allocation13] sm:$0x1] }
 0x642   : > { %v11473_v63 = vpop.f32.mrf.mxu0 }
 0x643   : > { %v11515_v37 = vmul.f32 1.442695, %v11482_v35  ;;  %v11474_v50 = vadd.f32 %v12813_v27, %v11473_v63  ;;  %vm11504_vm4 = vcmp.gt.f32.partialorder %v11482_v35, 0.0  ;;  %v11564_v63 = vlaneseq }
 0x645   : > { %v11511_v16 = vmul.f32 1.442695, %v11474_v50  ;;  %vm11502_vm6 = vcmp.gt.f32.partialorder %v11474_v50, 0.0 }
 0x654   : > { %v12981_v21 = vpop.f32.mrf.mxu0 }
 0x655   : > { %v11495_v24 = vadd.f32 %v12981_v21, %v12813_v27 }
 0x656   : > { %v11486_v5 = vpop.f32.mrf.mxu0 }
 0x657   : > { %v11521_v43 = vmul.f32 1.442695, %v11495_v24  ;;  %v11487_v31 = vadd.f32 %v12813_v27, %v11486_v5  ;;  %vm11507_vm1 = vcmp.gt.f32.partialorder %v11495_v24, 0.0 }
 0x658   : > { %v12982_v51 = vpop.f32.mrf.mxu0 }
 0x659   : > { %14644 = vpow2.f32 %v11521_v43  ;;  %v11498_v53 = vadd.f32 %v12982_v51, %v12813_v27  ;;  %v11517_v3 = vmul.f32 1.442695, %v11487_v31  ;;  %vm11505_vm3 = vcmp.gt.f32.partialorder %v11487_v31, 0.0 }
 0x65a   : > { %v11489_v11 = vpop.f32.mrf.mxu0 }
 0x65b   : > { %v11523_v34 = vmul.f32 1.442695, %v11498_v53  ;;  %v11490_v23 = vadd.f32 %v12813_v27, %v11489_v11  ;;  %vm11508_vm0 = vcmp.gt.f32.partialorder %v11498_v53, 0.0  ;;  %v11565_v27 = vshrl.u32 %v11564_v63, 7 }
 0x65d   : > { %14646 = vpow2.f32 %v11523_v34  ;;  %v11519_v13 = vmul.f32 1.442695, %v11490_v23  ;;  %vm11506_vm2 = vcmp.gt.f32.partialorder %v11490_v23, 0.0  ;;  %v11566_v21 = vsub.s32 0, %v11565_v27 }
 0x65f   : > { %14648 = vpow2.f32 %v11519_v13 }
 0x660   : > { %14650 = vpow2.f32 %v11517_v3 }
 0x661   : > { %14652 = vpow2.f32 %v11515_v37 }
 0x662   : > { %14654 = vpow2.f32 %v11513_v30 }
 0x663   : > { %14656 = vpow2.f32 %v11511_v16 }
 0x664   : > { %14658 = vpow2.f32 %v11509_v18 }
 0x666   : > { %v14645_v60 = vpop.eup %14644 }
 0x667   : > { %v12828_v55 = vadd.f32 -1.0, %v14645_v60 }
 0x669   : > { %v11539_v1 = vmul.f32 1.6732632, %v12828_v55 }
 0x66a   : > { %v14647_v62 = vpop.eup %14646 }
 0x66b   : > { %v12829_v6 = vadd.f32 -1.0, %v14647_v62  ;;  %v11547_v52 = vsel %vm11507_vm1, %v11495_v24, %v11539_v1  ;;  %v11562_v24 = vpop.permute.xlu0 %11561 }
 0x66c   : > { %v14649_v26 = vpop.eup %14648  ;;  %v11555_v32 = vmul.f32 1.050701, %v11547_v52  ;;  %v11567_v5 = vrot.slane %v11562_v24, %v11566_v21 }
 0x66d   : > { %v11540_v39 = vmul.f32 1.6732632, %v12829_v6  ;;  %v12827_v33 = vadd.f32 -1.0, %v14649_v26  ;;  %v14651_v41 = vpop.eup %14650 }
 0x66e   : > { %v12826_v12 = vadd.f32 -1.0, %v14651_v41  ;;  %v14653_v7 = vpop.eup %14652 }
 0x66f   : > { %v11548_v48 = vsel %vm11508_vm0, %v11498_v53, %v11540_v39  ;;  %v11538_v58 = vmul.f32 1.6732632, %v12827_v33  ;;  %v12825_v2 = vadd.f32 -1.0, %v14653_v7  ;;  %v14655_v9 = vpop.eup %14654 }
 0x670   : > { %v11556_v19 = vmul.f32 1.050701, %v11548_v48  ;;  %v11537_v8 = vmul.f32 1.6732632, %v12826_v12  ;;  %v12824_v15 = vadd.f32 -1.0, %v14655_v9  ;;  %v14657_v59 = vpop.eup %14656 }
 0x671   : > { %v11546_v10 = vsel %vm11506_vm2, %v11490_v23, %v11538_v58  ;;  %v11536_v40 = vmul.f32 1.6732632, %v12825_v2  ;;  %v12823_v4 = vadd.f32 -1.0, %v14657_v59  ;;  %v14659_v42 = vpop.eup %14658 }
 0x672   : > { %12984 = vmatpush3.xpose.msra.mxu1 %v11556_v19  ;;  %v11554_v36 = vmul.f32 1.050701, %v11546_v10  ;;  %v11545_v17 = vsel %vm11505_vm3, %v11487_v31, %v11537_v8  ;;  %v11535_v25 = vmul.f32 1.6732632, %v12824_v15  ;;  %v12822_v46 = vadd.f32 -1.0, %v14659_v42 }
 0x673   : > { %12985 = vmatprep.subr.mxu1 %v15078_v45  ;;  %v11553_v29 = vmul.f32 1.050701, %v11545_v17  ;;  %v11544_v47 = vsel %vm11504_vm4, %v11482_v35, %v11536_v40  ;;  %v11534_v0 = vmul.f32 1.6732632, %v12823_v4 }
 0x674   : > { %v11552_v44 = vmul.f32 1.050701, %v11544_v47  ;;  %v11543_v20 = vsel %vm11503_vm5, %v11479_v54, %v11535_v25  ;;  %v11533_v61 = vmul.f32 1.6732632, %v12822_v46 }
 0x675   : > { %v11551_v49 = vmul.f32 1.050701, %v11543_v20  ;;  %v11542_v57 = vsel %vm11502_vm6, %v11474_v50, %v11534_v0 }
 0x676   : > { %12986 = vmatpush3.xpose.msra.mxu1 %v11555_v32  ;;  %v11550_v14 = vmul.f32 1.050701, %v11542_v57  ;;  %v11541_v28 = vsel %vm11501_vm7, %v17104_v22, %v11533_v61 }
 0x677   : > { %12987 = vmatprep.subr.mxu1 %v15078_v45  ;;  %v11549_v38 = vmul.f32 1.050701, %v11541_v28 }
 0x67a   : > { %12988 = vmatpush3.xpose.msra.mxu1 %v11554_v36 }
 0x67b   : > { %12989 = vmatprep.subr.mxu1 %v15078_v45 }
 0x67e   : > { %12990 = vmatpush3.xpose.msra.mxu1 %v11553_v29 }
 0x67f   : > { %12991 = vmatprep.subr.mxu1 %v15078_v45 }
 0x682   : > { %12992 = vmatpush3.xpose.msra.mxu1 %v11552_v44 }
 0x683   : > { %12993 = vmatprep.subr.mxu1 %v15078_v45 }
 0x686   : > { %12994 = vmatpush3.xpose.msra.mxu1 %v11551_v49 }
 0x687   : > { %12995 = vmatprep.subr.mxu1 %v15078_v45 }
 0x68a   : > { %12996 = vmatpush3.xpose.msra.mxu1 %v11550_v14 }
 0x68b   : > { %12997 = vmatprep.subr.mxu1 %v15078_v45 }
 0x68e   : > { %12998 = vmatpush3.xpose.msra.mxu1 %v11549_v38 }
 0x691   : > { %13000 = vmatmul.mubr.f32.vlgmr.msra.gmra.mxu1 %v11557_v56 }
 0x751   : > { %v11634_v43 = vpop.f32.mrf.mxu1 }
 0x752   : > { %v11635_v51 = vadd.f32 %v11634_v43, %v11567_v5 }
 0x753   : > { %v13001_v31 = vpop.f32.mrf.mxu1 }
 0x754   : > { %v12830_v53 = vmul.f32 -1.442695, %v11635_v51 }
 0x756   : > { %14660 = vpow2.f32 %v12830_v53 }
 0x763   : > { %v14661_v11 = vpop.eup %14660 }
 0x764   : > { %v11641_v45 = vadd.f32 1.0, %v14661_v11 }
 0x766   : > { %14662 = vrcp.f32 %v11641_v45 }
 0x773   : > { %v14663_v34 = vpop.eup %14662 }
 0x774   : > { %11645 = vst.msk [vmem:[%s364_s13] sm:$0x1] %vm11644_vm8, %v14663_v34 }
 0x775   : > { %15001 = shalt.err (!%p14998_p3)
}
 0x776   : > { %s15002_s30 = scalar_lea.hbm %s17121_s25, 16  ;;  %s15006_s14 = scalar_lea.hbm %s17165_s7, 32 }
 0x777   : > { %p15003_p9 = scmp.ne.s32.totalorder %s17121_s25, %s15002_s30  ;;  %p15007_p0 = scmp.lt.s32.totalorder %s17121_s25, %s17165_s7 }
 0x778   : > { %p15008_p13 = scmp.lt.s32.totalorder %s15006_s14, %s15002_s30 }
 0x779   : > { %p15004_p6 = pnand %p15003_p9, %p17186_p8 }
 0x77a   : > { %p15009_p2 = por %p15008_p13, %p15007_p0 }
 0x77b   : > { %p15005_p12 = pneg %p15004_p6 }
 0x77d   : > { %p15010_p5 = pnand %p15009_p2, %p15005_p12 }
 0x77f   : > { %15013 = shalt.err (!%p15010_p5)
}
 0x780   : > { %13027 = dma.vmem_to_hbm [thread:$0]  (%p17186_p8), %s11660_s19, 16, %s17121_s25, %s11647_s18  }
 0x781 PF: > { %s11671_s13 = sand.u32 1, %s15052_s26   ;;  %p17187_p10 = scmp.ne.s32.totalorder %s17176_s17, 0 }
 0x782   : > { %p17188_p11 = scmp.ge.s32.totalorder %s15064_s29, 2  ;;  %s11672_s22 = scalar_lea.sflag [#allocation6], %s11671_s13 }
 0x784   : > { %p13050_p1 = pnand %p17188_p11, %p17187_p10 }
 0x786   : > { %p13051_p7 = pneg %p13050_p1 }
 0x788   : > { %15047 = dma.done.wait (%p13051_p7), %s11672_s22, 16  }
 0x789   : > { %15049 = vsyncadd (%p13051_p7), %s11672_s22, 4294967280  ;;  %p25_p4 = scmp.ge.s32.totalorder %s15217_s12, 4   ;;  %s17189_s26 = smov %s15056_s27 }
 0x78a   : > { %s17190_s27 = smov %s15060_s28  ;;  %s17191_s28 = smov %s15229_s10 }
 0x78b   : > { %s17192_s29 = smov %s15217_s12  ;;  %27 = sbr.rel (!%p25_p4) target bundleno = 11 (0xb), region = 113 }
 0x790   :  { %11676 = vsyncpa [#allocation5], 1 }
 0x791   :  { %11678 = vsyncpa [#allocation5 + $0x1], 1 }
 0x792   :  { %11679 = vsyncpa [#allocation8], 1 }
 0x793   :  { %11680 = vsyncpa [#allocation11], 1 }
 0x794   :  { %11681 = vsyncpa [#allocation14], 1 }
 0x795   :  { %11682 = vsyncpa [#allocation6], 1 }
 0x796   :  { %11684 = vsyncpa [#allocation6 + $0x1], 1 }

</bundles_post_ra>
